<compile_context>
chip_gen: v5e
topology: v5e:2x2
jax: 0.10.0
libtpu: 0.0.40
codegen_flags: <defaults>
</compile_context>

<pallas_src>
import functools

import jax
import jax.numpy as jnp
from jax.experimental import pallas as pl
from jax.experimental.pallas import tpu as pltpu

LN_EPS = 1e-5        # PyTorch nn.LayerNorm default
ATTN_EPS = 1e-8      # SlotAttention epsilon


def _layernorm(h, g, b):
    mu = jnp.mean(h, axis=-1, keepdims=True)
    var = jnp.mean(jnp.square(h - mu), axis=-1, keepdims=True)
    return (h - mu) * jax.lax.rsqrt(var + LN_EPS) * g + b


def _slot_attention_kernel(
    # data
    inputs_ref,        # (Bt, N, F)
    slots_init_ref,    # (Bt, S, D)
    vecs_ref,          # (num_vecs, padw) -- all 1-D params, lane-padded
    # weights (in, out)
    wk_ref, wv_ref, wq_ref,
    w_ih_r_ref, w_ih_z_ref, w_ih_n_ref,
    w_hh_r_ref, w_hh_z_ref, w_hh_n_ref,
    w1_ref, w2_ref,
    # output
    out_ref,           # (Bt, S, D)
    *, num_iterations, bt, n_in, f_in, n_slots, d_slot, vec_slots,
):
    f32 = jnp.float32

    # ---- unpack small parameter vectors ONCE (hoisted out of the unrolled loop) ----
    vecs = vecs_ref[...]

    def vec(name):
        row, dim = vec_slots[name]
        return vecs[row:row + 1, :dim]                      # (1, dim)

    ln_in_g, ln_in_b = vec("ln_in_g"), vec("ln_in_b")
    ln_s_g, ln_s_b = vec("ln_s_g"), vec("ln_s_b")
    ln_m_g, ln_m_b = vec("ln_m_g"), vec("ln_m_b")
    b1, b2 = vec("b1"), vec("b2")
    mu, log_sigma = vec("mu"), vec("log_sigma")
    b_ih_r, b_ih_z, b_ih_n = vec("b_ih_r"), vec("b_ih_z"), vec("b_ih_n")
    b_hh_r, b_hh_z, b_hh_n = vec("b_hh_r"), vec("b_hh_z"), vec("b_hh_n")

    wk, wv, wq = wk_ref[...], wv_ref[...], wq_ref[...]
    w_ih_r, w_ih_z, w_ih_n = w_ih_r_ref[...], w_ih_z_ref[...], w_ih_n_ref[...]
    w_hh_r, w_hh_z, w_hh_n = w_hh_r_ref[...], w_hh_z_ref[...], w_hh_n_ref[...]
    w1, w2 = w1_ref[...], w2_ref[...]

    # ---- shared k/v projections over the whole batch block (flattened M axis) ----
    x = inputs_ref[...].reshape(bt * n_in, f_in)            # leading-dim merge: cheap
    xn = _layernorm(x, ln_in_g, ln_in_b)                    # norm_inputs
    k = jnp.dot(xn, wk, preferred_element_type=f32).reshape(bt, n_in, d_slot)
    v = jnp.dot(xn, wv, preferred_element_type=f32).reshape(bt, n_in, d_slot)

    # slots = mu + exp(log_sigma) * normal_init
    slots = mu + jnp.exp(log_sigma) * slots_init_ref[...].reshape(bt * n_slots, d_slot)
    scale = d_slot ** -0.5

    # num_iterations regular steps + 1 extra step on detached slots (detach is a no-op fwd).
    for _ in range(num_iterations + 1):
        slots_prev = slots                                   # (Bt*S, D)

        # norm_slots -> q (flattened M axis)
        sn = _layernorm(slots, ln_s_g, ln_s_b)
        q = (jnp.dot(sn, wq, preferred_element_type=f32) * scale).reshape(bt, n_slots, d_slot)

        # attention logits in (b, S, N) layout: softmax over slots (axis=1, sublane reduce),
        # weighted-mean renorm over inputs (axis=-1, lane reduce); no transposes needed.
        logits = jnp.einsum("bsd,bnd->bsn", q, k, preferred_element_type=f32)
        logits = logits - jnp.max(logits, axis=1, keepdims=True)
        e = jnp.exp(logits)
        attn = e * pl.reciprocal(jnp.sum(e, axis=1, keepdims=True), approx=True)

        attn = attn + ATTN_EPS
        attn = attn * pl.reciprocal(jnp.sum(attn, axis=-1, keepdims=True), approx=True)
        updates = jnp.einsum("bsn,bnd->bsd", attn, v,
                             preferred_element_type=f32).reshape(bt * n_slots, d_slot)

        # GRUCell(updates, slots_prev) with per-gate (D, D) weights (lane-aligned outputs).
        r = jax.nn.sigmoid(
            jnp.dot(updates, w_ih_r, preferred_element_type=f32) + b_ih_r
            + jnp.dot(slots_prev, w_hh_r, preferred_element_type=f32) + b_hh_r)
        z = jax.nn.sigmoid(
            jnp.dot(updates, w_ih_z, preferred_element_type=f32) + b_ih_z
            + jnp.dot(slots_prev, w_hh_z, preferred_element_type=f32) + b_hh_z)
        gn_i = jnp.dot(updates, w_ih_n, preferred_element_type=f32) + b_ih_n
        gn_h = jnp.dot(slots_prev, w_hh_n, preferred_element_type=f32) + b_hh_n
        ng = jnp.tanh(gn_i + r * gn_h)
        slots = (1.0 - z) * ng + z * slots_prev

        # residual MLP on norm_mlp(slots)
        mn = _layernorm(slots, ln_m_g, ln_m_b)
        h1 = jnp.maximum(jnp.dot(mn, w1, preferred_element_type=f32) + b1, 0.0)
        slots = slots + jnp.dot(h1, w2, preferred_element_type=f32) + b2

    # Output kept (Bt, S, D): leading-dim split only (cheap). A (Bt, S*D) lane-dense store was
    # evaluated but needs a sublane->lane relayout that costs >= the masked-store savings here.
    out_ref[...] = slots.reshape(bt, n_slots, d_slot)


def slot_attention_forward(inputs, slots_init, params, num_iterations, block_b=None):
    B, N, F = inputs.shape
    S, D = slots_init.shape[1], slots_init.shape[2]

    if block_b is None:
        # Several batch elements per grid step to amortize per-step overhead and fill the MXU,
        # but keep >= 2 grid steps so both TensorCores get work (v7x megacore).
        target = max(1, min(B // 2 if B >= 2 else 1, 16))
        block_b = max(d for d in range(1, target + 1) if B % d == 0)
    assert B % block_b == 0, "batch must be divisible by the batch block"
    bt = block_b
    grid = (B // bt,)

    # Split fused GRU weights/biases into per-gate blocks (PyTorch gate order r, z, n).
    w_ih, w_hh = params["w_ih"], params["w_hh"]
    b_ih, b_hh = params["b_ih"], params["b_hh"]
    weights = [
        params["wk"], params["wv"], params["wq"],
        w_ih[:, :D], w_ih[:, D:2 * D], w_ih[:, 2 * D:],
        w_hh[:, :D], w_hh[:, D:2 * D], w_hh[:, 2 * D:],
        params["w1"], params["w2"],
    ]

    # Pack all small 1-D params into ONE lane-padded (num_vecs, padw) array:
    # one DMA instead of ~16 tiny ones, aligned static slices in-kernel.
    vec_dict = {
        "ln_in_g": params["ln_in_g"], "ln_in_b": params["ln_in_b"],
        "ln_s_g": params["ln_s_g"], "ln_s_b": params["ln_s_b"],
        "ln_m_g": params["ln_m_g"], "ln_m_b": params["ln_m_b"],
        "b1": params["b1"], "b2": params["b2"],
        "mu": params["mu"], "log_sigma": params["log_sigma"],
        "b_ih_r": b_ih[:D], "b_ih_z": b_ih[D:2 * D], "b_ih_n": b_ih[2 * D:],
        "b_hh_r": b_hh[:D], "b_hh_z": b_hh[D:2 * D], "b_hh_n": b_hh[2 * D:],
    }
    maxlen = max(int(v.shape[0]) for v in vec_dict.values())
    padw = ((maxlen + 127) // 128) * 128
    vecs = jnp.stack([jnp.pad(v.astype(jnp.float32), (0, padw - int(v.shape[0])))
                      for v in vec_dict.values()])
    vec_slots = {name: (i, int(v.shape[0]))
                 for i, (name, v) in enumerate(vec_dict.items())}

    def full_spec(arr):
        nd = arr.ndim
        return pl.BlockSpec(arr.shape, lambda b, _nd=nd: (0,) * _nd)

    in_specs = ([pl.BlockSpec((bt, N, F), lambda b: (b, 0, 0)),
                 pl.BlockSpec((bt, S, D), lambda b: (b, 0, 0)),
                 full_spec(vecs)]
                + [full_spec(w) for w in weights])

    kernel = functools.partial(
        _slot_attention_kernel,
        num_iterations=num_iterations, bt=bt, n_in=N, f_in=F,
        n_slots=S, d_slot=D, vec_slots=vec_slots)

    return pl.pallas_call(
        kernel,
        out_shape=jax.ShapeDtypeStruct((B, S, D), jnp.float32),
        grid_spec=pltpu.PrefetchScalarGridSpec(
            num_scalar_prefetch=0,
            grid=grid,
            in_specs=in_specs,
            out_specs=pl.BlockSpec((bt, S, D), lambda b: (b, 0, 0)),
        ),
        compiler_params=pltpu.CompilerParams(
            dimension_semantics=("parallel",)),
    )(inputs, slots_init, vecs, *weights)


def slot_attention_reference(inputs, slots_init, p, num_iterations):
    """Pure-JAX reference mirroring the PyTorch forward pass."""
    def ln(h, g, b):
        mu = jnp.mean(h, -1, keepdims=True)
        var = jnp.mean((h - mu) ** 2, -1, keepdims=True)
        return (h - mu) / jnp.sqrt(var + LN_EPS) * g + b

    x = ln(inputs, p["ln_in_g"], p["ln_in_b"])
    k = x @ p["wk"]
    v = x @ p["wv"]
    slots = p["mu"] + jnp.exp(p["log_sigma"]) * slots_init
    D = slots.shape[-1]
    for _ in range(num_iterations + 1):
        sp = slots
        sn = ln(slots, p["ln_s_g"], p["ln_s_b"])
        q = sn @ p["wq"] * D ** -0.5
        logits = jnp.einsum("bnd,bsd->bns", k, q)
        attn = jax.nn.softmax(logits, -1)
        attn = attn + ATTN_EPS
        attn = attn / jnp.sum(attn, axis=1, keepdims=True)
        updates = jnp.einsum("bns,bnd->bsd", attn, v)
        gx = updates @ p["w_ih"] + p["b_ih"]
        gh = sp @ p["w_hh"] + p["b_hh"]
        r = jax.nn.sigmoid(gx[..., :D] + gh[..., :D])
        z = jax.nn.sigmoid(gx[..., D:2 * D] + gh[..., D:2 * D])
        n = jnp.tanh(gx[..., 2 * D:] + r * gh[..., 2 * D:])
        slots = (1.0 - z) * n + z * sp
        mn = ln(slots, p["ln_m_g"], p["ln_m_b"])
        slots = slots + jnp.maximum(mn @ p["w1"] + p["b1"], 0.0) @ p["w2"] + p["b2"]
    return slots


def make_params(key, in_features, slot_size, mlp_hidden_size):
    F, D, H = in_features, slot_size, mlp_hidden_size
    ks = jax.random.split(key, 12)

    def w(k, shape, fan_in):
        return jax.random.normal(k, shape, jnp.float32) * (1.0 / fan_in) ** 0.5

    bound = (6.0 / (2.0 * D)) ** 0.5  # xavier_uniform on (1,1,D)
    return {
        "ln_in_g": jnp.ones((F,), jnp.float32), "ln_in_b": jnp.zeros((F,), jnp.float32),
        "wk": w(ks[0], (F, D), F), "wv": w(ks[1], (F, D), F),
        "ln_s_g": jnp.ones((D,), jnp.float32), "ln_s_b": jnp.zeros((D,), jnp.float32),
        "wq": w(ks[2], (D, D), D),
        "w_ih": w(ks[3], (D, 3 * D), D), "w_hh": w(ks[4], (D, 3 * D), D),
        "b_ih": 0.01 * jax.random.normal(ks[5], (3 * D,), jnp.float32),
        "b_hh": 0.01 * jax.random.normal(ks[6], (3 * D,), jnp.float32),
        "ln_m_g": jnp.ones((D,), jnp.float32), "ln_m_b": jnp.zeros((D,), jnp.float32),
        "w1": w(ks[7], (D, H), D), "b1": jnp.zeros((H,), jnp.float32),
        "w2": w(ks[8], (H, D), H), "b2": jnp.zeros((D,), jnp.float32),
        "mu": jax.random.uniform(ks[9], (D,), jnp.float32, -bound, bound),
        "log_sigma": jax.random.uniform(ks[10], (D,), jnp.float32, -bound, bound),
    }


if __name__ == "__main__":
    # Small but representative shapes: B=8, N=64 tokens (8x8 flattened), F=32 features,
    # S=8 slots, D=32 slot_size, H=64 mlp hidden, 3 iterations (+1 detached step).
    # Batch blocking picks Bt=4 -> grid=(2,) so both TCs get work on megacore parts.
    B, N, F = 8, 64, 32
    S, D, H = 8, 32, 64
    NUM_ITERS = 3

    key = jax.random.PRNGKey(0)
    k_in, k_slots, k_par = jax.random.split(key, 3)

    inputs = jax.random.normal(k_in, (B, N, F), jnp.float32)
    # TODO(synk): torch's slots_init.normal_() has no in-kernel torch-RNG equivalent;
    # the noise is drawn with jax.random in the wrapper and passed in.
    slots_init = jax.random.normal(k_slots, (B, S, D), jnp.float32)
    params = make_params(k_par, F, D, H)

    out = slot_attention_forward(inputs, slots_init, params, NUM_ITERS)
    out = jax.block_until_ready(out)

    ref = slot_attention_reference(inputs, slots_init, params, NUM_ITERS)
    assert out.shape == (B, S, D)
    err = float(jnp.max(jnp.abs(out - ref)))
    # Tolerance slightly loosened vs f32 reference because the softmax / weighted-mean path
    # uses pl.reciprocal(approx=True) (EUP estimate) per the perf review.
    assert jnp.allclose(out, ref, rtol=3e-3, atol=3e-3), f"max abs err = {err}"

    print("KERNEL_OK")
</pallas_src>

<mosaic_0001>
module attributes {stable_mosaic.version = 11 : i64} {
  func.func @_slot_attention_kernel(%arg0: i32, %arg1: memref<4x64x32xf32, #tpu.memory_space<vmem>>, %arg2: memref<4x8x32xf32, #tpu.memory_space<vmem>>, %arg3: memref<16x128xf32, #tpu.memory_space<vmem>>, %arg4: memref<32x32xf32, #tpu.memory_space<vmem>>, %arg5: memref<32x32xf32, #tpu.memory_space<vmem>>, %arg6: memref<32x32xf32, #tpu.memory_space<vmem>>, %arg7: memref<32x32xf32, #tpu.memory_space<vmem>>, %arg8: memref<32x32xf32, #tpu.memory_space<vmem>>, %arg9: memref<32x32xf32, #tpu.memory_space<vmem>>, %arg10: memref<32x32xf32, #tpu.memory_space<vmem>>, %arg11: memref<32x32xf32, #tpu.memory_space<vmem>>, %arg12: memref<32x32xf32, #tpu.memory_space<vmem>>, %arg13: memref<32x64xf32, #tpu.memory_space<vmem>>, %arg14: memref<64x32xf32, #tpu.memory_space<vmem>>, %arg15: memref<4x8x32xf32, #tpu.memory_space<vmem>>) attributes {dimension_semantics = [#tpu.dimension_semantics<parallel>], iteration_bounds = array<i64: 2>, scalar_prefetch = 0 : i64, scratch_operands = 0 : i64, tpu.core_type = #tpu.core_type<tc>, window_params = [{transform_indices = @transform_0, window_bounds = array<i64: 4, 64, 32>}, {transform_indices = @transform_1, window_bounds = array<i64: 4, 8, 32>}, {pipeline_mode = #tpu.pipeline_mode<synchronous>, transform_indices = @transform_2, window_bounds = array<i64: 16, 128>}, {pipeline_mode = #tpu.pipeline_mode<synchronous>, transform_indices = @transform_3, window_bounds = array<i64: 32, 32>}, {pipeline_mode = #tpu.pipeline_mode<synchronous>, transform_indices = @transform_4, window_bounds = array<i64: 32, 32>}, {pipeline_mode = #tpu.pipeline_mode<synchronous>, transform_indices = @transform_5, window_bounds = array<i64: 32, 32>}, {pipeline_mode = #tpu.pipeline_mode<synchronous>, transform_indices = @transform_6, window_bounds = array<i64: 32, 32>}, {pipeline_mode = #tpu.pipeline_mode<synchronous>, transform_indices = @transform_7, window_bounds = array<i64: 32, 32>}, {pipeline_mode = #tpu.pipeline_mode<synchronous>, transform_indices = @transform_8, window_bounds = array<i64: 32, 32>}, {pipeline_mode = #tpu.pipeline_mode<synchronous>, transform_indices = @transform_9, window_bounds = array<i64: 32, 32>}, {pipeline_mode = #tpu.pipeline_mode<synchronous>, transform_indices = @transform_10, window_bounds = array<i64: 32, 32>}, {pipeline_mode = #tpu.pipeline_mode<synchronous>, transform_indices = @transform_11, window_bounds = array<i64: 32, 32>}, {pipeline_mode = #tpu.pipeline_mode<synchronous>, transform_indices = @transform_12, window_bounds = array<i64: 32, 64>}, {pipeline_mode = #tpu.pipeline_mode<synchronous>, transform_indices = @transform_13, window_bounds = array<i64: 64, 32>}, {transform_indices = @transform_14, window_bounds = array<i64: 4, 8, 32>}]} {
    %c0 = arith.constant 0 : index
    %c0_0 = arith.constant 0 : index
    %0 = vector.load %arg3[%c0, %c0_0] : memref<16x128xf32, #tpu.memory_space<vmem>>, vector<16x128xf32>
    %1 = vector.extract_strided_slice %0 {offsets = [0, 0], sizes = [1, 32], strides = [1, 1]} : vector<16x128xf32> to vector<1x32xf32>
    %2 = vector.extract_strided_slice %0 {offsets = [1, 0], sizes = [1, 32], strides = [1, 1]} : vector<16x128xf32> to vector<1x32xf32>
    %3 = vector.extract_strided_slice %0 {offsets = [2, 0], sizes = [1, 32], strides = [1, 1]} : vector<16x128xf32> to vector<1x32xf32>
    %4 = vector.extract_strided_slice %0 {offsets = [3, 0], sizes = [1, 32], strides = [1, 1]} : vector<16x128xf32> to vector<1x32xf32>
    %5 = vector.extract_strided_slice %0 {offsets = [4, 0], sizes = [1, 32], strides = [1, 1]} : vector<16x128xf32> to vector<1x32xf32>
    %6 = vector.extract_strided_slice %0 {offsets = [5, 0], sizes = [1, 32], strides = [1, 1]} : vector<16x128xf32> to vector<1x32xf32>
    %7 = vector.extract_strided_slice %0 {offsets = [6, 0], sizes = [1, 64], strides = [1, 1]} : vector<16x128xf32> to vector<1x64xf32>
    %8 = vector.extract_strided_slice %0 {offsets = [7, 0], sizes = [1, 32], strides = [1, 1]} : vector<16x128xf32> to vector<1x32xf32>
    %9 = vector.extract_strided_slice %0 {offsets = [8, 0], sizes = [1, 32], strides = [1, 1]} : vector<16x128xf32> to vector<1x32xf32>
    %10 = vector.extract_strided_slice %0 {offsets = [9, 0], sizes = [1, 32], strides = [1, 1]} : vector<16x128xf32> to vector<1x32xf32>
    %11 = vector.extract_strided_slice %0 {offsets = [10, 0], sizes = [1, 32], strides = [1, 1]} : vector<16x128xf32> to vector<1x32xf32>
    %12 = vector.extract_strided_slice %0 {offsets = [11, 0], sizes = [1, 32], strides = [1, 1]} : vector<16x128xf32> to vector<1x32xf32>
    %13 = vector.extract_strided_slice %0 {offsets = [12, 0], sizes = [1, 32], strides = [1, 1]} : vector<16x128xf32> to vector<1x32xf32>
    %14 = vector.extract_strided_slice %0 {offsets = [13, 0], sizes = [1, 32], strides = [1, 1]} : vector<16x128xf32> to vector<1x32xf32>
    %15 = vector.extract_strided_slice %0 {offsets = [14, 0], sizes = [1, 32], strides = [1, 1]} : vector<16x128xf32> to vector<1x32xf32>
    %16 = vector.extract_strided_slice %0 {offsets = [15, 0], sizes = [1, 32], strides = [1, 1]} : vector<16x128xf32> to vector<1x32xf32>
    %c0_1 = arith.constant 0 : index
    %c0_2 = arith.constant 0 : index
    %17 = vector.load %arg4[%c0_1, %c0_2] : memref<32x32xf32, #tpu.memory_space<vmem>>, vector<32x32xf32>
    %c0_3 = arith.constant 0 : index
    %c0_4 = arith.constant 0 : index
    %18 = vector.load %arg5[%c0_3, %c0_4] : memref<32x32xf32, #tpu.memory_space<vmem>>, vector<32x32xf32>
    %c0_5 = arith.constant 0 : index
    %c0_6 = arith.constant 0 : index
    %19 = vector.load %arg6[%c0_5, %c0_6] : memref<32x32xf32, #tpu.memory_space<vmem>>, vector<32x32xf32>
    %c0_7 = arith.constant 0 : index
    %c0_8 = arith.constant 0 : index
    %20 = vector.load %arg7[%c0_7, %c0_8] : memref<32x32xf32, #tpu.memory_space<vmem>>, vector<32x32xf32>
    %c0_9 = arith.constant 0 : index
    %c0_10 = arith.constant 0 : index
    %21 = vector.load %arg8[%c0_9, %c0_10] : memref<32x32xf32, #tpu.memory_space<vmem>>, vector<32x32xf32>
    %c0_11 = arith.constant 0 : index
    %c0_12 = arith.constant 0 : index
    %22 = vector.load %arg9[%c0_11, %c0_12] : memref<32x32xf32, #tpu.memory_space<vmem>>, vector<32x32xf32>
    %c0_13 = arith.constant 0 : index
    %c0_14 = arith.constant 0 : index
    %23 = vector.load %arg10[%c0_13, %c0_14] : memref<32x32xf32, #tpu.memory_space<vmem>>, vector<32x32xf32>
    %c0_15 = arith.constant 0 : index
    %c0_16 = arith.constant 0 : index
    %24 = vector.load %arg11[%c0_15, %c0_16] : memref<32x32xf32, #tpu.memory_space<vmem>>, vector<32x32xf32>
    %c0_17 = arith.constant 0 : index
    %c0_18 = arith.constant 0 : index
    %25 = vector.load %arg12[%c0_17, %c0_18] : memref<32x32xf32, #tpu.memory_space<vmem>>, vector<32x32xf32>
    %c0_19 = arith.constant 0 : index
    %c0_20 = arith.constant 0 : index
    %26 = vector.load %arg13[%c0_19, %c0_20] : memref<32x64xf32, #tpu.memory_space<vmem>>, vector<32x64xf32>
    %c0_21 = arith.constant 0 : index
    %c0_22 = arith.constant 0 : index
    %27 = vector.load %arg14[%c0_21, %c0_22] : memref<64x32xf32, #tpu.memory_space<vmem>>, vector<64x32xf32>
    %c0_23 = arith.constant 0 : index
    %c0_24 = arith.constant 0 : index
    %c0_25 = arith.constant 0 : index
    %28 = vector.load %arg1[%c0_23, %c0_24, %c0_25] : memref<4x64x32xf32, #tpu.memory_space<vmem>>, vector<4x64x32xf32>
    %29 = vector.shape_cast %28 : vector<4x64x32xf32> to vector<256x32xf32>
    %cst = arith.constant dense<0.000000e+00> : vector<256xf32>
    %30 = vector.multi_reduction <add>, %29, %cst [1] : vector<256x32xf32> to vector<256xf32>
    %31 = vector.shape_cast %30 : vector<256xf32> to vector<256x1xf32>
    %cst_26 = arith.constant 3.200000e+01 : f32
    %32 = vector.broadcast %cst_26 : f32 to vector<256x1xf32>
    %33 = arith.divf %31, %32 : vector<256x1xf32>
    %34 = vector.broadcast %33 : vector<256x1xf32> to vector<256x32xf32>
    %35 = arith.subf %29, %34 : vector<256x32xf32>
    %36 = arith.mulf %35, %35 : vector<256x32xf32>
    %cst_27 = arith.constant dense<0.000000e+00> : vector<256xf32>
    %37 = vector.multi_reduction <add>, %36, %cst_27 [1] : vector<256x32xf32> to vector<256xf32>
    %38 = vector.shape_cast %37 : vector<256xf32> to vector<256x1xf32>
    %cst_28 = arith.constant 3.200000e+01 : f32
    %39 = vector.broadcast %cst_28 : f32 to vector<256x1xf32>
    %40 = arith.divf %38, %39 : vector<256x1xf32>
    %41 = vector.broadcast %33 : vector<256x1xf32> to vector<256x32xf32>
    %42 = arith.subf %29, %41 : vector<256x32xf32>
    %cst_29 = arith.constant 9.99999974E-6 : f32
    %43 = vector.broadcast %cst_29 : f32 to vector<256x1xf32>
    %44 = arith.addf %40, %43 : vector<256x1xf32>
    %45 = math.rsqrt %44 : vector<256x1xf32>
    %46 = vector.broadcast %45 : vector<256x1xf32> to vector<256x32xf32>
    %47 = arith.mulf %42, %46 : vector<256x32xf32>
    %48 = vector.broadcast %1 : vector<1x32xf32> to vector<256x32xf32>
    %49 = arith.mulf %47, %48 : vector<256x32xf32>
    %50 = vector.broadcast %2 : vector<1x32xf32> to vector<256x32xf32>
    %51 = arith.addf %49, %50 : vector<256x32xf32>
    %cst_30 = arith.constant dense<0.000000e+00> : vector<256x32xf32>
    %52 = tpu.matmul %51, %17, %cst_30 {dimension_numbers = #tpu.dot_dimension_numbers<[1], [0], [0], [1], [0, 0, 1, 1], [], []>} : vector<256x32xf32>, vector<32x32xf32>, vector<256x32xf32> -> vector<256x32xf32>
    %53 = vector.shape_cast %52 : vector<256x32xf32> to vector<4x64x32xf32>
    %cst_31 = arith.constant dense<0.000000e+00> : vector<256x32xf32>
    %54 = tpu.matmul %51, %18, %cst_31 {dimension_numbers = #tpu.dot_dimension_numbers<[1], [0], [0], [1], [0, 0, 1, 1], [], []>} : vector<256x32xf32>, vector<32x32xf32>, vector<256x32xf32> -> vector<256x32xf32>
    %55 = vector.shape_cast %54 : vector<256x32xf32> to vector<4x64x32xf32>
    %56 = math.exp %10 : vector<1x32xf32>
    %c0_32 = arith.constant 0 : index
    %c0_33 = arith.constant 0 : index
    %c0_34 = arith.constant 0 : index
    %57 = vector.load %arg2[%c0_32, %c0_33, %c0_34] : memref<4x8x32xf32, #tpu.memory_space<vmem>>, vector<4x8x32xf32>
    %58 = vector.shape_cast %57 : vector<4x8x32xf32> to vector<32x32xf32>
    %59 = vector.broadcast %56 : vector<1x32xf32> to vector<32x32xf32>
    %60 = arith.mulf %59, %58 : vector<32x32xf32>
    %61 = vector.broadcast %9 : vector<1x32xf32> to vector<32x32xf32>
    %62 = arith.addf %61, %60 : vector<32x32xf32>
    %cst_35 = arith.constant dense<0.000000e+00> : vector<32xf32>
    %63 = vector.multi_reduction <add>, %62, %cst_35 [1] : vector<32x32xf32> to vector<32xf32>
    %64 = vector.shape_cast %63 : vector<32xf32> to vector<32x1xf32>
    %cst_36 = arith.constant 3.200000e+01 : f32
    %65 = vector.broadcast %cst_36 : f32 to vector<32x1xf32>
    %66 = arith.divf %64, %65 : vector<32x1xf32>
    %67 = vector.broadcast %66 : vector<32x1xf32> to vector<32x32xf32>
    %68 = arith.subf %62, %67 : vector<32x32xf32>
    %69 = arith.mulf %68, %68 : vector<32x32xf32>
    %cst_37 = arith.constant dense<0.000000e+00> : vector<32xf32>
    %70 = vector.multi_reduction <add>, %69, %cst_37 [1] : vector<32x32xf32> to vector<32xf32>
    %71 = vector.shape_cast %70 : vector<32xf32> to vector<32x1xf32>
    %cst_38 = arith.constant 3.200000e+01 : f32
    %72 = vector.broadcast %cst_38 : f32 to vector<32x1xf32>
    %73 = arith.divf %71, %72 : vector<32x1xf32>
    %74 = vector.broadcast %66 : vector<32x1xf32> to vector<32x32xf32>
    %75 = arith.subf %62, %74 : vector<32x32xf32>
    %cst_39 = arith.constant 9.99999974E-6 : f32
    %76 = vector.broadcast %cst_39 : f32 to vector<32x1xf32>
    %77 = arith.addf %73, %76 : vector<32x1xf32>
    %78 = math.rsqrt %77 : vector<32x1xf32>
    %79 = vector.broadcast %78 : vector<32x1xf32> to vector<32x32xf32>
    %80 = arith.mulf %75, %79 : vector<32x32xf32>
    %81 = vector.broadcast %3 : vector<1x32xf32> to vector<32x32xf32>
    %82 = arith.mulf %80, %81 : vector<32x32xf32>
    %83 = vector.broadcast %4 : vector<1x32xf32> to vector<32x32xf32>
    %84 = arith.addf %82, %83 : vector<32x32xf32>
    %cst_40 = arith.constant dense<0.000000e+00> : vector<32x32xf32>
    %85 = tpu.matmul %84, %19, %cst_40 {dimension_numbers = #tpu.dot_dimension_numbers<[1], [0], [0], [1], [0, 0, 1, 1], [], []>} : vector<32x32xf32>, vector<32x32xf32>, vector<32x32xf32> -> vector<32x32xf32>
    %cst_41 = arith.constant 0.176776692 : f32
    %86 = vector.broadcast %cst_41 : f32 to vector<32x32xf32>
    %87 = arith.mulf %85, %86 : vector<32x32xf32>
    %88 = vector.shape_cast %87 : vector<32x32xf32> to vector<4x8x32xf32>
    "tpu.trace_start"() <{level = 10 : i32, message = "bsd,bnd->bsn"}> : () -> ()
    %cst_42 = arith.constant dense<0.000000e+00> : vector<4x8x64xf32>
    %89 = tpu.matmul %88, %53, %cst_42 {dimension_numbers = #tpu.dot_dimension_numbers<[2], [2], [1], [1], [0, 0, 0, 1, 1, 1], [0], [0]>} : vector<4x8x32xf32>, vector<4x64x32xf32>, vector<4x8x64xf32> -> vector<4x8x64xf32>
    "tpu.trace_stop"() : () -> ()
    %cst_43 = arith.constant dense<0xFF800000> : vector<4x64xf32>
    %90 = vector.multi_reduction <maximumf>, %89, %cst_43 [1] : vector<4x8x64xf32> to vector<4x64xf32>
    %91 = vector.shape_cast %90 : vector<4x64xf32> to vector<4x1x64xf32>
    %92 = vector.broadcast %91 : vector<4x1x64xf32> to vector<4x8x64xf32>
    %93 = arith.subf %89, %92 : vector<4x8x64xf32>
    %94 = math.exp %93 : vector<4x8x64xf32>
    %cst_44 = arith.constant dense<0.000000e+00> : vector<4x64xf32>
    %95 = vector.multi_reduction <add>, %94, %cst_44 [1] : vector<4x8x64xf32> to vector<4x64xf32>
    %96 = vector.shape_cast %95 : vector<4x64xf32> to vector<4x1x64xf32>
    %97 = tpu.reciprocal %96 {approx = true} : vector<4x1x64xf32> -> vector<4x1x64xf32>
    %98 = vector.broadcast %97 : vector<4x1x64xf32> to vector<4x8x64xf32>
    %99 = arith.mulf %94, %98 : vector<4x8x64xf32>
    %cst_45 = arith.constant 9.99999993E-9 : f32
    %100 = vector.broadcast %cst_45 : f32 to vector<4x8x64xf32>
    %101 = arith.addf %99, %100 : vector<4x8x64xf32>
    %cst_46 = arith.constant dense<0.000000e+00> : vector<4x8xf32>
    %102 = vector.multi_reduction <add>, %101, %cst_46 [2] : vector<4x8x64xf32> to vector<4x8xf32>
    %103 = vector.shape_cast %102 : vector<4x8xf32> to vector<4x8x1xf32>
    %104 = tpu.reciprocal %103 {approx = true} : vector<4x8x1xf32> -> vector<4x8x1xf32>
    %105 = vector.broadcast %104 : vector<4x8x1xf32> to vector<4x8x64xf32>
    %106 = arith.mulf %101, %105 : vector<4x8x64xf32>
    "tpu.trace_start"() <{level = 10 : i32, message = "bsn,bnd->bsd"}> : () -> ()
    %cst_47 = arith.constant dense<0.000000e+00> : vector<4x8x32xf32>
    %107 = tpu.matmul %106, %55, %cst_47 {dimension_numbers = #tpu.dot_dimension_numbers<[2], [1], [1], [2], [0, 0, 0, 1, 1, 2], [0], [0]>} : vector<4x8x64xf32>, vector<4x64x32xf32>, vector<4x8x32xf32> -> vector<4x8x32xf32>
    "tpu.trace_stop"() : () -> ()
    %108 = vector.shape_cast %107 : vector<4x8x32xf32> to vector<32x32xf32>
    %cst_48 = arith.constant dense<0.000000e+00> : vector<32x32xf32>
    %109 = tpu.matmul %108, %20, %cst_48 {dimension_numbers = #tpu.dot_dimension_numbers<[1], [0], [0], [1], [0, 0, 1, 1], [], []>} : vector<32x32xf32>, vector<32x32xf32>, vector<32x32xf32> -> vector<32x32xf32>
    %110 = vector.broadcast %11 : vector<1x32xf32> to vector<32x32xf32>
    %111 = arith.addf %109, %110 : vector<32x32xf32>
    %cst_49 = arith.constant dense<0.000000e+00> : vector<32x32xf32>
    %112 = tpu.matmul %62, %23, %cst_49 {dimension_numbers = #tpu.dot_dimension_numbers<[1], [0], [0], [1], [0, 0, 1, 1], [], []>} : vector<32x32xf32>, vector<32x32xf32>, vector<32x32xf32> -> vector<32x32xf32>
    %113 = arith.addf %111, %112 : vector<32x32xf32>
    %114 = vector.broadcast %14 : vector<1x32xf32> to vector<32x32xf32>
    %115 = arith.addf %113, %114 : vector<32x32xf32>
    %116 = arith.negf %115 : vector<32x32xf32>
    %117 = math.exp %116 : vector<32x32xf32>
    %cst_50 = arith.constant 1.000000e+00 : f32
    %118 = vector.broadcast %cst_50 : f32 to vector<32x32xf32>
    %119 = arith.addf %118, %117 : vector<32x32xf32>
    %120 = arith.divf %118, %119 : vector<32x32xf32>
    %cst_51 = arith.constant dense<0.000000e+00> : vector<32x32xf32>
    %121 = tpu.matmul %108, %21, %cst_51 {dimension_numbers = #tpu.dot_dimension_numbers<[1], [0], [0], [1], [0, 0, 1, 1], [], []>} : vector<32x32xf32>, vector<32x32xf32>, vector<32x32xf32> -> vector<32x32xf32>
    %122 = vector.broadcast %12 : vector<1x32xf32> to vector<32x32xf32>
    %123 = arith.addf %121, %122 : vector<32x32xf32>
    %cst_52 = arith.constant dense<0.000000e+00> : vector<32x32xf32>
    %124 = tpu.matmul %62, %24, %cst_52 {dimension_numbers = #tpu.dot_dimension_numbers<[1], [0], [0], [1], [0, 0, 1, 1], [], []>} : vector<32x32xf32>, vector<32x32xf32>, vector<32x32xf32> -> vector<32x32xf32>
    %125 = arith.addf %123, %124 : vector<32x32xf32>
    %126 = vector.broadcast %15 : vector<1x32xf32> to vector<32x32xf32>
    %127 = arith.addf %125, %126 : vector<32x32xf32>
    %128 = arith.negf %127 : vector<32x32xf32>
    %129 = math.exp %128 : vector<32x32xf32>
    %cst_53 = arith.constant 1.000000e+00 : f32
    %130 = vector.broadcast %cst_53 : f32 to vector<32x32xf32>
    %131 = arith.addf %130, %129 : vector<32x32xf32>
    %132 = arith.divf %130, %131 : vector<32x32xf32>
    %cst_54 = arith.constant dense<0.000000e+00> : vector<32x32xf32>
    %133 = tpu.matmul %108, %22, %cst_54 {dimension_numbers = #tpu.dot_dimension_numbers<[1], [0], [0], [1], [0, 0, 1, 1], [], []>} : vector<32x32xf32>, vector<32x32xf32>, vector<32x32xf32> -> vector<32x32xf32>
    %134 = vector.broadcast %13 : vector<1x32xf32> to vector<32x32xf32>
    %135 = arith.addf %133, %134 : vector<32x32xf32>
    %cst_55 = arith.constant dense<0.000000e+00> : vector<32x32xf32>
    %136 = tpu.matmul %62, %25, %cst_55 {dimension_numbers = #tpu.dot_dimension_numbers<[1], [0], [0], [1], [0, 0, 1, 1], [], []>} : vector<32x32xf32>, vector<32x32xf32>, vector<32x32xf32> -> vector<32x32xf32>
    %137 = vector.broadcast %16 : vector<1x32xf32> to vector<32x32xf32>
    %138 = arith.addf %136, %137 : vector<32x32xf32>
    %139 = arith.mulf %120, %138 : vector<32x32xf32>
    %140 = arith.addf %135, %139 : vector<32x32xf32>
    %141 = math.tanh %140 : vector<32x32xf32>
    %cst_56 = arith.constant 1.000000e+00 : f32
    %142 = vector.broadcast %cst_56 : f32 to vector<32x32xf32>
    %143 = arith.subf %142, %132 : vector<32x32xf32>
    %144 = arith.mulf %143, %141 : vector<32x32xf32>
    %145 = arith.mulf %132, %62 : vector<32x32xf32>
    %146 = arith.addf %144, %145 : vector<32x32xf32>
    %cst_57 = arith.constant dense<0.000000e+00> : vector<32xf32>
    %147 = vector.multi_reduction <add>, %146, %cst_57 [1] : vector<32x32xf32> to vector<32xf32>
    %148 = vector.shape_cast %147 : vector<32xf32> to vector<32x1xf32>
    %cst_58 = arith.constant 3.200000e+01 : f32
    %149 = vector.broadcast %cst_58 : f32 to vector<32x1xf32>
    %150 = arith.divf %148, %149 : vector<32x1xf32>
    %151 = vector.broadcast %150 : vector<32x1xf32> to vector<32x32xf32>
    %152 = arith.subf %146, %151 : vector<32x32xf32>
    %153 = arith.mulf %152, %152 : vector<32x32xf32>
    %cst_59 = arith.constant dense<0.000000e+00> : vector<32xf32>
    %154 = vector.multi_reduction <add>, %153, %cst_59 [1] : vector<32x32xf32> to vector<32xf32>
    %155 = vector.shape_cast %154 : vector<32xf32> to vector<32x1xf32>
    %cst_60 = arith.constant 3.200000e+01 : f32
    %156 = vector.broadcast %cst_60 : f32 to vector<32x1xf32>
    %157 = arith.divf %155, %156 : vector<32x1xf32>
    %158 = vector.broadcast %150 : vector<32x1xf32> to vector<32x32xf32>
    %159 = arith.subf %146, %158 : vector<32x32xf32>
    %cst_61 = arith.constant 9.99999974E-6 : f32
    %160 = vector.broadcast %cst_61 : f32 to vector<32x1xf32>
    %161 = arith.addf %157, %160 : vector<32x1xf32>
    %162 = math.rsqrt %161 : vector<32x1xf32>
    %163 = vector.broadcast %162 : vector<32x1xf32> to vector<32x32xf32>
    %164 = arith.mulf %159, %163 : vector<32x32xf32>
    %165 = vector.broadcast %5 : vector<1x32xf32> to vector<32x32xf32>
    %166 = arith.mulf %164, %165 : vector<32x32xf32>
    %167 = vector.broadcast %6 : vector<1x32xf32> to vector<32x32xf32>
    %168 = arith.addf %166, %167 : vector<32x32xf32>
    %cst_62 = arith.constant dense<0.000000e+00> : vector<32x64xf32>
    %169 = tpu.matmul %168, %26, %cst_62 {dimension_numbers = #tpu.dot_dimension_numbers<[1], [0], [0], [1], [0, 0, 1, 1], [], []>} : vector<32x32xf32>, vector<32x64xf32>, vector<32x64xf32> -> vector<32x64xf32>
    %170 = vector.broadcast %7 : vector<1x64xf32> to vector<32x64xf32>
    %171 = arith.addf %169, %170 : vector<32x64xf32>
    %cst_63 = arith.constant 0.000000e+00 : f32
    %172 = vector.broadcast %cst_63 : f32 to vector<32x64xf32>
    %173 = arith.maximumf %171, %172 : vector<32x64xf32>
    %cst_64 = arith.constant dense<0.000000e+00> : vector<32x32xf32>
    %174 = tpu.matmul %173, %27, %cst_64 {dimension_numbers = #tpu.dot_dimension_numbers<[1], [0], [0], [1], [0, 0, 1, 1], [], []>} : vector<32x64xf32>, vector<64x32xf32>, vector<32x32xf32> -> vector<32x32xf32>
    %175 = arith.addf %146, %174 : vector<32x32xf32>
    %176 = vector.broadcast %8 : vector<1x32xf32> to vector<32x32xf32>
    %177 = arith.addf %175, %176 : vector<32x32xf32>
    %cst_65 = arith.constant dense<0.000000e+00> : vector<32xf32>
    %178 = vector.multi_reduction <add>, %177, %cst_65 [1] : vector<32x32xf32> to vector<32xf32>
    %179 = vector.shape_cast %178 : vector<32xf32> to vector<32x1xf32>
    %cst_66 = arith.constant 3.200000e+01 : f32
    %180 = vector.broadcast %cst_66 : f32 to vector<32x1xf32>
    %181 = arith.divf %179, %180 : vector<32x1xf32>
    %182 = vector.broadcast %181 : vector<32x1xf32> to vector<32x32xf32>
    %183 = arith.subf %177, %182 : vector<32x32xf32>
    %184 = arith.mulf %183, %183 : vector<32x32xf32>
    %cst_67 = arith.constant dense<0.000000e+00> : vector<32xf32>
    %185 = vector.multi_reduction <add>, %184, %cst_67 [1] : vector<32x32xf32> to vector<32xf32>
    %186 = vector.shape_cast %185 : vector<32xf32> to vector<32x1xf32>
    %cst_68 = arith.constant 3.200000e+01 : f32
    %187 = vector.broadcast %cst_68 : f32 to vector<32x1xf32>
    %188 = arith.divf %186, %187 : vector<32x1xf32>
    %189 = vector.broadcast %181 : vector<32x1xf32> to vector<32x32xf32>
    %190 = arith.subf %177, %189 : vector<32x32xf32>
    %cst_69 = arith.constant 9.99999974E-6 : f32
    %191 = vector.broadcast %cst_69 : f32 to vector<32x1xf32>
    %192 = arith.addf %188, %191 : vector<32x1xf32>
    %193 = math.rsqrt %192 : vector<32x1xf32>
    %194 = vector.broadcast %193 : vector<32x1xf32> to vector<32x32xf32>
    %195 = arith.mulf %190, %194 : vector<32x32xf32>
    %196 = vector.broadcast %3 : vector<1x32xf32> to vector<32x32xf32>
    %197 = arith.mulf %195, %196 : vector<32x32xf32>
    %198 = vector.broadcast %4 : vector<1x32xf32> to vector<32x32xf32>
    %199 = arith.addf %197, %198 : vector<32x32xf32>
    %cst_70 = arith.constant dense<0.000000e+00> : vector<32x32xf32>
    %200 = tpu.matmul %199, %19, %cst_70 {dimension_numbers = #tpu.dot_dimension_numbers<[1], [0], [0], [1], [0, 0, 1, 1], [], []>} : vector<32x32xf32>, vector<32x32xf32>, vector<32x32xf32> -> vector<32x32xf32>
    %cst_71 = arith.constant 0.176776692 : f32
    %201 = vector.broadcast %cst_71 : f32 to vector<32x32xf32>
    %202 = arith.mulf %200, %201 : vector<32x32xf32>
    %203 = vector.shape_cast %202 : vector<32x32xf32> to vector<4x8x32xf32>
    "tpu.trace_start"() <{level = 10 : i32, message = "bsd,bnd->bsn"}> : () -> ()
    %cst_72 = arith.constant dense<0.000000e+00> : vector<4x8x64xf32>
    %204 = tpu.matmul %203, %53, %cst_72 {dimension_numbers = #tpu.dot_dimension_numbers<[2], [2], [1], [1], [0, 0, 0, 1, 1, 1], [0], [0]>} : vector<4x8x32xf32>, vector<4x64x32xf32>, vector<4x8x64xf32> -> vector<4x8x64xf32>
    "tpu.trace_stop"() : () -> ()
    %cst_73 = arith.constant dense<0xFF800000> : vector<4x64xf32>
    %205 = vector.multi_reduction <maximumf>, %204, %cst_73 [1] : vector<4x8x64xf32> to vector<4x64xf32>
    %206 = vector.shape_cast %205 : vector<4x64xf32> to vector<4x1x64xf32>
    %207 = vector.broadcast %206 : vector<4x1x64xf32> to vector<4x8x64xf32>
    %208 = arith.subf %204, %207 : vector<4x8x64xf32>
    %209 = math.exp %208 : vector<4x8x64xf32>
    %cst_74 = arith.constant dense<0.000000e+00> : vector<4x64xf32>
    %210 = vector.multi_reduction <add>, %209, %cst_74 [1] : vector<4x8x64xf32> to vector<4x64xf32>
    %211 = vector.shape_cast %210 : vector<4x64xf32> to vector<4x1x64xf32>
    %212 = tpu.reciprocal %211 {approx = true} : vector<4x1x64xf32> -> vector<4x1x64xf32>
    %213 = vector.broadcast %212 : vector<4x1x64xf32> to vector<4x8x64xf32>
    %214 = arith.mulf %209, %213 : vector<4x8x64xf32>
    %cst_75 = arith.constant 9.99999993E-9 : f32
    %215 = vector.broadcast %cst_75 : f32 to vector<4x8x64xf32>
    %216 = arith.addf %214, %215 : vector<4x8x64xf32>
    %cst_76 = arith.constant dense<0.000000e+00> : vector<4x8xf32>
    %217 = vector.multi_reduction <add>, %216, %cst_76 [2] : vector<4x8x64xf32> to vector<4x8xf32>
    %218 = vector.shape_cast %217 : vector<4x8xf32> to vector<4x8x1xf32>
    %219 = tpu.reciprocal %218 {approx = true} : vector<4x8x1xf32> -> vector<4x8x1xf32>
    %220 = vector.broadcast %219 : vector<4x8x1xf32> to vector<4x8x64xf32>
    %221 = arith.mulf %216, %220 : vector<4x8x64xf32>
    "tpu.trace_start"() <{level = 10 : i32, message = "bsn,bnd->bsd"}> : () -> ()
    %cst_77 = arith.constant dense<0.000000e+00> : vector<4x8x32xf32>
    %222 = tpu.matmul %221, %55, %cst_77 {dimension_numbers = #tpu.dot_dimension_numbers<[2], [1], [1], [2], [0, 0, 0, 1, 1, 2], [0], [0]>} : vector<4x8x64xf32>, vector<4x64x32xf32>, vector<4x8x32xf32> -> vector<4x8x32xf32>
    "tpu.trace_stop"() : () -> ()
    %223 = vector.shape_cast %222 : vector<4x8x32xf32> to vector<32x32xf32>
    %cst_78 = arith.constant dense<0.000000e+00> : vector<32x32xf32>
    %224 = tpu.matmul %223, %20, %cst_78 {dimension_numbers = #tpu.dot_dimension_numbers<[1], [0], [0], [1], [0, 0, 1, 1], [], []>} : vector<32x32xf32>, vector<32x32xf32>, vector<32x32xf32> -> vector<32x32xf32>
    %225 = vector.broadcast %11 : vector<1x32xf32> to vector<32x32xf32>
    %226 = arith.addf %224, %225 : vector<32x32xf32>
    %cst_79 = arith.constant dense<0.000000e+00> : vector<32x32xf32>
    %227 = tpu.matmul %177, %23, %cst_79 {dimension_numbers = #tpu.dot_dimension_numbers<[1], [0], [0], [1], [0, 0, 1, 1], [], []>} : vector<32x32xf32>, vector<32x32xf32>, vector<32x32xf32> -> vector<32x32xf32>
    %228 = arith.addf %226, %227 : vector<32x32xf32>
    %229 = vector.broadcast %14 : vector<1x32xf32> to vector<32x32xf32>
    %230 = arith.addf %228, %229 : vector<32x32xf32>
    %231 = arith.negf %230 : vector<32x32xf32>
    %232 = math.exp %231 : vector<32x32xf32>
    %cst_80 = arith.constant 1.000000e+00 : f32
    %233 = vector.broadcast %cst_80 : f32 to vector<32x32xf32>
    %234 = arith.addf %233, %232 : vector<32x32xf32>
    %235 = arith.divf %233, %234 : vector<32x32xf32>
    %cst_81 = arith.constant dense<0.000000e+00> : vector<32x32xf32>
    %236 = tpu.matmul %223, %21, %cst_81 {dimension_numbers = #tpu.dot_dimension_numbers<[1], [0], [0], [1], [0, 0, 1, 1], [], []>} : vector<32x32xf32>, vector<32x32xf32>, vector<32x32xf32> -> vector<32x32xf32>
    %237 = vector.broadcast %12 : vector<1x32xf32> to vector<32x32xf32>
    %238 = arith.addf %236, %237 : vector<32x32xf32>
    %cst_82 = arith.constant dense<0.000000e+00> : vector<32x32xf32>
    %239 = tpu.matmul %177, %24, %cst_82 {dimension_numbers = #tpu.dot_dimension_numbers<[1], [0], [0], [1], [0, 0, 1, 1], [], []>} : vector<32x32xf32>, vector<32x32xf32>, vector<32x32xf32> -> vector<32x32xf32>
    %240 = arith.addf %238, %239 : vector<32x32xf32>
    %241 = vector.broadcast %15 : vector<1x32xf32> to vector<32x32xf32>
    %242 = arith.addf %240, %241 : vector<32x32xf32>
    %243 = arith.negf %242 : vector<32x32xf32>
    %244 = math.exp %243 : vector<32x32xf32>
    %cst_83 = arith.constant 1.000000e+00 : f32
    %245 = vector.broadcast %cst_83 : f32 to vector<32x32xf32>
    %246 = arith.addf %245, %244 : vector<32x32xf32>
    %247 = arith.divf %245, %246 : vector<32x32xf32>
    %cst_84 = arith.constant dense<0.000000e+00> : vector<32x32xf32>
    %248 = tpu.matmul %223, %22, %cst_84 {dimension_numbers = #tpu.dot_dimension_numbers<[1], [0], [0], [1], [0, 0, 1, 1], [], []>} : vector<32x32xf32>, vector<32x32xf32>, vector<32x32xf32> -> vector<32x32xf32>
    %249 = vector.broadcast %13 : vector<1x32xf32> to vector<32x32xf32>
    %250 = arith.addf %248, %249 : vector<32x32xf32>
    %cst_85 = arith.constant dense<0.000000e+00> : vector<32x32xf32>
    %251 = tpu.matmul %177, %25, %cst_85 {dimension_numbers = #tpu.dot_dimension_numbers<[1], [0], [0], [1], [0, 0, 1, 1], [], []>} : vector<32x32xf32>, vector<32x32xf32>, vector<32x32xf32> -> vector<32x32xf32>
    %252 = vector.broadcast %16 : vector<1x32xf32> to vector<32x32xf32>
    %253 = arith.addf %251, %252 : vector<32x32xf32>
    %254 = arith.mulf %235, %253 : vector<32x32xf32>
    %255 = arith.addf %250, %254 : vector<32x32xf32>
    %256 = math.tanh %255 : vector<32x32xf32>
    %cst_86 = arith.constant 1.000000e+00 : f32
    %257 = vector.broadcast %cst_86 : f32 to vector<32x32xf32>
    %258 = arith.subf %257, %247 : vector<32x32xf32>
    %259 = arith.mulf %258, %256 : vector<32x32xf32>
    %260 = arith.mulf %247, %177 : vector<32x32xf32>
    %261 = arith.addf %259, %260 : vector<32x32xf32>
    %cst_87 = arith.constant dense<0.000000e+00> : vector<32xf32>
    %262 = vector.multi_reduction <add>, %261, %cst_87 [1] : vector<32x32xf32> to vector<32xf32>
    %263 = vector.shape_cast %262 : vector<32xf32> to vector<32x1xf32>
    %cst_88 = arith.constant 3.200000e+01 : f32
    %264 = vector.broadcast %cst_88 : f32 to vector<32x1xf32>
    %265 = arith.divf %263, %264 : vector<32x1xf32>
    %266 = vector.broadcast %265 : vector<32x1xf32> to vector<32x32xf32>
    %267 = arith.subf %261, %266 : vector<32x32xf32>
    %268 = arith.mulf %267, %267 : vector<32x32xf32>
    %cst_89 = arith.constant dense<0.000000e+00> : vector<32xf32>
    %269 = vector.multi_reduction <add>, %268, %cst_89 [1] : vector<32x32xf32> to vector<32xf32>
    %270 = vector.shape_cast %269 : vector<32xf32> to vector<32x1xf32>
    %cst_90 = arith.constant 3.200000e+01 : f32
    %271 = vector.broadcast %cst_90 : f32 to vector<32x1xf32>
    %272 = arith.divf %270, %271 : vector<32x1xf32>
    %273 = vector.broadcast %265 : vector<32x1xf32> to vector<32x32xf32>
    %274 = arith.subf %261, %273 : vector<32x32xf32>
    %cst_91 = arith.constant 9.99999974E-6 : f32
    %275 = vector.broadcast %cst_91 : f32 to vector<32x1xf32>
    %276 = arith.addf %272, %275 : vector<32x1xf32>
    %277 = math.rsqrt %276 : vector<32x1xf32>
    %278 = vector.broadcast %277 : vector<32x1xf32> to vector<32x32xf32>
    %279 = arith.mulf %274, %278 : vector<32x32xf32>
    %280 = vector.broadcast %5 : vector<1x32xf32> to vector<32x32xf32>
    %281 = arith.mulf %279, %280 : vector<32x32xf32>
    %282 = vector.broadcast %6 : vector<1x32xf32> to vector<32x32xf32>
    %283 = arith.addf %281, %282 : vector<32x32xf32>
    %cst_92 = arith.constant dense<0.000000e+00> : vector<32x64xf32>
    %284 = tpu.matmul %283, %26, %cst_92 {dimension_numbers = #tpu.dot_dimension_numbers<[1], [0], [0], [1], [0, 0, 1, 1], [], []>} : vector<32x32xf32>, vector<32x64xf32>, vector<32x64xf32> -> vector<32x64xf32>
    %285 = vector.broadcast %7 : vector<1x64xf32> to vector<32x64xf32>
    %286 = arith.addf %284, %285 : vector<32x64xf32>
    %cst_93 = arith.constant 0.000000e+00 : f32
    %287 = vector.broadcast %cst_93 : f32 to vector<32x64xf32>
    %288 = arith.maximumf %286, %287 : vector<32x64xf32>
    %cst_94 = arith.constant dense<0.000000e+00> : vector<32x32xf32>
    %289 = tpu.matmul %288, %27, %cst_94 {dimension_numbers = #tpu.dot_dimension_numbers<[1], [0], [0], [1], [0, 0, 1, 1], [], []>} : vector<32x64xf32>, vector<64x32xf32>, vector<32x32xf32> -> vector<32x32xf32>
    %290 = arith.addf %261, %289 : vector<32x32xf32>
    %291 = vector.broadcast %8 : vector<1x32xf32> to vector<32x32xf32>
    %292 = arith.addf %290, %291 : vector<32x32xf32>
    %cst_95 = arith.constant dense<0.000000e+00> : vector<32xf32>
    %293 = vector.multi_reduction <add>, %292, %cst_95 [1] : vector<32x32xf32> to vector<32xf32>
    %294 = vector.shape_cast %293 : vector<32xf32> to vector<32x1xf32>
    %cst_96 = arith.constant 3.200000e+01 : f32
    %295 = vector.broadcast %cst_96 : f32 to vector<32x1xf32>
    %296 = arith.divf %294, %295 : vector<32x1xf32>
    %297 = vector.broadcast %296 : vector<32x1xf32> to vector<32x32xf32>
    %298 = arith.subf %292, %297 : vector<32x32xf32>
    %299 = arith.mulf %298, %298 : vector<32x32xf32>
    %cst_97 = arith.constant dense<0.000000e+00> : vector<32xf32>
    %300 = vector.multi_reduction <add>, %299, %cst_97 [1] : vector<32x32xf32> to vector<32xf32>
    %301 = vector.shape_cast %300 : vector<32xf32> to vector<32x1xf32>
    %cst_98 = arith.constant 3.200000e+01 : f32
    %302 = vector.broadcast %cst_98 : f32 to vector<32x1xf32>
    %303 = arith.divf %301, %302 : vector<32x1xf32>
    %304 = vector.broadcast %296 : vector<32x1xf32> to vector<32x32xf32>
    %305 = arith.subf %292, %304 : vector<32x32xf32>
    %cst_99 = arith.constant 9.99999974E-6 : f32
    %306 = vector.broadcast %cst_99 : f32 to vector<32x1xf32>
    %307 = arith.addf %303, %306 : vector<32x1xf32>
    %308 = math.rsqrt %307 : vector<32x1xf32>
    %309 = vector.broadcast %308 : vector<32x1xf32> to vector<32x32xf32>
    %310 = arith.mulf %305, %309 : vector<32x32xf32>
    %311 = vector.broadcast %3 : vector<1x32xf32> to vector<32x32xf32>
    %312 = arith.mulf %310, %311 : vector<32x32xf32>
    %313 = vector.broadcast %4 : vector<1x32xf32> to vector<32x32xf32>
    %314 = arith.addf %312, %313 : vector<32x32xf32>
    %cst_100 = arith.constant dense<0.000000e+00> : vector<32x32xf32>
    %315 = tpu.matmul %314, %19, %cst_100 {dimension_numbers = #tpu.dot_dimension_numbers<[1], [0], [0], [1], [0, 0, 1, 1], [], []>} : vector<32x32xf32>, vector<32x32xf32>, vector<32x32xf32> -> vector<32x32xf32>
    %cst_101 = arith.constant 0.176776692 : f32
    %316 = vector.broadcast %cst_101 : f32 to vector<32x32xf32>
    %317 = arith.mulf %315, %316 : vector<32x32xf32>
    %318 = vector.shape_cast %317 : vector<32x32xf32> to vector<4x8x32xf32>
    "tpu.trace_start"() <{level = 10 : i32, message = "bsd,bnd->bsn"}> : () -> ()
    %cst_102 = arith.constant dense<0.000000e+00> : vector<4x8x64xf32>
    %319 = tpu.matmul %318, %53, %cst_102 {dimension_numbers = #tpu.dot_dimension_numbers<[2], [2], [1], [1], [0, 0, 0, 1, 1, 1], [0], [0]>} : vector<4x8x32xf32>, vector<4x64x32xf32>, vector<4x8x64xf32> -> vector<4x8x64xf32>
    "tpu.trace_stop"() : () -> ()
    %cst_103 = arith.constant dense<0xFF800000> : vector<4x64xf32>
    %320 = vector.multi_reduction <maximumf>, %319, %cst_103 [1] : vector<4x8x64xf32> to vector<4x64xf32>
    %321 = vector.shape_cast %320 : vector<4x64xf32> to vector<4x1x64xf32>
    %322 = vector.broadcast %321 : vector<4x1x64xf32> to vector<4x8x64xf32>
    %323 = arith.subf %319, %322 : vector<4x8x64xf32>
    %324 = math.exp %323 : vector<4x8x64xf32>
    %cst_104 = arith.constant dense<0.000000e+00> : vector<4x64xf32>
    %325 = vector.multi_reduction <add>, %324, %cst_104 [1] : vector<4x8x64xf32> to vector<4x64xf32>
    %326 = vector.shape_cast %325 : vector<4x64xf32> to vector<4x1x64xf32>
    %327 = tpu.reciprocal %326 {approx = true} : vector<4x1x64xf32> -> vector<4x1x64xf32>
    %328 = vector.broadcast %327 : vector<4x1x64xf32> to vector<4x8x64xf32>
    %329 = arith.mulf %324, %328 : vector<4x8x64xf32>
    %cst_105 = arith.constant 9.99999993E-9 : f32
    %330 = vector.broadcast %cst_105 : f32 to vector<4x8x64xf32>
    %331 = arith.addf %329, %330 : vector<4x8x64xf32>
    %cst_106 = arith.constant dense<0.000000e+00> : vector<4x8xf32>
    %332 = vector.multi_reduction <add>, %331, %cst_106 [2] : vector<4x8x64xf32> to vector<4x8xf32>
    %333 = vector.shape_cast %332 : vector<4x8xf32> to vector<4x8x1xf32>
    %334 = tpu.reciprocal %333 {approx = true} : vector<4x8x1xf32> -> vector<4x8x1xf32>
    %335 = vector.broadcast %334 : vector<4x8x1xf32> to vector<4x8x64xf32>
    %336 = arith.mulf %331, %335 : vector<4x8x64xf32>
    "tpu.trace_start"() <{level = 10 : i32, message = "bsn,bnd->bsd"}> : () -> ()
    %cst_107 = arith.constant dense<0.000000e+00> : vector<4x8x32xf32>
    %337 = tpu.matmul %336, %55, %cst_107 {dimension_numbers = #tpu.dot_dimension_numbers<[2], [1], [1], [2], [0, 0, 0, 1, 1, 2], [0], [0]>} : vector<4x8x64xf32>, vector<4x64x32xf32>, vector<4x8x32xf32> -> vector<4x8x32xf32>
    "tpu.trace_stop"() : () -> ()
    %338 = vector.shape_cast %337 : vector<4x8x32xf32> to vector<32x32xf32>
    %cst_108 = arith.constant dense<0.000000e+00> : vector<32x32xf32>
    %339 = tpu.matmul %338, %20, %cst_108 {dimension_numbers = #tpu.dot_dimension_numbers<[1], [0], [0], [1], [0, 0, 1, 1], [], []>} : vector<32x32xf32>, vector<32x32xf32>, vector<32x32xf32> -> vector<32x32xf32>
    %340 = vector.broadcast %11 : vector<1x32xf32> to vector<32x32xf32>
    %341 = arith.addf %339, %340 : vector<32x32xf32>
    %cst_109 = arith.constant dense<0.000000e+00> : vector<32x32xf32>
    %342 = tpu.matmul %292, %23, %cst_109 {dimension_numbers = #tpu.dot_dimension_numbers<[1], [0], [0], [1], [0, 0, 1, 1], [], []>} : vector<32x32xf32>, vector<32x32xf32>, vector<32x32xf32> -> vector<32x32xf32>
    %343 = arith.addf %341, %342 : vector<32x32xf32>
    %344 = vector.broadcast %14 : vector<1x32xf32> to vector<32x32xf32>
    %345 = arith.addf %343, %344 : vector<32x32xf32>
    %346 = arith.negf %345 : vector<32x32xf32>
    %347 = math.exp %346 : vector<32x32xf32>
    %cst_110 = arith.constant 1.000000e+00 : f32
    %348 = vector.broadcast %cst_110 : f32 to vector<32x32xf32>
    %349 = arith.addf %348, %347 : vector<32x32xf32>
    %350 = arith.divf %348, %349 : vector<32x32xf32>
    %cst_111 = arith.constant dense<0.000000e+00> : vector<32x32xf32>
    %351 = tpu.matmul %338, %21, %cst_111 {dimension_numbers = #tpu.dot_dimension_numbers<[1], [0], [0], [1], [0, 0, 1, 1], [], []>} : vector<32x32xf32>, vector<32x32xf32>, vector<32x32xf32> -> vector<32x32xf32>
    %352 = vector.broadcast %12 : vector<1x32xf32> to vector<32x32xf32>
    %353 = arith.addf %351, %352 : vector<32x32xf32>
    %cst_112 = arith.constant dense<0.000000e+00> : vector<32x32xf32>
    %354 = tpu.matmul %292, %24, %cst_112 {dimension_numbers = #tpu.dot_dimension_numbers<[1], [0], [0], [1], [0, 0, 1, 1], [], []>} : vector<32x32xf32>, vector<32x32xf32>, vector<32x32xf32> -> vector<32x32xf32>
    %355 = arith.addf %353, %354 : vector<32x32xf32>
    %356 = vector.broadcast %15 : vector<1x32xf32> to vector<32x32xf32>
    %357 = arith.addf %355, %356 : vector<32x32xf32>
    %358 = arith.negf %357 : vector<32x32xf32>
    %359 = math.exp %358 : vector<32x32xf32>
    %cst_113 = arith.constant 1.000000e+00 : f32
    %360 = vector.broadcast %cst_113 : f32 to vector<32x32xf32>
    %361 = arith.addf %360, %359 : vector<32x32xf32>
    %362 = arith.divf %360, %361 : vector<32x32xf32>
    %cst_114 = arith.constant dense<0.000000e+00> : vector<32x32xf32>
    %363 = tpu.matmul %338, %22, %cst_114 {dimension_numbers = #tpu.dot_dimension_numbers<[1], [0], [0], [1], [0, 0, 1, 1], [], []>} : vector<32x32xf32>, vector<32x32xf32>, vector<32x32xf32> -> vector<32x32xf32>
    %364 = vector.broadcast %13 : vector<1x32xf32> to vector<32x32xf32>
    %365 = arith.addf %363, %364 : vector<32x32xf32>
    %cst_115 = arith.constant dense<0.000000e+00> : vector<32x32xf32>
    %366 = tpu.matmul %292, %25, %cst_115 {dimension_numbers = #tpu.dot_dimension_numbers<[1], [0], [0], [1], [0, 0, 1, 1], [], []>} : vector<32x32xf32>, vector<32x32xf32>, vector<32x32xf32> -> vector<32x32xf32>
    %367 = vector.broadcast %16 : vector<1x32xf32> to vector<32x32xf32>
    %368 = arith.addf %366, %367 : vector<32x32xf32>
    %369 = arith.mulf %350, %368 : vector<32x32xf32>
    %370 = arith.addf %365, %369 : vector<32x32xf32>
    %371 = math.tanh %370 : vector<32x32xf32>
    %cst_116 = arith.constant 1.000000e+00 : f32
    %372 = vector.broadcast %cst_116 : f32 to vector<32x32xf32>
    %373 = arith.subf %372, %362 : vector<32x32xf32>
    %374 = arith.mulf %373, %371 : vector<32x32xf32>
    %375 = arith.mulf %362, %292 : vector<32x32xf32>
    %376 = arith.addf %374, %375 : vector<32x32xf32>
    %cst_117 = arith.constant dense<0.000000e+00> : vector<32xf32>
    %377 = vector.multi_reduction <add>, %376, %cst_117 [1] : vector<32x32xf32> to vector<32xf32>
    %378 = vector.shape_cast %377 : vector<32xf32> to vector<32x1xf32>
    %cst_118 = arith.constant 3.200000e+01 : f32
    %379 = vector.broadcast %cst_118 : f32 to vector<32x1xf32>
    %380 = arith.divf %378, %379 : vector<32x1xf32>
    %381 = vector.broadcast %380 : vector<32x1xf32> to vector<32x32xf32>
    %382 = arith.subf %376, %381 : vector<32x32xf32>
    %383 = arith.mulf %382, %382 : vector<32x32xf32>
    %cst_119 = arith.constant dense<0.000000e+00> : vector<32xf32>
    %384 = vector.multi_reduction <add>, %383, %cst_119 [1] : vector<32x32xf32> to vector<32xf32>
    %385 = vector.shape_cast %384 : vector<32xf32> to vector<32x1xf32>
    %cst_120 = arith.constant 3.200000e+01 : f32
    %386 = vector.broadcast %cst_120 : f32 to vector<32x1xf32>
    %387 = arith.divf %385, %386 : vector<32x1xf32>
    %388 = vector.broadcast %380 : vector<32x1xf32> to vector<32x32xf32>
    %389 = arith.subf %376, %388 : vector<32x32xf32>
    %cst_121 = arith.constant 9.99999974E-6 : f32
    %390 = vector.broadcast %cst_121 : f32 to vector<32x1xf32>
    %391 = arith.addf %387, %390 : vector<32x1xf32>
    %392 = math.rsqrt %391 : vector<32x1xf32>
    %393 = vector.broadcast %392 : vector<32x1xf32> to vector<32x32xf32>
    %394 = arith.mulf %389, %393 : vector<32x32xf32>
    %395 = vector.broadcast %5 : vector<1x32xf32> to vector<32x32xf32>
    %396 = arith.mulf %394, %395 : vector<32x32xf32>
    %397 = vector.broadcast %6 : vector<1x32xf32> to vector<32x32xf32>
    %398 = arith.addf %396, %397 : vector<32x32xf32>
    %cst_122 = arith.constant dense<0.000000e+00> : vector<32x64xf32>
    %399 = tpu.matmul %398, %26, %cst_122 {dimension_numbers = #tpu.dot_dimension_numbers<[1], [0], [0], [1], [0, 0, 1, 1], [], []>} : vector<32x32xf32>, vector<32x64xf32>, vector<32x64xf32> -> vector<32x64xf32>
    %400 = vector.broadcast %7 : vector<1x64xf32> to vector<32x64xf32>
    %401 = arith.addf %399, %400 : vector<32x64xf32>
    %cst_123 = arith.constant 0.000000e+00 : f32
    %402 = vector.broadcast %cst_123 : f32 to vector<32x64xf32>
    %403 = arith.maximumf %401, %402 : vector<32x64xf32>
    %cst_124 = arith.constant dense<0.000000e+00> : vector<32x32xf32>
    %404 = tpu.matmul %403, %27, %cst_124 {dimension_numbers = #tpu.dot_dimension_numbers<[1], [0], [0], [1], [0, 0, 1, 1], [], []>} : vector<32x64xf32>, vector<64x32xf32>, vector<32x32xf32> -> vector<32x32xf32>
    %405 = arith.addf %376, %404 : vector<32x32xf32>
    %406 = vector.broadcast %8 : vector<1x32xf32> to vector<32x32xf32>
    %407 = arith.addf %405, %406 : vector<32x32xf32>
    %cst_125 = arith.constant dense<0.000000e+00> : vector<32xf32>
    %408 = vector.multi_reduction <add>, %407, %cst_125 [1] : vector<32x32xf32> to vector<32xf32>
    %409 = vector.shape_cast %408 : vector<32xf32> to vector<32x1xf32>
    %cst_126 = arith.constant 3.200000e+01 : f32
    %410 = vector.broadcast %cst_126 : f32 to vector<32x1xf32>
    %411 = arith.divf %409, %410 : vector<32x1xf32>
    %412 = vector.broadcast %411 : vector<32x1xf32> to vector<32x32xf32>
    %413 = arith.subf %407, %412 : vector<32x32xf32>
    %414 = arith.mulf %413, %413 : vector<32x32xf32>
    %cst_127 = arith.constant dense<0.000000e+00> : vector<32xf32>
    %415 = vector.multi_reduction <add>, %414, %cst_127 [1] : vector<32x32xf32> to vector<32xf32>
    %416 = vector.shape_cast %415 : vector<32xf32> to vector<32x1xf32>
    %cst_128 = arith.constant 3.200000e+01 : f32
    %417 = vector.broadcast %cst_128 : f32 to vector<32x1xf32>
    %418 = arith.divf %416, %417 : vector<32x1xf32>
    %419 = vector.broadcast %411 : vector<32x1xf32> to vector<32x32xf32>
    %420 = arith.subf %407, %419 : vector<32x32xf32>
    %cst_129 = arith.constant 9.99999974E-6 : f32
    %421 = vector.broadcast %cst_129 : f32 to vector<32x1xf32>
    %422 = arith.addf %418, %421 : vector<32x1xf32>
    %423 = math.rsqrt %422 : vector<32x1xf32>
    %424 = vector.broadcast %423 : vector<32x1xf32> to vector<32x32xf32>
    %425 = arith.mulf %420, %424 : vector<32x32xf32>
    %426 = vector.broadcast %3 : vector<1x32xf32> to vector<32x32xf32>
    %427 = arith.mulf %425, %426 : vector<32x32xf32>
    %428 = vector.broadcast %4 : vector<1x32xf32> to vector<32x32xf32>
    %429 = arith.addf %427, %428 : vector<32x32xf32>
    %cst_130 = arith.constant dense<0.000000e+00> : vector<32x32xf32>
    %430 = tpu.matmul %429, %19, %cst_130 {dimension_numbers = #tpu.dot_dimension_numbers<[1], [0], [0], [1], [0, 0, 1, 1], [], []>} : vector<32x32xf32>, vector<32x32xf32>, vector<32x32xf32> -> vector<32x32xf32>
    %cst_131 = arith.constant 0.176776692 : f32
    %431 = vector.broadcast %cst_131 : f32 to vector<32x32xf32>
    %432 = arith.mulf %430, %431 : vector<32x32xf32>
    %433 = vector.shape_cast %432 : vector<32x32xf32> to vector<4x8x32xf32>
    "tpu.trace_start"() <{level = 10 : i32, message = "bsd,bnd->bsn"}> : () -> ()
    %cst_132 = arith.constant dense<0.000000e+00> : vector<4x8x64xf32>
    %434 = tpu.matmul %433, %53, %cst_132 {dimension_numbers = #tpu.dot_dimension_numbers<[2], [2], [1], [1], [0, 0, 0, 1, 1, 1], [0], [0]>} : vector<4x8x32xf32>, vector<4x64x32xf32>, vector<4x8x64xf32> -> vector<4x8x64xf32>
    "tpu.trace_stop"() : () -> ()
    %cst_133 = arith.constant dense<0xFF800000> : vector<4x64xf32>
    %435 = vector.multi_reduction <maximumf>, %434, %cst_133 [1] : vector<4x8x64xf32> to vector<4x64xf32>
    %436 = vector.shape_cast %435 : vector<4x64xf32> to vector<4x1x64xf32>
    %437 = vector.broadcast %436 : vector<4x1x64xf32> to vector<4x8x64xf32>
    %438 = arith.subf %434, %437 : vector<4x8x64xf32>
    %439 = math.exp %438 : vector<4x8x64xf32>
    %cst_134 = arith.constant dense<0.000000e+00> : vector<4x64xf32>
    %440 = vector.multi_reduction <add>, %439, %cst_134 [1] : vector<4x8x64xf32> to vector<4x64xf32>
    %441 = vector.shape_cast %440 : vector<4x64xf32> to vector<4x1x64xf32>
    %442 = tpu.reciprocal %441 {approx = true} : vector<4x1x64xf32> -> vector<4x1x64xf32>
    %443 = vector.broadcast %442 : vector<4x1x64xf32> to vector<4x8x64xf32>
    %444 = arith.mulf %439, %443 : vector<4x8x64xf32>
    %cst_135 = arith.constant 9.99999993E-9 : f32
    %445 = vector.broadcast %cst_135 : f32 to vector<4x8x64xf32>
    %446 = arith.addf %444, %445 : vector<4x8x64xf32>
    %cst_136 = arith.constant dense<0.000000e+00> : vector<4x8xf32>
    %447 = vector.multi_reduction <add>, %446, %cst_136 [2] : vector<4x8x64xf32> to vector<4x8xf32>
    %448 = vector.shape_cast %447 : vector<4x8xf32> to vector<4x8x1xf32>
    %449 = tpu.reciprocal %448 {approx = true} : vector<4x8x1xf32> -> vector<4x8x1xf32>
    %450 = vector.broadcast %449 : vector<4x8x1xf32> to vector<4x8x64xf32>
    %451 = arith.mulf %446, %450 : vector<4x8x64xf32>
    "tpu.trace_start"() <{level = 10 : i32, message = "bsn,bnd->bsd"}> : () -> ()
    %cst_137 = arith.constant dense<0.000000e+00> : vector<4x8x32xf32>
    %452 = tpu.matmul %451, %55, %cst_137 {dimension_numbers = #tpu.dot_dimension_numbers<[2], [1], [1], [2], [0, 0, 0, 1, 1, 2], [0], [0]>} : vector<4x8x64xf32>, vector<4x64x32xf32>, vector<4x8x32xf32> -> vector<4x8x32xf32>
    "tpu.trace_stop"() : () -> ()
    %453 = vector.shape_cast %452 : vector<4x8x32xf32> to vector<32x32xf32>
    %cst_138 = arith.constant dense<0.000000e+00> : vector<32x32xf32>
    %454 = tpu.matmul %453, %20, %cst_138 {dimension_numbers = #tpu.dot_dimension_numbers<[1], [0], [0], [1], [0, 0, 1, 1], [], []>} : vector<32x32xf32>, vector<32x32xf32>, vector<32x32xf32> -> vector<32x32xf32>
    %455 = vector.broadcast %11 : vector<1x32xf32> to vector<32x32xf32>
    %456 = arith.addf %454, %455 : vector<32x32xf32>
    %cst_139 = arith.constant dense<0.000000e+00> : vector<32x32xf32>
    %457 = tpu.matmul %407, %23, %cst_139 {dimension_numbers = #tpu.dot_dimension_numbers<[1], [0], [0], [1], [0, 0, 1, 1], [], []>} : vector<32x32xf32>, vector<32x32xf32>, vector<32x32xf32> -> vector<32x32xf32>
    %458 = arith.addf %456, %457 : vector<32x32xf32>
    %459 = vector.broadcast %14 : vector<1x32xf32> to vector<32x32xf32>
    %460 = arith.addf %458, %459 : vector<32x32xf32>
    %461 = arith.negf %460 : vector<32x32xf32>
    %462 = math.exp %461 : vector<32x32xf32>
    %cst_140 = arith.constant 1.000000e+00 : f32
    %463 = vector.broadcast %cst_140 : f32 to vector<32x32xf32>
    %464 = arith.addf %463, %462 : vector<32x32xf32>
    %465 = arith.divf %463, %464 : vector<32x32xf32>
    %cst_141 = arith.constant dense<0.000000e+00> : vector<32x32xf32>
    %466 = tpu.matmul %453, %21, %cst_141 {dimension_numbers = #tpu.dot_dimension_numbers<[1], [0], [0], [1], [0, 0, 1, 1], [], []>} : vector<32x32xf32>, vector<32x32xf32>, vector<32x32xf32> -> vector<32x32xf32>
    %467 = vector.broadcast %12 : vector<1x32xf32> to vector<32x32xf32>
    %468 = arith.addf %466, %467 : vector<32x32xf32>
    %cst_142 = arith.constant dense<0.000000e+00> : vector<32x32xf32>
    %469 = tpu.matmul %407, %24, %cst_142 {dimension_numbers = #tpu.dot_dimension_numbers<[1], [0], [0], [1], [0, 0, 1, 1], [], []>} : vector<32x32xf32>, vector<32x32xf32>, vector<32x32xf32> -> vector<32x32xf32>
    %470 = arith.addf %468, %469 : vector<32x32xf32>
    %471 = vector.broadcast %15 : vector<1x32xf32> to vector<32x32xf32>
    %472 = arith.addf %470, %471 : vector<32x32xf32>
    %473 = arith.negf %472 : vector<32x32xf32>
    %474 = math.exp %473 : vector<32x32xf32>
    %cst_143 = arith.constant 1.000000e+00 : f32
    %475 = vector.broadcast %cst_143 : f32 to vector<32x32xf32>
    %476 = arith.addf %475, %474 : vector<32x32xf32>
    %477 = arith.divf %475, %476 : vector<32x32xf32>
    %cst_144 = arith.constant dense<0.000000e+00> : vector<32x32xf32>
    %478 = tpu.matmul %453, %22, %cst_144 {dimension_numbers = #tpu.dot_dimension_numbers<[1], [0], [0], [1], [0, 0, 1, 1], [], []>} : vector<32x32xf32>, vector<32x32xf32>, vector<32x32xf32> -> vector<32x32xf32>
    %479 = vector.broadcast %13 : vector<1x32xf32> to vector<32x32xf32>
    %480 = arith.addf %478, %479 : vector<32x32xf32>
    %cst_145 = arith.constant dense<0.000000e+00> : vector<32x32xf32>
    %481 = tpu.matmul %407, %25, %cst_145 {dimension_numbers = #tpu.dot_dimension_numbers<[1], [0], [0], [1], [0, 0, 1, 1], [], []>} : vector<32x32xf32>, vector<32x32xf32>, vector<32x32xf32> -> vector<32x32xf32>
    %482 = vector.broadcast %16 : vector<1x32xf32> to vector<32x32xf32>
    %483 = arith.addf %481, %482 : vector<32x32xf32>
    %484 = arith.mulf %465, %483 : vector<32x32xf32>
    %485 = arith.addf %480, %484 : vector<32x32xf32>
    %486 = math.tanh %485 : vector<32x32xf32>
    %cst_146 = arith.constant 1.000000e+00 : f32
    %487 = vector.broadcast %cst_146 : f32 to vector<32x32xf32>
    %488 = arith.subf %487, %477 : vector<32x32xf32>
    %489 = arith.mulf %488, %486 : vector<32x32xf32>
    %490 = arith.mulf %477, %407 : vector<32x32xf32>
    %491 = arith.addf %489, %490 : vector<32x32xf32>
    %cst_147 = arith.constant dense<0.000000e+00> : vector<32xf32>
    %492 = vector.multi_reduction <add>, %491, %cst_147 [1] : vector<32x32xf32> to vector<32xf32>
    %493 = vector.shape_cast %492 : vector<32xf32> to vector<32x1xf32>
    %cst_148 = arith.constant 3.200000e+01 : f32
    %494 = vector.broadcast %cst_148 : f32 to vector<32x1xf32>
    %495 = arith.divf %493, %494 : vector<32x1xf32>
    %496 = vector.broadcast %495 : vector<32x1xf32> to vector<32x32xf32>
    %497 = arith.subf %491, %496 : vector<32x32xf32>
    %498 = arith.mulf %497, %497 : vector<32x32xf32>
    %cst_149 = arith.constant dense<0.000000e+00> : vector<32xf32>
    %499 = vector.multi_reduction <add>, %498, %cst_149 [1] : vector<32x32xf32> to vector<32xf32>
    %500 = vector.shape_cast %499 : vector<32xf32> to vector<32x1xf32>
    %cst_150 = arith.constant 3.200000e+01 : f32
    %501 = vector.broadcast %cst_150 : f32 to vector<32x1xf32>
    %502 = arith.divf %500, %501 : vector<32x1xf32>
    %503 = vector.broadcast %495 : vector<32x1xf32> to vector<32x32xf32>
    %504 = arith.subf %491, %503 : vector<32x32xf32>
    %cst_151 = arith.constant 9.99999974E-6 : f32
    %505 = vector.broadcast %cst_151 : f32 to vector<32x1xf32>
    %506 = arith.addf %502, %505 : vector<32x1xf32>
    %507 = math.rsqrt %506 : vector<32x1xf32>
    %508 = vector.broadcast %507 : vector<32x1xf32> to vector<32x32xf32>
    %509 = arith.mulf %504, %508 : vector<32x32xf32>
    %510 = vector.broadcast %5 : vector<1x32xf32> to vector<32x32xf32>
    %511 = arith.mulf %509, %510 : vector<32x32xf32>
    %512 = vector.broadcast %6 : vector<1x32xf32> to vector<32x32xf32>
    %513 = arith.addf %511, %512 : vector<32x32xf32>
    %cst_152 = arith.constant dense<0.000000e+00> : vector<32x64xf32>
    %514 = tpu.matmul %513, %26, %cst_152 {dimension_numbers = #tpu.dot_dimension_numbers<[1], [0], [0], [1], [0, 0, 1, 1], [], []>} : vector<32x32xf32>, vector<32x64xf32>, vector<32x64xf32> -> vector<32x64xf32>
    %515 = vector.broadcast %7 : vector<1x64xf32> to vector<32x64xf32>
    %516 = arith.addf %514, %515 : vector<32x64xf32>
    %cst_153 = arith.constant 0.000000e+00 : f32
    %517 = vector.broadcast %cst_153 : f32 to vector<32x64xf32>
    %518 = arith.maximumf %516, %517 : vector<32x64xf32>
    %cst_154 = arith.constant dense<0.000000e+00> : vector<32x32xf32>
    %519 = tpu.matmul %518, %27, %cst_154 {dimension_numbers = #tpu.dot_dimension_numbers<[1], [0], [0], [1], [0, 0, 1, 1], [], []>} : vector<32x64xf32>, vector<64x32xf32>, vector<32x32xf32> -> vector<32x32xf32>
    %520 = arith.addf %491, %519 : vector<32x32xf32>
    %521 = vector.broadcast %8 : vector<1x32xf32> to vector<32x32xf32>
    %522 = arith.addf %520, %521 : vector<32x32xf32>
    %523 = vector.shape_cast %522 : vector<32x32xf32> to vector<4x8x32xf32>
    %c0_155 = arith.constant 0 : index
    %c0_156 = arith.constant 0 : index
    %c0_157 = arith.constant 0 : index
    %524 = vector.load %arg15[%c0_155, %c0_156, %c0_157] : memref<4x8x32xf32, #tpu.memory_space<vmem>>, vector<4x8x32xf32>
    tpu.vector_store %arg15[%c0_155, %c0_156, %c0_157], %523 {strides = array<i32>} : memref<4x8x32xf32, #tpu.memory_space<vmem>>, vector<4x8x32xf32>,
    return
  }
  func.func @transform_0(%arg0: i32) -> (i32, i32, i32) {
    %c0_i32 = arith.constant 0 : i32
    %c0_i32_0 = arith.constant 0 : i32
    %c0_i32_1 = arith.constant 0 : i32
    return %arg0, %c0_i32, %c0_i32_0 : i32, i32, i32
  }
  func.func @transform_1(%arg0: i32) -> (i32, i32, i32) {
    %c0_i32 = arith.constant 0 : i32
    %c0_i32_0 = arith.constant 0 : i32
    %c0_i32_1 = arith.constant 0 : i32
    return %arg0, %c0_i32, %c0_i32_0 : i32, i32, i32
  }
  func.func @transform_2(%arg0: i32) -> (i32, i32) {
    %c0_i32 = arith.constant 0 : i32
    %c0_i32_0 = arith.constant 0 : i32
    %c0_i32_1 = arith.constant 0 : i32
    return %c0_i32, %c0_i32_0 : i32, i32
  }
  func.func @transform_3(%arg0: i32) -> (i32, i32) {
    %c0_i32 = arith.constant 0 : i32
    %c0_i32_0 = arith.constant 0 : i32
    %c0_i32_1 = arith.constant 0 : i32
    return %c0_i32, %c0_i32_0 : i32, i32
  }
  func.func @transform_4(%arg0: i32) -> (i32, i32) {
    %c0_i32 = arith.constant 0 : i32
    %c0_i32_0 = arith.constant 0 : i32
    %c0_i32_1 = arith.constant 0 : i32
    return %c0_i32, %c0_i32_0 : i32, i32
  }
  func.func @transform_5(%arg0: i32) -> (i32, i32) {
    %c0_i32 = arith.constant 0 : i32
    %c0_i32_0 = arith.constant 0 : i32
    %c0_i32_1 = arith.constant 0 : i32
    return %c0_i32, %c0_i32_0 : i32, i32
  }
  func.func @transform_6(%arg0: i32) -> (i32, i32) {
    %c0_i32 = arith.constant 0 : i32
    %c0_i32_0 = arith.constant 0 : i32
    %c0_i32_1 = arith.constant 0 : i32
    return %c0_i32, %c0_i32_0 : i32, i32
  }
  func.func @transform_7(%arg0: i32) -> (i32, i32) {
    %c0_i32 = arith.constant 0 : i32
    %c0_i32_0 = arith.constant 0 : i32
    %c0_i32_1 = arith.constant 0 : i32
    return %c0_i32, %c0_i32_0 : i32, i32
  }
  func.func @transform_8(%arg0: i32) -> (i32, i32) {
    %c0_i32 = arith.constant 0 : i32
    %c0_i32_0 = arith.constant 0 : i32
    %c0_i32_1 = arith.constant 0 : i32
    return %c0_i32, %c0_i32_0 : i32, i32
  }
  func.func @transform_9(%arg0: i32) -> (i32, i32) {
    %c0_i32 = arith.constant 0 : i32
    %c0_i32_0 = arith.constant 0 : i32
    %c0_i32_1 = arith.constant 0 : i32
    return %c0_i32, %c0_i32_0 : i32, i32
  }
  func.func @transform_10(%arg0: i32) -> (i32, i32) {
    %c0_i32 = arith.constant 0 : i32
    %c0_i32_0 = arith.constant 0 : i32
    %c0_i32_1 = arith.constant 0 : i32
    return %c0_i32, %c0_i32_0 : i32, i32
  }
  func.func @transform_11(%arg0: i32) -> (i32, i32) {
    %c0_i32 = arith.constant 0 : i32
    %c0_i32_0 = arith.constant 0 : i32
    %c0_i32_1 = arith.constant 0 : i32
    return %c0_i32, %c0_i32_0 : i32, i32
  }
  func.func @transform_12(%arg0: i32) -> (i32, i32) {
    %c0_i32 = arith.constant 0 : i32
    %c0_i32_0 = arith.constant 0 : i32
    %c0_i32_1 = arith.constant 0 : i32
    return %c0_i32, %c0_i32_0 : i32, i32
  }
  func.func @transform_13(%arg0: i32) -> (i32, i32) {
    %c0_i32 = arith.constant 0 : i32
    %c0_i32_0 = arith.constant 0 : i32
    %c0_i32_1 = arith.constant 0 : i32
    return %c0_i32, %c0_i32_0 : i32, i32
  }
  func.func @transform_14(%arg0: i32) -> (i32, i32, i32) {
    %c0_i32 = arith.constant 0 : i32
    %c0_i32_0 = arith.constant 0 : i32
    %c0_i32_1 = arith.constant 0 : i32
    return %arg0, %c0_i32, %c0_i32_0 : i32, i32, i32
  }
}

</mosaic_0001>

<bundles_post_ra>
// kernel: tpu_custom_call.1
= control target key start
LH: loop header
LB: loop body
LE: loop exit
PB: predicated region body
PF: predicated region fallthrough
CT: control target
= control target key end

     0   :  { %s10464_s0 = inlined_call_operand.vmem [shape: f32[8,64,32], index: 0, kind: input, shape index: {}]   ;;  %s10465_s1 = inlined_call_operand.vmem [shape: f32[8,8,32], index: 1, kind: input, shape index: {}]   ;;  %s10466_s2 = inlined_call_operand.vmem [shape: f32[16,128], index: 2, kind: input, shape index: {}]   ;;  %s10467_s3 = inlined_call_operand.vmem [shape: f32[32,32], index: 3, kind: input, shape index: {}]   ;;  %s10468_s4 = inlined_call_operand.vmem [shape: f32[32,32], index: 4, kind: input, shape index: {}]   ;;  %s10469_s5 = inlined_call_operand.vmem [shape: f32[32,32], index: 5, kind: input, shape index: {}]   ;;  %s10470_s6 = inlined_call_operand.vmem [shape: f32[32,32], index: 6, kind: input, shape index: {}]   ;;  %s10471_s7 = inlined_call_operand.vmem [shape: f32[32,32], index: 7, kind: input, shape index: {}]   ;;  %s10472_s8 = inlined_call_operand.vmem [shape: f32[32,32], index: 8, kind: input, shape index: {}]   ;;  %s10473_s9 = inlined_call_operand.vmem [shape: f32[32,32], index: 9, kind: input, shape index: {}]   ;;  %s10474_s10 = inlined_call_operand.vmem [shape: f32[32,32], index: 10, kind: input, shape index: {}]   ;;  %s10475_s11 = inlined_call_operand.vmem [shape: f32[32,32], index: 11, kind: input, shape index: {}]   ;;  %s10476_s12 = inlined_call_operand.vmem [shape: f32[32,64], index: 12, kind: input, shape index: {}]   ;;  %s10477_s13 = inlined_call_operand.vmem [shape: f32[64,32], index: 13, kind: input, shape index: {}]   ;;  %s10478_s14 = inlined_call_operand.hbm [shape: f32[8,8,32], index: 14, kind: output, shape index: {}]  }
   0x1   :  { %10610 = sst [smem:[#allocation73_spill]] %s10464_s0 }
   0x2   :  { %19 = vsyncpa [#allocation3], 0 }
   0x3   :  { %21 = vsyncpa [#allocation3 + $0x1], 0  ;;  %s7035_s29 = smov 0   ;;  %s7037_s30 = smov 0  }
   0x4   :  { %s7039_s15 = smov 0   ;;  %s7041_s16 = smov 0  }
   0x5 LB: > { %10611 = sst [smem:[#allocation5_spill]] %s6951_s15  ;;  %s7056_s17 = sadd.s32 4294967295, %s6955_s16   ;;  %s6955_s16 = sphi %s7041_s16, %s10847_s16   ;;  %s6951_s15 = sphi %s7039_s15, %s10849_s15   ;;  %s6947_s30 = sphi %s7037_s30, %s10851_s30   ;;  %s6943_s29 = sphi %s7035_s29, %s10850_s29  }
   0x6   : > { %s5931_s18 = sadd.s32 4294967294, %s6955_s16   ;;  %s7060_s19 = sadd.s32 1, %s6955_s16  }
   0x7   : > { %10612 = sst [smem:[#allocation6_spill]] %s7060_s19  ;;  %s338_s20 = sadd.s32 1, %s6951_s15 }
   0x8   : > { %s335_s21 = ssub.s32 %s6955_s16, %s7060_s19  ;;  %p348_p0 = scmp.ne.s32.totalorder %s6951_s15, %s6947_s30 }
   0x9   : > { %p336_p1 = scmp.eq.s32.totalorder %s335_s21, 0  ;;  %p349_p2 = scmp.eq.s32.totalorder %s7056_s17, 1 }
   0xa   : > { %p354_p3 = scmp.ne.s32.totalorder %s6947_s30, %s6943_s29  ;;  %p355_p4 = scmp.eq.s32.totalorder %s5931_s18, 1 }
   0xb   : > { %s7071_s22 = scalar_select %p336_p1, %s6951_s15, %s338_s20  }
   0xc   : > { %p7073_p5 = por %p349_p2, %p348_p0  ;;  %p7077_p6 = por %p355_p4, %p354_p3 }
   0xd   : > { %10613 = sst [smem:[#allocation7_spill]] %s7071_s22  ;;  %p5934_p7 = scmp.ge.s32.totalorder %s6955_s16, 1 }
   0xe   : > { %s10615_s24 = scalar_select %p7077_p6, 1, 0 }
   0xf   : > { %p428_p8 = scmp.lt.s32.totalorder %s6955_s16, 3 }
  0x10   : > { %10616 = sst [smem:[#allocation8_spill]] %s10615_s24 }
  0x11   : > { %p429_p9 = pnand %p5934_p7, %p428_p8 }
  0x13   : > { %432 = sbr.rel (%p429_p9) target bundleno = 6849 (0x1ac1), region = 76 }
  0x18   : > { %s5936_s25 = sshll.u32 %s7056_s17, 2  ;;  %vm576_vm0 = vcmask 261120   ;;  %s10617_s0 = sld [smem:[#allocation73_spill]]  ;;  %v6957_v14 = vmov 32.0  }
  0x19   : > { %p481_p10 = scmp.lt.s32.totalorder %s5936_s25, 7  ;;  %6390 = vrcp.f32 %v6957_v14  ;;  %s477_s21 = sand.u32 1, %s6947_s30  }
  0x1a   : > { %s6347_s27 = sshll.u32 %s7056_s17, 5  ;;  %s5842_s17 = scalar_lea.sflag [#allocation3], %s477_s21 }
  0x1b   : > { %s10853_s25 = smov (!%p481_p10, %s5936_s25), 7  ;;  %s5853_s15 = scalar_lea.hbm %s10478_s14, %s6347_s27 }
  0x1c   : > { %s6346_s26 = sshll.u32 %s10853_s25, 6  ;;  %s5940_s20 = sshll.u32 %s10853_s25, 3 }
  0x1d   : > { %s5856_s22 = sshll.u32 %s5853_s15, 4  ;;  %s6913_s27 = scalar_lea.hbm %s10478_s14, 64  ;;  %s5857_s22 = int_to_ptr.hbm [resolvable:$true] %s5856_s22 }
  0x1e   : > { %s7090_s18 = scalar_lea.vmem %s10617_s0, %s6346_s26  ;;  %s7685_s26 = scalar_lea.vmem %s10465_s1, %s5940_s20 }
  0x1f   : > { %v546_v0 = vld [vmem:[%s7090_s18 + $0x10] sm:$0xff]  ;;  %v544_v1 = vld [vmem:[%s7090_s18] sm:$0xff]  ;;  %v545_v6 = vld [vmem:[%s7090_s18 + $0x8] sm:$0xff]  ;;  %v6391_v15 = vpop.eup %6390  ;;  %s6907_s24 = sshra.s32 %s5857_s22, 4  ;;  %s6908_s24 = int_to_ptr.hbm [resolvable:$true] %s6907_s24 }
  0x20   : > { %v7095_v2 = vld [vmem:[%s7090_s18 + $0x20] sm:$0xff]  ;;  %v583_v3 = vsel %vm576_vm0, %v546_v0, 0.0  ;;  %v577_v4 = vsel %vm576_vm0, %v544_v1, 0.0  ;;  %v547_v7 = vld [vmem:[%s7090_s18 + $0x18] sm:$0xff]  ;;  %v549_v8 = vld [vmem:[%s7090_s18 + $0x28] sm:$0xff]  ;;  %v580_v9 = vsel %vm576_vm0, %v545_v6, 0.0  ;;  %vm678_vm1 = vweird.f32 %v6391_v15  ;;  %p6914_p0 = scmp.lt.s32.totalorder %s6908_s24, %s10478_s14 }
  0x21   : > { %v589_v5 = vsel %vm576_vm0, %v7095_v2, 0.0  ;;  %584 = vadd.xlane.f32.xlu1 %v583_v3  ;;  %578 = vadd.xlane.f32.xlu0 %v577_v4  ;;  %v586_v10 = vsel %vm576_vm0, %v547_v7, 0.0  ;;  %v592_v11 = vsel %vm576_vm0, %v549_v8, 0.0  ;;  %v550_v12 = vld [vmem:[%s7090_s18 + $0x30] sm:$0xff]  ;;  %v674_v16 = vmul.f32 32.0, %v6391_v15  ;;  %v7125_v36 = vld [vmem:[%s7090_s18 + $0x48] sm:$0xff] }
  0x22   : > { %590 = vadd.xlane.f32.xlu2 %v589_v5  ;;  %v595_v13 = vsel %vm576_vm0, %v550_v12, 0.0  ;;  %v7130_v39 = vld [vmem:[%s7090_s18 + $0x38] sm:$0xff]  ;;  %v604_v41 = vsel %vm576_vm0, %v7125_v36, 0.0  ;;  %v7151_v50 = vld [vmem:[%s7090_s18 + $0x40] sm:$0xff]  ;;  %v7165_v58 = vld [vmem:[%s7090_s18 + $0x50] sm:$0xff]  ;;  %s6909_s20 = scalar_lea.hbm %s6908_s24, 32 }
  0x23   : > { %v675_v17 = vsub.f32 1.0, %v674_v16  ;;  %v598_v44 = vsel %vm576_vm0, %v7130_v39, 0.0  ;;  %v601_v54 = vsel %vm576_vm0, %v7151_v50, 0.0  ;;  %v7162_v57 = vld [vmem:[%s7090_s18 + $0x60] sm:$0xff]  ;;  %v607_v62 = vsel %vm576_vm0, %v7165_v58, 0.0  ;;  %v7185_v4 = vld [vmem:[%s7090_s18 + $0x68] sm:$0xff]  ;;  %p6910_p11 = scmp.ne.s32.totalorder %s6908_s24, %s6909_s20  ;;  %p6915_p1 = scmp.lt.s32.totalorder %s6913_s27, %s6909_s20 }
  0x24   : > { %v613_v60 = vsel %vm576_vm0, %v7162_v57, 0.0  ;;  %v616_v5 = vsel %vm576_vm0, %v7185_v4, 0.0 }
  0x25   : > { %v676_v18 = vmul.f32 %v6391_v15, %v675_v17  ;;  %p6911_p12 = pnand %p6910_p11, %p7073_p5  ;;  %p6916_p2 = por %p6915_p1, %p6914_p0 }
  0x27   : > { %v677_v19 = vadd.f32 %v6391_v15, %v676_v18  ;;  %p6912_p13 = pneg %p6911_p12 }
  0x29   : > { %581 = vadd.xlane.f32.xlu0 %v580_v9  ;;  %587 = vadd.xlane.f32.xlu1 %v586_v10  ;;  %v7109_v20 = vsel %vm678_vm1, %v6391_v15, %v677_v19  ;;  %v502_v9 = vld [vmem:[%s10468_s4 + $0x10] sm:$0xff]  ;;  %v497_v10 = vld [vmem:[%s10467_s3 + $0x8] sm:$0xff]  ;;  %p6917_p3 = pnand %p6916_p2, %p6912_p13 }
  0x2a   : > { %593 = vadd.xlane.f32.xlu2 %v592_v11  ;;  %v501_v11 = vld [vmem:[%s10468_s4 + $0x8] sm:$0xff] }
  0x31   : > { %596 = vadd.xlane.f32.xlu1 %v595_v13  ;;  %v500_v13 = vld [vmem:[%s10468_s4] sm:$0xff] }
  0x94   : > { %v585_v21 = vpop.xlane.xlu1 %584  ;;  %v579_v22 = vpop.xlane.xlu0 %578 }
  0x95   : > { %v682_v23 = vmul.f32 %v7109_v20, %v585_v21  ;;  %v680_v24 = vmul.f32 %v7109_v20, %v579_v22  ;;  %v591_v25 = vpop.xlane.xlu2 %590 }
  0x96   : > { %v684_v49 = vmul.f32 %v7109_v20, %v591_v25 }
  0x97   : > { %v7113_v26 = vsub.f32 %v546_v0, %v682_v23  ;;  %v7115_v27 = vsub.f32 %v544_v1, %v680_v24  ;;  %v7179_v1 = vld [vmem:[%s7090_s18 + $0x58] sm:$0xff] }
  0x98   : > { %v7156_v53 = vsub.f32 %v7095_v2, %v684_v49  ;;  %v610_v3 = vsel %vm576_vm0, %v7179_v1, 0.0 }
  0x99   : > { %v746_v28 = vmul.f32 %v7113_v26, %v7113_v26  ;;  %v744_v29 = vmul.f32 %v7115_v27, %v7115_v27 }
  0x9a   : > { %v748_v59 = vmul.f32 %v7156_v53, %v7156_v53 }
  0x9b   : > { %v782_v30 = vsel %vm576_vm0, %v746_v28, 0.0  ;;  %v776_v31 = vsel %vm576_vm0, %v744_v29, 0.0 }
  0x9c   : > { %783 = vadd.xlane.f32.xlu1 %v782_v30  ;;  %777 = vadd.xlane.f32.xlu0 %v776_v31  ;;  %v582_v32 = vpop.xlane.xlu0 %581  ;;  %v588_v33 = vpop.xlane.xlu1 %587  ;;  %v788_v63 = vsel %vm576_vm0, %v748_v59, 0.0 }
  0x9d   : > { %v681_v34 = vmul.f32 %v7109_v20, %v582_v32  ;;  %v594_v35 = vpop.xlane.xlu2 %593  ;;  %v683_v37 = vmul.f32 %v7109_v20, %v588_v33 }
  0x9e   : > { %v685_v38 = vmul.f32 %v7109_v20, %v594_v35 }
  0x9f   : > { %v7132_v40 = vsub.f32 %v545_v6, %v681_v34  ;;  %v7138_v43 = vsub.f32 %v547_v7, %v683_v37  ;;  %v499_v6 = vld [vmem:[%s10467_s3 + $0x18] sm:$0xff] }
  0xa0   : > { %v7136_v42 = vsub.f32 %v549_v8, %v685_v38  ;;  %v503_v7 = vld [vmem:[%s10468_s4 + $0x18] sm:$0xff]  ;;  %1462 = vmatpush.msra.mxu0 %v499_v6  ;;  %v498_v8 = vld [vmem:[%s10467_s3 + $0x10] sm:$0xff] }
  0xa1   : > { %v745_v45 = vmul.f32 %v7132_v40, %v7132_v40  ;;  %v747_v48 = vmul.f32 %v7138_v43, %v7138_v43  ;;  %1575 = vmatpush.msra.mxu1 %v503_v7 }
  0xa2   : > { %v749_v47 = vmul.f32 %v7136_v42, %v7136_v42  ;;  %1463 = vmatpush.msra.mxu0 %v498_v8 }
  0xa3   : > { %v779_v46 = vsel %vm576_vm0, %v745_v45, 0.0  ;;  %v785_v52 = vsel %vm576_vm0, %v747_v48, 0.0  ;;  %1576 = vmatpush.msra.mxu1 %v502_v9 }
  0xa4   : > { %605 = vadd.xlane.f32.xlu1 %v604_v41  ;;  %599 = vadd.xlane.f32.xlu0 %v598_v44  ;;  %v791_v51 = vsel %vm576_vm0, %v749_v47, 0.0  ;;  %v597_v55 = vpop.xlane.xlu1 %596 }
  0xa5   : > { %780 = vadd.xlane.f32.xlu2 %v779_v46  ;;  %v686_v56 = vmul.f32 %v7109_v20, %v597_v55  ;;  %1464 = vmatpush.msra.mxu0 %v497_v10 }
  0xa6   : > { %1577 = vmatpush.msra.mxu1 %v501_v11 }
  0xa7   : > { %v7171_v61 = vsub.f32 %v550_v12, %v686_v56  ;;  %v496_v12 = vld [vmem:[%s10467_s3] sm:$0xff] }
  0xa8   : > { %1465 = vmatpush.msra.mxu0 %v496_v12  ;;  %1578 = vmatpush.msra.mxu1 %v500_v13 }
  0xa9   : > { %v750_v0 = vmul.f32 %v7171_v61, %v7171_v61 }
  0xab   : > { %v794_v2 = vsel %vm576_vm0, %v750_v0, 0.0 }
  0xac   : > { %792 = vadd.xlane.f32.xlu1 %v791_v51  ;;  %786 = vadd.xlane.f32.xlu0 %v785_v52  ;;  %v7243_v51 = vld [vmem:[%s7090_s18 + $0x80] sm:$0xff] }
  0xad   : > { %602 = vadd.xlane.f32.xlu2 %v601_v54  ;;  %v7247_v54 = vld [vmem:[%s7090_s18 + $0x70] sm:$0xff] }
  0xae   : > { %v619_v6 = vsel %vm576_vm0, %v7247_v54, 0.0 }
  0xb4   : > { %614 = vadd.xlane.f32.xlu1 %v613_v60  ;;  %608 = vadd.xlane.f32.xlu0 %v607_v62  ;;  %v494_v60 = vld [vmem:[%s10466_s2] sm:$0xff] }
  0xb5   : > { %789 = vadd.xlane.f32.xlu2 %v788_v63  ;;  %v7264_v7 = vperm.slane %v494_v60, 0 }
  0xbc   : > { %795 = vadd.xlane.f32.xlu0 %v794_v2  ;;  %v625_v2 = vsel %vm576_vm0, %v7243_v51, 0.0 }
  0xbd   : > { %611 = vadd.xlane.f32.xlu2 %v610_v3 }
  0xc4   : > { %617 = vadd.xlane.f32.xlu0 %v616_v5 }
 0x10f   : > { %v784_v14 = vpop.xlane.xlu1 %783  ;;  %v778_v15 = vpop.xlane.xlu0 %777 }
 0x110   : > { %v874_v16 = vmul.f32 %v784_v14, %v7109_v20  ;;  %v872_v17 = vmul.f32 %v778_v15, %v7109_v20  ;;  %v7272_v15 = vperm.slane %v494_v60, 1 }
 0x112   : > { %v7215_v18 = vadd.f32 1e-05, %v874_v16  ;;  %v904_v19 = vadd.f32 1e-05, %v872_v17 }
 0x114   : > { %6392 = vrsqrt.f32 %v7215_v18  ;;  %vm942_vm3 = vweird.f32 %v904_v19  ;;  %vm962_vm5 = vweird.f32 %v7215_v18 }
 0x115   : > { %6394 = vrsqrt.f32 %v904_v19 }
 0x117   : > { %v606_v21 = vpop.xlane.xlu1 %605  ;;  %v600_v22 = vpop.xlane.xlu0 %599 }
 0x118   : > { %v689_v23 = vmul.f32 %v7109_v20, %v606_v21  ;;  %v781_v24 = vpop.xlane.xlu2 %780  ;;  %v687_v25 = vmul.f32 %v7109_v20, %v600_v22 }
 0x119   : > { %v873_v28 = vmul.f32 %v781_v24, %v7109_v20 }
 0x11a   : > { %v7221_v29 = vpop.eup %6392  ;;  %v7224_v30 = vsub.f32 %v7125_v36, %v689_v23  ;;  %v7227_v31 = vsub.f32 %v7130_v39, %v687_v25 }
 0x11b   : > { %v6395_v32 = vpop.eup %6394  ;;  %v957_v33 = vmul.f32 %v7221_v29, %v7215_v18  ;;  %v7231_v34 = vadd.f32 1e-05, %v873_v28  ;;  %vm963_vm6 = vweird.f32 %v7221_v29 }
 0x11c   : > { %v937_v35 = vmul.f32 %v6395_v32, %v904_v19  ;;  %v753_v37 = vmul.f32 %v7224_v30, %v7224_v30  ;;  %v751_v38 = vmul.f32 %v7227_v31, %v7227_v31  ;;  %vm943_vm2 = vweird.f32 %v6395_v32  ;;  %vm7301_vm9 = vmor %vm962_vm5, %vm963_vm6 }
 0x11d   : > { %6396 = vrsqrt.f32 %v7231_v34  ;;  %v958_v44 = vmul.f32 %v7221_v29, %v957_v33  ;;  %vm944_vm4 = vmor %vm942_vm3, %vm943_vm2  ;;  %vm952_vm8 = vweird.f32 %v7231_v34 }
 0x11e   : > { %v938_v36 = vmul.f32 %v6395_v32, %v937_v35  ;;  %v803_v39 = vsel %vm576_vm0, %v753_v37, 0.0  ;;  %v797_v41 = vsel %vm576_vm0, %v751_v38, 0.0  ;;  %v7294_v37 = vld [vmem:[%s7090_s18 + $0x78] sm:$0xff] }
 0x11f   : > { %v793_v45 = vpop.xlane.xlu1 %792  ;;  %804 = vadd.xlane.f32.xlu0 %v803_v39  ;;  %798 = vadd.xlane.f32.xlu2 %v797_v41  ;;  %v787_v46 = vpop.xlane.xlu0 %786  ;;  %v959_v63 = vmul.f32 0.5, %v958_v44 }
 0x120   : > { %v939_v47 = vmul.f32 0.5, %v938_v36  ;;  %v603_v48 = vpop.xlane.xlu2 %602  ;;  %v875_v49 = vmul.f32 %v787_v46, %v7109_v20  ;;  %v877_v56 = vmul.f32 %v793_v45, %v7109_v20  ;;  %v622_v45 = vsel %vm576_vm0, %v7294_v37, 0.0 }
 0x121   : > { %v688_v52 = vmul.f32 %v7109_v20, %v603_v48  ;;  %v960_v11 = vsub.f32 1.5, %v959_v63 }
 0x122   : > { %v940_v55 = vsub.f32 1.5, %v939_v47  ;;  %v7250_v59 = vadd.f32 1e-05, %v875_v49  ;;  %v7266_v10 = vadd.f32 1e-05, %v877_v56  ;;  %v7322_v49 = vld [vmem:[%s7090_s18 + $0x98] sm:$0xff] }
 0x123   : > { %v6397_v62 = vpop.eup %6396  ;;  %v7256_v0 = vsub.f32 %v7151_v50, %v688_v52  ;;  %v961_v38 = vmul.f32 %v7221_v29, %v960_v11 }
 0x124   : > { %v941_v3 = vmul.f32 %v6395_v32, %v940_v55  ;;  %v947_v5 = vmul.f32 %v6397_v62, %v7231_v34  ;;  %6398 = vrsqrt.f32 %v7250_v59  ;;  %vm953_vm7 = vweird.f32 %v6397_v62 }
 0x125   : > { %v752_v50 = vmul.f32 %v7256_v0, %v7256_v0  ;;  %6400 = vrsqrt.f32 %v7266_v10  ;;  %vm954_vm10 = vmor %vm952_vm8, %vm953_vm7  ;;  %v965_v55 = vsel %vm7301_vm9, %v7221_v29, %v961_v38  ;;  %vm972_vm11 = vweird.f32 %v7250_v59 }
 0x126   : > { %v945_v8 = vsel %vm944_vm4, %v6395_v32, %v941_v3  ;;  %v948_v9 = vmul.f32 %v6397_v62, %v947_v5  ;;  %v634_v5 = vsel %vm576_vm0, %v7322_v49, 0.0  ;;  %v1258_v11 = vmul.f32 %v965_v55, %v7113_v26 }
 0x127   : > { %v615_v12 = vpop.xlane.xlu1 %614  ;;  %626 = vadd.xlane.f32.xlu0 %v625_v2  ;;  %620 = vadd.xlane.f32.xlu2 %v619_v6  ;;  %v609_v13 = vpop.xlane.xlu0 %608  ;;  %v1256_v14 = vmul.f32 %v945_v8, %v7115_v27  ;;  %v800_v19 = vsel %vm576_vm0, %v752_v50, 0.0  ;;  %v7338_v6 = vld [vmem:[%s7090_s18 + $0x88] sm:$0xff]  ;;  %vm992_vm2 = vweird.f32 %v7266_v10 }
 0x128   : > { %v949_v16 = vmul.f32 0.5, %v948_v9  ;;  %v692_v17 = vmul.f32 %v7109_v20, %v615_v12  ;;  %v790_v21 = vpop.xlane.xlu2 %789  ;;  %v690_v22 = vmul.f32 %v7109_v20, %v609_v13  ;;  %801 = vadd.xlane.f32.xlu1 %v800_v19 }
 0x129   : > { %v876_v23 = vmul.f32 %v790_v21, %v7109_v20  ;;  %v1289_v24 = vmul.f32 %v7264_v7, %v1256_v14  ;;  %v628_v14 = vsel %vm576_vm0, %v7338_v6, 0.0 }
 0x12a   : > { %v950_v27 = vsub.f32 1.5, %v949_v16  ;;  %v7282_v25 = vsub.f32 %v7162_v57, %v692_v17  ;;  %v7285_v28 = vsub.f32 %v7165_v58, %v690_v22  ;;  %v7287_v32 = vpop.eup %6398  ;;  %v1291_v22 = vmul.f32 %v7264_v7, %v1258_v11 }
 0x12b   : > { %v7290_v33 = vadd.f32 1e-05, %v876_v23  ;;  %v1322_v35 = vadd.f32 %v7272_v15, %v1289_v24  ;;  %v967_v34 = vmul.f32 %v7287_v32, %v7250_v59  ;;  %v7324_v52 = vpop.eup %6400  ;;  %vm973_vm12 = vweird.f32 %v7287_v32 }
 0x12c   : > { %v951_v58 = vmul.f32 %v6397_v62, %v950_v27  ;;  %v756_v36 = vmul.f32 %v7282_v25, %v7282_v25  ;;  %v754_v18 = vmul.f32 %v7285_v28, %v7285_v28  ;;  %v987_v8 = vmul.f32 %v7324_v52, %v7266_v10  ;;  %vm7360_vm13 = vmor %vm972_vm11, %vm973_vm12 }
 0x12d   : > { %6402 = vrsqrt.f32 %v7290_v33  ;;  %5941 = vmatmul.msk.f32.vlgmr.msra.gmra.mxu0 %vm576_vm0, %v1322_v35  ;;  %5973 = vmatmul.msk.f32.vlgmr.msra.gmra.mxu1 %vm576_vm0, %v1322_v35  ;;  %v968_v41 = vmul.f32 %v7287_v32, %v967_v34  ;;  %vm982_vm14 = vweird.f32 %v7290_v33  ;;  %v7376_v34 = vld [vmem:[%s7090_s18 + $0x90] sm:$0xff]  ;;  %vm993_vm3 = vweird.f32 %v7324_v52 }
 0x12e   : > { %v955_v39 = vsel %vm954_vm10, %v6397_v62, %v951_v58  ;;  %v812_v44 = vsel %vm576_vm0, %v756_v36, 0.0  ;;  %v806_v46 = vsel %vm576_vm0, %v754_v18, 0.0  ;;  %v988_v26 = vmul.f32 %v7324_v52, %v987_v8  ;;  %vm994_vm4 = vmor %vm992_vm2, %vm993_vm3 }
 0x12f   : > { %813 = vadd.xlane.f32.xlu0 %v812_v44  ;;  %v796_v47 = vpop.xlane.xlu0 %795  ;;  %v1257_v48 = vmul.f32 %v955_v39, %v7132_v40  ;;  %v969_v56 = vmul.f32 0.5, %v968_v41  ;;  %807 = vadd.xlane.f32.xlu2 %v806_v46  ;;  %v1324_v58 = vadd.f32 %v7272_v15, %v1291_v22  ;;  %v7391_v46 = vld [vmem:[%s7090_s18 + $0xa0] sm:$0xff] }
 0x130   : > { %v612_v60 = vpop.xlane.xlu2 %611  ;;  %v878_v62 = vmul.f32 %v796_v47, %v7109_v20  ;;  %623 = vadd.xlane.f32.xlu1 %v622_v45  ;;  %v989_v57 = vmul.f32 0.5, %v988_v26 }
 0x131   : > { %v691_v63 = vmul.f32 %v7109_v20, %v612_v60  ;;  %v1290_v2 = vmul.f32 %v7264_v7, %v1257_v48  ;;  %v970_v3 = vsub.f32 1.5, %v969_v56  ;;  %v637_v60 = vsel %vm576_vm0, %v7391_v46, 0.0 }
 0x132   : > { %v7333_v40 = vadd.f32 1e-05, %v878_v62  ;;  %v990_v41 = vsub.f32 1.5, %v989_v57 }
 0x133   : > { %v6403_v29 = vpop.eup %6402  ;;  %v7343_v9 = vsub.f32 %v7179_v1, %v691_v63  ;;  %v1323_v50 = vadd.f32 %v7272_v15, %v1290_v2  ;;  %v971_v12 = vmul.f32 %v7287_v32, %v970_v3 }
 0x134   : > { %v977_v13 = vmul.f32 %v6403_v29, %v7290_v33  ;;  %6404 = vrsqrt.f32 %v7333_v40  ;;  %vm983_vm15 = vweird.f32 %v6403_v29  ;;  %v991_v55 = vmul.f32 %v7324_v52, %v990_v41 }
 0x135   : > { %5942 = vmatmul.msk.f32.gmra.mxu0 %vm576_vm0, %v1323_v50  ;;  %5974 = vmatmul.msk.f32.gmra.mxu1 %vm576_vm0, %v1323_v50  ;;  %v755_v1 = vmul.f32 %v7343_v9, %v7343_v9  ;;  %v975_v23 = vsel %vm7360_vm13, %v7287_v32, %v971_v12  ;;  %vm984_vm1 = vmor %vm982_vm14, %vm983_vm15  ;;  %vm1002_vm5 = vweird.f32 %v7333_v40 }
 0x136   : > { %v978_v16 = vmul.f32 %v6403_v29, %v977_v13  ;;  %v1259_v36 = vmul.f32 %v975_v23, %v7138_v43  ;;  %v995_v62 = vsel %vm994_vm4, %v7324_v52, %v991_v55 }
 0x137   : > { %635 = vadd.xlane.f32.xlu0 %v634_v5  ;;  %v809_v19 = vsel %vm576_vm0, %v755_v1, 0.0  ;;  %v618_v21 = vpop.xlane.xlu0 %617  ;;  %629 = vadd.xlane.f32.xlu2 %v628_v14  ;;  %v1261_v2 = vmul.f32 %v995_v62, %v7136_v42 }
 0x138   : > { %v979_v24 = vmul.f32 0.5, %v978_v16  ;;  %v693_v27 = vmul.f32 %v7109_v20, %v618_v21  ;;  %810 = vadd.xlane.f32.xlu1 %v809_v19  ;;  %v1292_v43 = vmul.f32 %v7264_v7, %v1259_v36 }
 0x139   : > { %v1294_v5 = vmul.f32 %v7264_v7, %v1261_v2 }
 0x13a   : > { %v6405_v59 = vpop.eup %6404  ;;  %v980_v35 = vsub.f32 1.5, %v979_v24  ;;  %v7371_v38 = vsub.f32 %v7185_v4, %v693_v27  ;;  %v631_v4 = vsel %vm576_vm0, %v7376_v34, 0.0  ;;  %v1325_v47 = vadd.f32 %v7272_v15, %v1292_v43 }
 0x13b   : > { %v997_v18 = vmul.f32 %v6405_v59, %v7333_v40  ;;  %vm1003_vm6 = vweird.f32 %v6405_v59  ;;  %v1327_v52 = vadd.f32 %v7272_v15, %v1294_v5 }
 0x13c   : > { %v981_v32 = vmul.f32 %v6403_v29, %v980_v35  ;;  %v757_v39 = vmul.f32 %v7371_v38, %v7371_v38  ;;  %vm1004_vm7 = vmor %vm1002_vm5, %vm1003_vm6 }
 0x13d   : > { %5943 = vmatmul.msk.f32.gmra.mxu0 %vm576_vm0, %v1324_v58  ;;  %5975 = vmatmul.msk.f32.gmra.mxu1 %vm576_vm0, %v1324_v58  ;;  %v998_v45 = vmul.f32 %v6405_v59, %v997_v18 }
 0x13e   : > { %v815_v33 = vsel %vm576_vm0, %v757_v39, 0.0  ;;  %v985_v44 = vsel %vm984_vm1, %v6403_v29, %v981_v32 }
 0x13f   : > { %816 = vadd.xlane.f32.xlu2 %v815_v33  ;;  %v1260_v48 = vmul.f32 %v985_v44, %v7156_v53  ;;  %v999_v56 = vmul.f32 0.5, %v998_v45  ;;  %v7446_v45 = vld [vmem:[%s7090_s18 + $0xa8] sm:$0xff] }
 0x140   : > { %632 = vadd.xlane.f32.xlu1 %v631_v4 }
 0x141   : > { %v1293_v10 = vmul.f32 %v7264_v7, %v1260_v48  ;;  %v1000_v63 = vsub.f32 1.5, %v999_v56 }
 0x143   : > { %v1326_v53 = vadd.f32 %v7272_v15, %v1293_v10  ;;  %v1001_v3 = vmul.f32 %v6405_v59, %v1000_v63  ;;  %v640_v63 = vsel %vm576_vm0, %v7446_v45, 0.0 }
 0x145   : > { %5944 = vmatmul.msk.f32.gmra.mxu0 %vm576_vm0, %v1325_v47  ;;  %5976 = vmatmul.msk.f32.gmra.mxu1 %vm576_vm0, %v1325_v47  ;;  %v1005_v29 = vsel %vm1004_vm7, %v6405_v59, %v1001_v3  ;;  %v7449_v47 = vld [vmem:[%s7090_s18 + $0xb8] sm:$0xff] }
 0x146   : > { %v1262_v8 = vmul.f32 %v1005_v29, %v7171_v61 }
 0x147   : > { %638 = vadd.xlane.f32.xlu2 %v637_v60 }
 0x148   : > { %v1295_v40 = vmul.f32 %v7264_v7, %v1262_v8 }
 0x14a   : > { %v1328_v42 = vadd.f32 %v7272_v15, %v1295_v40 }
 0x14d   : > { %5945 = vmatmul.msk.f32.gmra.mxu0 %vm576_vm0, %v1326_v53  ;;  %5977 = vmatmul.msk.f32.gmra.mxu1 %vm576_vm0, %v1326_v53  ;;  %v646_v53 = vsel %vm576_vm0, %v7449_v47, 0.0 }
 0x155   : > { %5946 = vmatmul.msk.f32.gmra.mxu0 %vm576_vm0, %v1327_v52  ;;  %5978 = vmatmul.msk.f32.gmra.mxu1 %vm576_vm0, %v1327_v52 }
 0x15d   : > { %5947 = vmatmul.msk.f32.gmra.mxu0 %vm576_vm0, %v1328_v42  ;;  %5979 = vmatmul.msk.f32.gmra.mxu1 %vm576_vm0, %v1328_v42 }
 0x192   : > { %v799_v50 = vpop.xlane.xlu2 %798  ;;  %v805_v11 = vpop.xlane.xlu0 %804 }
 0x193   : > { %v879_v12 = vmul.f32 %v799_v50, %v7109_v20  ;;  %v881_v13 = vmul.f32 %v805_v11, %v7109_v20 }
 0x195   : > { %v911_v1 = vadd.f32 1e-05, %v879_v12  ;;  %v7418_v61 = vadd.f32 1e-05, %v881_v13 }
 0x197   : > { %6406 = vrsqrt.f32 %v911_v1  ;;  %vm1012_vm9 = vweird.f32 %v911_v1  ;;  %vm1032_vm11 = vweird.f32 %v7418_v61 }
 0x198   : > { %6408 = vrsqrt.f32 %v7418_v61 }
 0x19a   : > { %v621_v14 = vpop.xlane.xlu2 %620  ;;  %v627_v16 = vpop.xlane.xlu0 %626 }
 0x19b   : > { %v694_v26 = vmul.f32 %v7109_v20, %v621_v14  ;;  %v696_v17 = vmul.f32 %v7109_v20, %v627_v16  ;;  %v802_v19 = vpop.xlane.xlu1 %801 }
 0x19c   : > { %v880_v22 = vmul.f32 %v802_v19, %v7109_v20 }
 0x19d   : > { %v6407_v21 = vpop.eup %6406  ;;  %v7425_v23 = vsub.f32 %v7247_v54, %v694_v26  ;;  %v7428_v24 = vsub.f32 %v7243_v51, %v696_v17 }
 0x19e   : > { %v7430_v27 = vpop.eup %6408  ;;  %v1007_v59 = vmul.f32 %v6407_v21, %v911_v1  ;;  %v7432_v35 = vadd.f32 1e-05, %v880_v22  ;;  %vm1013_vm8 = vweird.f32 %v6407_v21  ;;  %v7484_v22 = vld [vmem:[%s7090_s18 + $0xb0] sm:$0xff] }
 0x19f   : > { %v758_v57 = vmul.f32 %v7425_v23, %v7425_v23  ;;  %v1027_v36 = vmul.f32 %v7430_v27, %v7418_v61  ;;  %v760_v54 = vmul.f32 %v7428_v24, %v7428_v24  ;;  %vm1014_vm10 = vmor %vm1012_vm9, %vm1013_vm8  ;;  %vm1033_vm12 = vweird.f32 %v7430_v27 }
 0x1a0   : > { %v1008_v58 = vmul.f32 %v6407_v21, %v1007_v59  ;;  %6410 = vrsqrt.f32 %v7432_v35  ;;  %vm7500_vm14 = vmor %vm1032_vm11, %vm1033_vm12  ;;  %vm1022_vm15 = vweird.f32 %v7432_v35 }
 0x1a1   : > { %v818_v51 = vsel %vm576_vm0, %v758_v57, 0.0  ;;  %v824_v18 = vsel %vm576_vm0, %v760_v54, 0.0  ;;  %v1028_v43 = vmul.f32 %v7430_v27, %v1027_v36 }
 0x1a2   : > { %v1009_v32 = vmul.f32 0.5, %v1008_v58  ;;  %819 = vadd.xlane.f32.xlu1 %v818_v51  ;;  %v814_v39 = vpop.xlane.xlu0 %813  ;;  %v808_v4 = vpop.xlane.xlu2 %807  ;;  %825 = vadd.xlane.f32.xlu2 %v824_v18 }
 0x1a3   : > { %v624_v41 = vpop.xlane.xlu1 %623  ;;  %v882_v44 = vmul.f32 %v808_v4, %v7109_v20  ;;  %v884_v60 = vmul.f32 %v814_v39, %v7109_v20  ;;  %v1029_v3 = vmul.f32 0.5, %v1028_v43 }
 0x1a4   : > { %v1010_v33 = vsub.f32 1.5, %v1009_v32  ;;  %v695_v48 = vmul.f32 %v7109_v20, %v624_v41  ;;  %v643_v32 = vsel %vm576_vm0, %v7484_v22, 0.0  ;;  %v7517_v41 = vld [vmem:[%s7090_s18 + $0xc0] sm:$0xff] }
 0x1a5   : > { %v7452_v56 = vadd.f32 1e-05, %v882_v44  ;;  %v1030_v12 = vsub.f32 1.5, %v1029_v3  ;;  %v7533_v3 = vld [vmem:[%s7090_s18 + $0xd0] sm:$0xff] }
 0x1a6   : > { %v1011_v55 = vmul.f32 %v6407_v21, %v1010_v33  ;;  %v6411_v10 = vpop.eup %6410  ;;  %v7456_v62 = vsub.f32 %v7294_v37, %v695_v48  ;;  %v7467_v37 = vadd.f32 1e-05, %v884_v60 }
 0x1a7   : > { %v1017_v5 = vmul.f32 %v6411_v10, %v7432_v35  ;;  %6412 = vrsqrt.f32 %v7452_v56  ;;  %vm1023_vm13 = vweird.f32 %v6411_v10  ;;  %v1031_v36 = vmul.f32 %v7430_v27, %v1030_v12 }
 0x1a8   : > { %v1015_v2 = vsel %vm1014_vm10, %v6407_v21, %v1011_v55  ;;  %v759_v29 = vmul.f32 %v7456_v62, %v7456_v62  ;;  %6414 = vrsqrt.f32 %v7467_v37  ;;  %vm1024_vm1 = vmor %vm1022_vm15, %vm1023_vm13  ;;  %vm1042_vm2 = vweird.f32 %v7452_v56 }
 0x1a9   : > { %v1263_v52 = vmul.f32 %v1015_v2, %v7227_v31  ;;  %v1018_v8 = vmul.f32 %v6411_v10, %v1017_v5  ;;  %v1035_v48 = vsel %vm7500_vm14, %v7430_v27, %v1031_v36  ;;  %v649_v2 = vsel %vm576_vm0, %v7517_v41, 0.0  ;;  %v7569_v36 = vld [vmem:[%s7090_s18 + $0xc8] sm:$0xff] }
 0x1aa   : > { %641 = vadd.xlane.f32.xlu1 %v640_v63  ;;  %v821_v40 = vsel %vm576_vm0, %v759_v29, 0.0  ;;  %v630_v42 = vpop.xlane.xlu2 %629  ;;  %647 = vadd.xlane.f32.xlu2 %v646_v53  ;;  %v636_v50 = vpop.xlane.xlu0 %635  ;;  %vm1062_vm8 = vweird.f32 %v7467_v37 }
 0x1ab   : > { %v1296_v11 = vmul.f32 %v7264_v7, %v1263_v52  ;;  %v1019_v13 = vmul.f32 0.5, %v1018_v8  ;;  %822 = vadd.xlane.f32.xlu0 %v821_v40  ;;  %v811_v1 = vpop.xlane.xlu1 %810  ;;  %v697_v14 = vmul.f32 %v7109_v20, %v630_v42  ;;  %v699_v31 = vmul.f32 %v7109_v20, %v636_v50 }
 0x1ac   : > { %v883_v16 = vmul.f32 %v811_v1, %v7109_v20  ;;  %v1265_v8 = vmul.f32 %v1035_v48, %v7224_v30  ;;  %v655_v50 = vsel %vm576_vm0, %v7533_v3, 0.0 }
 0x1ad   : > { %v1329_v26 = vadd.f32 %v7272_v15, %v1296_v11  ;;  %v7477_v17 = vpop.eup %6412  ;;  %v1020_v19 = vsub.f32 1.5, %v1019_v13  ;;  %v7481_v21 = vsub.f32 %v7338_v6, %v697_v14  ;;  %v7491_v58 = vsub.f32 %v7322_v49, %v699_v31 }
 0x1ae   : > { %v1037_v59 = vmul.f32 %v7477_v17, %v7452_v56  ;;  %v7488_v57 = vadd.f32 1e-05, %v883_v16  ;;  %v7519_v44 = vpop.eup %6414  ;;  %vm1043_vm3 = vweird.f32 %v7477_v17  ;;  %v1298_v14 = vmul.f32 %v7264_v7, %v1265_v8 }
 0x1af   : > { %5948 = vmatmul.msk.f32.gmra.mxu0 %vm576_vm0, %v1329_v26  ;;  %5980 = vmatmul.msk.f32.gmra.mxu1 %vm576_vm0, %v1329_v26  ;;  %v1021_v54 = vmul.f32 %v6411_v10, %v1020_v19  ;;  %v761_v49 = vmul.f32 %v7481_v21, %v7481_v21  ;;  %v763_v61 = vmul.f32 %v7491_v58, %v7491_v58  ;;  %vm7554_vm4 = vmor %vm1042_vm2, %vm1043_vm3  ;;  %vm1063_vm9 = vweird.f32 %v7519_v44 }
 0x1b0   : > { %v1038_v51 = vmul.f32 %v7477_v17, %v1037_v59  ;;  %6416 = vrsqrt.f32 %v7488_v57  ;;  %v1057_v5 = vmul.f32 %v7519_v44, %v7467_v37  ;;  %vm1052_vm5 = vweird.f32 %v7488_v57  ;;  %vm1064_vm10 = vmor %vm1062_vm8, %vm1063_vm9 }
 0x1b1   : > { %v1025_v18 = vsel %vm1024_vm1, %v6411_v10, %v1021_v54  ;;  %v827_v39 = vsel %vm576_vm0, %v761_v49, 0.0  ;;  %v833_v33 = vsel %vm576_vm0, %v763_v61, 0.0  ;;  %v1331_v54 = vadd.f32 %v7272_v15, %v1298_v14  ;;  %v7631_v14 = vld [vmem:[%s10466_s2 + $0x8] sm:$0xff] }
 0x1b2   : > { %v1039_v4 = vmul.f32 0.5, %v1038_v51  ;;  %828 = vadd.xlane.f32.xlu1 %v827_v39  ;;  %v817_v35 = vpop.xlane.xlu2 %816  ;;  %v1264_v43 = vmul.f32 %v1025_v18, %v7256_v0  ;;  %834 = vadd.xlane.f32.xlu2 %v833_v33  ;;  %v1058_v12 = vmul.f32 %v7519_v44, %v1057_v5 }
 0x1b3   : > { %644 = vadd.xlane.f32.xlu0 %v643_v32  ;;  %v633_v55 = vpop.xlane.xlu1 %632  ;;  %v885_v60 = vmul.f32 %v817_v35, %v7109_v20 }
 0x1b4   : > { %v1040_v10 = vsub.f32 1.5, %v1039_v4  ;;  %v698_v63 = vmul.f32 %v7109_v20, %v633_v55  ;;  %v1297_v53 = vmul.f32 %v7264_v7, %v1264_v43  ;;  %v1059_v6 = vmul.f32 0.5, %v1058_v12  ;;  %v7584_v4 = vld [vmem:[%s7090_s18 + $0xd8] sm:$0xff] }
 0x1b5   : > { %v7528_v0 = vadd.f32 1e-05, %v885_v60  ;;  %v658_v55 = vsel %vm576_vm0, %v7584_v4, 0.0 }
 0x1b6   : > { %v6417_v27 = vpop.eup %6416  ;;  %v7538_v29 = vsub.f32 %v7376_v34, %v698_v63  ;;  %v1330_v52 = vadd.f32 %v7272_v15, %v1297_v53  ;;  %v1041_v40 = vmul.f32 %v7477_v17, %v1040_v10  ;;  %v1060_v61 = vsub.f32 1.5, %v1059_v6 }
 0x1b7   : > { %v1047_v42 = vmul.f32 %v6417_v27, %v7488_v57  ;;  %6418 = vrsqrt.f32 %v7528_v0  ;;  %vm1053_vm6 = vweird.f32 %v6417_v27  ;;  %vm1072_vm11 = vweird.f32 %v7528_v0 }
 0x1b8   : > { %5949 = vmatmul.msk.f32.gmra.mxu0 %vm576_vm0, %v1330_v52  ;;  %5981 = vmatmul.msk.f32.gmra.mxu1 %vm576_vm0, %v1330_v52  ;;  %v762_v34 = vmul.f32 %v7538_v29, %v7538_v29  ;;  %v1045_v31 = vsel %vm7554_vm4, %v7477_v17, %v1041_v40  ;;  %vm1054_vm7 = vmor %vm1052_vm5, %vm1053_vm6  ;;  %v1061_v43 = vmul.f32 %v7519_v44, %v1060_v61  ;;  %v7611_v52 = vpop.f32.mrf.mxu0  ;;  %v1676_v6 = vmul.f32 1.442695, %v7631_v14 }
 0x1b9   : > { %v1048_v30 = vmul.f32 %v6417_v27, %v1047_v42  ;;  %v1266_v49 = vmul.f32 %v1045_v31, %v7285_v28  ;;  %10626 = vst [vmem:[#allocation9_spill] sm:$0xff] %v7611_v52 }
 0x1ba   : > { %v830_v13 = vsel %vm576_vm0, %v762_v34, 0.0  ;;  %650 = vadd.xlane.f32.xlu1 %v649_v2  ;;  %v639_v1 = vpop.xlane.xlu2 %638  ;;  %656 = vadd.xlane.f32.xlu2 %v655_v50  ;;  %v1065_v60 = vsel %vm1064_vm10, %v7519_v44, %v1061_v43 }
 0x1bb   : > { %v1049_v16 = vmul.f32 0.5, %v1048_v30  ;;  %831 = vadd.xlane.f32.xlu0 %v830_v13  ;;  %v700_v56 = vmul.f32 %v7109_v20, %v639_v1  ;;  %v1299_v28 = vmul.f32 %v7264_v7, %v1266_v49  ;;  %v1268_v63 = vmul.f32 %v1065_v60, %v7282_v25 }
 0x1bd   : > { %v6419_v26 = vpop.eup %6418  ;;  %v1050_v19 = vsub.f32 1.5, %v1049_v16  ;;  %v7566_v59 = vsub.f32 %v7391_v46, %v700_v56  ;;  %v652_v46 = vsel %vm576_vm0, %v7569_v36, 0.0  ;;  %v1332_v35 = vadd.f32 %v7272_v15, %v1299_v28 }
 0x1be   : > { %v1067_v51 = vmul.f32 %v6419_v26, %v7528_v0  ;;  %vm1073_vm12 = vweird.f32 %v6419_v26  ;;  %v1301_v2 = vmul.f32 %v7264_v7, %v1268_v63 }
 0x1bf   : > { %v1051_v17 = vmul.f32 %v6417_v27, %v1050_v19  ;;  %v764_v32 = vmul.f32 %v7566_v59, %v7566_v59  ;;  %vm1074_vm13 = vmor %vm1072_vm11, %vm1073_vm12 }
 0x1c0   : > { %5950 = vmatmul.msk.f32.gmra.mxu0 %vm576_vm0, %v1331_v54  ;;  %5982 = vmatmul.msk.f32.gmra.mxu1 %vm576_vm0, %v1331_v54  ;;  %v1068_v39 = vmul.f32 %v6419_v26, %v1067_v51  ;;  %v1334_v5 = vadd.f32 %v7272_v15, %v1301_v2  ;;  %v7613_v8 = vpop.f32.mrf.mxu0 }
 0x1c1   : > { %v836_v57 = vsel %vm576_vm0, %v764_v32, 0.0  ;;  %v1055_v18 = vsel %vm1054_vm7, %v6417_v27, %v1051_v17  ;;  %10627 = vst [vmem:[#allocation10_spill] sm:$0xff] %v7613_v8 }
 0x1c2   : > { %837 = vadd.xlane.f32.xlu1 %v836_v57  ;;  %v1267_v33 = vmul.f32 %v1055_v18, %v7343_v9  ;;  %v1069_v48 = vmul.f32 0.5, %v1068_v39 }
 0x1c3   : > { %653 = vadd.xlane.f32.xlu0 %v652_v46 }
 0x1c4   : > { %v1300_v37 = vmul.f32 %v7264_v7, %v1267_v33  ;;  %v1070_v10 = vsub.f32 1.5, %v1069_v48 }
 0x1c6   : > { %v1333_v9 = vadd.f32 %v7272_v15, %v1300_v37  ;;  %v1071_v53 = vmul.f32 %v6419_v26, %v1070_v10 }
 0x1c8   : > { %5951 = vmatmul.msk.f32.gmra.mxu0 %vm576_vm0, %v1332_v35  ;;  %5983 = vmatmul.msk.f32.gmra.mxu1 %vm576_vm0, %v1332_v35  ;;  %v1075_v27 = vsel %vm1074_vm13, %v6419_v26, %v1071_v53  ;;  %v7615_v40 = vpop.f32.mrf.mxu0  ;;  %v7666_v53 = vld [vmem:[%s7090_s18 + $0xf0] sm:$0xff] }
 0x1c9   : > { %v1269_v44 = vmul.f32 %v1075_v27, %v7371_v38  ;;  %10628 = vst [vmem:[#allocation11_spill] sm:$0xff] %v7615_v40 }
 0x1ca   : > { %659 = vadd.xlane.f32.xlu1 %v658_v55 }
 0x1cb   : > { %v1302_v0 = vmul.f32 %v7264_v7, %v1269_v44 }
 0x1cd   : > { %v1335_v25 = vadd.f32 %v7272_v15, %v1302_v0 }
 0x1d0   : > { %5952 = vmatmul.msk.f32.gmra.mxu0 %vm576_vm0, %v1333_v9  ;;  %5984 = vmatmul.msk.f32.gmra.mxu1 %vm576_vm0, %v1333_v9  ;;  %v7617_v42 = vpop.f32.mrf.mxu0  ;;  %v7661_v9 = vld [vmem:[%s7090_s18 + $0xe0] sm:$0xff] }
 0x1d1   : > { %10629 = vst [vmem:[#allocation12_spill] sm:$0xff] %v7617_v42 }
 0x1d8   : > { %5953 = vmatmul.msk.f32.gmra.mxu0 %vm576_vm0, %v1334_v5  ;;  %5985 = vmatmul.msk.f32.gmra.mxu1 %vm576_vm0, %v1334_v5  ;;  %v7619_v38 = vpop.f32.mrf.mxu0 }
 0x1d9   : > { %10630 = vst [vmem:[#allocation13_spill] sm:$0xff] %v7619_v38 }
 0x1e0   : > { %5954 = vmatmul.msk.f32.gmra.mxu0 %vm576_vm0, %v1335_v25  ;;  %5986 = vmatmul.msk.f32.gmra.mxu1 %vm576_vm0, %v1335_v25  ;;  %v7625_v1 = vpop.f32.mrf.mxu0 }
 0x1e1   : > { %10631 = vst [vmem:[#allocation14_spill] sm:$0xff] %v7625_v1 }
 0x1e8   : > { %v7653_v39 = vpop.f32.mrf.mxu0 }
 0x1e9   : > { %10632 = vst [vmem:[#allocation15_spill] sm:$0xff] %v7653_v39 }
 0x215   : > { %v820_v34 = vpop.xlane.xlu1 %819  ;;  %v826_v30 = vpop.xlane.xlu2 %825 }
 0x216   : > { %v886_v50 = vmul.f32 %v820_v34, %v7109_v20  ;;  %v888_v11 = vmul.f32 %v826_v30, %v7109_v20  ;;  %v661_v30 = vsel %vm576_vm0, %v7661_v9, 0.0 }
 0x218   : > { %v918_v12 = vadd.f32 1e-05, %v886_v50  ;;  %v7623_v13 = vadd.f32 1e-05, %v888_v11 }
 0x21a   : > { %6420 = vrsqrt.f32 %v918_v12  ;;  %vm1082_vm15 = vweird.f32 %v918_v12  ;;  %vm1102_vm2 = vweird.f32 %v7623_v13 }
 0x21b   : > { %6422 = vrsqrt.f32 %v7623_v13 }
 0x21c   : > { %6424 = vpow2.f32 %v1676_v6  ;;  %v1678_v6 = vld [vmem:[%s7685_s26] sm:$0xff] }
 0x21d   : > { %v642_v31 = vpop.xlane.xlu1 %641  ;;  %v648_v56 = vpop.xlane.xlu2 %647 }
 0x21e   : > { %v701_v16 = vmul.f32 %v7109_v20, %v642_v31  ;;  %v703_v26 = vmul.f32 %v7109_v20, %v648_v56  ;;  %v823_v19 = vpop.xlane.xlu0 %822 }
 0x21f   : > { %v887_v17 = vmul.f32 %v823_v19, %v7109_v20 }
 0x220   : > { %v6421_v54 = vpop.eup %6420  ;;  %v7637_v49 = vsub.f32 %v7446_v45, %v701_v16  ;;  %v7643_v46 = vsub.f32 %v7449_v47, %v703_v26 }
 0x221   : > { %v7640_v51 = vpop.eup %6422  ;;  %v1077_v32 = vmul.f32 %v6421_v54, %v918_v12  ;;  %v7647_v28 = vadd.f32 1e-05, %v887_v17  ;;  %vm1083_vm14 = vweird.f32 %v6421_v54 }
 0x222   : > { %v1097_v57 = vmul.f32 %v7640_v51, %v7623_v13  ;;  %v765_v61 = vmul.f32 %v7637_v49, %v7637_v49  ;;  %v767_v45 = vmul.f32 %v7643_v46, %v7643_v46  ;;  %v6425_v2 = vpop.eup %6424  ;;  %vm7672_vm1 = vmor %vm1082_vm15, %vm1083_vm14  ;;  %vm1103_vm3 = vweird.f32 %v7640_v51 }
 0x223   : > { %v1078_v18 = vmul.f32 %v6421_v54, %v1077_v32  ;;  %6426 = vrsqrt.f32 %v7647_v28  ;;  %v7696_v16 = vperm.slane %v6425_v2, 1  ;;  %vm7744_vm5 = vmor %vm1102_vm2, %vm1103_vm3  ;;  %vm1092_vm6 = vweird.f32 %v7647_v28 }
 0x224   : > { %v839_v47 = vsel %vm576_vm0, %v765_v61, 0.0  ;;  %v845_v33 = vsel %vm576_vm0, %v767_v45, 0.0  ;;  %v1098_v43 = vmul.f32 %v7640_v51, %v1097_v57 }
 0x225   : > { %v1079_v35 = vmul.f32 0.5, %v1078_v18  ;;  %840 = vadd.xlane.f32.xlu0 %v839_v47  ;;  %v829_v48 = vpop.xlane.xlu1 %828  ;;  %846 = vadd.xlane.f32.xlu1 %v845_v33  ;;  %v835_v60 = vpop.xlane.xlu2 %834  ;;  %v1683_v33 = vmul.f32 %v7696_v16, %v1678_v6 }
 0x226   : > { %v889_v37 = vmul.f32 %v829_v48, %v7109_v20  ;;  %v645_v10 = vpop.xlane.xlu0 %644  ;;  %v1099_v25 = vmul.f32 0.5, %v1098_v43  ;;  %v891_v34 = vmul.f32 %v835_v60, %v7109_v20  ;;  %v7718_v43 = vperm.slane %v7631_v14, 0 }
 0x227   : > { %v1080_v55 = vsub.f32 1.5, %v1079_v35  ;;  %v702_v63 = vmul.f32 %v7109_v20, %v645_v10  ;;  %v7712_v35 = vld [vmem:[%s7090_s18 + $0xf8] sm:$0xff] }
 0x228   : > { %v7668_v5 = vadd.f32 1e-05, %v889_v37  ;;  %v7706_v17 = vadd.f32 1e-05, %v891_v34  ;;  %v670_v2 = vsel %vm576_vm0, %v7712_v35, 0.0 }
 0x229   : > { %v1081_v27 = vmul.f32 %v6421_v54, %v1080_v55  ;;  %v7670_v44 = vpop.eup %6426  ;;  %v7678_v50 = vsub.f32 %v7484_v22, %v702_v63  ;;  %v667_v22 = vsel %vm576_vm0, %v7666_v53, 0.0  ;;  %v7735_v63 = vld [vmem:[%s7090_s18 + $0xe8] sm:$0xff] }
 0x22a   : > { %v1087_v12 = vmul.f32 %v7670_v44, %v7647_v28  ;;  %6428 = vrsqrt.f32 %v7668_v5  ;;  %vm1093_vm4 = vweird.f32 %v7670_v44  ;;  %v664_v28 = vsel %vm576_vm0, %v7735_v63, 0.0 }
 0x22b   : > { %v1085_v11 = vsel %vm7672_vm1, %v6421_v54, %v1081_v27  ;;  %v766_v26 = vmul.f32 %v7678_v50, %v7678_v50  ;;  %v1100_v54 = vsub.f32 1.5, %v1099_v25  ;;  %6430 = vrsqrt.f32 %v7706_v17  ;;  %vm1094_vm7 = vmor %vm1092_vm6, %vm1093_vm4 }
 0x22c   : > { %v7694_v31 = vpop.f32.mrf.mxu0  ;;  %v1088_v56 = vmul.f32 %v7670_v44, %v1087_v12  ;;  %v1270_v19 = vmul.f32 %v1085_v11, %v7425_v23  ;;  %v7765_v11 = vadd.f32 %v7718_v43, %v1683_v33  ;;  %vm1112_vm8 = vweird.f32 %v7668_v5 }
 0x22d   : > { %10635 = vst [vmem:[#allocation16_spill] sm:$0xff] %v7694_v31  ;;  %662 = vadd.xlane.f32.xlu0 %v661_v30  ;;  %6009 = vmatpush.xpose.msk.msra.mxu3 %vm576_vm0, %v7694_v31  ;;  %v651_v32 = vpop.xlane.xlu1 %650  ;;  %v842_v18 = vsel %vm576_vm0, %v766_v26, 0.0  ;;  %v1679_v26 = vld [vmem:[%s7685_s26 + $0x8] sm:$0xff]  ;;  %vm1132_vm14 = vweird.f32 %v7706_v17 }
 0x22e   : > { %668 = vadd.xlane.f32.xlu1 %v667_v22  ;;  %v1089_v57 = vmul.f32 0.5, %v1088_v56  ;;  %v704_v61 = vmul.f32 %v7109_v20, %v651_v32  ;;  %v832_v45 = vpop.xlane.xlu0 %831  ;;  %v1303_v47 = vmul.f32 %v7264_v7, %v1270_v19  ;;  %843 = vadd.xlane.f32.xlu2 %v842_v18  ;;  %v657_v56 = vpop.xlane.xlu2 %656 }
 0x22f   : > { %v890_v23 = vmul.f32 %v832_v45, %v7109_v20  ;;  %v1684_v45 = vmul.f32 %v7696_v16, %v1679_v26 }
 0x230   : > { %v7720_v48 = vpop.eup %6428  ;;  %v1090_v55 = vsub.f32 1.5, %v1089_v57  ;;  %v7724_v37 = vsub.f32 %v7517_v41, %v704_v61  ;;  %v1336_v60 = vadd.f32 %v7272_v15, %v1303_v47  ;;  %v1101_v41 = vmul.f32 %v7640_v51, %v1100_v54 }
 0x231   : > { %6010 = vmatpush.xpose.msk.msra.mxu3 %vm576_vm0, %v7653_v39  ;;  %v1107_v10 = vmul.f32 %v7720_v48, %v7668_v5  ;;  %v7732_v14 = vadd.f32 1e-05, %v890_v23  ;;  %v7772_v54 = vpop.eup %6430  ;;  %vm1113_vm9 = vweird.f32 %v7720_v48 }
 0x232   : > { %v1091_v0 = vmul.f32 %v7670_v44, %v1090_v55  ;;  %5955 = vmatmul.msk.f32.gmra.mxu0 %vm576_vm0, %v1336_v60  ;;  %5987 = vmatmul.msk.f32.gmra.mxu1 %vm576_vm0, %v1336_v60  ;;  %v768_v25 = vmul.f32 %v7724_v37, %v7724_v37  ;;  %vm7815_vm10 = vmor %vm1112_vm8, %vm1113_vm9  ;;  %vm1133_vm15 = vweird.f32 %v7772_v54 }
 0x233   : > { %v1108_v13 = vmul.f32 %v7720_v48, %v1107_v10  ;;  %6432 = vrsqrt.f32 %v7732_v14  ;;  %vm1122_vm11 = vweird.f32 %v7732_v14  ;;  %vm1134_vm1 = vmor %vm1132_vm14, %vm1133_vm15 }
 0x234   : > { %v1095_v34 = vsel %vm1094_vm7, %v7670_v44, %v1091_v0  ;;  %v848_v30 = vsel %vm576_vm0, %v768_v25, 0.0  ;;  %v1105_v44 = vsel %vm7744_vm5, %v7640_v51, %v1101_v41  ;;  %v706_v51 = vmul.f32 %v7109_v20, %v657_v56 }
 0x235   : > { %6011 = vmatpush.xpose.msk.msra.mxu3 %vm576_vm0, %v7625_v1  ;;  %v1109_v12 = vmul.f32 0.5, %v1108_v13  ;;  %849 = vadd.xlane.f32.xlu0 %v848_v30  ;;  %v1271_v22 = vmul.f32 %v1095_v34, %v7456_v62  ;;  %v838_v19 = vpop.xlane.xlu1 %837  ;;  %v1692_v62 = vsel %vm576_vm0, %v7765_v11, 0.0  ;;  %v1272_v60 = vmul.f32 %v1105_v44, %v7428_v24  ;;  %v1681_v44 = vld [vmem:[%s7685_s26 + $0x18] sm:$0xff] }
 0x236   : > { %671 = vadd.xlane.f32.xlu1 %v670_v2  ;;  %v654_v6 = vpop.xlane.xlu0 %653  ;;  %v892_v57 = vmul.f32 %v838_v19, %v7109_v20  ;;  %665 = vadd.xlane.f32.xlu2 %v664_v28  ;;  %v1127_v2 = vmul.f32 %v7772_v54, %v7706_v17  ;;  %v7808_v27 = vsub.f32 %v7533_v3, %v706_v51 }
 0x237   : > { %v1110_v32 = vsub.f32 1.5, %v1109_v12  ;;  %v705_v61 = vmul.f32 %v7109_v20, %v654_v6  ;;  %v1304_v18 = vmul.f32 %v7264_v7, %v1271_v22  ;;  %v7811_v0 = vadd.f32 %v7718_v43, %v1684_v45 }
 0x238   : > { %v7786_v23 = vadd.f32 1e-05, %v892_v57  ;;  %v1305_v34 = vmul.f32 %v7264_v7, %v1272_v60  ;;  %v1128_v30 = vmul.f32 %v7772_v54, %v1127_v2  ;;  %v770_v26 = vmul.f32 %v7808_v27, %v7808_v27  ;;  %v1680_v57 = vld [vmem:[%s7685_s26 + $0x10] sm:$0xff]  ;;  %s5935_s26 = sshll.u32 %s477_s21, 5 }
 0x239   : > { %6012 = vmatpush.xpose.msk.msra.mxu3 %vm576_vm0, %v7619_v38  ;;  %v7784_v47 = vpop.eup %6432  ;;  %v7789_v33 = vsub.f32 %v7569_v36, %v705_v61  ;;  %v1337_v55 = vadd.f32 %v7272_v15, %v1304_v18  ;;  %v1111_v10 = vmul.f32 %v7720_v48, %v1110_v32  ;;  %v1695_v56 = vsel %vm576_vm0, %v7811_v0, 0.0  ;;  %s479_s18 = scalar_lea.vmem [#allocation2], %s5935_s26 }
 0x23a   : > { %v1117_v41 = vmul.f32 %v7784_v47, %v7732_v14  ;;  %6434 = vrsqrt.f32 %v7786_v23  ;;  %v1338_v6 = vadd.f32 %v7272_v15, %v1305_v34  ;;  %v1129_v61 = vmul.f32 0.5, %v1128_v30  ;;  %s5854_s19 = sshll.u32 %s479_s18, 4  ;;  %s5855_s19 = int_to_ptr.vmem [resolvable:$true] %s5854_s19 }
 0x23b   : > { %5956 = vmatmul.msk.f32.gmra.mxu0 %vm576_vm0, %v1337_v55  ;;  %5988 = vmatmul.msk.f32.gmra.mxu1 %vm576_vm0, %v1337_v55  ;;  %v769_v36 = vmul.f32 %v7789_v33, %v7789_v33  ;;  %v1115_v3 = vsel %vm7815_vm10, %v7720_v48, %v1111_v10  ;;  %vm1123_vm12 = vweird.f32 %v7784_v47  ;;  %v1686_v51 = vmul.f32 %v7696_v16, %v1681_v44  ;;  %v7896_v44 = vpop.f32.mrf.mxu0 }
 0x23c   : > { %v1118_v24 = vmul.f32 %v7784_v47, %v1117_v41  ;;  %v1273_v32 = vmul.f32 %v1115_v3, %v7481_v21  ;;  %v854_v21 = vsel %vm576_vm0, %v770_v26, 0.0  ;;  %v1685_v45 = vmul.f32 %v7696_v16, %v1680_v57  ;;  %vm1124_vm13 = vmor %vm1122_vm11, %vm1123_vm12  ;;  %10643 = vst [vmem:[#allocation20_spill] sm:$0xff] %v7896_v44 }
 0x23d   : > { %6013 = vmatpush.xpose.msk.msra.mxu3 %vm576_vm0, %v7617_v42  ;;  %1693 = vadd.xlane.f32.xlu0 %v1692_v62  ;;  %v851_v13 = vsel %vm576_vm0, %v769_v36, 0.0  ;;  %v660_v12 = vpop.xlane.xlu1 %659  ;;  %v1130_v10 = vsub.f32 1.5, %v1129_v61  ;;  %v7858_v36 = vadd.f32 %v7718_v43, %v1686_v51  ;;  %vm1142_vm2 = vweird.f32 %v7786_v23 }
 0x23e   : > { %v1119_v28 = vmul.f32 0.5, %v1118_v24  ;;  %v707_v5 = vmul.f32 %v7109_v20, %v660_v12  ;;  %852 = vadd.xlane.f32.xlu2 %v851_v13  ;;  %v1306_v60 = vmul.f32 %v7264_v7, %v1273_v32  ;;  %v7865_v16 = vadd.f32 %v7718_v43, %v1685_v45 }
 0x23f   : > { %10640 = vst [vmem:[#allocation17_spill] sm:$0xff] %v7858_v36  ;;  %v1131_v24 = vmul.f32 %v7772_v54, %v1130_v10  ;;  %v1701_v17 = vsel %vm576_vm0, %v7858_v36, 0.0 }
 0x240   : > { %v1120_v22 = vsub.f32 1.5, %v1119_v28  ;;  %v6435_v48 = vpop.eup %6434  ;;  %v7835_v19 = vsub.f32 %v7584_v4, %v707_v5  ;;  %v1339_v14 = vadd.f32 %v7272_v15, %v1306_v60  ;;  %v1698_v13 = vsel %vm576_vm0, %v7865_v16, 0.0  ;;  %v505_v60 = vld [vmem:[%s10469_s5 + $0x8] sm:$0xff] }
 0x241   : > { %6014 = vmatpush.xpose.msk.msra.mxu3 %vm576_vm0, %v7615_v40  ;;  %v1137_v62 = vmul.f32 %v6435_v48, %v7786_v23  ;;  %v1135_v34 = vsel %vm1134_vm1, %v7772_v54, %v1131_v24  ;;  %vm1143_vm3 = vweird.f32 %v6435_v48 }
 0x242   : > { %v1121_v18 = vmul.f32 %v7784_v47, %v1120_v22  ;;  %v771_v4 = vmul.f32 %v7835_v19, %v7835_v19  ;;  %v1275_v30 = vmul.f32 %v1135_v34, %v7491_v58  ;;  %vm1144_vm4 = vmor %vm1142_vm2, %vm1143_vm3 }
 0x243   : > { %5957 = vmatmul.msk.f32.gmra.mxu0 %vm576_vm0, %v1338_v6  ;;  %5989 = vmatmul.msk.f32.gmra.mxu1 %vm576_vm0, %v1338_v6  ;;  %v1138_v41 = vmul.f32 %v6435_v48, %v1137_v62 }
 0x244   : > { %v857_v55 = vsel %vm576_vm0, %v771_v4, 0.0  ;;  %v1125_v2 = vsel %vm1124_vm13, %v7784_v47, %v1121_v18  ;;  %v1308_v12 = vmul.f32 %v7264_v7, %v1275_v30  ;;  %v507_v18 = vld [vmem:[%s10469_s5 + $0x18] sm:$0xff]  ;;  %v506_v4 = vld [vmem:[%s10469_s5 + $0x10] sm:$0xff] }
 0x245   : > { %6015 = vmatpush.xpose.msk.msra.mxu3 %vm576_vm0, %v7613_v8  ;;  %1696 = vadd.xlane.f32.xlu0 %v1695_v56  ;;  %v1274_v47 = vmul.f32 %v1125_v2, %v7538_v29  ;;  %v1139_v25 = vmul.f32 0.5, %v1138_v41  ;;  %v7892_v56 = vpop.f32.mrf.mxu1  ;;  %v504_v41 = vld [vmem:[%s10469_s5] sm:$0xff] }
 0x246   : > { %858 = vadd.xlane.f32.xlu1 %v857_v55  ;;  %855 = vadd.xlane.f32.xlu2 %v854_v21  ;;  %v1341_v54 = vadd.f32 %v7272_v15, %v1308_v12  ;;  %10641 = vst [vmem:[#allocation18_spill] sm:$0xff] %v7892_v56 }
 0x247   : > { %v1307_v43 = vmul.f32 %v7264_v7, %v1274_v47  ;;  %v1140_v3 = vsub.f32 1.5, %v1139_v25  ;;  %1814 = vmatpush.msra.mxu2 %v507_v18 }
 0x249   : > { %6016 = vmatpush.xpose.msk.msra.mxu3 %vm576_vm0, %v7611_v52  ;;  %v1340_v29 = vadd.f32 %v7272_v15, %v1307_v43  ;;  %v1141_v28 = vmul.f32 %v6435_v48, %v1140_v3  ;;  %1815 = vmatpush.msra.mxu2 %v506_v4 }
 0x24b   : > { %5958 = vmatmul.msk.f32.gmra.mxu0 %vm576_vm0, %v1339_v14  ;;  %5990 = vmatmul.msk.f32.gmra.mxu1 %vm576_vm0, %v1339_v14  ;;  %v1145_v5 = vsel %vm1144_vm4, %v6435_v48, %v1141_v28 }
 0x24c   : > { %v1276_v22 = vmul.f32 %v1145_v5, %v7566_v59  ;;  %v7900_v59 = vpop.f32.mrf.mxu0  ;;  %1816 = vmatpush.msra.mxu2 %v505_v60 }
 0x24d   : > { %v7894_v26 = vpop.f32.mrf.mxu1  ;;  %10645 = vst [vmem:[#allocation22_spill] sm:$0xff] %v7900_v59 }
 0x24e   : > { %1702 = vadd.xlane.f32.xlu1 %v1701_v17  ;;  %1699 = vadd.xlane.f32.xlu2 %v1698_v13  ;;  %v1309_v23 = vmul.f32 %v7264_v7, %v1276_v22  ;;  %10642 = vst [vmem:[#allocation19_spill] sm:$0xff] %v7894_v26 }
 0x24f   : > { %1817 = vmatpush.msra.mxu2 %v504_v41 }
 0x250   : > { %v1342_v58 = vadd.f32 %v7272_v15, %v1309_v23 }
 0x253   : > { %5959 = vmatmul.msk.f32.gmra.mxu0 %vm576_vm0, %v1340_v29  ;;  %5991 = vmatmul.msk.f32.gmra.mxu1 %vm576_vm0, %v1340_v29 }
 0x254   : > { %v7904_v32 = vpop.f32.mrf.mxu0 }
 0x255   : > { %v7898_v48 = vpop.f32.mrf.mxu1  ;;  %10646 = vst [vmem:[#allocation23_spill] sm:$0xff] %v7904_v32 }
 0x256   : > { %10644 = vst [vmem:[#allocation21_spill] sm:$0xff] %v7898_v48 }
 0x25b   : > { %5960 = vmatmul.msk.f32.gmra.mxu0 %vm576_vm0, %v1341_v54  ;;  %5992 = vmatmul.msk.f32.gmra.mxu1 %vm576_vm0, %v1341_v54 }
 0x25c   : > { %v7908_v61 = vpop.f32.mrf.mxu0 }
 0x25d   : > { %v7902_v6 = vpop.f32.mrf.mxu1  ;;  %10647 = vst [vmem:[#allocation24_spill] sm:$0xff] %v7908_v61 }
 0x263   : > { %5961 = vmatmul.msk.f32.gmra.mxu0 %vm576_vm0, %v1342_v58  ;;  %5993 = vmatmul.msk.f32.gmra.mxu1 %vm576_vm0, %v1342_v58 }
 0x264   : > { %v7928_v14 = vpop.f32.mrf.mxu0 }
 0x265   : > { %v7906_v57 = vpop.f32.mrf.mxu1  ;;  %10648 = vst [vmem:[#allocation25_spill] sm:$0xff] %v7928_v14 }
 0x26d   : > { %v7916_v51 = vpop.f32.mrf.mxu1 }
 0x275   : > { %v7933_v43 = vpop.f32.mrf.mxu1 }
 0x27d   : > { %v7955_v60 = vpop.f32.mrf.mxu1 }
 0x298   : > { %v841_v62 = vpop.xlane.xlu0 %840  ;;  %v847_v21 = vpop.xlane.xlu1 %846 }
 0x299   : > { %v893_v45 = vmul.f32 %v841_v62, %v7109_v20  ;;  %v895_v55 = vmul.f32 %v847_v21, %v7109_v20 }
 0x29b   : > { %v925_v10 = vadd.f32 1e-05, %v893_v45  ;;  %v7923_v2 = vadd.f32 1e-05, %v895_v55 }
 0x29d   : > { %6436 = vrsqrt.f32 %v925_v10  ;;  %vm1152_vm6 = vweird.f32 %v925_v10  ;;  %vm1172_vm8 = vweird.f32 %v7923_v2 }
 0x29e   : > { %6438 = vrsqrt.f32 %v7923_v2 }
 0x2a0   : > { %v663_v47 = vpop.xlane.xlu0 %662 }
 0x2a1   : > { %v708_v24 = vmul.f32 %v7109_v20, %v663_v47  ;;  %v669_v25 = vpop.xlane.xlu1 %668  ;;  %v844_v34 = vpop.xlane.xlu2 %843 }
 0x2a2   : > { %v710_v17 = vmul.f32 %v7109_v20, %v669_v25  ;;  %v894_v28 = vmul.f32 %v844_v34, %v7109_v20 }
 0x2a3   : > { %v6437_v13 = vpop.eup %6436  ;;  %v7936_v3 = vsub.f32 %v7661_v9, %v708_v24  ;;  %v7949_v9 = vpop.f32.mrf.mxu0 }
 0x2a4   : > { %v7938_v29 = vpop.eup %6438  ;;  %v1147_v30 = vmul.f32 %v6437_v13, %v925_v10  ;;  %v7942_v12 = vsub.f32 %v7666_v53, %v710_v17  ;;  %v926_v23 = vadd.f32 1e-05, %v894_v28  ;;  %10649 = vst [vmem:[#allocation26_spill] sm:$0xff] %v7949_v9  ;;  %vm1153_vm5 = vweird.f32 %v6437_v13 }
 0x2a5   : > { %v772_v5 = vmul.f32 %v7936_v3, %v7936_v3  ;;  %v1167_v54 = vmul.f32 %v7938_v29, %v7923_v2  ;;  %vm1154_vm7 = vmor %vm1152_vm6, %vm1153_vm5  ;;  %vm1173_vm9 = vweird.f32 %v7938_v29 }
 0x2a6   : > { %v1148_v22 = vmul.f32 %v6437_v13, %v1147_v30  ;;  %6440 = vrsqrt.f32 %v926_v23  ;;  %v774_v53 = vmul.f32 %v7942_v12, %v7942_v12  ;;  %vm8001_vm11 = vmor %vm1172_vm8, %vm1173_vm9  ;;  %vm1162_vm12 = vweird.f32 %v926_v23 }
 0x2a7   : > { %v860_v58 = vsel %vm576_vm0, %v772_v5, 0.0  ;;  %v1168_v21 = vmul.f32 %v7938_v29, %v1167_v54 }
 0x2a8   : > { %v1149_v18 = vmul.f32 0.5, %v1148_v22  ;;  %861 = vadd.xlane.f32.xlu0 %v860_v58  ;;  %v850_v62 = vpop.xlane.xlu0 %849  ;;  %v866_v34 = vsel %vm576_vm0, %v774_v53, 0.0 }
 0x2a9   : > { %v672_v4 = vpop.xlane.xlu1 %671  ;;  %v896_v55 = vmul.f32 %v850_v62, %v7109_v20  ;;  %v666_v41 = vpop.xlane.xlu2 %665  ;;  %v1169_v28 = vmul.f32 0.5, %v1168_v21 }
 0x2aa   : > { %v1150_v45 = vsub.f32 1.5, %v1149_v18  ;;  %v709_v24 = vmul.f32 %v7109_v20, %v666_v41  ;;  %v711_v17 = vmul.f32 %v7109_v20, %v672_v4 }
 0x2ab   : > { %v7958_v25 = vadd.f32 1e-05, %v896_v55 }
 0x2ac   : > { %v1151_v47 = vmul.f32 %v6437_v13, %v1150_v45  ;;  %v6441_v30 = vpop.eup %6440  ;;  %v7963_v54 = vsub.f32 %v7735_v63, %v709_v24  ;;  %v7970_v18 = vsub.f32 %v7712_v35, %v711_v17  ;;  %v1170_v63 = vsub.f32 1.5, %v1169_v28 }
 0x2ad   : > { %6442 = vrsqrt.f32 %v7958_v25  ;;  %v1157_v10 = vmul.f32 %v6441_v30, %v926_v23  ;;  %vm1163_vm10 = vweird.f32 %v6441_v30  ;;  %vm1182_vm14 = vweird.f32 %v7958_v25 }
 0x2ae   : > { %v1155_v5 = vsel %vm1154_vm7, %v6437_v13, %v1151_v47  ;;  %v773_v62 = vmul.f32 %v7963_v54, %v7963_v54  ;;  %v775_v17 = vmul.f32 %v7970_v18, %v7970_v18  ;;  %vm1164_vm13 = vmor %vm1162_vm12, %vm1163_vm10 }
 0x2af   : > { %v1277_v22 = vmul.f32 %v1155_v5, %v7637_v49  ;;  %v7967_v58 = vpop.f32.mrf.mxu0  ;;  %v1158_v4 = vmul.f32 %v6441_v30, %v1157_v10  ;;  %v1171_v10 = vmul.f32 %v7938_v29, %v1170_v63 }
 0x2b0   : > { %10650 = vst [vmem:[#allocation27_spill] sm:$0xff] %v7967_v58  ;;  %867 = vadd.xlane.f32.xlu0 %v866_v34  ;;  %v1694_v53 = vpop.xlane.xlu0 %1693  ;;  %v863_v21 = vsel %vm576_vm0, %v773_v62, 0.0  ;;  %v7988_v34 = vpop.f32.mrf.mxu1  ;;  %v869_v63 = vsel %vm576_vm0, %v775_v17, 0.0 }
 0x2b1   : > { %v1310_v13 = vmul.f32 %v7264_v7, %v1277_v22  ;;  %v1704_v45 = vmul.f32 %v1694_v53, %v7109_v20  ;;  %v1159_v49 = vmul.f32 0.5, %v1158_v4  ;;  %864 = vadd.xlane.f32.xlu2 %v863_v21  ;;  %v853_v55 = vpop.xlane.xlu2 %852  ;;  %10651 = vst [vmem:[#allocation28_spill] sm:$0xff] %v7988_v34  ;;  %v1175_v2 = vsel %vm8001_vm11, %v7938_v29, %v1171_v10 }
 0x2b2   : > { %v897_v47 = vmul.f32 %v853_v55, %v7109_v20 }
 0x2b3   : > { %v1343_v35 = vadd.f32 %v7272_v15, %v1310_v13  ;;  %v7979_v41 = vpop.eup %6442  ;;  %v7984_v24 = vsub.f32 %v7765_v11, %v1704_v45  ;;  %v1160_v28 = vsub.f32 1.5, %v1159_v49 }
 0x2b4   : > { %v1177_v5 = vmul.f32 %v7979_v41, %v7958_v25  ;;  %v7995_v22 = vadd.f32 1e-05, %v897_v47  ;;  %vm1183_vm15 = vweird.f32 %v7979_v41 }
 0x2b5   : > { %5962 = vmatmul.msk.f32.gmra.mxu0 %vm576_vm0, %v1343_v35  ;;  %5994 = vmatmul.msk.f32.gmra.mxu1 %vm576_vm0, %v1343_v35  ;;  %v1712_v62 = vmul.f32 %v7984_v24, %v7984_v24  ;;  %v1161_v53 = vmul.f32 %v6441_v30, %v1160_v28  ;;  %vm8051_vm1 = vmor %vm1182_vm14, %vm1183_vm15 }
 0x2b6   : > { %v1178_v13 = vmul.f32 %v7979_v41, %v1177_v5  ;;  %6444 = vrsqrt.f32 %v7995_v22  ;;  %vm1192_vm2 = vweird.f32 %v7995_v22 }
 0x2b7   : > { %v1716_v21 = vsel %vm576_vm0, %v1712_v62, 0.0  ;;  %v1165_v45 = vsel %vm1164_vm13, %v6441_v30, %v1161_v53  ;;  %v1279_v53 = vmul.f32 %v1175_v2, %v7643_v46 }
 0x2b8   : > { %v1179_v49 = vmul.f32 0.5, %v1178_v13  ;;  %v8009_v55 = vpop.f32.mrf.mxu0  ;;  %1717 = vadd.xlane.f32.xlu1 %v1716_v21  ;;  %v1697_v23 = vpop.xlane.xlu0 %1696  ;;  %v1278_v47 = vmul.f32 %v1165_v45, %v7678_v50 }
 0x2b9   : > { %10654 = vst [vmem:[#allocation29_spill] sm:$0xff] %v8009_v55  ;;  %v859_v35 = vpop.xlane.xlu1 %858  ;;  %6018 = vmatpush.xpose.msk.msrb.mxu2 %vm576_vm0, %v8009_v55  ;;  %6102 = vmatpush.xpose.msk.msrb.mxu0 %vm576_vm0, %v8009_v55  ;;  %v856_v28 = vpop.xlane.xlu2 %855  ;;  %v1705_v5 = vmul.f32 %v1697_v23, %v7109_v20 }
 0x2ba   : > { %v1180_v17 = vsub.f32 1.5, %v1179_v49  ;;  %v899_v30 = vmul.f32 %v859_v35, %v7109_v20  ;;  %870 = vadd.xlane.f32.xlu2 %v869_v63  ;;  %v898_v62 = vmul.f32 %v856_v28, %v7109_v20  ;;  %v1311_v29 = vmul.f32 %v7264_v7, %v1278_v47  ;;  %v8037_v21 = vpop.f32.mrf.mxu1 }
 0x2bb   : > { %v8026_v4 = vsub.f32 %v7811_v0, %v1705_v5  ;;  %10655 = vst [vmem:[#allocation30_spill] sm:$0xff] %v8037_v21  ;;  %v1312_v35 = vmul.f32 %v7264_v7, %v1279_v53 }
 0x2bc   : > { %v8023_v10 = vadd.f32 1e-05, %v899_v30  ;;  %v6445_v13 = vpop.eup %6444  ;;  %v8030_v50 = vadd.f32 1e-05, %v898_v62  ;;  %v1344_v63 = vadd.f32 %v7272_v15, %v1311_v29  ;;  %v1181_v45 = vmul.f32 %v7979_v41, %v1180_v17 }
 0x2bd   : > { %6019 = vmatpush.xpose.msk.msrb.mxu2 %vm576_vm0, %v7967_v58  ;;  %6103 = vmatpush.xpose.msk.msrb.mxu0 %vm576_vm0, %v7967_v58  ;;  %v1187_v46 = vmul.f32 %v6445_v13, %v7995_v22  ;;  %v1713_v2 = vmul.f32 %v8026_v4, %v8026_v4  ;;  %vm1193_vm3 = vweird.f32 %v6445_v13 }
 0x2be   : > { %6446 = vrsqrt.f32 %v8023_v10  ;;  %5963 = vmatmul.msk.f32.gmra.mxu0 %vm576_vm0, %v1344_v63  ;;  %5995 = vmatmul.msk.f32.gmra.mxu1 %vm576_vm0, %v1344_v63  ;;  %v1185_v17 = vsel %vm8051_vm1, %v7979_v41, %v1181_v45  ;;  %vm1194_vm4 = vmor %vm1192_vm2, %vm1193_vm3  ;;  %vm1202_vm5 = vweird.f32 %v8030_v50  ;;  %vm1212_vm8 = vweird.f32 %v8023_v10 }
 0x2bf   : > { %6448 = vrsqrt.f32 %v8030_v50  ;;  %v1188_v49 = vmul.f32 %v6445_v13, %v1187_v46  ;;  %v1719_v25 = vsel %vm576_vm0, %v1713_v2, 0.0  ;;  %v1345_v46 = vadd.f32 %v7272_v15, %v1312_v35 }
 0x2c0   : > { %1720 = vadd.xlane.f32.xlu0 %v1719_v25  ;;  %v1280_v41 = vmul.f32 %v1185_v17, %v7724_v37 }
 0x2c1   : > { %v1703_v47 = vpop.xlane.xlu1 %1702  ;;  %6020 = vmatpush.xpose.msk.msrb.mxu2 %vm576_vm0, %v7949_v9  ;;  %6104 = vmatpush.xpose.msk.msrb.mxu0 %vm576_vm0, %v7949_v9  ;;  %v1189_v30 = vmul.f32 0.5, %v1188_v49  ;;  %v1700_v5 = vpop.xlane.xlu2 %1699 }
 0x2c2   : > { %v1707_v28 = vmul.f32 %v1703_v47, %v7109_v20  ;;  %v1706_v62 = vmul.f32 %v1700_v5, %v7109_v20  ;;  %v8089_v47 = vpop.f32.mrf.mxu1  ;;  %v1313_v5 = vmul.f32 %v7264_v7, %v1280_v41 }
 0x2c3   : > { %v1190_v53 = vsub.f32 1.5, %v1189_v30  ;;  %10658 = vst [vmem:[#allocation31_spill] sm:$0xff] %v8089_v47 }
 0x2c4   : > { %v8065_v29 = vpop.eup %6446  ;;  %v8068_v63 = vsub.f32 %v7858_v36, %v1707_v28  ;;  %v8074_v45 = vsub.f32 %v7865_v16, %v1706_v62 }
 0x2c5   : > { %v6449_v9 = vpop.eup %6448  ;;  %6021 = vmatpush.xpose.msk.msrb.mxu2 %vm576_vm0, %v7928_v14  ;;  %6105 = vmatpush.xpose.msk.msrb.mxu0 %vm576_vm0, %v7928_v14  ;;  %v1191_v49 = vmul.f32 %v6445_v13, %v1190_v53  ;;  %v1207_v2 = vmul.f32 %v8065_v29, %v8023_v10  ;;  %vm1213_vm9 = vweird.f32 %v8065_v29 }
 0x2c6   : > { %v1197_v35 = vmul.f32 %v6449_v9, %v8030_v50  ;;  %v1715_v37 = vmul.f32 %v8068_v63, %v8068_v63  ;;  %5964 = vmatmul.msk.f32.gmra.mxu0 %vm576_vm0, %v1345_v46  ;;  %5996 = vmatmul.msk.f32.gmra.mxu1 %vm576_vm0, %v1345_v46  ;;  %v1714_v23 = vmul.f32 %v8074_v45, %v8074_v45  ;;  %vm1203_vm6 = vweird.f32 %v6449_v9  ;;  %vm1214_vm10 = vmor %vm1212_vm8, %vm1213_vm9 }
 0x2c7   : > { %v1195_v25 = vsel %vm1194_vm4, %v6445_v13, %v1191_v49  ;;  %v1208_v62 = vmul.f32 %v8065_v29, %v1207_v2  ;;  %vm1204_vm7 = vmor %vm1202_vm5, %vm1203_vm6 }
 0x2c8   : > { %v1198_v17 = vmul.f32 %v6449_v9, %v1197_v35  ;;  %v1725_v30 = vsel %vm576_vm0, %v1715_v37, 0.0  ;;  %v1722_v28 = vsel %vm576_vm0, %v1714_v23, 0.0  ;;  %v1281_v22 = vmul.f32 %v1195_v25, %v7789_v33 }
 0x2c9   : > { %6022 = vmatpush.xpose.msk.msrb.mxu2 %vm576_vm0, %v7908_v61  ;;  %6106 = vmatpush.xpose.msk.msrb.mxu0 %vm576_vm0, %v7908_v61  ;;  %v1346_v35 = vadd.f32 %v7272_v15, %v1313_v5  ;;  %v1209_v37 = vmul.f32 0.5, %v1208_v62 }
 0x2ca   : > { %v1199_v53 = vmul.f32 0.5, %v1198_v17  ;;  %1726 = vadd.xlane.f32.xlu2 %v1725_v30  ;;  %1723 = vadd.xlane.f32.xlu1 %v1722_v28  ;;  %v1314_v33 = vmul.f32 %v7264_v7, %v1281_v22  ;;  %v8115_v13 = vpop.f32.mrf.mxu1 }
 0x2cb   : > { %v1210_v41 = vsub.f32 1.5, %v1209_v37 }
 0x2cc   : > { %v1200_v46 = vsub.f32 1.5, %v1199_v53  ;;  %v1347_v2 = vadd.f32 %v7272_v15, %v1314_v33 }
 0x2cd   : > { %6023 = vmatpush.xpose.msk.msrb.mxu2 %vm576_vm0, %v7904_v32  ;;  %6107 = vmatpush.xpose.msk.msrb.mxu0 %vm576_vm0, %v7904_v32  ;;  %v1211_v17 = vmul.f32 %v8065_v29, %v1210_v41 }
 0x2ce   : > { %v1201_v23 = vmul.f32 %v6449_v9, %v1200_v46  ;;  %5965 = vmatmul.msk.f32.gmra.mxu0 %vm576_vm0, %v1346_v35  ;;  %5997 = vmatmul.msk.f32.gmra.mxu1 %vm576_vm0, %v1346_v35 }
 0x2cf   : > { %v1215_v10 = vsel %vm1214_vm10, %v8065_v29, %v1211_v17 }
 0x2d0   : > { %v1205_v49 = vsel %vm1204_vm7, %v6449_v9, %v1201_v23  ;;  %v1283_v30 = vmul.f32 %v1215_v10, %v7835_v19  ;;  %v8146_v19 = vpop.f32.mrf.mxu0 }
 0x2d1   : > { %6024 = vmatpush.xpose.msk.msrb.mxu2 %vm576_vm0, %v7900_v59  ;;  %6108 = vmatpush.xpose.msk.msrb.mxu0 %vm576_vm0, %v7900_v59  ;;  %v1282_v50 = vmul.f32 %v1205_v49, %v7808_v27  ;;  %10659 = vst [vmem:[#allocation32_spill] sm:$0xff] %v8146_v19 }
 0x2d2   : > { %v8130_v27 = vpop.f32.mrf.mxu1  ;;  %v1316_v5 = vmul.f32 %v7264_v7, %v1283_v30 }
 0x2d3   : > { %v1315_v9 = vmul.f32 %v7264_v7, %v1282_v50 }
 0x2d4   : > { %v1349_v25 = vadd.f32 %v7272_v15, %v1316_v5 }
 0x2d5   : > { %6025 = vmatpush.xpose.msk.msrb.mxu2 %vm576_vm0, %v7896_v44  ;;  %6109 = vmatpush.xpose.msk.msrb.mxu0 %vm576_vm0, %v7896_v44  ;;  %v1348_v28 = vadd.f32 %v7272_v15, %v1315_v9 }
 0x2d6   : > { %5966 = vmatmul.msk.f32.gmra.mxu0 %vm576_vm0, %v1347_v2  ;;  %5998 = vmatmul.msk.f32.gmra.mxu1 %vm576_vm0, %v1347_v2 }
 0x2d8   : > { %v8150_v22 = vpop.f32.mrf.mxu0 }
 0x2d9   : > { %10661 = vst [vmem:[#allocation34_spill] sm:$0xff] %v8150_v22 }
 0x2da   : > { %v8138_v62 = vpop.f32.mrf.mxu1 }
 0x2de   : > { %5967 = vmatmul.msk.f32.gmra.mxu0 %vm576_vm0, %v1348_v28  ;;  %5999 = vmatmul.msk.f32.gmra.mxu1 %vm576_vm0, %v1348_v28 }
 0x2e0   : > { %v8154_v37 = vpop.f32.mrf.mxu0 }
 0x2e1   : > { %10663 = vst [vmem:[#allocation36_spill] sm:$0xff] %v8154_v37 }
 0x2e2   : > { %v8142_v29 = vpop.f32.mrf.mxu1 }
 0x2e6   : > { %5968 = vmatmul.msk.f32.gmra.mxu0 %vm576_vm0, %v1349_v25  ;;  %6000 = vmatmul.msk.f32.gmra.mxu1 %vm576_vm0, %v1349_v25 }
 0x2e8   : > { %v8159_v50 = vpop.f32.mrf.mxu0 }
 0x2e9   : > { %10665 = vst [vmem:[#allocation38_spill] sm:$0xff] %v8159_v50 }
 0x2ea   : > { %v8144_v53 = vpop.f32.mrf.mxu1 }
 0x2f0   : > { %v8165_v32 = vpop.f32.mrf.mxu0 }
 0x2f1   : > { %10667 = vst [vmem:[#allocation40_spill] sm:$0xff] %v8165_v32 }
 0x2f2   : > { %v8148_v46 = vpop.f32.mrf.mxu1 }
 0x2f3   : > { %10660 = vst [vmem:[#allocation33_spill] sm:$0xff] %v8148_v46 }
 0x2fa   : > { %v8152_v35 = vpop.f32.mrf.mxu1 }
 0x2fb   : > { %10662 = vst [vmem:[#allocation35_spill] sm:$0xff] %v8152_v35 }
 0x302   : > { %v8156_v23 = vpop.f32.mrf.mxu1 }
 0x303   : > { %10664 = vst [vmem:[#allocation37_spill] sm:$0xff] %v8156_v23 }
 0x30a   : > { %v8161_v2 = vpop.f32.mrf.mxu1 }
 0x30b   : > { %10666 = vst [vmem:[#allocation39_spill] sm:$0xff] %v8161_v2 }
 0x31b   : > { %v862_v33 = vpop.xlane.xlu0 %861 }
 0x31c   : > { %v900_v41 = vmul.f32 %v862_v33, %v7109_v20  ;;  %v8167_v33 = vpop.f32.mrf.mxu1 }
 0x31d   : > { %10668 = vst [vmem:[#allocation41_spill] sm:$0xff] %v8167_v33 }
 0x31e   : > { %v932_v49 = vadd.f32 1e-05, %v900_v41 }
 0x320   : > { %6450 = vrsqrt.f32 %v932_v49  ;;  %vm1222_vm12 = vweird.f32 %v932_v49 }
 0x323   : > { %v868_v17 = vpop.xlane.xlu0 %867 }
 0x324   : > { %v902_v9 = vmul.f32 %v868_v17, %v7109_v20  ;;  %v865_v30 = vpop.xlane.xlu2 %864 }
 0x325   : > { %v901_v25 = vmul.f32 %v865_v30, %v7109_v20 }
 0x326   : > { %v6451_v10 = vpop.eup %6450  ;;  %v934_v28 = vadd.f32 1e-05, %v902_v9 }
 0x327   : > { %v1217_v5 = vmul.f32 %v6451_v10, %v932_v49  ;;  %v933_v59 = vadd.f32 1e-05, %v901_v25  ;;  %vm1223_vm11 = vweird.f32 %v6451_v10 }
 0x328   : > { %6452 = vrsqrt.f32 %v934_v28  ;;  %vm1224_vm13 = vmor %vm1222_vm12, %vm1223_vm11  ;;  %vm1242_vm15 = vweird.f32 %v934_v28 }
 0x329   : > { %v1218_v44 = vmul.f32 %v6451_v10, %v1217_v5  ;;  %6454 = vrsqrt.f32 %v933_v59  ;;  %vm1232_vm2 = vweird.f32 %v933_v59 }
 0x32b   : > { %v1219_v41 = vmul.f32 0.5, %v1218_v44  ;;  %v1718_v61 = vpop.xlane.xlu1 %1717 }
 0x32c   : > { %v1728_v17 = vmul.f32 %v1718_v61, %v7109_v20 }
 0x32d   : > { %v1220_v14 = vsub.f32 1.5, %v1219_v41  ;;  %v871_v55 = vpop.xlane.xlu2 %870 }
 0x32e   : > { %v6453_v58 = vpop.eup %6452  ;;  %v903_v30 = vmul.f32 %v871_v55, %v7109_v20  ;;  %v1732_v5 = vadd.f32 1e-05, %v1728_v17 }
 0x32f   : > { %v1221_v9 = vmul.f32 %v6451_v10, %v1220_v14  ;;  %v1237_v52 = vmul.f32 %v6453_v58, %v934_v28  ;;  %v6455_v25 = vpop.eup %6454  ;;  %vm1243_vm1 = vweird.f32 %v6453_v58 }
 0x330   : > { %v8171_v42 = vadd.f32 1e-05, %v903_v30  ;;  %v1227_v41 = vmul.f32 %v6455_v25, %v933_v59  ;;  %6456 = vrsqrt.f32 %v1732_v5  ;;  %vm1233_vm14 = vweird.f32 %v6455_v25  ;;  %vm8190_vm4 = vmor %vm1242_vm15, %vm1243_vm1 }
 0x331   : > { %v1225_v8 = vsel %vm1224_vm13, %v6451_v10, %v1221_v9  ;;  %v1238_v40 = vmul.f32 %v6453_v58, %v1237_v52  ;;  %vm1234_vm3 = vmor %vm1232_vm2, %vm1233_vm14  ;;  %vm1742_vm5 = vweird.f32 %v1732_v5 }
 0x332   : > { %v1284_v44 = vmul.f32 %v1225_v8, %v7936_v3  ;;  %6458 = vrsqrt.f32 %v8171_v42  ;;  %v8175_v61 = vpop.f32.mrf.mxu0  ;;  %v8177_v14 = vpop.f32.mrf.mxu1  ;;  %v1228_v49 = vmul.f32 %v6455_v25, %v1227_v41  ;;  %vm1252_vm7 = vweird.f32 %v8171_v42 }
 0x333   : > { %v1239_v38 = vmul.f32 0.5, %v1238_v40  ;;  %10669 = vst [vmem:[#allocation42_spill] sm:$0xff] %v8175_v61  ;;  %v1721_v10 = vpop.xlane.xlu0 %1720 }
 0x334   : > { %10670 = vst [vmem:[#allocation43_spill] sm:$0xff] %v8177_v14  ;;  %v1317_v55 = vmul.f32 %v7264_v7, %v1284_v44  ;;  %v1229_v1 = vmul.f32 0.5, %v1228_v49  ;;  %v1729_v8 = vmul.f32 %v1721_v10, %v7109_v20 }
 0x335   : > { %v1240_v17 = vsub.f32 1.5, %v1239_v38 }
 0x336   : > { %v1350_v52 = vadd.f32 %v7272_v15, %v1317_v55  ;;  %v6457_v9 = vpop.eup %6456  ;;  %v1230_v30 = vsub.f32 1.5, %v1229_v1  ;;  %v8188_v49 = vadd.f32 1e-05, %v1729_v8 }
 0x337   : > { %v1241_v3 = vmul.f32 %v6453_v58, %v1240_v17  ;;  %v1737_v44 = vmul.f32 %v6457_v9, %v1732_v5  ;;  %vm1743_vm6 = vweird.f32 %v6457_v9 }
 0x338   : > { %5969 = vmatmul.msk.f32.gmra.mxu0 %vm576_vm0, %v1350_v52  ;;  %6001 = vmatmul.msk.f32.gmra.mxu1 %vm576_vm0, %v1350_v52  ;;  %v8184_v40 = vpop.eup %6458  ;;  %v1231_v38 = vmul.f32 %v6455_v25, %v1230_v30  ;;  %6460 = vrsqrt.f32 %v8188_v49  ;;  %vm1744_vm9 = vmor %vm1742_vm5, %vm1743_vm6  ;;  %vm1752_vm11 = vweird.f32 %v8188_v49  ;;  %vm2023_vm5 = vcmask 523264  }
 0x339   : > { %v1247_v41 = vmul.f32 %v8184_v40, %v8171_v42  ;;  %v1738_v1 = vmul.f32 %v6457_v9, %v1737_v44  ;;  %v1245_v17 = vsel %vm8190_vm4, %v6453_v58, %v1241_v3  ;;  %vm1253_vm8 = vweird.f32 %v8184_v40 }
 0x33a   : > { %v1235_v55 = vsel %vm1234_vm3, %v6455_v25, %v1231_v38  ;;  %v1286_v58 = vmul.f32 %v1245_v17, %v7942_v12  ;;  %vm1254_vm10 = vmor %vm1252_vm7, %vm1253_vm8 }
 0x33b   : > { %v1248_v52 = vmul.f32 %v8184_v40, %v1247_v41  ;;  %v1285_v28 = vmul.f32 %v1235_v55, %v7963_v54  ;;  %v1739_v59 = vmul.f32 0.5, %v1738_v1  ;;  %v8199_v30 = vpop.f32.mrf.mxu0  ;;  %v8201_v44 = vpop.f32.mrf.mxu1 }
 0x33c   : > { %10673 = vst [vmem:[#allocation44_spill] sm:$0xff] %v8199_v30  ;;  %v1319_v17 = vmul.f32 %v7264_v7, %v1286_v58 }
 0x33d   : > { %10674 = vst [vmem:[#allocation45_spill] sm:$0xff] %v8201_v44  ;;  %v1249_v8 = vmul.f32 0.5, %v1248_v52  ;;  %v1727_v25 = vpop.xlane.xlu2 %1726  ;;  %v1724_v38 = vpop.xlane.xlu1 %1723  ;;  %v1740_v39 = vsub.f32 1.5, %v1739_v59  ;;  %v1318_v55 = vmul.f32 %v7264_v7, %v1285_v28 }
 0x33e   : > { %v1731_v41 = vmul.f32 %v1727_v25, %v7109_v20  ;;  %v1730_v54 = vmul.f32 %v1724_v38, %v7109_v20  ;;  %v6461_v28 = vpop.eup %6460 }
 0x33f   : > { %v1250_v3 = vsub.f32 1.5, %v1249_v8  ;;  %v1741_v1 = vmul.f32 %v6457_v9, %v1740_v39  ;;  %v1351_v52 = vadd.f32 %v7272_v15, %v1318_v55  ;;  %v6778_v39 = vld [vmem:[%s10466_s2] sm:$0xff]  ;;  %v1747_v42 = vmul.f32 %v6461_v28, %v8188_v49 }
 0x340   : > { %v8207_v10 = vadd.f32 1e-05, %v1731_v41  ;;  %v8209_v31 = vadd.f32 1e-05, %v1730_v54  ;;  %v8223_v12 = vperm.slane %v6778_v39, 2  ;;  %v8233_v25 = vperm.slane %v6778_v39, 3 }
 0x341   : > { %v1251_v36 = vmul.f32 %v8184_v40, %v1250_v3  ;;  %v1745_v59 = vsel %vm1744_vm9, %v6457_v9, %v1741_v1  ;;  %5970 = vmatmul.msk.f32.gmra.mxu0 %vm576_vm0, %v1351_v52  ;;  %6002 = vmatmul.msk.f32.gmra.mxu1 %vm576_vm0, %v1351_v52  ;;  %v1748_v41 = vmul.f32 %v6461_v28, %v1747_v42  ;;  %vm1753_vm12 = vweird.f32 %v6461_v28 }
 0x342   : > { %6462 = vrsqrt.f32 %v8207_v10  ;;  %10675 = vst [vmem:[#allocation46_spill] sm:$0xff] %v8223_v12  ;;  %v1776_v8 = vmul.f32 %v1745_v59, %v7984_v24  ;;  %v1352_v24 = vadd.f32 %v7272_v15, %v1319_v17  ;;  %vm1754_vm13 = vmor %vm1752_vm11, %vm1753_vm12  ;;  %vm1762_vm14 = vweird.f32 %v8209_v31 }
 0x343   : > { %6464 = vrsqrt.f32 %v8209_v31  ;;  %v8227_v5 = vpop.f32.mrf.mxu0  ;;  %v8229_v9 = vpop.f32.mrf.mxu1  ;;  %10678 = vst [vmem:[#allocation49_spill] sm:$0xff] %v8233_v25  ;;  %v1255_v38 = vsel %vm1254_vm10, %v8184_v40, %v1251_v36  ;;  %v1749_v55 = vmul.f32 0.5, %v1748_v41  ;;  %vm1772_vm1 = vweird.f32 %v8207_v10 }
 0x344   : > { %10676 = vst [vmem:[#allocation47_spill] sm:$0xff] %v8227_v5  ;;  %6027 = vmatpush.xpose.msk.msrb.mxu3 %vm576_vm0, %v8227_v5  ;;  %6111 = vmatpush.xpose.msk.msrb.mxu1 %vm576_vm0, %v8227_v5  ;;  %v1781_v54 = vmul.f32 %v8223_v12, %v1776_v8  ;;  %v1287_v58 = vmul.f32 %v1255_v38, %v7970_v18 }
 0x345   : > { %10677 = vst [vmem:[#allocation48_spill] sm:$0xff] %v8229_v9  ;;  %3200 = vmatpush.msra.mxu0 %v8229_v9  ;;  %v1750_v1 = vsub.f32 1.5, %v1749_v55 }
 0x346   : > { %v1786_v36 = vadd.f32 %v8233_v25, %v1781_v54  ;;  %v1320_v42 = vmul.f32 %v7264_v7, %v1287_v58 }
 0x347   : > { %3201 = vmatpush.msra.mxu0 %v8201_v44  ;;  %v1751_v59 = vmul.f32 %v6461_v28, %v1750_v1 }
 0x348   : > { %v6463_v3 = vpop.eup %6462  ;;  %6028 = vmatpush.xpose.msk.msrb.mxu3 %vm576_vm0, %v8199_v30  ;;  %6112 = vmatpush.xpose.msk.msrb.mxu1 %vm576_vm0, %v8199_v30  ;;  %v1353_v7 = vadd.f32 %v7272_v15, %v1320_v42 }
 0x349   : > { %v6465_v40 = vpop.eup %6464  ;;  %v1767_v52 = vmul.f32 %v6463_v3, %v8207_v10  ;;  %3202 = vmatpush.msra.mxu0 %v8177_v14  ;;  %6003 = vmatmul.msk.f32.gmra.mxu1 %vm576_vm0, %v1352_v24  ;;  %v1755_v17 = vsel %vm1754_vm13, %v6461_v28, %v1751_v59  ;;  %vm1773_vm2 = vweird.f32 %v6463_v3 }
 0x34a   : > { %v1757_v18 = vmul.f32 %v6465_v40, %v8209_v31  ;;  %5971 = vmatmul.msk.f32.gmra.mxu0 %vm576_vm0, %v1352_v24  ;;  %6005 = vmatmul.msk.f32.vlgmr.msra.gmra.mxu2 %vm576_vm0, %v1786_v36  ;;  %v1777_v41 = vmul.f32 %v1755_v17, %v8026_v4  ;;  %vm1763_vm15 = vweird.f32 %v6465_v40  ;;  %vm1774_vm4 = vmor %vm1772_vm1, %vm1773_vm2 }
 0x34b   : > { %v1768_v39 = vmul.f32 %v6463_v3, %v1767_v52  ;;  %3203 = vmatpush.msra.mxu0 %v8167_v33  ;;  %vm1764_vm3 = vmor %vm1762_vm14, %vm1763_vm15  ;;  %v8308_v52 = vpop.f32.mrf.mxu1 }
 0x34c   : > { %v1758_v49 = vmul.f32 %v6465_v40, %v1757_v18  ;;  %6029 = vmatpush.xpose.msk.msrb.mxu3 %vm576_vm0, %v8175_v61  ;;  %6113 = vmatpush.xpose.msk.msrb.mxu1 %vm576_vm0, %v8175_v61  ;;  %v1782_v28 = vmul.f32 %v8223_v12, %v1777_v41  ;;  %10680 = vst [vmem:[#allocation51_spill] sm:$0xff] %v8308_v52 }
 0x34d   : > { %v1769_v8 = vmul.f32 0.5, %v1768_v39  ;;  %3204 = vmatpush.msra.mxu0 %v8161_v2 }
 0x34e   : > { %v1759_v38 = vmul.f32 0.5, %v1758_v49  ;;  %v1787_v58 = vadd.f32 %v8233_v25, %v1782_v28 }
 0x34f   : > { %v1770_v54 = vsub.f32 1.5, %v1769_v8  ;;  %3205 = vmatpush.msra.mxu0 %v8156_v23 }
 0x350   : > { %v1760_v55 = vsub.f32 1.5, %v1759_v38  ;;  %6030 = vmatpush.xpose.msk.msrb.mxu3 %vm576_vm0, %v8165_v32  ;;  %6114 = vmatpush.xpose.msk.msrb.mxu1 %vm576_vm0, %v8165_v32 }
 0x351   : > { %3206 = vmatpush.msra.mxu0 %v8152_v35  ;;  %6004 = vmatmul.msk.f32.gmra.mxu1 %vm576_vm0, %v1353_v7  ;;  %v1771_v24 = vmul.f32 %v6463_v3, %v1770_v54 }
 0x352   : > { %v1761_v4 = vmul.f32 %v6465_v40, %v1760_v55  ;;  %5972 = vmatmul.msk.f32.gmra.mxu0 %vm576_vm0, %v1353_v7  ;;  %6006 = vmatmul.msk.f32.gmra.mxu2 %vm576_vm0, %v1787_v58 }
 0x353   : > { %3207 = vmatpush.msra.mxu0 %v8148_v46  ;;  %v1775_v36 = vsel %vm1774_vm4, %v6463_v3, %v1771_v24  ;;  %v8312_v59 = vpop.f32.mrf.mxu1 }
 0x354   : > { %v1765_v15 = vsel %vm1764_vm3, %v6465_v40, %v1761_v4  ;;  %6031 = vmatpush.xpose.msk.msrb.mxu3 %vm576_vm0, %v8159_v50  ;;  %6115 = vmatpush.xpose.msk.msrb.mxu1 %vm576_vm0, %v8159_v50  ;;  %v1779_v1 = vmul.f32 %v1775_v36, %v8068_v63  ;;  %v8306_v63 = vpop.f32.mrf.mxu0  ;;  %10682 = vst [vmem:[#allocation53_spill] sm:$0xff] %v8312_v59 }
 0x355   : > { %v1778_v10 = vmul.f32 %v1765_v15, %v8074_v45  ;;  %10679 = vst [vmem:[#allocation50_spill] sm:$0xff] %v8306_v63 }
 0x356   : > { %v1784_v45 = vmul.f32 %v8223_v12, %v1779_v1 }
 0x357   : > { %v1783_v31 = vmul.f32 %v8223_v12, %v1778_v10 }
 0x358   : > { %6032 = vmatpush.xpose.msk.msrb.mxu3 %vm576_vm0, %v8154_v37  ;;  %6116 = vmatpush.xpose.msk.msrb.mxu1 %vm576_vm0, %v8154_v37  ;;  %v1789_v3 = vadd.f32 %v8233_v25, %v1784_v45 }
 0x359   : > { %v1788_v40 = vadd.f32 %v8233_v25, %v1783_v31 }
 0x35b   : > { %6007 = vmatmul.msk.f32.gmra.mxu2 %vm576_vm0, %v1788_v40  ;;  %v8316_v49 = vpop.f32.mrf.mxu1 }
 0x35c   : > { %6033 = vmatpush.xpose.msk.msrb.mxu3 %vm576_vm0, %v8150_v22  ;;  %6117 = vmatpush.xpose.msk.msrb.mxu1 %vm576_vm0, %v8150_v22  ;;  %v8310_v18 = vpop.f32.mrf.mxu0  ;;  %10684 = vst [vmem:[#allocation55_spill] sm:$0xff] %v8316_v49 }
 0x35d   : > { %10681 = vst [vmem:[#allocation52_spill] sm:$0xff] %v8310_v18 }
 0x360   : > { %6034 = vmatpush.xpose.msk.msrb.mxu3 %vm576_vm0, %v8146_v19  ;;  %6118 = vmatpush.xpose.msk.msrb.mxu1 %vm576_vm0, %v8146_v19 }
 0x363   : > { %6008 = vmatmul.msk.f32.gmra.mxu2 %vm576_vm0, %v1789_v3  ;;  %v8320_v17 = vpop.f32.mrf.mxu1 }
 0x364   : > { %v8314_v39 = vpop.f32.mrf.mxu0  ;;  %10686 = vst [vmem:[#allocation57_spill] sm:$0xff] %v8320_v17 }
 0x365   : > { %10683 = vst [vmem:[#allocation54_spill] sm:$0xff] %v8314_v39 }
 0x36c   : > { %v8318_v42 = vpop.f32.mrf.mxu0 }
 0x36d   : > { %10685 = vst [vmem:[#allocation56_spill] sm:$0xff] %v8318_v42 }
 0x3b5   : > { %v8322_v8 = vpop.f32.mrf.mxu0  ;;  %v8324_v38 = vpop.f32.mrf.mxu1 }
 0x3b6   : > { %10687 = vst [vmem:[#allocation58_spill] sm:$0xff] %v8322_v8 }
 0x3b7   : > { %10688 = vst [vmem:[#allocation59_spill] sm:$0xff] %v8324_v38 }
 0x3be   : > { %v8326_v41 = vpop.f32.mrf.mxu0  ;;  %v8328_v54 = vpop.f32.mrf.mxu1 }
 0x3bf   : > { %10689 = vst [vmem:[#allocation60_spill] sm:$0xff] %v8326_v41 }
 0x3c0   : > { %10690 = vst [vmem:[#allocation61_spill] sm:$0xff] %v8328_v54 }
 0x3c6   : > { %v8330_v55 = vpop.f32.mrf.mxu1 }
 0x3c7   : > { %10691 = vst [vmem:[#allocation62_spill] sm:$0xff] %v8330_v55  ;;  %v8332_v7 = vpop.f32.mrf.mxu0 }
 0x3c8   : > { %10692 = vst [vmem:[#allocation63_spill] sm:$0xff] %v8332_v7 }
 0x3cd   : > { %v1819_v28 = vpop.f32.mrf.mxu2 }
 0x3ce   : > { %v1831_v4 = vmul.f32 0.17677669, %v1819_v28  ;;  %v8334_v58 = vpop.f32.mrf.mxu1 }
 0x3cf   : > { %10693 = vst [vmem:[#allocation64_spill] sm:$0xff] %v8334_v58  ;;  %v8336_v24 = vpop.f32.mrf.mxu0  ;;  %3223 = vmatpush.msra.mxu1 %v8334_v58 }
 0x3d0   : > { %10694 = vst [vmem:[#allocation65_spill] sm:$0xff] %v8336_v24  ;;  %6017 = vmatmul.msk.f32.vlgmr.msra.gmra.mxu3 %vm576_vm0, %v1831_v4  ;;  %6036 = vmatpush.xpose.msk.msra.mxu2 %vm576_vm0, %v8336_v24 }
 0x3d1   : > { %2135 = vmatpush.msra.mxu3 %v7955_v60  ;;  %3224 = vmatpush.msra.mxu1 %v8330_v55 }
 0x3d3   : > { %2136 = vmatpush.msra.mxu3 %v7933_v43  ;;  %3225 = vmatpush.msra.mxu1 %v8328_v54 }
 0x3d4   : > { %6037 = vmatpush.xpose.msk.msra.mxu2 %vm576_vm0, %v8332_v7 }
 0x3d5   : > { %2137 = vmatpush.msra.mxu3 %v7916_v51  ;;  %3226 = vmatpush.msra.mxu1 %v8324_v38  ;;  %v1822_v15 = vpop.f32.mrf.mxu2 }
 0x3d6   : > { %v1832_v10 = vmul.f32 0.17677669, %v1822_v15 }
 0x3d7   : > { %2138 = vmatpush.msra.mxu3 %v7906_v57  ;;  %3227 = vmatpush.msra.mxu1 %v8320_v17 }
 0x3d8   : > { %6038 = vmatpush.xpose.msk.msra.mxu2 %vm576_vm0, %v8326_v41 }
 0x3d9   : > { %6026 = vmatmul.msk.f32.vlgmr.msrb.gmra.mxu2 %vm576_vm0, %v1832_v10  ;;  %2139 = vmatpush.msra.mxu3 %v7902_v6 }
 0x3da   : > { %3228 = vmatpush.msra.mxu1 %v8316_v49 }
 0x3db   : > { %2140 = vmatpush.msra.mxu3 %v7898_v48 }
 0x3dc   : > { %6039 = vmatpush.xpose.msk.msra.mxu2 %vm576_vm0, %v8322_v8  ;;  %3229 = vmatpush.msra.mxu1 %v8312_v59 }
 0x3dd   : > { %2141 = vmatpush.msra.mxu3 %v7894_v26 }
 0x3de   : > { %v1825_v36 = vpop.f32.mrf.mxu2  ;;  %3230 = vmatpush.msra.mxu1 %v8308_v52 }
 0x3df   : > { %v1833_v31 = vmul.f32 0.17677669, %v1825_v36  ;;  %2142 = vmatpush.msra.mxu3 %v7892_v56 }
 0x3e0   : > { %6040 = vmatpush.xpose.msk.msra.mxu2 %vm576_vm0, %v8318_v42 }
 0x3e1   : > { %6035 = vmatmul.msk.f32.vlgmr.msrb.gmra.mxu3 %vm576_vm0, %v1833_v31 }
 0x3e2   : > { %2181 = vmatpush.msrb.mxu3 %v8229_v9 }
 0x3e4   : > { %2182 = vmatpush.msrb.mxu3 %v8201_v44  ;;  %6041 = vmatpush.xpose.msk.msra.mxu2 %vm576_vm0, %v8314_v39 }
 0x3e6   : > { %2183 = vmatpush.msrb.mxu3 %v8177_v14  ;;  %v1828_v40 = vpop.f32.mrf.mxu2 }
 0x3e7   : > { %v1834_v1 = vmul.f32 0.17677669, %v1828_v40 }
 0x3e8   : > { %2184 = vmatpush.msrb.mxu3 %v8167_v33  ;;  %6042 = vmatpush.xpose.msk.msra.mxu2 %vm576_vm0, %v8310_v18 }
 0x3ea   : > { %2185 = vmatpush.msrb.mxu3 %v8161_v2 }
 0x3ec   : > { %2186 = vmatpush.msrb.mxu3 %v8156_v23  ;;  %6043 = vmatpush.xpose.msk.msra.mxu2 %vm576_vm0, %v8306_v63 }
 0x3ee   : > { %2187 = vmatpush.msrb.mxu3 %v8152_v35 }
 0x3ef   : > { %6044 = vmatmul.msk.f32.vlgmr.msra.gmra.mxu2 %vm576_vm0, %v1834_v1 }
 0x3f0   : > { %2158 = vmatpush.msrb.mxu2 %v8144_v53  ;;  %2188 = vmatpush.msrb.mxu3 %v8148_v46 }
 0x3f2   : > { %2159 = vmatpush.msrb.mxu2 %v8142_v29 }
 0x3f4   : > { %2160 = vmatpush.msrb.mxu2 %v8138_v62 }
 0x3f6   : > { %2161 = vmatpush.msrb.mxu2 %v8130_v27 }
 0x3f8   : > { %2162 = vmatpush.msrb.mxu2 %v8115_v13 }
 0x3fa   : > { %2163 = vmatpush.msrb.mxu2 %v8089_v47 }
 0x3fc   : > { %2164 = vmatpush.msrb.mxu2 %v8037_v21 }
 0x3fe   : > { %2165 = vmatpush.msrb.mxu2 %v7988_v34 }
 0x400   : > { %2204 = vmatpush.msra.mxu2 %v8334_v58 }
 0x402   : > { %2205 = vmatpush.msra.mxu2 %v8330_v55 }
 0x404   : > { %2206 = vmatpush.msra.mxu2 %v8328_v54 }
 0x406   : > { %2207 = vmatpush.msra.mxu2 %v8324_v38 }
 0x408   : > { %2208 = vmatpush.msra.mxu2 %v8320_v17 }
 0x40a   : > { %2209 = vmatpush.msra.mxu2 %v8316_v49 }
 0x40c   : > { %2210 = vmatpush.msra.mxu2 %v8312_v59 }
 0x40e   : > { %2211 = vmatpush.msra.mxu2 %v8308_v52 }
 0x453   : > { %v1879_v45 = vpop.f32.mrf.mxu3 }
 0x454   : > { %v2024_v3 = vsel %vm2023_vm5, %v1879_v45, -inf }
 0x455   : > { %v2025_v28 = vrot.slane %v2024_v3, 4 }
 0x457   : > { %v2026_v4 = vmax.f32 %v2024_v3, %v2025_v28 }
 0x459   : > { %v2027_v15 = vrot.slane %v2026_v4, 2 }
 0x45b   : > { %v2028_v10 = vmax.f32 %v2026_v4, %v2027_v15 }
 0x45c   : > { %v1926_v36 = vpop.f32.mrf.mxu2 }
 0x45d   : > { %v2029_v31 = vrot.slane %v2028_v10, 1  ;;  %v2031_v40 = vsel %vm2023_vm5, %v1926_v36, -inf }
 0x45e   : > { %v2032_v1 = vrot.slane %v2031_v40, 4 }
 0x45f   : > { %v2030_v17 = vmax.f32 %v2028_v10, %v2029_v31 }
 0x460   : > { %v2033_v38 = vmax.f32 %v2031_v40, %v2032_v1 }
 0x461   : > { %v2052_v49 = vsub.f32 %v1879_v45, %v2030_v17 }
 0x462   : > { %v2034_v54 = vrot.slane %v2033_v38, 2 }
 0x463   : > { %v2056_v59 = vmul.f32 1.442695, %v2052_v49 }
 0x464   : > { %v2035_v55 = vmax.f32 %v2033_v38, %v2034_v54  ;;  %v1973_v52 = vpop.f32.mrf.mxu3 }
 0x465   : > { %6466 = vpow2.f32 %v2056_v59  ;;  %v2038_v58 = vsel %vm2023_vm5, %v1973_v52, -inf }
 0x466   : > { %v2036_v46 = vrot.slane %v2035_v55, 1  ;;  %v2039_v35 = vrot.slane %v2038_v58, 4 }
 0x468   : > { %v2037_v3 = vmax.f32 %v2035_v55, %v2036_v46  ;;  %v2040_v28 = vmax.f32 %v2038_v58, %v2039_v35 }
 0x46a   : > { %v2053_v4 = vsub.f32 %v1926_v36, %v2037_v3  ;;  %v2041_v15 = vrot.slane %v2040_v28, 2 }
 0x46b   : > { %v6467_v23 = vpop.eup %6466 }
 0x46c   : > { %v2064_v2 = vsel %vm2023_vm5, %v6467_v23, 0.0  ;;  %v2058_v33 = vmul.f32 1.442695, %v2053_v4  ;;  %v2042_v10 = vmax.f32 %v2040_v28, %v2041_v15 }
 0x46d   : > { %v2065_v31 = vrot.slane %v2064_v2, 4 }
 0x46e   : > { %6468 = vpow2.f32 %v2058_v33  ;;  %v2043_v17 = vrot.slane %v2042_v10, 1 }
 0x46f   : > { %v2066_v49 = vadd.f32 %v2065_v31, %v2064_v2 }
 0x470   : > { %v2044_v38 = vmax.f32 %v2042_v10, %v2043_v17 }
 0x471   : > { %v2067_v54 = vrot.slane %v2066_v49, 2 }
 0x472   : > { %v2054_v59 = vsub.f32 %v1973_v52, %v2044_v38  ;;  %v2020_v45 = vpop.f32.mrf.mxu2 }
 0x473   : > { %v2045_v40 = vsel %vm2023_vm5, %v2020_v45, -inf  ;;  %v2068_v1 = vadd.f32 %v2067_v54, %v2066_v49 }
 0x474   : > { %v6469_v46 = vpop.eup %6468  ;;  %v2060_v35 = vmul.f32 1.442695, %v2054_v59  ;;  %v2046_v55 = vrot.slane %v2045_v40, 4 }
 0x475   : > { %v2071_v58 = vsel %vm2023_vm5, %v6469_v46, 0.0  ;;  %v2069_v36 = vrot.slane %v2068_v1, 1 }
 0x476   : > { %v2072_v3 = vrot.slane %v2071_v58, 4  ;;  %6470 = vpow2.f32 %v2060_v35  ;;  %v2047_v28 = vmax.f32 %v2045_v40, %v2046_v55 }
 0x477   : > { %v2070_v4 = vadd.f32 %v2069_v36, %v2068_v1 }
 0x478   : > { %v2073_v33 = vadd.f32 %v2072_v3, %v2071_v58  ;;  %v2048_v15 = vrot.slane %v2047_v28, 2 }
 0x479   : > { %6472 = vrcp.f32 %v2070_v4 }
 0x47a   : > { %v2049_v2 = vmax.f32 %v2047_v28, %v2048_v15  ;;  %v2074_v10 = vrot.slane %v2073_v33, 2 }
 0x47c   : > { %v6471_v52 = vpop.eup %6470  ;;  %v2050_v31 = vrot.slane %v2049_v2, 1  ;;  %v2075_v17 = vadd.f32 %v2074_v10, %v2073_v33 }
 0x47d   : > { %v2078_v49 = vsel %vm2023_vm5, %v6471_v52, 0.0 }
 0x47e   : > { %v2079_v38 = vrot.slane %v2078_v49, 4  ;;  %v2051_v54 = vmax.f32 %v2049_v2, %v2050_v31  ;;  %v2076_v59 = vrot.slane %v2075_v17, 1 }
 0x47f   : > { %v6473_v14 = vpop.eup %6472 }
 0x480   : > { %v2080_v44 = vadd.f32 %v2079_v38, %v2078_v49  ;;  %v2055_v9 = vsub.f32 %v2020_v45, %v2051_v54  ;;  %v2096_v19 = vmul.f32 %v6473_v14, %v6467_v23  ;;  %v2077_v35 = vadd.f32 %v2076_v59, %v2075_v17 }
 0x482   : > { %v2062_v40 = vmul.f32 1.442695, %v2055_v9  ;;  %v2100_v1 = vadd.f32 1e-08, %v2096_v19  ;;  %6474 = vrcp.f32 %v2077_v35  ;;  %v2081_v55 = vrot.slane %v2080_v44, 2 }
 0x484   : > { %6476 = vpow2.f32 %v2062_v40  ;;  %v2104_v58 = vsel %vm2023_vm5, %v2100_v1, 0.0  ;;  %v2082_v36 = vadd.f32 %v2081_v55, %v2080_v44 }
 0x485   : > { %2105 = vadd.xlane.f32.xlu0 %v2104_v58 }
 0x486   : > { %v2083_v3 = vrot.slane %v2082_v36, 1 }
 0x488   : > { %v6475_v28 = vpop.eup %6474  ;;  %v2084_v4 = vadd.f32 %v2083_v3, %v2082_v36 }
 0x489   : > { %v2097_v33 = vmul.f32 %v6475_v28, %v6469_v46 }
 0x48a   : > { %v6477_v15 = vpop.eup %6476  ;;  %6478 = vrcp.f32 %v2084_v4 }
 0x48b   : > { %v2085_v2 = vsel %vm2023_vm5, %v6477_v15, 0.0  ;;  %v2101_v45 = vadd.f32 1e-08, %v2097_v33  ;;  %v523_v33 = vld [vmem:[%s10473_s9 + $0x18] sm:$0xff] }
 0x48c   : > { %v2086_v23 = vrot.slane %v2085_v2, 4 }
 0x48d   : > { %v2107_v14 = vsel %vm2023_vm5, %v2101_v45, 0.0 }
 0x48e   : > { %v2087_v19 = vadd.f32 %v2086_v23, %v2085_v2  ;;  %2108 = vadd.xlane.f32.xlu1 %v2107_v14  ;;  %v520_v2 = vld [vmem:[%s10473_s9] sm:$0xff] }
 0x490   : > { %v6479_v9 = vpop.eup %6478  ;;  %v2088_v10 = vrot.slane %v2087_v19, 2 }
 0x491   : > { %v2098_v31 = vmul.f32 %v6479_v9, %v6471_v52 }
 0x492   : > { %v2089_v17 = vadd.f32 %v2088_v10, %v2087_v19  ;;  %v527_v10 = vld [vmem:[%s10474_s10 + $0x18] sm:$0xff] }
 0x493   : > { %v2102_v44 = vadd.f32 1e-08, %v2098_v31  ;;  %v526_v31 = vld [vmem:[%s10474_s10 + $0x10] sm:$0xff] }
 0x494   : > { %v2090_v49 = vrot.slane %v2089_v17, 1 }
 0x495   : > { %v2110_v38 = vsel %vm2023_vm5, %v2102_v44, 0.0 }
 0x496   : > { %2111 = vadd.xlane.f32.xlu2 %v2110_v38  ;;  %v2091_v46 = vadd.f32 %v2090_v49, %v2089_v17  ;;  %v525_v17 = vld [vmem:[%s10474_s10 + $0x8] sm:$0xff]  ;;  %v531_v49 = vld [vmem:[%s10475_s11 + $0x18] sm:$0xff]  ;;  %v530_v38 = vld [vmem:[%s10475_s11 + $0x10] sm:$0xff] }
 0x498   : > { %6480 = vrcp.f32 %v2091_v46  ;;  %v529_v46 = vld [vmem:[%s10475_s11 + $0x8] sm:$0xff] }
 0x49e   : > { %v6481_v54 = vpop.eup %6480 }
 0x49f   : > { %v2099_v59 = vmul.f32 %v6481_v54, %v6477_v15  ;;  %v522_v15 = vld [vmem:[%s10473_s9 + $0x10] sm:$0xff]  ;;  %v528_v54 = vld [vmem:[%s10475_s11] sm:$0xff] }
 0x4a1   : > { %v2103_v35 = vadd.f32 1e-08, %v2099_v59  ;;  %v10695_v59 = vld [vmem:[#allocation17_spill] sm:$0xff] }
 0x4a3   : > { %v2113_v40 = vsel %vm2023_vm5, %v2103_v35, 0.0 }
 0x4a4   : > { %2114 = vadd.xlane.f32.xlu0 %v2113_v40  ;;  %v542_v40 = vld [vmem:[%s10477_s13 + $0x30] sm:$0xff] }
 0x4f8   : > { %v2106_v55 = vpop.xlane.xlu0 %2105 }
 0x4f9   : > { %6482 = vrcp.f32 %v2106_v55  ;;  %v541_v55 = vld [vmem:[%s10477_s13 + $0x28] sm:$0xff] }
 0x4ff   : > { %v6483_v58 = vpop.eup %6482 }
 0x500   : > { %v2120_v36 = vmul.f32 %v6483_v58, %v2100_v1  ;;  %v521_v1 = vld [vmem:[%s10473_s9 + $0x8] sm:$0xff]  ;;  %v540_v58 = vld [vmem:[%s10477_s13 + $0x20] sm:$0xff] }
 0x501   : > { %v2109_v3 = vpop.xlane.xlu1 %2108 }
 0x502   : > { %6484 = vrcp.f32 %v2109_v3  ;;  %6045 = vmatmul.msk.f32.vlgmr.msra.gmra.mxu3 %vm2023_vm5, %v2120_v36  ;;  %v539_v36 = vld [vmem:[%s10477_s13 + $0x18] sm:$0xff]  ;;  %v538_v3 = vld [vmem:[%s10477_s13 + $0x10] sm:$0xff] }
 0x508   : > { %v6485_v52 = vpop.eup %6484 }
 0x509   : > { %v2121_v28 = vmul.f32 %v6485_v52, %v2101_v45  ;;  %v2112_v4 = vpop.xlane.xlu2 %2111  ;;  %v537_v52 = vld [vmem:[%s10477_s13 + $0x8] sm:$0xff] }
 0x50a   : > { %6486 = vrcp.f32 %v2112_v4  ;;  %v511_v4 = vld [vmem:[%s10470_s6 + $0x18] sm:$0xff] }
 0x50b   : > { %6046 = vmatmul.msk.f32.vlgmr.msrb.gmra.mxu2 %vm2023_vm5, %v2121_v28  ;;  %v536_v28 = vld [vmem:[%s10477_s13] sm:$0xff]  ;;  %2241 = vmatpush.msra.mxu3 %v511_v4 }
 0x50c   : > { %2282 = vmatpush.msrb.mxu2 %v523_v33  ;;  %v510_v33 = vld [vmem:[%s10470_s6 + $0x10] sm:$0xff] }
 0x50d   : > { %2242 = vmatpush.msra.mxu3 %v510_v33 }
 0x50e   : > { %2283 = vmatpush.msrb.mxu2 %v522_v15  ;;  %v509_v15 = vld [vmem:[%s10470_s6 + $0x8] sm:$0xff] }
 0x50f   : > { %2243 = vmatpush.msra.mxu3 %v509_v15 }
 0x510   : > { %v6487_v45 = vpop.eup %6486  ;;  %2284 = vmatpush.msrb.mxu2 %v521_v1  ;;  %v508_v1 = vld [vmem:[%s10470_s6] sm:$0xff] }
 0x511   : > { %v2122_v23 = vmul.f32 %v6487_v45, %v2102_v44  ;;  %v524_v44 = vld [vmem:[%s10474_s10] sm:$0xff]  ;;  %2244 = vmatpush.msra.mxu3 %v508_v1  ;;  %v10697_v45 = vld [vmem:[#allocation15_spill] sm:$0xff]  ;;  %v8565_v1 = vld [vmem:[%s10466_s2 + $0x8] sm:$0xff] }
 0x512   : > { %2285 = vmatpush.msrb.mxu2 %v520_v2  ;;  %v10696_v2 = vld [vmem:[#allocation16_spill] sm:$0xff] }
 0x513   : > { %6047 = vmatmul.msk.f32.vlgmr.msrb.gmra.mxu3 %vm2023_vm5, %v2122_v23  ;;  %v515_v23 = vld [vmem:[%s10471_s7 + $0x18] sm:$0xff] }
 0x514   : > { %2397 = vmatpush.msrb.mxu3 %v515_v23  ;;  %v8568_v23 = vperm.slane %v8565_v1, 2 }
 0x516   : > { %10704 = vst [vmem:[#allocation17_spill] sm:$0xff] %v8568_v23 }
 0x517   : > { %v2115_v14 = vpop.xlane.xlu0 %2114 }
 0x518   : > { %6488 = vrcp.f32 %v2115_v14  ;;  %v10698_v14 = vld [vmem:[#allocation14_spill] sm:$0xff] }
 0x51e   : > { %v6489_v19 = vpop.eup %6488 }
 0x51f   : > { %v2123_v9 = vmul.f32 %v6489_v19, %v2103_v35  ;;  %v543_v35 = vld [vmem:[%s10477_s13 + $0x38] sm:$0xff]  ;;  %v10699_v19 = vld [vmem:[#allocation13_spill] sm:$0xff] }
 0x521   : > { %6048 = vmatmul.msk.f32.vlgmr.msra.gmra.mxu2 %vm2023_vm5, %v2123_v9  ;;  %v514_v9 = vld [vmem:[%s10471_s7 + $0x10] sm:$0xff] }
 0x522   : > { %2426 = vmatpush.msra.mxu2 %v527_v10  ;;  %2398 = vmatpush.msrb.mxu3 %v514_v9  ;;  %v513_v10 = vld [vmem:[%s10471_s7 + $0x8] sm:$0xff] }
 0x524   : > { %2427 = vmatpush.msra.mxu2 %v526_v31  ;;  %2399 = vmatpush.msrb.mxu3 %v513_v10  ;;  %v10700_v31 = vld [vmem:[#allocation12_spill] sm:$0xff] }
 0x526   : > { %2428 = vmatpush.msra.mxu2 %v525_v17  ;;  %v10701_v17 = vld [vmem:[#allocation11_spill] sm:$0xff] }
 0x528   : > { %2429 = vmatpush.msra.mxu2 %v524_v44  ;;  %v10702_v44 = vld [vmem:[#allocation10_spill] sm:$0xff] }
 0x529   : > { %6053 = vmatmul.msk.f32.vlgmr.msrb.gmra.mxu2 %vm576_vm0, %v7765_v11 }
 0x52a   : > { %2571 = vmatpush.msrb.mxu2 %v531_v49 }
 0x52c   : > { %2572 = vmatpush.msrb.mxu2 %v530_v38  ;;  %v512_v38 = vld [vmem:[%s10471_s7] sm:$0xff] }
 0x52d   : > { %2400 = vmatpush.msrb.mxu3 %v512_v38  ;;  %v8572_v38 = vperm.slane %v8565_v1, 5 }
 0x52e   : > { %2573 = vmatpush.msrb.mxu2 %v529_v46  ;;  %v10703_v46 = vld [vmem:[#allocation9_spill] sm:$0xff] }
 0x52f   : > { %10705 = vst [vmem:[#allocation66_spill] sm:$0xff] %v8572_v38 }
 0x530   : > { %2574 = vmatpush.msrb.mxu2 %v528_v54  ;;  %v519_v54 = vld [vmem:[%s10472_s8 + $0x18] sm:$0xff] }
 0x531   : > { %6054 = vmatmul.msk.f32.gmra.mxu2 %vm576_vm0, %v7811_v0 }
 0x539   : > { %6055 = vmatmul.msk.f32.gmra.mxu2 %vm576_vm0, %v7865_v16 }
 0x541   : > { %6056 = vmatmul.msk.f32.gmra.mxu2 %vm576_vm0, %v10695_v59 }
 0x549   : > { %6065 = vmatmul.msk.f32.vlgmr.msra.gmra.mxu2 %vm576_vm0, %v7765_v11 }
 0x54a   : > { %2780 = vmatpush.msra.mxu2 %v543_v35 }
 0x54c   : > { %2781 = vmatpush.msra.mxu2 %v542_v40  ;;  %v518_v40 = vld [vmem:[%s10472_s8 + $0x10] sm:$0xff] }
 0x54e   : > { %2782 = vmatpush.msra.mxu2 %v541_v55 }
 0x550   : > { %2783 = vmatpush.msra.mxu2 %v540_v58  ;;  %v517_v58 = vld [vmem:[%s10472_s8 + $0x8] sm:$0xff] }
 0x551   : > { %6066 = vmatmul.msk.f32.gmra.mxu2 %vm576_vm0, %v7811_v0 }
 0x552   : > { %2784 = vmatpush.msra.mxu2 %v539_v36 }
 0x554   : > { %2785 = vmatpush.msra.mxu2 %v538_v3  ;;  %v516_v3 = vld [vmem:[%s10472_s8] sm:$0xff] }
 0x556   : > { %2786 = vmatpush.msra.mxu2 %v537_v52 }
 0x558   : > { %2787 = vmatpush.msra.mxu2 %v536_v28 }
 0x559   : > { %6067 = vmatmul.msk.f32.gmra.mxu2 %vm576_vm0, %v7865_v16 }
 0x561   : > { %6068 = vmatmul.msk.f32.gmra.mxu2 %vm576_vm0, %v10695_v59 }
 0x569   : > { %6077 = vmatmul.msk.f32.vlgmr.msrb.gmra.mxu2 %vm576_vm0, %v7765_v11 }
 0x56a   : > { %6093 = vmatpush.xpose.msk.msrb.mxu2 %vm576_vm0, %v10696_v2 }
 0x56e   : > { %6094 = vmatpush.xpose.msk.msrb.mxu2 %vm576_vm0, %v10697_v45 }
 0x571   : > { %6078 = vmatmul.msk.f32.gmra.mxu2 %vm576_vm0, %v7811_v0 }
 0x572   : > { %6095 = vmatpush.xpose.msk.msrb.mxu2 %vm576_vm0, %v10698_v14 }
 0x576   : > { %6096 = vmatpush.xpose.msk.msrb.mxu2 %vm576_vm0, %v10699_v19 }
 0x579   : > { %6079 = vmatmul.msk.f32.gmra.mxu2 %vm576_vm0, %v7865_v16 }
 0x57a   : > { %6097 = vmatpush.xpose.msk.msrb.mxu2 %vm576_vm0, %v10700_v31 }
 0x57e   : > { %6098 = vmatpush.xpose.msk.msrb.mxu2 %vm576_vm0, %v10701_v17 }
 0x581   : > { %6080 = vmatmul.msk.f32.gmra.mxu2 %vm576_vm0, %v10695_v59 }
 0x582   : > { %6099 = vmatpush.xpose.msk.msrb.mxu2 %vm576_vm0, %v10702_v44 }
 0x585   : > { %v2144_v49 = vpop.f32.mrf.mxu3 }
 0x586   : > { %6100 = vmatpush.xpose.msk.msrb.mxu2 %vm576_vm0, %v10703_v46  ;;  %6049 = vmatmul.msk.f32.vlgmr.msra.gmra.mxu3 %vm576_vm0, %v2144_v49 }
 0x587   : > { %2541 = vmatpush.msra.mxu3 %v519_v54 }
 0x589   : > { %2542 = vmatpush.msra.mxu3 %v518_v40 }
 0x58b   : > { %2543 = vmatpush.msra.mxu3 %v517_v58 }
 0x58d   : > { %2544 = vmatpush.msra.mxu3 %v516_v3 }
 0x58e   : > { %v2167_v35 = vpop.f32.mrf.mxu2 }
 0x58f   : > { %6050 = vmatmul.msk.f32.gmra.mxu3 %vm576_vm0, %v2167_v35 }
 0x596   : > { %v2190_v55 = vpop.f32.mrf.mxu3 }
 0x597   : > { %6051 = vmatmul.msk.f32.gmra.mxu3 %vm576_vm0, %v2190_v55 }
 0x5a4   : > { %v2213_v36 = vpop.f32.mrf.mxu2 }
 0x5a5   : > { %6052 = vmatmul.msk.f32.gmra.mxu3 %vm576_vm0, %v2213_v36 }
 0x5ac   : > { %v2287_v52 = vpop.f32.mrf.mxu2 }
 0x5ad   : > { %6061 = vmatmul.msk.f32.vlgmr.msrb.gmra.mxu3 %vm576_vm0, %v2144_v49 }
 0x5b4   : > { %v2290_v28 = vpop.f32.mrf.mxu2 }
 0x5b5   : > { %6062 = vmatmul.msk.f32.gmra.mxu3 %vm576_vm0, %v2167_v35 }
 0x5bc   : > { %v2293_v4 = vpop.f32.mrf.mxu2 }
 0x5bd   : > { %6063 = vmatmul.msk.f32.gmra.mxu3 %vm576_vm0, %v2190_v55 }
 0x5c4   : > { %v2296_v33 = vpop.f32.mrf.mxu2 }
 0x5c5   : > { %6064 = vmatmul.msk.f32.gmra.mxu3 %vm576_vm0, %v2213_v36 }
 0x5cc   : > { %v2431_v10 = vpop.f32.mrf.mxu2 }
 0x5cd   : > { %6073 = vmatmul.msk.f32.vlgmr.msra.gmra.mxu3 %vm576_vm0, %v2144_v49 }
 0x5d4   : > { %v2434_v58 = vpop.f32.mrf.mxu2 }
 0x5d5   : > { %6074 = vmatmul.msk.f32.gmra.mxu3 %vm576_vm0, %v2167_v35 }
 0x5dc   : > { %v2437_v61 = vpop.f32.mrf.mxu2 }
 0x5dd   : > { %6075 = vmatmul.msk.f32.gmra.mxu3 %vm576_vm0, %v2190_v55 }
 0x5e5   : > { %6076 = vmatmul.msk.f32.gmra.mxu3 %vm576_vm0, %v2213_v36 }
 0x609   : > { %v2246_v15 = vpop.f32.mrf.mxu3 }
 0x60a   : > { %v2247_v9 = vadd.f32 %v2246_v15, %v8568_v23 }
 0x60c   : > { %v2299_v54 = vadd.f32 %v2287_v52, %v2247_v9 }
 0x60e   : > { %v2304_v40 = vadd.f32 %v8572_v38, %v2299_v54 }
 0x610   : > { %v6057_v36 = vmul.f32 -1.442695, %v2304_v40 }
 0x612   : > { %v2249_v49 = vpop.f32.mrf.mxu3  ;;  %6490 = vpow2.f32 %v6057_v36 }
 0x613   : > { %v2250_v35 = vadd.f32 %v2249_v49, %v8568_v23 }
 0x615   : > { %v2300_v55 = vadd.f32 %v2290_v28, %v2250_v35  ;;  %v8581_v28 = vperm.slane %v8565_v1, 3 }
 0x617   : > { %v2305_v22 = vadd.f32 %v8572_v38, %v2300_v55  ;;  %10706 = vst [vmem:[#allocation67_spill] sm:$0xff] %v8581_v28 }
 0x618   : > { %v6491_v46 = vpop.eup %6490 }
 0x619   : > { %v6058_v15 = vmul.f32 -1.442695, %v2305_v22  ;;  %v8583_v49 = vadd.f32 1.0, %v6491_v46  ;;  %v8586_v22 = vperm.slane %v8565_v1, 6 }
 0x61a   : > { %v2252_v3 = vpop.f32.mrf.mxu3 }
 0x61b   : > { %v2253_v37 = vadd.f32 %v2252_v3, %v8568_v23  ;;  %6492 = vpow2.f32 %v6058_v15  ;;  %10707 = vst [vmem:[#allocation68_spill] sm:$0xff] %v8586_v22  ;;  %vm2329_vm7 = vweird.f32 %v8583_v49 }
 0x61c   : > { %6494 = vrcp.f32 %v8583_v49 }
 0x61d   : > { %v2301_v50 = vadd.f32 %v2293_v4, %v2253_v37 }
 0x61f   : > { %v2306_v52 = vadd.f32 %v8572_v38, %v2301_v50  ;;  %v2440_v50 = vpop.f32.mrf.mxu2 }
 0x621   : > { %v6059_v54 = vmul.f32 -1.442695, %v2306_v52  ;;  %v6493_v55 = vpop.eup %6492 }
 0x622   : > { %v8591_v36 = vadd.f32 1.0, %v6493_v55  ;;  %v6495_v3 = vpop.eup %6494 }
 0x623   : > { %6496 = vpow2.f32 %v6059_v54  ;;  %v2325_v54 = vmul.f32 %v6495_v3, %v8583_v49  ;;  %vm2330_vm6 = vweird.f32 %v6495_v3 }
 0x624   : > { %6498 = vrcp.f32 %v8591_v36  ;;  %vm2331_vm8 = vmor %vm2329_vm7, %vm2330_vm6  ;;  %vm2344_vm10 = vweird.f32 %v8591_v36 }
 0x628   : > { %v2255_v32 = vpop.f32.mrf.mxu3 }
 0x629   : > { %v2256_v9 = vadd.f32 %v2255_v32, %v8568_v23 }
 0x62b   : > { %v2302_v35 = vadd.f32 %v2296_v33, %v2256_v9  ;;  %v6497_v9 = vpop.eup %6496 }
 0x62d   : > { %v2307_v32 = vadd.f32 %v8572_v38, %v2302_v35  ;;  %v8597_v35 = vadd.f32 1.0, %v6497_v9 }
 0x62f   : > { %v6060_v33 = vmul.f32 -1.442695, %v2307_v32  ;;  %v2326_v32 = vsub.f32 1.0, %v2325_v54  ;;  %vm2359_vm2 = vweird.f32 %v8597_v35 }
 0x630   : > { %v2402_v40 = vpop.f32.mrf.mxu3 }
 0x631   : > { %v2403_v37 = vadd.f32 %v2402_v40, %v8581_v28 }
 0x633   : > { %v2443_v4 = vadd.f32 %v2431_v10, %v2403_v37  ;;  %v2576_v10 = vpop.f32.mrf.mxu2  ;;  %v8600_v37 = vpop.eup %6498 }
 0x634   : > { %vm2345_vm11 = vweird.f32 %v8600_v37 }
 0x635   : > { %v2448_v46 = vadd.f32 %v8586_v22, %v2443_v4  ;;  %vm8651_vm13 = vmor %vm2344_vm10, %vm2345_vm11 }
 0x637   : > { %v6069_v15 = vmul.f32 -1.442695, %v2448_v46 }
 0x638   : > { %v2405_v52 = vpop.f32.mrf.mxu3 }
 0x639   : > { %6500 = vpow2.f32 %v6069_v15  ;;  %v2406_v23 = vadd.f32 %v2405_v52, %v8581_v28 }
 0x63a   : > { %6502 = vpow2.f32 %v6060_v33 }
 0x63b   : > { %v2444_v40 = vadd.f32 %v2434_v58, %v2406_v23  ;;  %6504 = vrcp.f32 %v8597_v35  ;;  %v2327_v23 = vmul.f32 %v6495_v3, %v2326_v32  ;;  %v2340_v58 = vmul.f32 %v8600_v37, %v8591_v36 }
 0x63c   : > { %v2335_v32 = vand.u32 2147483648, %v8583_v49 }
 0x63d   : > { %v2449_v55 = vadd.f32 %v8586_v22, %v2444_v40  ;;  %v2341_v30 = vsub.f32 1.0, %v2340_v58 }
 0x63e   : > { %v2336_v31 = vor.u32 1.1754944e-38, %v2335_v32  ;;  %v2348_v32 = vand.u32 2147483647, %v8591_v36 }
 0x63f   : > { %v6501_v4 = vpop.eup %6500  ;;  %v6070_v46 = vmul.f32 -1.442695, %v2449_v55 }
 0x640   : > { %v8603_v38 = vadd.f32 1.0, %v6501_v4  ;;  %v2408_v15 = vpop.f32.mrf.mxu3  ;;  %v6503_v52 = vpop.eup %6502  ;;  %v2328_v4 = vadd.f32 %v6495_v3, %v2327_v23  ;;  %vm2349_vm1 = vcmp.eq.f32.partialorder %v2348_v32, 8.507059e+37 }
 0x641   : > { %6506 = vpow2.f32 %v6070_v46  ;;  %v2409_v33 = vadd.f32 %v2408_v15, %v8581_v28  ;;  %v8609_v40 = vadd.f32 1.0, %v6503_v52  ;;  %v8612_v55 = vpop.eup %6504  ;;  %v8615_v46 = vperm.slane %v8565_v1, 7  ;;  %v2579_v15 = vpop.f32.mrf.mxu2 }
 0x642   : > { %6508 = vrcp.f32 %v8603_v38  ;;  %v2355_v19 = vmul.f32 %v8612_v55, %v8597_v35  ;;  %vm2473_vm14 = vweird.f32 %v8603_v38  ;;  %vm2360_vm4 = vweird.f32 %v8612_v55 }
 0x643   : > { %v2445_v9 = vadd.f32 %v2437_v61, %v2409_v33  ;;  %10708 = vst [vmem:[#allocation69_spill] sm:$0xff] %v8615_v46  ;;  %6510 = vrcp.f32 %v8609_v40  ;;  %v2333_v61 = vand.u32 2147483647, %v8583_v49  ;;  %v2577_v14 = vadd.f32 %v2576_v10, %v8615_v46  ;;  %vm8695_vm7 = vmor %vm2359_vm2, %vm2360_vm4 }
 0x644   : > { %v2350_v10 = vand.u32 2147483648, %v8591_v36  ;;  %vm2374_vm11 = vweird.f32 %v8609_v40 }
 0x645   : > { %v2450_v54 = vadd.f32 %v8586_v22, %v2445_v9  ;;  %v2332_v9 = vsel %vm2331_vm8, %v6495_v3, %v2328_v4  ;;  %vm2334_vm9 = vcmp.eq.f32.partialorder %v2333_v61, 8.507059e+37 }
 0x646   : > { %v2351_v45 = vor.u32 1.1754944e-38, %v2350_v10 }
 0x647   : > { %v6507_v44 = vpop.eup %6506  ;;  %v6071_v5 = vmul.f32 -1.442695, %v2450_v54  ;;  %v2342_v54 = vmul.f32 %v8600_v37, %v2341_v30 }
 0x648   : > { %v8618_v17 = vpop.eup %6508  ;;  %v8623_v52 = vadd.f32 1.0, %v6507_v44  ;;  %v2411_v33 = vpop.f32.mrf.mxu3 }
 0x649   : > { %6512 = vpow2.f32 %v6071_v5  ;;  %v2412_v23 = vadd.f32 %v2411_v33, %v8581_v28  ;;  %v2469_v58 = vmul.f32 %v8618_v17, %v8603_v38  ;;  %v8634_v5 = vperm.slane %v8565_v1, 4  ;;  %v8638_v30 = vpop.eup %6510 }
 0x64a   : > { %6514 = vrcp.f32 %v8623_v52  ;;  %v2337_v33 = vsel %vm2334_vm9, %v2336_v31, %v2332_v9  ;;  %v2343_v4 = vadd.f32 %v8600_v37, %v2342_v54  ;;  %v2356_v1 = vsub.f32 1.0, %v2355_v19 }
 0x64b   : > { %v2446_v49 = vadd.f32 %v2440_v50, %v2412_v23  ;;  %v2470_v44 = vsub.f32 1.0, %v2469_v58  ;;  %10709 = vst [vmem:[#allocation70_spill] sm:$0xff] %v8634_v5  ;;  %v2588_v23 = vmul.f32 %v2577_v14, %v2337_v33  ;;  %vm2474_vm12 = vweird.f32 %v8618_v17 }
 0x64c   : > { %v2479_v19 = vand.u32 2147483648, %v8603_v38  ;;  %v2477_v33 = vand.u32 2147483647, %v8603_v38  ;;  %vm8668_vm15 = vmor %vm2473_vm14, %vm2474_vm12  ;;  %vm2488_vm8 = vweird.f32 %v8623_v52 }
 0x64d   : > { %v2451_v28 = vadd.f32 %v8586_v22, %v2446_v49  ;;  %v2471_v3 = vmul.f32 %v8618_v17, %v2470_v44  ;;  %v2582_v44 = vpop.f32.mrf.mxu2 }
 0x64e   : > { %vm2478_vm3 = vcmp.eq.f32.partialorder %v2477_v33, 8.507059e+37 }
 0x64f   : > { %v6513_v50 = vpop.eup %6512  ;;  %v6072_v61 = vmul.f32 -1.442695, %v2451_v28  ;;  %v2472_v49 = vadd.f32 %v8618_v17, %v2471_v3  ;;  %v2347_v28 = vsel %vm8651_vm13, %v8600_v37, %v2343_v4  ;;  %v2357_v3 = vmul.f32 %v8612_v55, %v2356_v1 }
 0x650   : > { %v8645_v31 = vpop.eup %6514  ;;  %v8647_v58 = vadd.f32 1.0, %v6513_v50  ;;  %v2546_v9 = vpop.f32.mrf.mxu3  ;;  %v2370_v50 = vmul.f32 %v8638_v30, %v8609_v40  ;;  %v2580_v37 = vadd.f32 %v2579_v15, %v8615_v46  ;;  %v2583_v4 = vadd.f32 %v2582_v44, %v8615_v46 }
 0x651   : > { %6516 = vpow2.f32 %v6072_v61  ;;  %v2547_v36 = vadd.f32 %v2546_v9, %v8634_v5  ;;  %v2484_v14 = vmul.f32 %v8645_v31, %v8623_v52  ;;  %v2476_v38 = vsel %vm8668_vm15, %v8618_v17, %v2472_v49 }
 0x652   : > { %6518 = vrcp.f32 %v8647_v58  ;;  %v2480_v1 = vor.u32 1.1754944e-38, %v2479_v19  ;;  %v2358_v15 = vadd.f32 %v8612_v55, %v2357_v3  ;;  %v2371_v44 = vsub.f32 1.0, %v2370_v50 }
 0x653   : > { %v2592_v61 = vadd.f32 %v2588_v23, %v2547_v36  ;;  %v2485_v22 = vsub.f32 1.0, %v2484_v14  ;;  %v2352_v23 = vsel %vm2349_vm1, %v2351_v45, %v2347_v28  ;;  %v2363_v36 = vand.u32 2147483647, %v8597_v35 }
 0x654   : > { %v2481_v14 = vsel %vm2478_vm3, %v2480_v1, %v2476_v38  ;;  %v2365_v17 = vand.u32 2147483648, %v8597_v35  ;;  %vm2489_vm6 = vweird.f32 %v8645_v31  ;;  %v2589_v49 = vmul.f32 %v2580_v37, %v2352_v23 }
 0x655   : > { %6520 = vtanh.f32 %v2592_v61  ;;  %v2486_v54 = vmul.f32 %v8645_v31, %v2485_v22  ;;  %v2494_v28 = vand.u32 2147483648, %v8623_v52  ;;  %v2600_v50 = vsub.f32 1.0, %v2481_v14  ;;  %vm8706_vm9 = vmor %vm2488_vm8, %vm2489_vm6 }
 0x656   : > { %v2492_v61 = vand.u32 2147483647, %v8623_v52  ;;  %v2362_v38 = vsel %vm8695_vm7, %v8612_v55, %v2358_v15  ;;  %v2372_v1 = vmul.f32 %v8638_v30, %v2371_v44  ;;  %v2608_v2 = vmul.f32 %v2481_v14, %v7765_v11 }
 0x657   : > { %v6517_v10 = vpop.eup %6516  ;;  %v2487_v45 = vadd.f32 %v8645_v31, %v2486_v54  ;;  %vm2364_vm10 = vcmp.eq.f32.partialorder %v2363_v36, 8.507059e+37  ;;  %v2495_v3 = vor.u32 1.1754944e-38, %v2494_v28  ;;  %vm2375_vm13 = vweird.f32 %v8638_v30  ;;  %v2585_v36 = vpop.f32.mrf.mxu2 }
 0x658   : > { %v8682_v9 = vpop.eup %6518  ;;  %v8685_v32 = vadd.f32 1.0, %v6517_v10  ;;  %v2549_v22 = vpop.f32.mrf.mxu3  ;;  %v2366_v10 = vor.u32 1.1754944e-38, %v2365_v17  ;;  %vm2493_vm12 = vcmp.eq.f32.partialorder %v2492_v61, 8.507059e+37  ;;  %v2373_v17 = vadd.f32 %v8638_v30, %v2372_v1  ;;  %vm8733_vm15 = vmor %vm2374_vm11, %vm2375_vm13 }
 0x659   : > { %v2550_v19 = vadd.f32 %v2549_v22, %v8634_v5  ;;  %v2499_v33 = vmul.f32 %v8682_v9, %v8647_v58  ;;  %v2491_v52 = vsel %vm8706_vm9, %v8645_v31, %v2487_v45  ;;  %v2378_v11 = vand.u32 2147483647, %v8609_v40 }
 0x65a   : > { %6522 = vrcp.f32 %v8685_v32  ;;  %v2367_v15 = vsel %vm2364_vm10, %v2366_v10, %v2362_v38  ;;  %v2496_v14 = vsel %vm2493_vm12, %v2495_v3, %v2491_v52  ;;  %v2380_v31 = vand.u32 2147483648, %v8609_v40 }
 0x65b   : > { %v6521_v37 = vpop.eup %6520  ;;  %v2593_v54 = vadd.f32 %v2589_v49, %v2550_v19  ;;  %v2500_v23 = vsub.f32 1.0, %v2499_v33  ;;  %vm2504_vm14 = vweird.f32 %v8682_v9  ;;  %v2601_v38 = vsub.f32 1.0, %v2496_v14 }
 0x65c   : > { %v2604_v22 = vmul.f32 %v6521_v37, %v2600_v50  ;;  %v2509_v50 = vand.u32 2147483648, %v8647_v58  ;;  %vm2503_vm1 = vweird.f32 %v8647_v58  ;;  %v2586_v35 = vadd.f32 %v2585_v36, %v8615_v46 }
 0x65d   : > { %6524 = vtanh.f32 %v2593_v54  ;;  %v2501_v55 = vmul.f32 %v8682_v9, %v2500_v23  ;;  %v2377_v54 = vsel %vm8733_vm15, %v8638_v30, %v2373_v17  ;;  %vm2505_vm2 = vmor %vm2503_vm1, %vm2504_vm14  ;;  %v2381_v40 = vor.u32 1.1754944e-38, %v2380_v31 }
 0x65e   : > { %v8716_v44 = vadd.f32 %v2608_v2, %v2604_v22  ;;  %v2590_v2 = vmul.f32 %v2583_v4, %v2367_v15  ;;  %v2507_v4 = vand.u32 2147483647, %v8647_v58  ;;  %v2609_v52 = vmul.f32 %v2496_v14, %v7811_v0 }
 0x65f   : > { %v2502_v28 = vadd.f32 %v8682_v9, %v2501_v55  ;;  %vm2379_vm3 = vcmp.eq.f32.partialorder %v2378_v11, 8.507059e+37  ;;  %v2510_v55 = vor.u32 1.1754944e-38, %v2509_v50  ;;  %vm2518_vm7 = vweird.f32 %v8685_v32 }
 0x660   : > { %v6523_v49 = vpop.eup %6522  ;;  %v2552_v45 = vpop.f32.mrf.mxu3  ;;  %v2616_v19 = vsel %vm576_vm0, %v8716_v44, 0.0  ;;  %v2382_v15 = vsel %vm2379_vm3, %v2381_v40, %v2377_v54  ;;  %vm2508_vm4 = vcmp.eq.f32.partialorder %v2507_v4, 8.507059e+37  ;;  %v2522_v14 = vand.u32 2147483647, %v8685_v32  ;;  %v8766_v40 = vld [vmem:[%s10476_s12 + $0x18] sm:$0xff] }
 0x661   : > { %v2553_v33 = vadd.f32 %v2552_v45, %v8634_v5  ;;  %2617 = vadd.xlane.f32.xlu1 %v2616_v19  ;;  %v2514_v61 = vmul.f32 %v6523_v49, %v8685_v32  ;;  %v2506_v3 = vsel %vm2505_vm2, %v8682_v9, %v2502_v28  ;;  %vm2519_vm6 = vweird.f32 %v6523_v49  ;;  %2739 = vmatpush.msrb.mxu3 %v8766_v40 }
 0x662   : > { %v2511_v30 = vsel %vm2508_vm4, %v2510_v55, %v2506_v3  ;;  %v2591_v31 = vmul.f32 %v2586_v35, %v2382_v15  ;;  %v2524_v9 = vand.u32 2147483648, %v8685_v32  ;;  %vm2520_vm8 = vmor %vm2518_vm7, %vm2519_vm6  ;;  %vm2523_vm9 = vcmp.eq.f32.partialorder %v2522_v14, 8.507059e+37 }
 0x663   : > { %v6525_v1 = vpop.eup %6524  ;;  %v2594_v23 = vadd.f32 %v2590_v2, %v2553_v33  ;;  %v2515_v10 = vsub.f32 1.0, %v2514_v61  ;;  %v2602_v11 = vsub.f32 1.0, %v2511_v30  ;;  %v2610_v50 = vmul.f32 %v2511_v30, %v7865_v16 }
 0x664   : > { %v2605_v22 = vmul.f32 %v6525_v1, %v2601_v38  ;;  %v2525_v37 = vor.u32 1.1754944e-38, %v2524_v9 }
 0x665   : > { %6526 = vtanh.f32 %v2594_v23  ;;  %v2516_v58 = vmul.f32 %v6523_v49, %v2515_v10 }
 0x666   : > { %v8745_v45 = vadd.f32 %v2609_v52, %v2605_v22 }
 0x667   : > { %v2517_v19 = vadd.f32 %v6523_v49, %v2516_v58 }
 0x668   : > { %v2555_v17 = vpop.f32.mrf.mxu3  ;;  %v2619_v36 = vsel %vm576_vm0, %v8745_v45, 0.0 }
 0x669   : > { %v2556_v0 = vadd.f32 %v2555_v17, %v8634_v5  ;;  %2620 = vadd.xlane.f32.xlu2 %v2619_v36  ;;  %v2521_v61 = vsel %vm2520_vm8, %v6523_v49, %v2517_v19 }
 0x66a   : > { %v2526_v4 = vsel %vm2523_vm9, %v2525_v37, %v2521_v61  ;;  %v8806_v61 = vld [vmem:[%s10476_s12 + $0x8] sm:$0xff]  ;;  %v8812_v37 = vld [vmem:[%s10476_s12] sm:$0xff] }
 0x66b   : > { %v6527_v28 = vpop.eup %6526  ;;  %v2595_v2 = vadd.f32 %v2591_v31, %v2556_v0  ;;  %v2603_v54 = vsub.f32 1.0, %v2526_v4  ;;  %v2611_v23 = vmul.f32 %v2526_v4, %v10695_v59  ;;  %v8818_v4 = vld [vmem:[%s10469_s5 + $0x18] sm:$0xff] }
 0x66c   : > { %v2606_v33 = vmul.f32 %v6527_v28, %v2602_v11 }
 0x66d   : > { %6528 = vtanh.f32 %v2595_v2 }
 0x66e   : > { %v8754_v38 = vadd.f32 %v2610_v50, %v2606_v33  ;;  %v8800_v50 = vld [vmem:[%s10476_s12 + $0x10] sm:$0xff] }
 0x66f   : > { %2740 = vmatpush.msrb.mxu3 %v8800_v50 }
 0x670   : > { %v2622_v1 = vsel %vm576_vm0, %v8754_v38, 0.0 }
 0x671   : > { %2623 = vadd.xlane.f32.xlu0 %v2622_v1  ;;  %2741 = vmatpush.msrb.mxu3 %v8806_v61  ;;  %v8824_v1 = vld [vmem:[%s10469_s5 + $0x10] sm:$0xff] }
 0x673   : > { %v6529_v35 = vpop.eup %6528  ;;  %2742 = vmatpush.msrb.mxu3 %v8812_v37 }
 0x674   : > { %v2607_v32 = vmul.f32 %v6529_v35, %v2603_v54  ;;  %v8830_v54 = vld [vmem:[%s10469_s5 + $0x8] sm:$0xff]  ;;  %v8836_v35 = vld [vmem:[%s10469_s5] sm:$0xff] }
 0x675   : > { %2930 = vmatpush.msra.mxu3 %v8818_v4 }
 0x676   : > { %v8759_v10 = vadd.f32 %v2611_v23, %v2607_v32 }
 0x677   : > { %2931 = vmatpush.msra.mxu3 %v8824_v1 }
 0x678   : > { %v2625_v16 = vsel %vm576_vm0, %v8759_v10, 0.0 }
 0x679   : > { %2626 = vadd.xlane.f32.xlu1 %v2625_v16  ;;  %2932 = vmatpush.msra.mxu3 %v8830_v54 }
 0x67b   : > { %2933 = vmatpush.msra.mxu3 %v8836_v35 }
 0x6d4   : > { %v2618_v49 = vpop.xlane.xlu1 %2617 }
 0x6d5   : > { %v2628_v22 = vmul.f32 %v2618_v49, %v7109_v20 }
 0x6d7   : > { %v8771_v52 = vsub.f32 %v8716_v44, %v2628_v22 }
 0x6d9   : > { %v2636_v59 = vmul.f32 %v8771_v52, %v8771_v52 }
 0x6db   : > { %v2640_v3 = vsel %vm576_vm0, %v2636_v59, 0.0 }
 0x6dc   : > { %v2621_v55 = vpop.xlane.xlu2 %2620  ;;  %2641 = vadd.xlane.f32.xlu2 %v2640_v3 }
 0x6dd   : > { %v2629_v58 = vmul.f32 %v2621_v55, %v7109_v20 }
 0x6df   : > { %v8778_v15 = vsub.f32 %v8745_v45, %v2629_v58 }
 0x6e1   : > { %v2637_v30 = vmul.f32 %v8778_v15, %v8778_v15 }
 0x6e3   : > { %v2643_v17 = vsel %vm576_vm0, %v2637_v30, 0.0 }
 0x6e4   : > { %v2624_v36 = vpop.xlane.xlu0 %2623  ;;  %2644 = vadd.xlane.f32.xlu0 %v2643_v17 }
 0x6e5   : > { %v2630_v19 = vmul.f32 %v2624_v36, %v7109_v20 }
 0x6e7   : > { %v8785_v31 = vsub.f32 %v8754_v38, %v2630_v19 }
 0x6e9   : > { %v2638_v0 = vmul.f32 %v8785_v31, %v8785_v31 }
 0x6eb   : > { %v2646_v9 = vsel %vm576_vm0, %v2638_v0, 0.0 }
 0x6ec   : > { %2647 = vadd.xlane.f32.xlu1 %v2646_v9  ;;  %v2627_v11 = vpop.xlane.xlu1 %2626 }
 0x6ed   : > { %v2631_v14 = vmul.f32 %v2627_v11, %v7109_v20 }
 0x6ef   : > { %v8792_v28 = vsub.f32 %v8759_v10, %v2631_v14 }
 0x6f1   : > { %v2639_v2 = vmul.f32 %v8792_v28, %v8792_v28 }
 0x6f3   : > { %v2649_v33 = vsel %vm576_vm0, %v2639_v2, 0.0  ;;  %v8845_v2 = vld [vmem:[%s10466_s2] sm:$0xff] }
 0x6f4   : > { %2650 = vadd.xlane.f32.xlu2 %v2649_v33  ;;  %v8848_v33 = vperm.slane %v8845_v2, 4 }
 0x74f   : > { %v2642_v32 = vpop.xlane.xlu2 %2641 }
 0x750   : > { %v2652_v23 = vmul.f32 %v2642_v32, %v7109_v20 }
 0x752   : > { %v2656_v16 = vadd.f32 1e-05, %v2652_v23 }
 0x754   : > { %6530 = vrsqrt.f32 %v2656_v16  ;;  %vm2666_vm11 = vweird.f32 %v2656_v16 }
 0x757   : > { %v2645_v49 = vpop.xlane.xlu0 %2644 }
 0x758   : > { %v2653_v22 = vmul.f32 %v2645_v49, %v7109_v20 }
 0x75a   : > { %v6531_v59 = vpop.eup %6530  ;;  %v2657_v3 = vadd.f32 1e-05, %v2653_v22  ;;  %v8852_v22 = vperm.slane %v8845_v2, 5 }
 0x75b   : > { %v2661_v55 = vmul.f32 %v6531_v59, %v2656_v16  ;;  %vm2667_vm10 = vweird.f32 %v6531_v59 }
 0x75c   : > { %6532 = vrsqrt.f32 %v2657_v3  ;;  %vm2668_vm12 = vmor %vm2666_vm11, %vm2667_vm10  ;;  %vm2676_vm14 = vweird.f32 %v2657_v3 }
 0x75d   : > { %v2662_v58 = vmul.f32 %v6531_v59, %v2661_v55 }
 0x75f   : > { %v2663_v30 = vmul.f32 0.5, %v2662_v58  ;;  %v2648_v17 = vpop.xlane.xlu1 %2647 }
 0x760   : > { %v2654_v36 = vmul.f32 %v2648_v17, %v7109_v20 }
 0x761   : > { %v2664_v19 = vsub.f32 1.5, %v2663_v30 }
 0x762   : > { %v6533_v0 = vpop.eup %6532  ;;  %v2658_v9 = vadd.f32 1e-05, %v2654_v36 }
 0x763   : > { %v2665_v11 = vmul.f32 %v6531_v59, %v2664_v19  ;;  %v2671_v14 = vmul.f32 %v6533_v0, %v2657_v3  ;;  %vm2677_vm13 = vweird.f32 %v6533_v0 }
 0x764   : > { %6534 = vrsqrt.f32 %v2658_v9  ;;  %vm2678_vm15 = vmor %vm2676_vm14, %vm2677_vm13  ;;  %vm2686_vm2 = vweird.f32 %v2658_v9 }
 0x765   : > { %v2669_v32 = vsel %vm2668_vm12, %v6531_v59, %v2665_v11  ;;  %v2672_v23 = vmul.f32 %v6533_v0, %v2671_v14 }
 0x766   : > { %v2700_v49 = vmul.f32 %v2669_v32, %v8771_v52 }
 0x767   : > { %v2673_v55 = vmul.f32 0.5, %v2672_v23  ;;  %v2651_v16 = vpop.xlane.xlu2 %2650 }
 0x768   : > { %v2705_v58 = vmul.f32 %v8848_v33, %v2700_v49  ;;  %v2655_v30 = vmul.f32 %v2651_v16, %v7109_v20 }
 0x769   : > { %v2674_v17 = vsub.f32 1.5, %v2673_v55 }
 0x76a   : > { %v6535_v36 = vpop.eup %6534  ;;  %v2659_v19 = vadd.f32 1e-05, %v2655_v30  ;;  %v2710_v5 = vadd.f32 %v8852_v22, %v2705_v58 }
 0x76b   : > { %v2675_v46 = vmul.f32 %v6533_v0, %v2674_v17  ;;  %v2681_v59 = vmul.f32 %v6535_v36, %v2658_v9  ;;  %vm2687_vm1 = vweird.f32 %v6535_v36 }
 0x76c   : > { %6536 = vrsqrt.f32 %v2659_v19  ;;  %6081 = vmatmul.msk.f32.vlgmr.msrb.gmra.mxu3 %vm576_vm0, %v2710_v5  ;;  %vm2688_vm3 = vmor %vm2686_vm2, %vm2687_vm1  ;;  %vm2696_vm6 = vweird.f32 %v2659_v19 }
 0x76d   : > { %v2679_v52 = vsel %vm2678_vm15, %v6533_v0, %v2675_v46  ;;  %v2682_v11 = vmul.f32 %v6535_v36, %v2681_v59  ;;  %6120 = vmatpush.xpose.msk.msrb.mxu3 %vm576_vm0, %v8336_v24 }
 0x76e   : > { %v2701_v14 = vmul.f32 %v2679_v52, %v8778_v15 }
 0x76f   : > { %v2683_v32 = vmul.f32 0.5, %v2682_v11 }
 0x770   : > { %v2706_v23 = vmul.f32 %v8848_v33, %v2701_v14 }
 0x771   : > { %v2684_v49 = vsub.f32 1.5, %v2683_v32  ;;  %6121 = vmatpush.xpose.msk.msrb.mxu3 %vm576_vm0, %v8332_v7 }
 0x772   : > { %v6537_v3 = vpop.eup %6536  ;;  %v2711_v55 = vadd.f32 %v8852_v22, %v2706_v23 }
 0x773   : > { %v2685_v16 = vmul.f32 %v6535_v36, %v2684_v49  ;;  %v2691_v46 = vmul.f32 %v6537_v3, %v2659_v19  ;;  %vm2697_vm4 = vweird.f32 %v6537_v3  ;;  %v8887_v19 = vperm.slane %v8845_v2, 6 }
 0x774   : > { %6082 = vmatmul.msk.f32.gmra.mxu3 %vm576_vm0, %v2711_v55  ;;  %vm2698_vm7 = vmor %vm2696_vm6, %vm2697_vm4 }
 0x775   : > { %v2689_v5 = vsel %vm2688_vm3, %v6535_v36, %v2685_v16  ;;  %v2692_v0 = vmul.f32 %v6537_v3, %v2691_v46  ;;  %6122 = vmatpush.xpose.msk.msrb.mxu3 %vm576_vm0, %v8326_v41  ;;  %10720 = vst [vmem:[#allocation71_spill] sm:$0xff] %v8887_v19 }
 0x776   : > { %v2702_v15 = vmul.f32 %v2689_v5, %v8785_v31 }
 0x777   : > { %v2693_v58 = vmul.f32 0.5, %v2692_v0 }
 0x778   : > { %v2707_v30 = vmul.f32 %v8848_v33, %v2702_v15 }
 0x779   : > { %v2694_v17 = vsub.f32 1.5, %v2693_v58  ;;  %6123 = vmatpush.xpose.msk.msrb.mxu3 %vm576_vm0, %v8322_v8  ;;  %v8906_v58 = vperm.slane %v8845_v2, 7 }
 0x77a   : > { %v2712_v9 = vadd.f32 %v8852_v22, %v2707_v30 }
 0x77b   : > { %v2695_v59 = vmul.f32 %v6537_v3, %v2694_v17  ;;  %10721 = vst [vmem:[#allocation72_spill] sm:$0xff] %v8906_v58 }
 0x77c   : > { %6083 = vmatmul.msk.f32.gmra.mxu3 %vm576_vm0, %v2712_v9 }
 0x77d   : > { %v2699_v36 = vsel %vm2698_vm7, %v6537_v3, %v2695_v59  ;;  %6124 = vmatpush.xpose.msk.msrb.mxu3 %vm576_vm0, %v8318_v42 }
 0x77e   : > { %v2703_v31 = vmul.f32 %v2699_v36, %v8792_v28 }
 0x780   : > { %v2708_v52 = vmul.f32 %v8848_v33, %v2703_v31 }
 0x781   : > { %6125 = vmatpush.xpose.msk.msrb.mxu3 %vm576_vm0, %v8314_v39 }
 0x782   : > { %v2713_v11 = vadd.f32 %v8852_v22, %v2708_v52 }
 0x784   : > { %6084 = vmatmul.msk.f32.gmra.mxu3 %vm576_vm0, %v2713_v11 }
 0x785   : > { %6126 = vmatpush.xpose.msk.msrb.mxu3 %vm576_vm0, %v8310_v18 }
 0x789   : > { %6127 = vmatpush.xpose.msk.msrb.mxu3 %vm576_vm0, %v8306_v63 }
 0x7ef   : > { %v2744_v14 = vpop.f32.mrf.mxu3 }
 0x7f0   : > { %v2745_v28 = vadd.f32 %v2744_v14, %v8887_v19 }
 0x7f2   : > { %v2756_v32 = vmax.f32 %v2745_v28, 0.0 }
 0x7f4   : > { %6085 = vmatmul.msk.f32.vlgmr.msra.gmra.mxu2 %vm2023_vm5, %v2756_v32 }
 0x7f5   : > { %3154 = vmatpush.msra.mxu2 %v7955_v60 }
 0x7f7   : > { %3155 = vmatpush.msra.mxu2 %v7933_v43  ;;  %v2747_v23 = vpop.f32.mrf.mxu3 }
 0x7f8   : > { %v2748_v49 = vadd.f32 %v2747_v23, %v8887_v19 }
 0x7f9   : > { %3156 = vmatpush.msra.mxu2 %v7916_v51 }
 0x7fa   : > { %v2757_v3 = vmax.f32 %v2748_v49, 0.0 }
 0x7fb   : > { %3157 = vmatpush.msra.mxu2 %v7906_v57 }
 0x7fc   : > { %6086 = vmatmul.msk.f32.gmra.mxu2 %vm2023_vm5, %v2757_v3 }
 0x7fd   : > { %3158 = vmatpush.msra.mxu2 %v7902_v6 }
 0x7ff   : > { %3159 = vmatpush.msra.mxu2 %v7898_v48  ;;  %v2750_v55 = vpop.f32.mrf.mxu3 }
 0x800   : > { %v2751_v16 = vadd.f32 %v2750_v55, %v8887_v19 }
 0x801   : > { %3160 = vmatpush.msra.mxu2 %v7894_v26 }
 0x802   : > { %v2758_v46 = vmax.f32 %v2751_v16, 0.0 }
 0x803   : > { %3161 = vmatpush.msra.mxu2 %v7892_v56 }
 0x804   : > { %6087 = vmatmul.msk.f32.gmra.mxu2 %vm2023_vm5, %v2758_v46 }
 0x807   : > { %v2753_v5 = vpop.f32.mrf.mxu3 }
 0x808   : > { %v2754_v0 = vadd.f32 %v2753_v5, %v8887_v19 }
 0x80a   : > { %v2759_v15 = vmax.f32 %v2754_v0, 0.0 }
 0x80c   : > { %6088 = vmatmul.msk.f32.gmra.mxu2 %vm2023_vm5, %v2759_v15 }
 0x877   : > { %v2789_v30 = vpop.f32.mrf.mxu2 }
 0x878   : > { %v2801_v17 = vadd.f32 %v2789_v30, %v8716_v44 }
 0x87a   : > { %v8910_v9 = vadd.f32 %v8906_v58, %v2801_v17 }
 0x87c   : > { %v2810_v59 = vsel %vm576_vm0, %v8910_v9, 0.0 }
 0x87d   : > { %2811 = vadd.xlane.f32.xlu0 %v2810_v59 }
 0x87f   : > { %v2792_v36 = vpop.f32.mrf.mxu2 }
 0x880   : > { %v2802_v31 = vadd.f32 %v2792_v36, %v8745_v45 }
 0x882   : > { %v8916_v52 = vadd.f32 %v8906_v58, %v2802_v31 }
 0x884   : > { %v2813_v2 = vsel %vm576_vm0, %v8916_v52, 0.0 }
 0x885   : > { %2814 = vadd.xlane.f32.xlu1 %v2813_v2 }
 0x887   : > { %v2795_v11 = vpop.f32.mrf.mxu2 }
 0x888   : > { %v2803_v44 = vadd.f32 %v2795_v11, %v8754_v38 }
 0x88a   : > { %v8922_v14 = vadd.f32 %v8906_v58, %v2803_v44 }
 0x88c   : > { %v2816_v28 = vsel %vm576_vm0, %v8922_v14, 0.0 }
 0x88d   : > { %2817 = vadd.xlane.f32.xlu2 %v2816_v28 }
 0x88f   : > { %v2798_v32 = vpop.f32.mrf.mxu2 }
 0x890   : > { %v2804_v45 = vadd.f32 %v2798_v32, %v8759_v10 }
 0x892   : > { %v8928_v23 = vadd.f32 %v8906_v58, %v2804_v45 }
 0x894   : > { %v2819_v49 = vsel %vm576_vm0, %v8928_v23, 0.0 }
 0x895   : > { %2820 = vadd.xlane.f32.xlu0 %v2819_v49 }
 0x8f0   : > { %v2812_v3 = vpop.xlane.xlu0 %2811 }
 0x8f1   : > { %v2822_v38 = vmul.f32 %v2812_v3, %v7109_v20 }
 0x8f3   : > { %v2826_v55 = vsub.f32 %v8910_v9, %v2822_v38 }
 0x8f5   : > { %v2830_v16 = vmul.f32 %v2826_v55, %v2826_v55 }
 0x8f7   : > { %v2834_v46 = vsel %vm576_vm0, %v2830_v16, 0.0 }
 0x8f8   : > { %2835 = vadd.xlane.f32.xlu1 %v2834_v46  ;;  %v2815_v5 = vpop.xlane.xlu1 %2814 }
 0x8f9   : > { %v2823_v0 = vmul.f32 %v2815_v5, %v7109_v20 }
 0x8fb   : > { %v2827_v10 = vsub.f32 %v8916_v52, %v2823_v0 }
 0x8fd   : > { %v2831_v15 = vmul.f32 %v2827_v10, %v2827_v10 }
 0x8ff   : > { %v2837_v30 = vsel %vm576_vm0, %v2831_v15, 0.0 }
 0x900   : > { %v2818_v17 = vpop.xlane.xlu2 %2817  ;;  %2838 = vadd.xlane.f32.xlu2 %v2837_v30 }
 0x901   : > { %v2824_v59 = vmul.f32 %v2818_v17, %v7109_v20 }
 0x903   : > { %v8940_v36 = vsub.f32 %v8922_v14, %v2824_v59 }
 0x905   : > { %v2832_v31 = vmul.f32 %v8940_v36, %v8940_v36 }
 0x907   : > { %v2840_v2 = vsel %vm576_vm0, %v2832_v31, 0.0 }
 0x908   : > { %2841 = vadd.xlane.f32.xlu0 %v2840_v2  ;;  %v2821_v11 = vpop.xlane.xlu0 %2820 }
 0x909   : > { %v2825_v44 = vmul.f32 %v2821_v11, %v7109_v20 }
 0x90b   : > { %v8947_v28 = vsub.f32 %v8928_v23, %v2825_v44 }
 0x90d   : > { %v2833_v32 = vmul.f32 %v8947_v28, %v8947_v28 }
 0x90f   : > { %v2843_v45 = vsel %vm576_vm0, %v2833_v32, 0.0 }
 0x910   : > { %2844 = vadd.xlane.f32.xlu1 %v2843_v45 }
 0x96b   : > { %v2836_v49 = vpop.xlane.xlu1 %2835 }
 0x96c   : > { %v2846_v3 = vmul.f32 %v2836_v49, %v7109_v20 }
 0x96e   : > { %v2850_v38 = vadd.f32 1e-05, %v2846_v3 }
 0x970   : > { %6538 = vrsqrt.f32 %v2850_v38  ;;  %vm2860_vm9 = vweird.f32 %v2850_v38 }
 0x973   : > { %v2839_v16 = vpop.xlane.xlu2 %2838 }
 0x974   : > { %v2847_v46 = vmul.f32 %v2839_v16, %v7109_v20 }
 0x976   : > { %v6539_v5 = vpop.eup %6538  ;;  %v2851_v0 = vadd.f32 1e-05, %v2847_v46 }
 0x977   : > { %v2855_v15 = vmul.f32 %v6539_v5, %v2850_v38  ;;  %vm2861_vm8 = vweird.f32 %v6539_v5 }
 0x978   : > { %6540 = vrsqrt.f32 %v2851_v0  ;;  %vm2862_vm10 = vmor %vm2860_vm9, %vm2861_vm8  ;;  %vm2870_vm12 = vweird.f32 %v2851_v0 }
 0x979   : > { %v2856_v30 = vmul.f32 %v6539_v5, %v2855_v15 }
 0x97b   : > { %v2857_v17 = vmul.f32 0.5, %v2856_v30  ;;  %v2842_v59 = vpop.xlane.xlu0 %2841 }
 0x97c   : > { %v2848_v31 = vmul.f32 %v2842_v59, %v7109_v20 }
 0x97d   : > { %v2858_v2 = vsub.f32 1.5, %v2857_v17 }
 0x97e   : > { %v6541_v11 = vpop.eup %6540  ;;  %v2852_v44 = vadd.f32 1e-05, %v2848_v31 }
 0x97f   : > { %v2859_v32 = vmul.f32 %v6539_v5, %v2858_v2  ;;  %v2865_v45 = vmul.f32 %v6541_v11, %v2851_v0  ;;  %vm2871_vm11 = vweird.f32 %v6541_v11 }
 0x980   : > { %6542 = vrsqrt.f32 %v2852_v44  ;;  %vm2872_vm13 = vmor %vm2870_vm12, %vm2871_vm11  ;;  %vm2880_vm15 = vweird.f32 %v2852_v44 }
 0x981   : > { %v2863_v49 = vsel %vm2862_vm10, %v6539_v5, %v2859_v32  ;;  %v2866_v3 = vmul.f32 %v6541_v11, %v2865_v45  ;;  %v6785_v32 = vld [vmem:[%s10470_s6 + $0x18] sm:$0xff] }
 0x982   : > { %v2894_v16 = vmul.f32 %v2863_v49, %v2826_v55  ;;  %v6786_v49 = vld [vmem:[%s10470_s6 + $0x10] sm:$0xff] }
 0x983   : > { %v2867_v46 = vmul.f32 0.5, %v2866_v3  ;;  %v2845_v58 = vpop.xlane.xlu1 %2844 }
 0x984   : > { %v2898_v15 = vmul.f32 %v2894_v16, %v8223_v12  ;;  %v2849_v30 = vmul.f32 %v2845_v58, %v7109_v20 }
 0x985   : > { %v2868_v19 = vsub.f32 1.5, %v2867_v46 }
 0x986   : > { %v6543_v17 = vpop.eup %6542  ;;  %v2853_v59 = vadd.f32 1e-05, %v2849_v30  ;;  %v2902_v31 = vadd.f32 %v2898_v15, %v8233_v25  ;;  %v6788_v15 = vld [vmem:[%s10470_s6] sm:$0xff] }
 0x987   : > { %v2869_v2 = vmul.f32 %v6541_v11, %v2868_v19  ;;  %v2875_v38 = vmul.f32 %v6543_v17, %v2852_v44  ;;  %vm2881_vm14 = vweird.f32 %v6543_v17 }
 0x988   : > { %6544 = vrsqrt.f32 %v2853_v59  ;;  %6089 = vmatmul.msk.f32.vlgmr.msra.gmra.mxu3 %vm576_vm0, %v2902_v31  ;;  %vm2882_vm1 = vmor %vm2880_vm15, %vm2881_vm14  ;;  %vm2890_vm3 = vweird.f32 %v2853_v59 }
 0x989   : > { %v2873_v55 = vsel %vm2872_vm13, %v6541_v11, %v2869_v2  ;;  %v2876_v5 = vmul.f32 %v6543_v17, %v2875_v38  ;;  %3259 = vmatpush.msra.mxu3 %v6785_v32  ;;  %v6787_v11 = vld [vmem:[%s10470_s6 + $0x8] sm:$0xff] }
 0x98a   : > { %v2895_v58 = vmul.f32 %v2873_v55, %v2827_v10 }
 0x98b   : > { %v2877_v45 = vmul.f32 0.5, %v2876_v5  ;;  %3260 = vmatpush.msra.mxu3 %v6786_v49 }
 0x98c   : > { %v2899_v19 = vmul.f32 %v2895_v58, %v8223_v12 }
 0x98d   : > { %v2878_v0 = vsub.f32 1.5, %v2877_v45  ;;  %3261 = vmatpush.msra.mxu3 %v6787_v11  ;;  %v6790_v11 = vld [vmem:[%s10471_s7 + $0x10] sm:$0xff] }
 0x98e   : > { %v6545_v3 = vpop.eup %6544  ;;  %v2903_v16 = vadd.f32 %v2899_v19, %v8233_v25 }
 0x98f   : > { %v2879_v46 = vmul.f32 %v6543_v17, %v2878_v0  ;;  %v2885_v10 = vmul.f32 %v6545_v3, %v2853_v59  ;;  %3262 = vmatpush.msra.mxu3 %v6788_v15  ;;  %vm2891_vm2 = vweird.f32 %v6545_v3  ;;  %v6793_v15 = vld [vmem:[%s10474_s10 + $0x18] sm:$0xff] }
 0x990   : > { %6090 = vmatmul.msk.f32.gmra.mxu3 %vm576_vm0, %v2903_v16  ;;  %vm2892_vm4 = vmor %vm2890_vm3, %vm2891_vm2  ;;  %v6791_v16 = vld [vmem:[%s10471_s7 + $0x8] sm:$0xff] }
 0x991   : > { %v2883_v30 = vsel %vm2882_vm1, %v6543_v17, %v2879_v46  ;;  %v2886_v31 = vmul.f32 %v6545_v3, %v2885_v10  ;;  %v6792_v10 = vld [vmem:[%s10471_s7] sm:$0xff] }
 0x992   : > { %v2896_v2 = vmul.f32 %v2883_v30, %v8940_v36  ;;  %v6794_v30 = vld [vmem:[%s10474_s10 + $0x10] sm:$0xff] }
 0x993   : > { %v2887_v38 = vmul.f32 0.5, %v2886_v31 }
 0x994   : > { %v2900_v55 = vmul.f32 %v2896_v2, %v8223_v12  ;;  %v6795_v2 = vld [vmem:[%s10474_s10 + $0x8] sm:$0xff] }
 0x995   : > { %v2888_v5 = vsub.f32 1.5, %v2887_v38 }
 0x996   : > { %v2904_v44 = vadd.f32 %v2900_v55, %v8233_v25  ;;  %v6796_v55 = vld [vmem:[%s10474_s10] sm:$0xff] }
 0x997   : > { %v2889_v32 = vmul.f32 %v6545_v3, %v2888_v5  ;;  %v6797_v5 = vld [vmem:[%s10472_s8 + $0x18] sm:$0xff] }
 0x998   : > { %6091 = vmatmul.msk.f32.gmra.mxu3 %vm576_vm0, %v2904_v44  ;;  %v6798_v44 = vld [vmem:[%s10472_s8 + $0x10] sm:$0xff] }
 0x999   : > { %v2893_v58 = vsel %vm2892_vm4, %v6545_v3, %v2889_v32  ;;  %v6799_v32 = vld [vmem:[%s10472_s8 + $0x8] sm:$0xff] }
 0x99a   : > { %v2897_v45 = vmul.f32 %v2893_v58, %v8947_v28  ;;  %v6789_v28 = vld [vmem:[%s10471_s7 + $0x18] sm:$0xff]  ;;  %v6800_v58 = vld [vmem:[%s10472_s8] sm:$0xff] }
 0x99c   : > { %v2901_v17 = vmul.f32 %v2897_v45, %v8223_v12 }
 0x99e   : > { %v2905_v49 = vadd.f32 %v2901_v17, %v8233_v25 }
 0x9a0   : > { %6092 = vmatmul.msk.f32.gmra.mxu3 %vm576_vm0, %v2905_v49 }
 0xa0b   : > { %v2935_v36 = vpop.f32.mrf.mxu3 }
 0xa0c   : > { %v2947_v19 = vmul.f32 0.17677669, %v2935_v36 }
 0xa0e   : > { %6101 = vmatmul.msk.f32.vlgmr.msrb.gmra.mxu2 %vm576_vm0, %v2947_v19 }
 0xa0f   : > { %3177 = vmatpush.msrb.mxu2 %v8144_v53 }
 0xa11   : > { %3178 = vmatpush.msrb.mxu2 %v8142_v29 }
 0xa13   : > { %3179 = vmatpush.msrb.mxu2 %v8138_v62  ;;  %v2938_v59 = vpop.f32.mrf.mxu3 }
 0xa14   : > { %v2948_v0 = vmul.f32 0.17677669, %v2938_v59 }
 0xa15   : > { %3180 = vmatpush.msrb.mxu2 %v8130_v27 }
 0xa16   : > { %6110 = vmatmul.msk.f32.vlgmr.msrb.gmra.mxu0 %vm576_vm0, %v2948_v0 }
 0xa17   : > { %3181 = vmatpush.msrb.mxu2 %v8115_v13  ;;  %3413 = vmatpush.msrb.mxu0 %v6789_v28 }
 0xa19   : > { %3182 = vmatpush.msrb.mxu2 %v8089_v47  ;;  %3414 = vmatpush.msrb.mxu0 %v6790_v11 }
 0xa1b   : > { %3183 = vmatpush.msrb.mxu2 %v8037_v21  ;;  %v2941_v3 = vpop.f32.mrf.mxu3  ;;  %3415 = vmatpush.msrb.mxu0 %v6791_v16 }
 0xa1c   : > { %v2949_v46 = vmul.f32 0.17677669, %v2941_v3 }
 0xa1d   : > { %3184 = vmatpush.msrb.mxu2 %v7988_v34  ;;  %3416 = vmatpush.msrb.mxu0 %v6792_v10 }
 0xa1e   : > { %6119 = vmatmul.msk.f32.vlgmr.msrb.gmra.mxu1 %vm576_vm0, %v2949_v46 }
 0xa1f   : > { %3442 = vmatpush.msrb.mxu1 %v6793_v15 }
 0xa21   : > { %3443 = vmatpush.msrb.mxu1 %v6794_v30 }
 0xa23   : > { %v2944_v31 = vpop.f32.mrf.mxu3  ;;  %3444 = vmatpush.msrb.mxu1 %v6795_v2 }
 0xa24   : > { %v2950_v38 = vmul.f32 0.17677669, %v2944_v31 }
 0xa25   : > { %3445 = vmatpush.msrb.mxu1 %v6796_v55 }
 0xa26   : > { %6128 = vmatmul.msk.f32.vlgmr.msrb.gmra.mxu3 %vm576_vm0, %v2950_v38 }
 0xa27   : > { %3555 = vmatpush.msrb.mxu3 %v6797_v5 }
 0xa29   : > { %3556 = vmatpush.msrb.mxu3 %v6798_v44 }
 0xa2b   : > { %3557 = vmatpush.msrb.mxu3 %v6799_v32 }
 0xa2d   : > { %3558 = vmatpush.msrb.mxu3 %v6800_v58 }
 0xa91   : > { %v2971_v45 = vpop.f32.mrf.mxu2 }
 0xa92   : > { %v3043_v17 = vsel %vm2023_vm5, %v2971_v45, -inf }
 0xa93   : > { %v3044_v49 = vrot.slane %v3043_v17, 4  ;;  %v2994_v36 = vpop.f32.mrf.mxu0 }
 0xa94   : > { %v3050_v19 = vsel %vm2023_vm5, %v2994_v36, -inf }
 0xa95   : > { %v3045_v59 = vmax.f32 %v3043_v17, %v3044_v49  ;;  %v3051_v0 = vrot.slane %v3050_v19, 4 }
 0xa97   : > { %v3046_v28 = vrot.slane %v3045_v59, 2  ;;  %v3052_v11 = vmax.f32 %v3050_v19, %v3051_v0 }
 0xa99   : > { %v3047_v3 = vmax.f32 %v3045_v59, %v3046_v28  ;;  %v3053_v16 = vrot.slane %v3052_v11, 2 }
 0xa9b   : > { %v3048_v46 = vrot.slane %v3047_v3, 1  ;;  %v3054_v10 = vmax.f32 %v3052_v11, %v3053_v16  ;;  %v3017_v15 = vpop.f32.mrf.mxu1 }
 0xa9c   : > { %v3057_v30 = vsel %vm2023_vm5, %v3017_v15, -inf }
 0xa9d   : > { %v3049_v31 = vmax.f32 %v3047_v3, %v3048_v46  ;;  %v3055_v2 = vrot.slane %v3054_v10, 1  ;;  %v3058_v38 = vrot.slane %v3057_v30, 4 }
 0xa9f   : > { %v3071_v55 = vsub.f32 %v2971_v45, %v3049_v31  ;;  %v3056_v5 = vmax.f32 %v3054_v10, %v3055_v2  ;;  %v3059_v44 = vmax.f32 %v3057_v30, %v3058_v38 }
 0xaa1   : > { %v3075_v32 = vmul.f32 1.442695, %v3071_v55  ;;  %v3072_v58 = vsub.f32 %v2994_v36, %v3056_v5  ;;  %v3060_v25 = vrot.slane %v3059_v44, 2 }
 0xaa3   : > { %6546 = vpow2.f32 %v3075_v32  ;;  %v3077_v17 = vmul.f32 1.442695, %v3072_v58  ;;  %v3061_v49 = vmax.f32 %v3059_v44, %v3060_v25 }
 0xaa5   : > { %6548 = vpow2.f32 %v3077_v17  ;;  %v3062_v19 = vrot.slane %v3061_v49, 1 }
 0xaa7   : > { %v3063_v59 = vmax.f32 %v3061_v49, %v3062_v19 }
 0xaa9   : > { %v6547_v0 = vpop.eup %6546  ;;  %v3073_v28 = vsub.f32 %v3017_v15, %v3063_v59  ;;  %v3040_v11 = vpop.f32.mrf.mxu3 }
 0xaaa   : > { %v3083_v16 = vsel %vm2023_vm5, %v6547_v0, 0.0  ;;  %v3064_v3 = vsel %vm2023_vm5, %v3040_v11, -inf }
 0xaab   : > { %v6549_v46 = vpop.eup %6548  ;;  %v3084_v45 = vrot.slane %v3083_v16, 4  ;;  %v3079_v10 = vmul.f32 1.442695, %v3073_v28  ;;  %v3065_v30 = vrot.slane %v3064_v3, 4 }
 0xaac   : > { %v3090_v36 = vsel %vm2023_vm5, %v6549_v46, 0.0 }
 0xaad   : > { %v3085_v31 = vadd.f32 %v3084_v45, %v3083_v16  ;;  %v3091_v2 = vrot.slane %v3090_v36, 4  ;;  %6550 = vpow2.f32 %v3079_v10  ;;  %v3066_v25 = vmax.f32 %v3064_v3, %v3065_v30 }
 0xaaf   : > { %v3092_v38 = vadd.f32 %v3091_v2, %v3090_v36  ;;  %v3067_v55 = vrot.slane %v3066_v25, 2  ;;  %v3086_v5 = vrot.slane %v3085_v31, 2 }
 0xab1   : > { %v3068_v44 = vmax.f32 %v3066_v25, %v3067_v55  ;;  %v3087_v15 = vadd.f32 %v3086_v5, %v3085_v31  ;;  %v3093_v32 = vrot.slane %v3092_v38, 2 }
 0xab3   : > { %v6551_v58 = vpop.eup %6550  ;;  %v3069_v17 = vrot.slane %v3068_v44, 1  ;;  %v3088_v49 = vrot.slane %v3087_v15, 1  ;;  %v3094_v19 = vadd.f32 %v3093_v32, %v3092_v38 }
 0xab4   : > { %v3097_v59 = vsel %vm2023_vm5, %v6551_v58, 0.0 }
 0xab5   : > { %v3098_v28 = vrot.slane %v3097_v59, 4  ;;  %v3070_v12 = vmax.f32 %v3068_v44, %v3069_v17  ;;  %v3089_v34 = vadd.f32 %v3088_v49, %v3087_v15  ;;  %v3095_v21 = vrot.slane %v3094_v19, 1 }
 0xab7   : > { %v3099_v16 = vadd.f32 %v3098_v28, %v3097_v59  ;;  %v3074_v45 = vsub.f32 %v3040_v11, %v3070_v12  ;;  %6552 = vrcp.f32 %v3089_v34  ;;  %v3096_v3 = vadd.f32 %v3095_v21, %v3094_v19 }
 0xab9   : > { %v3081_v10 = vmul.f32 1.442695, %v3074_v45  ;;  %6554 = vrcp.f32 %v3096_v3  ;;  %v3100_v30 = vrot.slane %v3099_v16, 2 }
 0xabb   : > { %6556 = vpow2.f32 %v3081_v10  ;;  %v3101_v36 = vadd.f32 %v3100_v30, %v3099_v16 }
 0xabd   : > { %v6553_v31 = vpop.eup %6552  ;;  %v3102_v2 = vrot.slane %v3101_v36, 1 }
 0xabe   : > { %v3115_v25 = vmul.f32 %v6553_v31, %v6547_v0 }
 0xabf   : > { %v6555_v55 = vpop.eup %6554  ;;  %v3103_v38 = vadd.f32 %v3102_v2, %v3101_v36 }
 0xac0   : > { %v3119_v5 = vadd.f32 1e-08, %v3115_v25  ;;  %v3116_v32 = vmul.f32 %v6555_v55, %v6549_v46  ;;  %v6801_v55 = vld [vmem:[%s10473_s9 + $0x18] sm:$0xff] }
 0xac1   : > { %v6557_v47 = vpop.eup %6556  ;;  %6558 = vrcp.f32 %v3103_v38  ;;  %v6802_v38 = vld [vmem:[%s10473_s9 + $0x10] sm:$0xff] }
 0xac2   : > { %v3104_v44 = vsel %vm2023_vm5, %v6557_v47, 0.0  ;;  %v3123_v12 = vsel %vm2023_vm5, %v3119_v5, 0.0  ;;  %v3120_v34 = vadd.f32 1e-08, %v3116_v32  ;;  %v6803_v32 = vld [vmem:[%s10473_s9 + $0x8] sm:$0xff] }
 0xac3   : > { %v3105_v21 = vrot.slane %v3104_v44, 4  ;;  %3124 = vadd.xlane.f32.xlu2 %v3123_v12  ;;  %v6804_v12 = vld [vmem:[%s10473_s9] sm:$0xff] }
 0xac4   : > { %v3126_v11 = vsel %vm2023_vm5, %v3120_v34, 0.0 }
 0xac5   : > { %v3106_v15 = vadd.f32 %v3105_v21, %v3104_v44  ;;  %3127 = vadd.xlane.f32.xlu0 %v3126_v11  ;;  %v6805_v11 = vld [vmem:[%s10475_s11 + $0x18] sm:$0xff] }
 0xac7   : > { %v6559_v17 = vpop.eup %6558  ;;  %v3107_v49 = vrot.slane %v3106_v15, 2 }
 0xac8   : > { %v3117_v0 = vmul.f32 %v6559_v17, %v6551_v58 }
 0xac9   : > { %v3108_v19 = vadd.f32 %v3107_v49, %v3106_v15  ;;  %v6807_v15 = vld [vmem:[%s10475_s11 + $0x8] sm:$0xff]  ;;  %v6808_v49 = vld [vmem:[%s10475_s11] sm:$0xff] }
 0xaca   : > { %v3121_v59 = vadd.f32 1e-08, %v3117_v0 }
 0xacb   : > { %v3109_v28 = vrot.slane %v3108_v19, 1 }
 0xacc   : > { %v3129_v46 = vsel %vm2023_vm5, %v3121_v59, 0.0 }
 0xacd   : > { %3130 = vadd.xlane.f32.xlu1 %v3129_v46  ;;  %v3110_v16 = vadd.f32 %v3109_v28, %v3108_v19  ;;  %v10723_v19 = vld [vmem:[#allocation15_spill] sm:$0xff]  ;;  %v6811_v28 = vld [vmem:[%s10477_s13 + $0x28] sm:$0xff]  ;;  %v10725_v46 = vld [vmem:[#allocation13_spill] sm:$0xff] }
 0xacf   : > { %6560 = vrcp.f32 %v3110_v16  ;;  %v6812_v16 = vld [vmem:[%s10477_s13 + $0x20] sm:$0xff] }
 0xad5   : > { %v6561_v45 = vpop.eup %6560 }
 0xad6   : > { %v3118_v3 = vmul.f32 %v6561_v45, %v6557_v47  ;;  %v6813_v45 = vld [vmem:[%s10477_s13 + $0x18] sm:$0xff] }
 0xad8   : > { %v3122_v10 = vadd.f32 1e-08, %v3118_v3  ;;  %v10726_v3 = vld [vmem:[#allocation12_spill] sm:$0xff] }
 0xada   : > { %v3132_v30 = vsel %vm2023_vm5, %v3122_v10, 0.0 }
 0xadb   : > { %3133 = vadd.xlane.f32.xlu2 %v3132_v30  ;;  %v6815_v30 = vld [vmem:[%s10477_s13 + $0x8] sm:$0xff] }
 0xb36   : > { %v3125_v36 = vpop.xlane.xlu2 %3124 }
 0xb37   : > { %6562 = vrcp.f32 %v3125_v36  ;;  %v10727_v36 = vld [vmem:[#allocation11_spill] sm:$0xff] }
 0xb38   : > { %v3128_v31 = vpop.xlane.xlu0 %3127 }
 0xb39   : > { %6564 = vrcp.f32 %v3128_v31  ;;  %v6816_v31 = vld [vmem:[%s10477_s13] sm:$0xff] }
 0xb3d   : > { %v6563_v2 = vpop.eup %6562 }
 0xb3e   : > { %v3139_v58 = vmul.f32 %v6563_v2, %v3119_v5  ;;  %v10728_v2 = vld [vmem:[#allocation47_spill] sm:$0xff] }
 0xb3f   : > { %v6565_v47 = vpop.eup %6564 }
 0xb40   : > { %6129 = vmatmul.msk.f32.vlgmr.msra.gmra.mxu2 %vm2023_vm5, %v3139_v58  ;;  %v3131_v25 = vpop.xlane.xlu1 %3130  ;;  %v3140_v5 = vmul.f32 %v6565_v47, %v3120_v34  ;;  %v6806_v34 = vld [vmem:[%s10475_s11 + $0x10] sm:$0xff]  ;;  %v10729_v58 = vld [vmem:[#allocation10_spill] sm:$0xff] }
 0xb41   : > { %6566 = vrcp.f32 %v3131_v25  ;;  %3300 = vmatpush.msra.mxu2 %v6801_v55  ;;  %v10730_v25 = vld [vmem:[#allocation44_spill] sm:$0xff]  ;;  %v10731_v55 = vld [vmem:[#allocation9_spill] sm:$0xff]  ;;  %v10732_v47 = vld [vmem:[#allocation42_spill] sm:$0xff] }
 0xb43   : > { %3301 = vmatpush.msra.mxu2 %v6802_v38  ;;  %v10733_v38 = vld [vmem:[#allocation40_spill] sm:$0xff] }
 0xb45   : > { %3302 = vmatpush.msra.mxu2 %v6803_v32  ;;  %v10734_v32 = vld [vmem:[#allocation38_spill] sm:$0xff] }
 0xb47   : > { %v6567_v44 = vpop.eup %6566  ;;  %3303 = vmatpush.msra.mxu2 %v6804_v12  ;;  %v10737_v12 = vld [vmem:[#allocation32_spill] sm:$0xff] }
 0xb48   : > { %v3141_v21 = vmul.f32 %v6567_v44, %v3121_v59  ;;  %6130 = vmatmul.msk.f32.vlgmr.msrb.gmra.mxu2 %vm2023_vm5, %v3140_v5  ;;  %v10724_v59 = vld [vmem:[#allocation14_spill] sm:$0xff]  ;;  %v10735_v5 = vld [vmem:[#allocation36_spill] sm:$0xff] }
 0xb49   : > { %3584 = vmatpush.msrb.mxu2 %v6805_v11  ;;  %v10736_v44 = vld [vmem:[#allocation34_spill] sm:$0xff]  ;;  %v10738_v11 = vld [vmem:[#allocation29_spill] sm:$0xff] }
 0xb4a   : > { %6131 = vmatmul.msk.f32.vlgmr.msra.gmra.mxu0 %vm2023_vm5, %v3141_v21 }
 0xb4b   : > { %3585 = vmatpush.msrb.mxu2 %v6806_v34  ;;  %3749 = vmatpush.msra.mxu0 %v8766_v40  ;;  %v10722_v40 = vld [vmem:[#allocation16_spill] sm:$0xff]  ;;  %v10739_v34 = vld [vmem:[#allocation27_spill] sm:$0xff] }
 0xb4d   : > { %3586 = vmatpush.msrb.mxu2 %v6807_v15  ;;  %3750 = vmatpush.msra.mxu0 %v8800_v50 }
 0xb4e   : > { %v3134_v17 = vpop.xlane.xlu2 %3133 }
 0xb4f   : > { %6568 = vrcp.f32 %v3134_v17  ;;  %3587 = vmatpush.msrb.mxu2 %v6808_v49  ;;  %3751 = vmatpush.msra.mxu0 %v8806_v61  ;;  %v6809_v61 = vld [vmem:[%s10477_s13 + $0x38] sm:$0xff]  ;;  %v10740_v17 = vld [vmem:[#allocation26_spill] sm:$0xff]  ;;  %v10741_v49 = vld [vmem:[#allocation25_spill] sm:$0xff] }
 0xb50   : > { %6137 = vmatmul.msk.f32.vlgmr.msra.gmra.mxu2 %vm576_vm0, %v8910_v9 }
 0xb51   : > { %6177 = vmatpush.xpose.msk.msra.mxu2 %vm576_vm0, %v10722_v40  ;;  %3752 = vmatpush.msra.mxu0 %v8812_v37  ;;  %v6810_v37 = vld [vmem:[%s10477_s13 + $0x30] sm:$0xff] }
 0xb55   : > { %v6569_v0 = vpop.eup %6568  ;;  %6178 = vmatpush.xpose.msk.msra.mxu2 %vm576_vm0, %v10723_v19 }
 0xb56   : > { %v3142_v50 = vmul.f32 %v6569_v0, %v3122_v10  ;;  %v6814_v10 = vld [vmem:[%s10477_s13 + $0x10] sm:$0xff]  ;;  %v10744_v0 = vld [vmem:[#allocation22_spill] sm:$0xff] }
 0xb58   : > { %6132 = vmatmul.msk.f32.vlgmr.msra.gmra.mxu1 %vm2023_vm5, %v3142_v50  ;;  %6138 = vmatmul.msk.f32.gmra.mxu2 %vm576_vm0, %v8916_v52  ;;  %v10745_v50 = vld [vmem:[#allocation20_spill] sm:$0xff] }
 0xb59   : > { %3790 = vmatpush.msra.mxu1 %v6809_v61  ;;  %6179 = vmatpush.xpose.msk.msra.mxu2 %vm576_vm0, %v10724_v59 }
 0xb5b   : > { %3791 = vmatpush.msra.mxu1 %v6810_v37 }
 0xb5d   : > { %3792 = vmatpush.msra.mxu1 %v6811_v28  ;;  %6180 = vmatpush.xpose.msk.msra.mxu2 %vm576_vm0, %v10725_v46 }
 0xb5f   : > { %3793 = vmatpush.msra.mxu1 %v6812_v16 }
 0xb60   : > { %6139 = vmatmul.msk.f32.gmra.mxu2 %vm576_vm0, %v8922_v14  ;;  %6149 = vmatmul.msk.f32.vlgmr.msrb.gmra.mxu1 %vm576_vm0, %v8910_v9 }
 0xb61   : > { %3794 = vmatpush.msra.mxu1 %v6813_v45  ;;  %6181 = vmatpush.xpose.msk.msra.mxu2 %vm576_vm0, %v10726_v3 }
 0xb63   : > { %3795 = vmatpush.msra.mxu1 %v6814_v10  ;;  %v10746_v10 = vld [vmem:[#allocation67_spill] sm:$0xff] }
 0xb65   : > { %3796 = vmatpush.msra.mxu1 %v6815_v30  ;;  %6182 = vmatpush.xpose.msk.msra.mxu2 %vm576_vm0, %v10727_v36 }
 0xb67   : > { %3797 = vmatpush.msra.mxu1 %v6816_v31 }
 0xb68   : > { %6140 = vmatmul.msk.f32.gmra.mxu2 %vm576_vm0, %v8928_v23  ;;  %6150 = vmatmul.msk.f32.gmra.mxu1 %vm576_vm0, %v8916_v52 }
 0xb69   : > { %6195 = vmatpush.xpose.msk.msrb.mxu1 %vm576_vm0, %v10728_v2  ;;  %6183 = vmatpush.xpose.msk.msra.mxu2 %vm576_vm0, %v10729_v58 }
 0xb6d   : > { %6196 = vmatpush.xpose.msk.msrb.mxu1 %vm576_vm0, %v10730_v25  ;;  %6184 = vmatpush.xpose.msk.msra.mxu2 %vm576_vm0, %v10731_v55 }
 0xb70   : > { %6161 = vmatmul.msk.f32.vlgmr.msrb.gmra.mxu2 %vm576_vm0, %v8910_v9  ;;  %6151 = vmatmul.msk.f32.gmra.mxu1 %vm576_vm0, %v8922_v14 }
 0xb71   : > { %6197 = vmatpush.xpose.msk.msrb.mxu1 %vm576_vm0, %v10732_v47  ;;  %4163 = vmatpush.msrb.mxu2 %v7955_v60 }
 0xb73   : > { %4164 = vmatpush.msrb.mxu2 %v7933_v43 }
 0xb75   : > { %6198 = vmatpush.xpose.msk.msrb.mxu1 %vm576_vm0, %v10733_v38  ;;  %4165 = vmatpush.msrb.mxu2 %v7916_v51 }
 0xb77   : > { %4166 = vmatpush.msrb.mxu2 %v7906_v57 }
 0xb78   : > { %6162 = vmatmul.msk.f32.gmra.mxu2 %vm576_vm0, %v8916_v52  ;;  %6152 = vmatmul.msk.f32.gmra.mxu1 %vm576_vm0, %v8928_v23 }
 0xb79   : > { %6199 = vmatpush.xpose.msk.msrb.mxu1 %vm576_vm0, %v10734_v32  ;;  %4167 = vmatpush.msrb.mxu2 %v7902_v6 }
 0xb7b   : > { %4168 = vmatpush.msrb.mxu2 %v7898_v48 }
 0xb7d   : > { %6200 = vmatpush.xpose.msk.msrb.mxu1 %vm576_vm0, %v10735_v5  ;;  %4169 = vmatpush.msrb.mxu2 %v7894_v26 }
 0xb7f   : > { %4170 = vmatpush.msrb.mxu2 %v7892_v56 }
 0xb80   : > { %6163 = vmatmul.msk.f32.gmra.mxu2 %vm576_vm0, %v8922_v14 }
 0xb81   : > { %6201 = vmatpush.xpose.msk.msrb.mxu1 %vm576_vm0, %v10736_v44 }
 0xb85   : > { %6202 = vmatpush.xpose.msk.msrb.mxu1 %vm576_vm0, %v10737_v12 }
 0xb88   : > { %6164 = vmatmul.msk.f32.gmra.mxu2 %vm576_vm0, %v8928_v23 }
 0xbc3   : > { %v3163_v21 = vpop.f32.mrf.mxu2 }
 0xbc4   : > { %6133 = vmatmul.msk.f32.vlgmr.msra.gmra.mxu3 %vm576_vm0, %v3163_v21  ;;  %6145 = vmatmul.msk.f32.vlgmr.msrb.gmra.mxu0 %vm576_vm0, %v3163_v21 }
 0xbc5   : > { %6186 = vmatpush.xpose.msk.msrb.mxu0 %vm576_vm0, %v10738_v11  ;;  %3939 = vmatpush.msra.mxu3 %v8818_v4 }
 0xbc7   : > { %3940 = vmatpush.msra.mxu3 %v8824_v1  ;;  %v3209_v4 = vpop.f32.mrf.mxu0  ;;  %v10742_v1 = vld [vmem:[#allocation24_spill] sm:$0xff] }
 0xbc9   : > { %6187 = vmatpush.xpose.msk.msrb.mxu0 %vm576_vm0, %v10739_v34  ;;  %3941 = vmatpush.msra.mxu3 %v8830_v54  ;;  %v10743_v54 = vld [vmem:[#allocation23_spill] sm:$0xff] }
 0xbcb   : > { %v3186_v15 = vpop.f32.mrf.mxu2  ;;  %3942 = vmatpush.msra.mxu3 %v8836_v35 }
 0xbcc   : > { %6134 = vmatmul.msk.f32.gmra.mxu3 %vm576_vm0, %v3186_v15  ;;  %6146 = vmatmul.msk.f32.gmra.mxu0 %vm576_vm0, %v3186_v15 }
 0xbcd   : > { %6188 = vmatpush.xpose.msk.msrb.mxu0 %vm576_vm0, %v10740_v17 }
 0xbd1   : > { %6189 = vmatpush.xpose.msk.msrb.mxu0 %vm576_vm0, %v10741_v49 }
 0xbd3   : > { %v3305_v61 = vpop.f32.mrf.mxu2 }
 0xbd4   : > { %6135 = vmatmul.msk.f32.gmra.mxu3 %vm576_vm0, %v3209_v4  ;;  %6147 = vmatmul.msk.f32.gmra.mxu0 %vm576_vm0, %v3209_v4 }
 0xbd5   : > { %6190 = vmatpush.xpose.msk.msrb.mxu0 %vm576_vm0, %v10742_v1  ;;  %v3232_v35 = vpop.f32.mrf.mxu1 }
 0xbd9   : > { %6191 = vmatpush.xpose.msk.msrb.mxu0 %vm576_vm0, %v10743_v54 }
 0xbdb   : > { %v3308_v37 = vpop.f32.mrf.mxu2 }
 0xbdc   : > { %6136 = vmatmul.msk.f32.gmra.mxu3 %vm576_vm0, %v3232_v35  ;;  %6148 = vmatmul.msk.f32.gmra.mxu0 %vm576_vm0, %v3232_v35 }
 0xbdd   : > { %6192 = vmatpush.xpose.msk.msrb.mxu0 %vm576_vm0, %v10744_v0  ;;  %v3447_v28 = vpop.f32.mrf.mxu1 }
 0xbe1   : > { %6193 = vmatpush.xpose.msk.msrb.mxu0 %vm576_vm0, %v10745_v50 }
 0xbe3   : > { %v3311_v16 = vpop.f32.mrf.mxu2 }
 0xbe4   : > { %6157 = vmatmul.msk.f32.vlgmr.msrb.gmra.mxu3 %vm576_vm0, %v3163_v21  ;;  %v10747_v21 = vld [vmem:[#allocation68_spill] sm:$0xff] }
 0xbe5   : > { %6204 = vmatpush.xpose.msk.msrb.mxu3 %vm576_vm0, %v8336_v24  ;;  %v10749_v24 = vld [vmem:[#allocation66_spill] sm:$0xff] }
 0xbe9   : > { %6205 = vmatpush.xpose.msk.msrb.mxu3 %vm576_vm0, %v8332_v7 }
 0xbec   : > { %6158 = vmatmul.msk.f32.gmra.mxu3 %vm576_vm0, %v3186_v15 }
 0xbed   : > { %6206 = vmatpush.xpose.msk.msrb.mxu3 %vm576_vm0, %v8326_v41 }
 0xbf1   : > { %6207 = vmatpush.xpose.msk.msrb.mxu3 %vm576_vm0, %v8322_v8 }
 0xbf4   : > { %6159 = vmatmul.msk.f32.gmra.mxu3 %vm576_vm0, %v3209_v4  ;;  %v3450_v4 = vpop.f32.mrf.mxu1 }
 0xbf5   : > { %6208 = vmatpush.xpose.msk.msrb.mxu3 %vm576_vm0, %v8318_v42 }
 0xbf9   : > { %6209 = vmatpush.xpose.msk.msrb.mxu3 %vm576_vm0, %v8314_v39 }
 0xbfc   : > { %6160 = vmatmul.msk.f32.gmra.mxu3 %vm576_vm0, %v3232_v35  ;;  %v10748_v35 = vld [vmem:[#allocation17_spill] sm:$0xff]  ;;  %v3453_v1 = vpop.f32.mrf.mxu1 }
 0xbfd   : > { %6210 = vmatpush.xpose.msk.msrb.mxu3 %vm576_vm0, %v8310_v18  ;;  %v3314_v18 = vpop.f32.mrf.mxu2 }
 0xc01   : > { %6211 = vmatpush.xpose.msk.msrb.mxu3 %vm576_vm0, %v8306_v63 }
 0xc41   : > { %v3418_v45 = vpop.f32.mrf.mxu0 }
 0xc42   : > { %v3419_v30 = vadd.f32 %v3418_v45, %v10746_v10 }
 0xc44   : > { %v3459_v31 = vadd.f32 %v3447_v28, %v3419_v30 }
 0xc46   : > { %v3463_v15 = vadd.f32 %v3459_v31, %v10747_v21 }
 0xc47   : > { %v3264_v39 = vpop.f32.mrf.mxu3 }
 0xc48   : > { %v6153_v42 = vmul.f32 -1.442695, %v3463_v15  ;;  %v3265_v8 = vadd.f32 %v3264_v39, %v10748_v35 }
 0xc49   : > { %v3421_v41 = vpop.f32.mrf.mxu0 }
 0xc4a   : > { %6570 = vpow2.f32 %v6153_v42  ;;  %v3317_v7 = vadd.f32 %v3305_v61, %v3265_v8  ;;  %v3422_v63 = vadd.f32 %v3421_v41, %v10746_v10 }
 0xc4c   : > { %v3321_v50 = vadd.f32 %v3317_v7, %v10749_v24  ;;  %v3460_v0 = vadd.f32 %v3450_v4, %v3422_v63  ;;  %v3589_v63 = vpop.f32.mrf.mxu2 }
 0xc4e   : > { %v6141_v54 = vmul.f32 -1.442695, %v3321_v50  ;;  %v3464_v45 = vadd.f32 %v3460_v0, %v10747_v21 }
 0xc4f   : > { %v3267_v28 = vpop.f32.mrf.mxu3 }
 0xc50   : > { %v6571_v30 = vpop.eup %6570  ;;  %6572 = vpow2.f32 %v6141_v54  ;;  %v6154_v31 = vmul.f32 -1.442695, %v3464_v45  ;;  %v3268_v15 = vadd.f32 %v3267_v28, %v10748_v35 }
 0xc51   : > { %v9217_v39 = vadd.f32 1.0, %v6571_v30  ;;  %v3424_v49 = vpop.f32.mrf.mxu0 }
 0xc52   : > { %6574 = vpow2.f32 %v6154_v31  ;;  %v3318_v42 = vadd.f32 %v3308_v37, %v3268_v15  ;;  %v3425_v8 = vadd.f32 %v3424_v49, %v10746_v10 }
 0xc53   : > { %6576 = vrcp.f32 %v9217_v39  ;;  %v3494_v48 = vand.u32 2147483648, %v9217_v39  ;;  %vm3488_vm11 = vweird.f32 %v9217_v39 }
 0xc54   : > { %v3322_v41 = vadd.f32 %v3318_v42, %v10749_v24  ;;  %v3461_v7 = vadd.f32 %v3453_v1, %v3425_v8  ;;  %v3456_v42 = vpop.f32.mrf.mxu1 }
 0xc56   : > { %v6573_v0 = vpop.eup %6572  ;;  %v6142_v50 = vmul.f32 -1.442695, %v3322_v41  ;;  %v3465_v54 = vadd.f32 %v3461_v7, %v10747_v21 }
 0xc57   : > { %v3337_v61 = vadd.f32 1.0, %v6573_v0  ;;  %v3270_v4 = vpop.f32.mrf.mxu3 }
 0xc58   : > { %v6575_v45 = vpop.eup %6574  ;;  %6578 = vpow2.f32 %v6142_v50  ;;  %v6155_v28 = vmul.f32 -1.442695, %v3465_v54  ;;  %v3271_v30 = vadd.f32 %v3270_v4, %v10748_v35  ;;  %v3592_v50 = vpop.f32.mrf.mxu2 }
 0xc59   : > { %v9224_v37 = vpop.eup %6576  ;;  %6580 = vrcp.f32 %v3337_v61  ;;  %v9226_v49 = vadd.f32 1.0, %v6575_v45  ;;  %v3427_v31 = vpop.f32.mrf.mxu0  ;;  %vm3346_vm7 = vweird.f32 %v3337_v61 }
 0xc5a   : > { %6582 = vpow2.f32 %v6155_v28  ;;  %v3319_v15 = vadd.f32 %v3311_v16, %v3271_v30  ;;  %v3428_v1 = vadd.f32 %v3427_v31, %v10746_v10  ;;  %v3484_v8 = vmul.f32 %v9224_v37, %v9217_v39 }
 0xc5b   : > { %6584 = vrcp.f32 %v9226_v49  ;;  %vm3489_vm10 = vweird.f32 %v9224_v37  ;;  %vm3503_vm3 = vweird.f32 %v9226_v49 }
 0xc5c   : > { %v3323_v41 = vadd.f32 %v3319_v15, %v10749_v24  ;;  %v3462_v7 = vadd.f32 %v3456_v42, %v3428_v1  ;;  %v3485_v28 = vsub.f32 1.0, %v3484_v8  ;;  %vm9273_vm13 = vmor %vm3488_vm11, %vm3489_vm10 }
 0xc5e   : > { %v6579_v0 = vpop.eup %6578  ;;  %v6143_v54 = vmul.f32 -1.442695, %v3323_v41  ;;  %v3466_v4 = vadd.f32 %v3462_v7, %v10747_v21  ;;  %v3350_v7 = vand.u32 2147483647, %v3337_v61  ;;  %v3486_v21 = vmul.f32 %v9224_v37, %v3485_v28 }
 0xc5f   : > { %v6581_v45 = vpop.eup %6580  ;;  %v9234_v17 = vadd.f32 1.0, %v6579_v0  ;;  %v3273_v16 = vpop.f32.mrf.mxu3  ;;  %v3352_v0 = vand.u32 2147483648, %v3337_v61  ;;  %v3492_v28 = vand.u32 2147483647, %v9217_v39 }
 0xc60   : > { %v6583_v30 = vpop.eup %6582  ;;  %6586 = vpow2.f32 %v6143_v54  ;;  %v6156_v31 = vmul.f32 -1.442695, %v3466_v4  ;;  %v3274_v10 = vadd.f32 %v3273_v16, %v10748_v35  ;;  %v3342_v34 = vmul.f32 %v6581_v45, %v3337_v61  ;;  %v10750_v4 = vld [vmem:[#allocation69_spill] sm:$0xff] }
 0xc61   : > { %6588 = vrcp.f32 %v9234_v17  ;;  %v9238_v15 = vadd.f32 1.0, %v6583_v30  ;;  %v9240_v1 = vpop.eup %6584  ;;  %vm3347_vm6 = vweird.f32 %v6581_v45  ;;  %v3590_v16 = vadd.f32 %v3589_v63, %v10750_v4 }
 0xc62   : > { %6590 = vpow2.f32 %v6156_v31  ;;  %v3320_v42 = vadd.f32 %v3314_v18, %v3274_v10  ;;  %v3343_v41 = vsub.f32 1.0, %v3342_v34  ;;  %v9247_v30 = vadd.f32 %v3592_v50, %v10750_v4  ;;  %vm3348_vm8 = vmor %vm3346_vm7, %vm3347_vm6  ;;  %v3595_v50 = vpop.f32.mrf.mxu2 }
 0xc63   : > { %6592 = vrcp.f32 %v9238_v15  ;;  %v3499_v31 = vmul.f32 %v9240_v1, %v9226_v49  ;;  %vm3351_vm9 = vcmp.eq.f32.partialorder %v3350_v7, 8.507059e+37  ;;  %v10751_v7 = vld [vmem:[#allocation70_spill] sm:$0xff]  ;;  %vm9280_vm14 = vcmp.eq.f32.partialorder %v3492_v28, 8.507059e+37 }
 0xc64   : > { %v3324_v8 = vadd.f32 %v3320_v42, %v10749_v24  ;;  %v3344_v54 = vmul.f32 %v6581_v45, %v3343_v41  ;;  %v3353_v42 = vor.u32 1.1754944e-38, %v3352_v0  ;;  %vm3361_vm15 = vweird.f32 %v9234_v17 }
 0xc65   : > { %vm3504_vm4 = vweird.f32 %v9240_v1 }
 0xc66   : > { %v6587_v18 = vpop.eup %6586  ;;  %v6144_v34 = vmul.f32 -1.442695, %v3324_v8  ;;  %v3345_v10 = vadd.f32 %v6581_v45, %v3344_v54  ;;  %v3487_v8 = vadd.f32 %v9224_v37, %v3486_v21  ;;  %v3367_v21 = vand.u32 2147483648, %v9234_v17  ;;  %vm9310_vm7 = vmor %vm3503_vm3, %vm3504_vm4 }
 0xc67   : > { %v6589_v35 = vpop.eup %6588  ;;  %v9252_v11 = vadd.f32 1.0, %v6587_v18  ;;  %v3560_v41 = vpop.f32.mrf.mxu3  ;;  %v3500_v18 = vsub.f32 1.0, %v3499_v31 }
 0xc68   : > { %v6591_v63 = vpop.eup %6590  ;;  %6594 = vpow2.f32 %v6144_v34  ;;  %v3349_v24 = vsel %vm3348_vm8, %v6581_v45, %v3345_v10  ;;  %v3357_v12 = vmul.f32 %v6589_v35, %v9234_v17  ;;  %v3561_v0 = vadd.f32 %v3560_v41, %v10751_v7 }
 0xc69   : > { %6596 = vrcp.f32 %v9252_v11  ;;  %v9258_v61 = vadd.f32 1.0, %v6591_v63  ;;  %v3354_v54 = vsel %vm3351_vm9, %v3353_v42, %v3349_v24  ;;  %v9260_v56 = vpop.eup %6592  ;;  %v9265_v45 = vadd.f32 %v3595_v50, %v10750_v4 }
 0xc6a   : > { %v3601_v44 = vmul.f32 %v3590_v16, %v3354_v54  ;;  %v3358_v26 = vsub.f32 1.0, %v3357_v12  ;;  %v3365_v34 = vand.u32 2147483647, %v9234_v17  ;;  %vm3362_vm12 = vweird.f32 %v6589_v35 }
 0xc6b   : > { %6598 = vrcp.f32 %v9258_v61  ;;  %v3491_v16 = vsel %vm9273_vm13, %v9224_v37, %v3487_v8  ;;  %v3501_v39 = vmul.f32 %v9240_v1, %v3500_v18  ;;  %v3495_v41 = vor.u32 1.1754944e-38, %v3494_v48  ;;  %vm3363_vm1 = vmor %vm3361_vm15, %vm3362_vm12 }
 0xc6c   : > { %v3605_v24 = vadd.f32 %v3601_v44, %v3561_v0  ;;  %v3359_v31 = vmul.f32 %v6589_v35, %v3358_v26  ;;  %v3514_v26 = vmul.f32 %v9260_v56, %v9238_v15  ;;  %vm3366_vm2 = vcmp.eq.f32.partialorder %v3365_v34, 8.507059e+37 }
 0xc6d   : > { %v3368_v37 = vor.u32 1.1754944e-38, %v3367_v21  ;;  %v3496_v18 = vsel %vm9280_vm14, %v3495_v41, %v3491_v16  ;;  %v3502_v17 = vadd.f32 %v9240_v1, %v3501_v39  ;;  %v3380_v12 = vand.u32 2147483647, %v9252_v11 }
 0xc6e   : > { %v6595_v44 = vpop.eup %6594  ;;  %6600 = vtanh.f32 %v3605_v24  ;;  %v3360_v42 = vadd.f32 %v6589_v35, %v3359_v31  ;;  %v3515_v0 = vsub.f32 1.0, %v3514_v26  ;;  %v3509_v31 = vand.u32 2147483648, %v9226_v49 }
 0xc6f   : > { %v6597_v63 = vpop.eup %6596  ;;  %v9288_v50 = vadd.f32 1.0, %v6595_v44  ;;  %v3563_v28 = vpop.f32.mrf.mxu3  ;;  %v3382_v16 = vand.u32 2147483648, %v9252_v11  ;;  %v3613_v10 = vsub.f32 1.0, %v3496_v18  ;;  %v3507_v44 = vand.u32 2147483647, %v9226_v49 }
 0xc70   : > { %v3364_v8 = vsel %vm3363_vm1, %v6589_v35, %v3360_v42  ;;  %v3372_v54 = vmul.f32 %v6597_v63, %v9252_v11  ;;  %v3564_v34 = vadd.f32 %v3563_v28, %v10751_v7  ;;  %vm3377_vm6 = vweird.f32 %v6597_v63 }
 0xc71   : > { %6602 = vrcp.f32 %v9288_v50  ;;  %v3369_v48 = vsel %vm3366_vm2, %v3368_v37, %v3364_v8  ;;  %v9297_v24 = vpop.eup %6598  ;;  %v3621_v26 = vmul.f32 %v3496_v18, %v8910_v9  ;;  %v3506_v28 = vsel %vm9310_vm7, %v9240_v1, %v3502_v17 }
 0xc72   : > { %v3602_v21 = vmul.f32 %v9247_v30, %v3369_v48  ;;  %v3373_v35 = vsub.f32 1.0, %v3372_v54  ;;  %v3516_v8 = vmul.f32 %v9260_v56, %v3515_v0  ;;  %v3529_v54 = vmul.f32 %v9297_v24, %v9258_v61 }
 0xc73   : > { %vm3376_vm8 = vweird.f32 %v9252_v11  ;;  %v3510_v18 = vor.u32 1.1754944e-38, %v3509_v31  ;;  %vm3381_vm10 = vcmp.eq.f32.partialorder %v3380_v12, 8.507059e+37  ;;  %v3383_v48 = vor.u32 1.1754944e-38, %v3382_v16 }
 0xc74   : > { %v6601_v42 = vpop.eup %6600  ;;  %v3606_v41 = vadd.f32 %v3602_v21, %v3564_v34  ;;  %v3374_v39 = vmul.f32 %v6597_v63, %v3373_v35  ;;  %vm3378_vm9 = vmor %vm3376_vm8, %vm3377_vm6  ;;  %vm3508_vm11 = vcmp.eq.f32.partialorder %v3507_v44, 8.507059e+37  ;;  %vm3519_vm12 = vweird.f32 %v9260_v56 }
 0xc75   : > { %v3617_v37 = vmul.f32 %v6601_v42, %v3613_v10  ;;  %v3511_v17 = vsel %vm3508_vm11, %v3510_v18, %v3506_v28  ;;  %v3517_v11 = vadd.f32 %v9260_v56, %v3516_v8  ;;  %v3530_v31 = vsub.f32 1.0, %v3529_v54  ;;  %v3598_v8 = vpop.f32.mrf.mxu2 }
 0xc76   : > { %6604 = vtanh.f32 %v3606_v41  ;;  %v3375_v9 = vadd.f32 %v6597_v63, %v3374_v39  ;;  %v3397_v44 = vand.u32 2147483648, %v9288_v50  ;;  %v3614_v41 = vsub.f32 1.0, %v3511_v17 }
 0xc77   : > { %v6603_v49 = vpop.eup %6602  ;;  %v3566_v34 = vpop.f32.mrf.mxu3  ;;  %v9321_v21 = vadd.f32 %v3621_v26, %v3617_v37  ;;  %vm3518_vm13 = vweird.f32 %v9238_v15  ;;  %v3522_v39 = vand.u32 2147483647, %v9238_v15  ;;  %v3395_v28 = vand.u32 2147483647, %v9288_v50 }
 0xc78   : > { %v3379_v35 = vsel %vm3378_vm9, %v6597_v63, %v3375_v9  ;;  %v3387_v1 = vmul.f32 %v6603_v49, %v9288_v50  ;;  %v3567_v12 = vadd.f32 %v3566_v34, %v10751_v7  ;;  %v3524_v63 = vand.u32 2147483648, %v9238_v15  ;;  %vm9337_vm15 = vmor %vm3518_vm13, %vm3519_vm12 }
 0xc79   : > { %v3384_v0 = vsel %vm3381_vm10, %v3383_v48, %v3379_v35  ;;  %v3629_v10 = vsel %vm576_vm0, %v9321_v21, 0.0  ;;  %vm3392_vm14 = vweird.f32 %v6603_v49  ;;  %v3622_v9 = vmul.f32 %v3511_v17, %v8916_v52 }
 0xc7a   : > { %v3603_v16 = vmul.f32 %v9265_v45, %v3384_v0  ;;  %3630 = vadd.xlane.f32.xlu0 %v3629_v10  ;;  %v3388_v42 = vsub.f32 1.0, %v3387_v1  ;;  %v3521_v15 = vsel %vm9337_vm15, %v9260_v56, %v3517_v11  ;;  %v3531_v18 = vmul.f32 %v9297_v24, %v3530_v31 }
 0xc7b   : > { %vm3391_vm1 = vweird.f32 %v9288_v50  ;;  %v3525_v34 = vor.u32 1.1754944e-38, %v3524_v63  ;;  %v3398_v35 = vor.u32 1.1754944e-38, %v3397_v44  ;;  %vm3523_vm3 = vcmp.eq.f32.partialorder %v3522_v39, 8.507059e+37 }
 0xc7c   : > { %v6605_v26 = vpop.eup %6604  ;;  %v3607_v30 = vadd.f32 %v3603_v16, %v3567_v12  ;;  %v3389_v37 = vmul.f32 %v6603_v49, %v3388_v42  ;;  %vm3393_vm2 = vmor %vm3391_vm1, %vm3392_vm14  ;;  %v3599_v10 = vadd.f32 %v3598_v8, %v10750_v4  ;;  %vm3396_vm4 = vcmp.eq.f32.partialorder %v3395_v28, 8.507059e+37 }
 0xc7d   : > { %v3618_v54 = vmul.f32 %v6605_v26, %v3614_v41  ;;  %v3526_v17 = vsel %vm3523_vm3, %v3525_v34, %v3521_v15  ;;  %v3532_v11 = vadd.f32 %v9297_v24, %v3531_v18  ;;  %vm3534_vm6 = vweird.f32 %v9297_v24 }
 0xc7e   : > { %6606 = vtanh.f32 %v3607_v30  ;;  %v3390_v48 = vadd.f32 %v6603_v49, %v3389_v37  ;;  %v3539_v16 = vand.u32 2147483648, %v9258_v61  ;;  %v3615_v42 = vsub.f32 1.0, %v3526_v17 }
 0xc7f   : > { %v3569_v1 = vpop.f32.mrf.mxu3  ;;  %v9347_v0 = vadd.f32 %v3622_v9, %v3618_v54  ;;  %vm3533_vm7 = vweird.f32 %v9258_v61  ;;  %v3623_v39 = vmul.f32 %v3526_v17, %v8922_v14 }
 0xc80   : > { %v3394_v52 = vsel %vm3393_vm2, %v6603_v49, %v3390_v48  ;;  %v3570_v50 = vadd.f32 %v3569_v1, %v10751_v7  ;;  %v3537_v49 = vand.u32 2147483647, %v9258_v61  ;;  %vm3535_vm8 = vmor %vm3533_vm7, %vm3534_vm6  ;;  %v3540_v30 = vor.u32 1.1754944e-38, %v3539_v16 }
 0xc81   : > { %v3399_v12 = vsel %vm3396_vm4, %v3398_v35, %v3394_v52  ;;  %v3632_v56 = vsel %vm576_vm0, %v9347_v0, 0.0  ;;  %v3536_v26 = vsel %vm3535_vm8, %v9297_v24, %v3532_v11 }
 0xc82   : > { %v3604_v31 = vmul.f32 %v3599_v10, %v3399_v12  ;;  %3633 = vadd.xlane.f32.xlu1 %v3632_v56  ;;  %vm3538_vm9 = vcmp.eq.f32.partialorder %v3537_v49, 8.507059e+37 }
 0xc83   : > { %v3541_v28 = vsel %vm3538_vm9, %v3540_v30, %v3536_v26 }
 0xc84   : > { %v6607_v63 = vpop.eup %6606  ;;  %v3608_v44 = vadd.f32 %v3604_v31, %v3570_v50  ;;  %v3616_v8 = vsub.f32 1.0, %v3541_v28  ;;  %v3624_v9 = vmul.f32 %v3541_v28, %v8928_v23 }
 0xc85   : > { %v3619_v41 = vmul.f32 %v6607_v63, %v3615_v42 }
 0xc86   : > { %6608 = vtanh.f32 %v3608_v44 }
 0xc87   : > { %v9360_v37 = vadd.f32 %v3623_v39, %v3619_v41 }
 0xc89   : > { %v3635_v45 = vsel %vm576_vm0, %v9360_v37, 0.0 }
 0xc8a   : > { %3636 = vadd.xlane.f32.xlu2 %v3635_v45 }
 0xc8c   : > { %v6609_v61 = vpop.eup %6608 }
 0xc8d   : > { %v3620_v54 = vmul.f32 %v6609_v61, %v3616_v8 }
 0xc8f   : > { %v9365_v15 = vadd.f32 %v3624_v9, %v3620_v54 }
 0xc91   : > { %v3638_v14 = vsel %vm576_vm0, %v9365_v15, 0.0 }
 0xc92   : > { %3639 = vadd.xlane.f32.xlu0 %v3638_v14 }
 0xced   : > { %v3631_v24 = vpop.xlane.xlu0 %3630 }
 0xcee   : > { %v3641_v18 = vmul.f32 %v3631_v24, %v7109_v20 }
 0xcf0   : > { %v3645_v48 = vsub.f32 %v9321_v21, %v3641_v18 }
 0xcf2   : > { %v3649_v34 = vmul.f32 %v3645_v48, %v3645_v48 }
 0xcf4   : > { %v3653_v35 = vsel %vm576_vm0, %v3649_v34, 0.0 }
 0xcf5   : > { %v3634_v1 = vpop.xlane.xlu1 %3633  ;;  %3654 = vadd.xlane.f32.xlu1 %v3653_v35 }
 0xcf6   : > { %v3642_v10 = vmul.f32 %v3634_v1, %v7109_v20 }
 0xcf8   : > { %v3646_v23 = vsub.f32 %v9347_v0, %v3642_v10 }
 0xcfa   : > { %v3650_v52 = vmul.f32 %v3646_v23, %v3646_v23 }
 0xcfc   : > { %v3656_v17 = vsel %vm576_vm0, %v3650_v52, 0.0 }
 0xcfd   : > { %3657 = vadd.xlane.f32.xlu2 %v3656_v17  ;;  %v3637_v12 = vpop.xlane.xlu2 %3636 }
 0xcfe   : > { %v3643_v56 = vmul.f32 %v3637_v12, %v7109_v20 }
 0xd00   : > { %v9377_v11 = vsub.f32 %v9360_v37, %v3643_v56 }
 0xd02   : > { %v3651_v50 = vmul.f32 %v9377_v11, %v9377_v11 }
 0xd04   : > { %v3659_v31 = vsel %vm576_vm0, %v3651_v50, 0.0 }
 0xd05   : > { %v3640_v16 = vpop.xlane.xlu0 %3639  ;;  %3660 = vadd.xlane.f32.xlu0 %v3659_v31 }
 0xd06   : > { %v3644_v42 = vmul.f32 %v3640_v16, %v7109_v20 }
 0xd08   : > { %v9384_v49 = vsub.f32 %v9365_v15, %v3644_v42 }
 0xd0a   : > { %v3652_v63 = vmul.f32 %v9384_v49, %v9384_v49 }
 0xd0c   : > { %v3662_v44 = vsel %vm576_vm0, %v3652_v63, 0.0 }
 0xd0d   : > { %3663 = vadd.xlane.f32.xlu1 %v3662_v44 }
 0xd68   : > { %v3655_v41 = vpop.xlane.xlu1 %3654 }
 0xd69   : > { %v3665_v39 = vmul.f32 %v3655_v41, %v7109_v20 }
 0xd6b   : > { %v3669_v26 = vadd.f32 1e-05, %v3665_v39 }
 0xd6d   : > { %6610 = vrsqrt.f32 %v3669_v26  ;;  %vm3679_vm11 = vweird.f32 %v3669_v26 }
 0xd70   : > { %v3658_v30 = vpop.xlane.xlu2 %3657 }
 0xd71   : > { %v3666_v28 = vmul.f32 %v3658_v30, %v7109_v20 }
 0xd73   : > { %v6611_v45 = vpop.eup %6610  ;;  %v3670_v8 = vadd.f32 1e-05, %v3666_v28 }
 0xd74   : > { %v3674_v61 = vmul.f32 %v6611_v45, %v3669_v26  ;;  %vm3680_vm10 = vweird.f32 %v6611_v45 }
 0xd75   : > { %6612 = vrsqrt.f32 %v3670_v8  ;;  %vm3681_vm12 = vmor %vm3679_vm11, %vm3680_vm10  ;;  %vm3689_vm14 = vweird.f32 %v3670_v8 }
 0xd76   : > { %v3675_v54 = vmul.f32 %v6611_v45, %v3674_v61 }
 0xd78   : > { %v3676_v9 = vmul.f32 0.5, %v3675_v54  ;;  %v3661_v14 = vpop.xlane.xlu0 %3660 }
 0xd79   : > { %v3667_v24 = vmul.f32 %v3661_v14, %v7109_v20 }
 0xd7a   : > { %v3677_v18 = vsub.f32 1.5, %v3676_v9 }
 0xd7b   : > { %v6613_v34 = vpop.eup %6612  ;;  %v3671_v35 = vadd.f32 1e-05, %v3667_v24 }
 0xd7c   : > { %v3678_v1 = vmul.f32 %v6611_v45, %v3677_v18  ;;  %v3684_v10 = vmul.f32 %v6613_v34, %v3670_v8  ;;  %vm3690_vm13 = vweird.f32 %v6613_v34 }
 0xd7d   : > { %6614 = vrsqrt.f32 %v3671_v35  ;;  %vm3691_vm15 = vmor %vm3689_vm14, %vm3690_vm13  ;;  %vm3699_vm2 = vweird.f32 %v3671_v35 }
 0xd7e   : > { %v3682_v52 = vsel %vm3681_vm12, %v6611_v45, %v3678_v1  ;;  %v3685_v17 = vmul.f32 %v6613_v34, %v3684_v10  ;;  %v10760_v10 = vld [vmem:[#allocation31_spill] sm:$0xff] }
 0xd7f   : > { %v3713_v12 = vmul.f32 %v3682_v52, %v3645_v48 }
 0xd80   : > { %v3686_v56 = vmul.f32 0.5, %v3685_v17  ;;  %v3664_v50 = vpop.xlane.xlu1 %3663 }
 0xd81   : > { %v3717_v31 = vmul.f32 %v3713_v12, %v8848_v33  ;;  %v3668_v16 = vmul.f32 %v3664_v50, %v7109_v20  ;;  %v10762_v50 = vld [vmem:[#allocation28_spill] sm:$0xff] }
 0xd82   : > { %v3687_v42 = vsub.f32 1.5, %v3686_v56 }
 0xd83   : > { %v6615_v63 = vpop.eup %6614  ;;  %v3721_v44 = vadd.f32 %v3717_v31, %v8852_v22  ;;  %v3672_v41 = vadd.f32 1e-05, %v3668_v16 }
 0xd84   : > { %v3688_v39 = vmul.f32 %v6613_v34, %v3687_v42  ;;  %v3694_v26 = vmul.f32 %v6615_v63, %v3671_v35  ;;  %vm3700_vm1 = vweird.f32 %v6615_v63  ;;  %v10761_v35 = vld [vmem:[#allocation30_spill] sm:$0xff] }
 0xd85   : > { %6616 = vrsqrt.f32 %v3672_v41  ;;  %6165 = vmatmul.msk.f32.vlgmr.msra.gmra.mxu0 %vm576_vm0, %v3721_v44  ;;  %vm3701_vm3 = vmor %vm3699_vm2, %vm3700_vm1  ;;  %vm3709_vm6 = vweird.f32 %v3672_v41  ;;  %v10763_v44 = vld [vmem:[#allocation71_spill] sm:$0xff] }
 0xd86   : > { %v3692_v48 = vsel %vm3691_vm15, %v6613_v34, %v3688_v39  ;;  %v3695_v30 = vmul.f32 %v6615_v63, %v3694_v26  ;;  %4186 = vmatpush.msra.mxu0 %v8144_v53 }
 0xd87   : > { %v3714_v28 = vmul.f32 %v3692_v48, %v3646_v23  ;;  %v10765_v48 = vld [vmem:[#allocation45_spill] sm:$0xff] }
 0xd88   : > { %v3696_v45 = vmul.f32 0.5, %v3695_v30  ;;  %4187 = vmatpush.msra.mxu0 %v8142_v29 }
 0xd89   : > { %v3718_v61 = vmul.f32 %v3714_v28, %v8848_v33 }
 0xd8a   : > { %v3697_v54 = vsub.f32 1.5, %v3696_v45  ;;  %4188 = vmatpush.msra.mxu0 %v8138_v62 }
 0xd8b   : > { %v6617_v8 = vpop.eup %6616  ;;  %v3722_v9 = vadd.f32 %v3718_v61, %v8852_v22  ;;  %v10767_v61 = vld [vmem:[#allocation41_spill] sm:$0xff] }
 0xd8c   : > { %v3698_v14 = vmul.f32 %v6615_v63, %v3697_v54  ;;  %v3704_v24 = vmul.f32 %v6617_v8, %v3672_v41  ;;  %4189 = vmatpush.msra.mxu0 %v8130_v27  ;;  %vm3710_vm4 = vweird.f32 %v6617_v8  ;;  %v10764_v41 = vld [vmem:[#allocation48_spill] sm:$0xff]  ;;  %v10768_v54 = vld [vmem:[#allocation39_spill] sm:$0xff] }
 0xd8d   : > { %6166 = vmatmul.msk.f32.gmra.mxu0 %vm576_vm0, %v3722_v9  ;;  %vm3711_vm7 = vmor %vm3709_vm6, %vm3710_vm4 }
 0xd8e   : > { %v3702_v23 = vsel %vm3701_vm3, %v6615_v63, %v3698_v14  ;;  %v3705_v18 = vmul.f32 %v6617_v8, %v3704_v24  ;;  %4190 = vmatpush.msra.mxu0 %v8115_v13  ;;  %v10770_v24 = vld [vmem:[#allocation35_spill] sm:$0xff] }
 0xd8f   : > { %v3715_v34 = vmul.f32 %v3702_v23, %v9377_v11 }
 0xd90   : > { %v3706_v1 = vmul.f32 0.5, %v3705_v18  ;;  %4191 = vmatpush.msra.mxu0 %v10760_v10  ;;  %v10771_v18 = vld [vmem:[#allocation33_spill] sm:$0xff] }
 0xd91   : > { %v3719_v52 = vmul.f32 %v3715_v34, %v8848_v33 }
 0xd92   : > { %v3707_v17 = vsub.f32 1.5, %v3706_v1  ;;  %4192 = vmatpush.msra.mxu0 %v10761_v35 }
 0xd93   : > { %v3723_v12 = vadd.f32 %v3719_v52, %v8852_v22 }
 0xd94   : > { %v3708_v56 = vmul.f32 %v6617_v8, %v3707_v17  ;;  %4193 = vmatpush.msra.mxu0 %v10762_v50 }
 0xd95   : > { %6167 = vmatmul.msk.f32.gmra.mxu0 %vm576_vm0, %v3723_v12 }
 0xd96   : > { %v3712_v31 = vsel %vm3711_vm7, %v6617_v8, %v3708_v56  ;;  %v10769_v8 = vld [vmem:[#allocation37_spill] sm:$0xff]  ;;  %v10772_v56 = vld [vmem:[#allocation72_spill] sm:$0xff] }
 0xd97   : > { %v3716_v11 = vmul.f32 %v3712_v31, %v9384_v49  ;;  %v10766_v49 = vld [vmem:[#allocation43_spill] sm:$0xff] }
 0xd99   : > { %v3720_v16 = vmul.f32 %v3716_v11, %v8848_v33 }
 0xd9b   : > { %v3724_v42 = vadd.f32 %v3720_v16, %v8852_v22 }
 0xd9d   : > { %6168 = vmatmul.msk.f32.gmra.mxu0 %vm576_vm0, %v3724_v42 }
 0xe02   : > { %v3754_v63 = vpop.f32.mrf.mxu0 }
 0xe03   : > { %v3755_v39 = vadd.f32 %v3754_v63, %v10763_v44 }
 0xe05   : > { %v3766_v26 = vmax.f32 %v3755_v39, 0.0 }
 0xe07   : > { %6169 = vmatmul.msk.f32.vlgmr.msra.gmra.mxu1 %vm2023_vm5, %v3766_v26 }
 0xe08   : > { %4209 = vmatpush.msra.mxu1 %v10764_v41 }
 0xe0a   : > { %4210 = vmatpush.msra.mxu1 %v10765_v48  ;;  %v3757_v30 = vpop.f32.mrf.mxu0 }
 0xe0b   : > { %v3758_v28 = vadd.f32 %v3757_v30, %v10763_v44 }
 0xe0c   : > { %4211 = vmatpush.msra.mxu1 %v10766_v49 }
 0xe0d   : > { %v3767_v45 = vmax.f32 %v3758_v28, 0.0 }
 0xe0e   : > { %4212 = vmatpush.msra.mxu1 %v10767_v61 }
 0xe0f   : > { %6170 = vmatmul.msk.f32.gmra.mxu1 %vm2023_vm5, %v3767_v45 }
 0xe10   : > { %4213 = vmatpush.msra.mxu1 %v10768_v54  ;;  %v10773_v54 = vld [vmem:[#allocation46_spill] sm:$0xff] }
 0xe12   : > { %4214 = vmatpush.msra.mxu1 %v10769_v8  ;;  %v3760_v9 = vpop.f32.mrf.mxu0 }
 0xe13   : > { %v3761_v14 = vadd.f32 %v3760_v9, %v10763_v44 }
 0xe14   : > { %4215 = vmatpush.msra.mxu1 %v10770_v24 }
 0xe15   : > { %v3768_v23 = vmax.f32 %v3761_v14, 0.0 }
 0xe16   : > { %4216 = vmatpush.msra.mxu1 %v10771_v18 }
 0xe17   : > { %6171 = vmatmul.msk.f32.gmra.mxu1 %vm2023_vm5, %v3768_v23 }
 0xe1a   : > { %v3763_v34 = vpop.f32.mrf.mxu0 }
 0xe1b   : > { %v3764_v1 = vadd.f32 %v3763_v34, %v10763_v44 }
 0xe1d   : > { %v3769_v52 = vmax.f32 %v3764_v1, 0.0 }
 0xe1f   : > { %6172 = vmatmul.msk.f32.gmra.mxu1 %vm2023_vm5, %v3769_v52 }
 0xe84   : > { %v3799_v17 = vpop.f32.mrf.mxu1 }
 0xe85   : > { %v3811_v12 = vadd.f32 %v3799_v17, %v9321_v21 }
 0xe87   : > { %v9433_v31 = vadd.f32 %v3811_v12, %v10772_v56 }
 0xe89   : > { %v3819_v11 = vsel %vm576_vm0, %v9433_v31, 0.0 }
 0xe8a   : > { %3820 = vadd.xlane.f32.xlu2 %v3819_v11 }
 0xe8c   : > { %v3802_v16 = vpop.f32.mrf.mxu1 }
 0xe8d   : > { %v3812_v42 = vadd.f32 %v3802_v16, %v9347_v0 }
 0xe8f   : > { %v9439_v63 = vadd.f32 %v3812_v42, %v10772_v56 }
 0xe91   : > { %v3822_v39 = vsel %vm576_vm0, %v9439_v63, 0.0 }
 0xe92   : > { %3823 = vadd.xlane.f32.xlu0 %v3822_v39 }
 0xe94   : > { %v3805_v26 = vpop.f32.mrf.mxu1 }
 0xe95   : > { %v3813_v21 = vadd.f32 %v3805_v26, %v9360_v37 }
 0xe97   : > { %v9445_v30 = vadd.f32 %v3813_v21, %v10772_v56 }
 0xe99   : > { %v3825_v28 = vsel %vm576_vm0, %v9445_v30, 0.0 }
 0xe9a   : > { %3826 = vadd.xlane.f32.xlu1 %v3825_v28 }
 0xe9c   : > { %v3808_v45 = vpop.f32.mrf.mxu1 }
 0xe9d   : > { %v3814_v0 = vadd.f32 %v3808_v45, %v9365_v15 }
 0xe9f   : > { %v9451_v9 = vadd.f32 %v3814_v0, %v10772_v56 }
 0xea1   : > { %v3828_v14 = vsel %vm576_vm0, %v9451_v9, 0.0 }
 0xea2   : > { %3829 = vadd.xlane.f32.xlu2 %v3828_v14 }
 0xefd   : > { %v3821_v23 = vpop.xlane.xlu2 %3820 }
 0xefe   : > { %v3831_v37 = vmul.f32 %v3821_v23, %v7109_v20 }
 0xf00   : > { %v3835_v34 = vsub.f32 %v9433_v31, %v3831_v37 }
 0xf02   : > { %v3839_v1 = vmul.f32 %v3835_v34, %v3835_v34 }
 0xf04   : > { %v3843_v52 = vsel %vm576_vm0, %v3839_v1, 0.0 }
 0xf05   : > { %v3824_v17 = vpop.xlane.xlu0 %3823  ;;  %3844 = vadd.xlane.f32.xlu0 %v3843_v52 }
 0xf06   : > { %v3832_v12 = vmul.f32 %v3824_v17, %v7109_v20 }
 0xf08   : > { %v3836_v15 = vsub.f32 %v9439_v63, %v3832_v12 }
 0xf0a   : > { %v3840_v11 = vmul.f32 %v3836_v15, %v3836_v15 }
 0xf0c   : > { %v3846_v16 = vsel %vm576_vm0, %v3840_v11, 0.0 }
 0xf0d   : > { %3847 = vadd.xlane.f32.xlu1 %v3846_v16  ;;  %v3827_v42 = vpop.xlane.xlu1 %3826 }
 0xf0e   : > { %v3833_v39 = vmul.f32 %v3827_v42, %v7109_v20 }
 0xf10   : > { %v9463_v26 = vsub.f32 %v9445_v30, %v3833_v39 }
 0xf12   : > { %v3841_v21 = vmul.f32 %v9463_v26, %v9463_v26 }
 0xf14   : > { %v3849_v28 = vsel %vm576_vm0, %v3841_v21, 0.0 }
 0xf15   : > { %3850 = vadd.xlane.f32.xlu2 %v3849_v28  ;;  %v3830_v45 = vpop.xlane.xlu2 %3829 }
 0xf16   : > { %v3834_v0 = vmul.f32 %v3830_v45, %v7109_v20 }
 0xf18   : > { %v9470_v14 = vsub.f32 %v9451_v9, %v3834_v0 }
 0xf1a   : > { %v3842_v23 = vmul.f32 %v9470_v14, %v9470_v14 }
 0xf1c   : > { %v3852_v37 = vsel %vm576_vm0, %v3842_v23, 0.0 }
 0xf1d   : > { %3853 = vadd.xlane.f32.xlu0 %v3852_v37 }
 0xf78   : > { %v3845_v1 = vpop.xlane.xlu0 %3844 }
 0xf79   : > { %v3855_v52 = vmul.f32 %v3845_v1, %v7109_v20 }
 0xf7b   : > { %v3859_v17 = vadd.f32 1e-05, %v3855_v52 }
 0xf7d   : > { %6618 = vrsqrt.f32 %v3859_v17  ;;  %vm3869_vm9 = vweird.f32 %v3859_v17 }
 0xf80   : > { %v3848_v12 = vpop.xlane.xlu1 %3847 }
 0xf81   : > { %v3856_v11 = vmul.f32 %v3848_v12, %v7109_v20 }
 0xf83   : > { %v6619_v16 = vpop.eup %6618  ;;  %v3860_v42 = vadd.f32 1e-05, %v3856_v11 }
 0xf84   : > { %v3864_v39 = vmul.f32 %v6619_v16, %v3859_v17  ;;  %vm3870_vm8 = vweird.f32 %v6619_v16 }
 0xf85   : > { %6620 = vrsqrt.f32 %v3860_v42  ;;  %vm3871_vm10 = vmor %vm3869_vm9, %vm3870_vm8  ;;  %vm3879_vm12 = vweird.f32 %v3860_v42 }
 0xf86   : > { %v3865_v21 = vmul.f32 %v6619_v16, %v3864_v39 }
 0xf88   : > { %v3866_v28 = vmul.f32 0.5, %v3865_v21  ;;  %v3851_v45 = vpop.xlane.xlu2 %3850 }
 0xf89   : > { %v3857_v0 = vmul.f32 %v3851_v45, %v7109_v20  ;;  %v10774_v45 = vld [vmem:[#allocation49_spill] sm:$0xff] }
 0xf8a   : > { %v3867_v56 = vsub.f32 1.5, %v3866_v28 }
 0xf8b   : > { %v6621_v23 = vpop.eup %6620  ;;  %v3861_v37 = vadd.f32 1e-05, %v3857_v0 }
 0xf8c   : > { %v3868_v18 = vmul.f32 %v6619_v16, %v3867_v56  ;;  %v3874_v1 = vmul.f32 %v6621_v23, %v3860_v42  ;;  %vm3880_vm11 = vweird.f32 %v6621_v23 }
 0xf8d   : > { %6622 = vrsqrt.f32 %v3861_v37  ;;  %vm3881_vm13 = vmor %vm3879_vm12, %vm3880_vm11  ;;  %vm3889_vm15 = vweird.f32 %v3861_v37 }
 0xf8e   : > { %v3872_v52 = vsel %vm3871_vm10, %v6619_v16, %v3868_v18  ;;  %v3875_v12 = vmul.f32 %v6621_v23, %v3874_v1  ;;  %v6818_v1 = vld [vmem:[%s10471_s7 + $0x10] sm:$0xff] }
 0xf8f   : > { %v3903_v24 = vmul.f32 %v3872_v52, %v3835_v34 }
 0xf90   : > { %v3876_v11 = vmul.f32 0.5, %v3875_v12  ;;  %v3854_v8 = vpop.xlane.xlu0 %3853 }
 0xf91   : > { %v3907_v39 = vmul.f32 %v3903_v24, %v10773_v54  ;;  %v3858_v21 = vmul.f32 %v3854_v8, %v7109_v20  ;;  %v6817_v24 = vld [vmem:[%s10471_s7 + $0x18] sm:$0xff] }
 0xf92   : > { %v3877_v61 = vsub.f32 1.5, %v3876_v11  ;;  %v6820_v11 = vld [vmem:[%s10471_s7] sm:$0xff] }
 0xf93   : > { %v6623_v28 = vpop.eup %6622  ;;  %v3911_v49 = vadd.f32 %v3907_v39, %v10774_v45  ;;  %v3862_v0 = vadd.f32 1e-05, %v3858_v21 }
 0xf94   : > { %v3878_v56 = vmul.f32 %v6621_v23, %v3877_v61  ;;  %v3884_v17 = vmul.f32 %v6623_v28, %v3861_v37  ;;  %vm3890_vm14 = vweird.f32 %v6623_v28 }
 0xf95   : > { %6624 = vrsqrt.f32 %v3862_v0  ;;  %6173 = vmatmul.msk.f32.vlgmr.msra.gmra.mxu3 %vm576_vm0, %v3911_v49  ;;  %v6819_v49 = vld [vmem:[%s10471_s7 + $0x8] sm:$0xff]  ;;  %vm3891_vm1 = vmor %vm3889_vm15, %vm3890_vm14  ;;  %vm3899_vm3 = vweird.f32 %v3862_v0 }
 0xf96   : > { %v3882_v18 = vsel %vm3881_vm13, %v6621_v23, %v3878_v56  ;;  %v3885_v34 = vmul.f32 %v6623_v28, %v3884_v17  ;;  %4422 = vmatpush.msra.mxu3 %v6817_v24 }
 0xf97   : > { %v3904_v8 = vmul.f32 %v3882_v18, %v3836_v15 }
 0xf98   : > { %v3886_v16 = vmul.f32 0.5, %v3885_v34  ;;  %4423 = vmatpush.msra.mxu3 %v6818_v1 }
 0xf99   : > { %v3908_v61 = vmul.f32 %v3904_v8, %v10773_v54 }
 0xf9a   : > { %v3887_v42 = vsub.f32 1.5, %v3886_v16  ;;  %4424 = vmatpush.msra.mxu3 %v6819_v49  ;;  %v10776_v49 = vld [vmem:[#allocation62_spill] sm:$0xff] }
 0xf9b   : > { %v6625_v23 = vpop.eup %6624  ;;  %v3912_v52 = vadd.f32 %v3908_v61, %v10774_v45 }
 0xf9c   : > { %v3888_v12 = vmul.f32 %v6623_v28, %v3887_v42  ;;  %v3894_v15 = vmul.f32 %v6625_v23, %v3862_v0  ;;  %4425 = vmatpush.msra.mxu3 %v6820_v11  ;;  %vm3900_vm2 = vweird.f32 %v6625_v23  ;;  %v10775_v42 = vld [vmem:[#allocation64_spill] sm:$0xff]  ;;  %v10777_v0 = vld [vmem:[#allocation61_spill] sm:$0xff]  ;;  %v10780_v11 = vld [vmem:[#allocation55_spill] sm:$0xff] }
 0xf9d   : > { %6174 = vmatmul.msk.f32.gmra.mxu3 %vm576_vm0, %v3912_v52  ;;  %vm3901_vm4 = vmor %vm3899_vm3, %vm3900_vm2 }
 0xf9e   : > { %v3892_v39 = vsel %vm3891_vm1, %v6623_v28, %v3888_v12  ;;  %v3895_v21 = vmul.f32 %v6625_v23, %v3894_v15  ;;  %v10778_v12 = vld [vmem:[#allocation59_spill] sm:$0xff]  ;;  %v6821_v15 = vld [vmem:[%s10470_s6 + $0x18] sm:$0xff] }
 0xf9f   : > { %v3905_v56 = vmul.f32 %v3892_v39, %v9463_v26  ;;  %v6822_v39 = vld [vmem:[%s10470_s6 + $0x10] sm:$0xff] }
 0xfa0   : > { %v3896_v17 = vmul.f32 0.5, %v3895_v21  ;;  %v10781_v21 = vld [vmem:[#allocation53_spill] sm:$0xff] }
 0xfa1   : > { %v3909_v18 = vmul.f32 %v3905_v56, %v10773_v54 }
 0xfa2   : > { %v3897_v34 = vsub.f32 1.5, %v3896_v17  ;;  %v6823_v17 = vld [vmem:[%s10470_s6 + $0x8] sm:$0xff] }
 0xfa3   : > { %v3913_v37 = vadd.f32 %v3909_v18, %v10774_v45 }
 0xfa4   : > { %v3898_v24 = vmul.f32 %v6625_v23, %v3897_v34  ;;  %v10782_v34 = vld [vmem:[#allocation51_spill] sm:$0xff] }
 0xfa5   : > { %6175 = vmatmul.msk.f32.gmra.mxu3 %vm576_vm0, %v3913_v37  ;;  %v6824_v37 = vld [vmem:[%s10470_s6] sm:$0xff] }
 0xfa6   : > { %v3902_v8 = vsel %vm3901_vm4, %v6625_v23, %v3898_v24  ;;  %v6825_v24 = vld [vmem:[%s10473_s9 + $0x18] sm:$0xff] }
 0xfa7   : > { %v3906_v16 = vmul.f32 %v3902_v8, %v9470_v14  ;;  %v10779_v14 = vld [vmem:[#allocation57_spill] sm:$0xff]  ;;  %v6826_v8 = vld [vmem:[%s10473_s9 + $0x10] sm:$0xff] }
 0xfa9   : > { %v3910_v28 = vmul.f32 %v3906_v16, %v10773_v54 }
 0xfab   : > { %v3914_v1 = vadd.f32 %v3910_v28, %v10774_v45  ;;  %v6827_v28 = vld [vmem:[%s10473_s9 + $0x8] sm:$0xff] }
 0xfad   : > { %6176 = vmatmul.msk.f32.gmra.mxu3 %vm576_vm0, %v3914_v1 }
0x1018   : > { %v3944_v26 = vpop.f32.mrf.mxu3 }
0x1019   : > { %v3956_v61 = vmul.f32 0.17677669, %v3944_v26  ;;  %v6828_v26 = vld [vmem:[%s10473_s9] sm:$0xff] }
0x101b   : > { %6185 = vmatmul.msk.f32.vlgmr.msra.gmra.mxu2 %vm576_vm0, %v3956_v61  ;;  %v6829_v61 = vld [vmem:[%s10476_s12 + $0x18] sm:$0xff] }
0x101c   : > { %4232 = vmatpush.msra.mxu2 %v10775_v42 }
0x101e   : > { %4233 = vmatpush.msra.mxu2 %v10776_v49 }
0x1020   : > { %4234 = vmatpush.msra.mxu2 %v10777_v0  ;;  %v3947_v52 = vpop.f32.mrf.mxu3 }
0x1021   : > { %v3957_v23 = vmul.f32 0.17677669, %v3947_v52  ;;  %v6830_v52 = vld [vmem:[%s10476_s12 + $0x10] sm:$0xff] }
0x1022   : > { %4235 = vmatpush.msra.mxu2 %v10778_v12 }
0x1023   : > { %6194 = vmatmul.msk.f32.vlgmr.msrb.gmra.mxu0 %vm576_vm0, %v3957_v23  ;;  %v6831_v23 = vld [vmem:[%s10476_s12 + $0x8] sm:$0xff] }
0x1024   : > { %4236 = vmatpush.msra.mxu2 %v10779_v14  ;;  %4268 = vmatpush.msrb.mxu0 %v6821_v15  ;;  %v6832_v15 = vld [vmem:[%s10476_s12] sm:$0xff] }
0x1026   : > { %4237 = vmatpush.msra.mxu2 %v10780_v11  ;;  %4269 = vmatpush.msrb.mxu0 %v6822_v39 }
0x1028   : > { %4238 = vmatpush.msra.mxu2 %v10781_v21  ;;  %v3950_v56 = vpop.f32.mrf.mxu3  ;;  %4270 = vmatpush.msrb.mxu0 %v6823_v17 }
0x1029   : > { %v3958_v18 = vmul.f32 0.17677669, %v3950_v56 }
0x102a   : > { %4239 = vmatpush.msra.mxu2 %v10782_v34  ;;  %4271 = vmatpush.msrb.mxu0 %v6824_v37 }
0x102b   : > { %6203 = vmatmul.msk.f32.vlgmr.msrb.gmra.mxu1 %vm576_vm0, %v3958_v18 }
0x102c   : > { %4309 = vmatpush.msrb.mxu1 %v6825_v24 }
0x102e   : > { %4310 = vmatpush.msrb.mxu1 %v6826_v8 }
0x1030   : > { %v3953_v16 = vpop.f32.mrf.mxu3  ;;  %4311 = vmatpush.msrb.mxu1 %v6827_v28 }
0x1031   : > { %v3959_v1 = vmul.f32 0.17677669, %v3953_v16 }
0x1032   : > { %4312 = vmatpush.msrb.mxu1 %v6828_v26 }
0x1033   : > { %6212 = vmatmul.msk.f32.vlgmr.msrb.gmra.mxu3 %vm576_vm0, %v3959_v1 }
0x1034   : > { %4758 = vmatpush.msrb.mxu3 %v6829_v61 }
0x1036   : > { %4759 = vmatpush.msrb.mxu3 %v6830_v52 }
0x1038   : > { %4760 = vmatpush.msrb.mxu3 %v6831_v23 }
0x103a   : > { %4761 = vmatpush.msrb.mxu3 %v6832_v15 }
0x109e   : > { %v3980_v39 = vpop.f32.mrf.mxu2 }
0x109f   : > { %v4052_v56 = vsel %vm2023_vm5, %v3980_v39, -inf }
0x10a0   : > { %v4053_v17 = vrot.slane %v4052_v56, 4  ;;  %v4003_v18 = vpop.f32.mrf.mxu0 }
0x10a1   : > { %v4059_v37 = vsel %vm2023_vm5, %v4003_v18, -inf }
0x10a2   : > { %v4054_v24 = vmax.f32 %v4052_v56, %v4053_v17  ;;  %v4060_v8 = vrot.slane %v4059_v37, 4 }
0x10a4   : > { %v4055_v16 = vrot.slane %v4054_v24, 2  ;;  %v4061_v28 = vmax.f32 %v4059_v37, %v4060_v8 }
0x10a6   : > { %v4056_v1 = vmax.f32 %v4054_v24, %v4055_v16  ;;  %v4062_v26 = vrot.slane %v4061_v28, 2 }
0x10a8   : > { %v4057_v61 = vrot.slane %v4056_v1, 1  ;;  %v4063_v52 = vmax.f32 %v4061_v28, %v4062_v26  ;;  %v4026_v23 = vpop.f32.mrf.mxu1 }
0x10a9   : > { %v4066_v34 = vsel %vm2023_vm5, %v4026_v23, -inf }
0x10aa   : > { %v4058_v21 = vmax.f32 %v4056_v1, %v4057_v61  ;;  %v4064_v15 = vrot.slane %v4063_v52, 1  ;;  %v4067_v11 = vrot.slane %v4066_v34, 4 }
0x10ac   : > { %v4080_v14 = vsub.f32 %v3980_v39, %v4058_v21  ;;  %v4065_v12 = vmax.f32 %v4063_v52, %v4064_v15  ;;  %v4068_v0 = vmax.f32 %v4066_v34, %v4067_v11 }
0x10ae   : > { %v4084_v49 = vmul.f32 1.442695, %v4080_v14  ;;  %v4081_v42 = vsub.f32 %v4003_v18, %v4065_v12  ;;  %v4069_v45 = vrot.slane %v4068_v0, 2 }
0x10b0   : > { %6626 = vpow2.f32 %v4084_v49  ;;  %v4086_v56 = vmul.f32 1.442695, %v4081_v42  ;;  %v4070_v17 = vmax.f32 %v4068_v0, %v4069_v45 }
0x10b2   : > { %6628 = vpow2.f32 %v4086_v56  ;;  %v4071_v37 = vrot.slane %v4070_v17, 1 }
0x10b4   : > { %v4072_v24 = vmax.f32 %v4070_v17, %v4071_v37 }
0x10b6   : > { %v6627_v8 = vpop.eup %6626  ;;  %v4082_v16 = vsub.f32 %v4026_v23, %v4072_v24  ;;  %v4049_v28 = vpop.f32.mrf.mxu3 }
0x10b7   : > { %v4092_v26 = vsel %vm2023_vm5, %v6627_v8, 0.0  ;;  %v4073_v1 = vsel %vm2023_vm5, %v4049_v28, -inf }
0x10b8   : > { %v6629_v61 = vpop.eup %6628  ;;  %v4093_v21 = vrot.slane %v4092_v26, 4  ;;  %v4088_v39 = vmul.f32 1.442695, %v4082_v16  ;;  %v4074_v11 = vrot.slane %v4073_v1, 4 }
0x10b9   : > { %v4099_v12 = vsel %vm2023_vm5, %v6629_v61, 0.0 }
0x10ba   : > { %v4094_v14 = vadd.f32 %v4093_v21, %v4092_v26  ;;  %v4100_v49 = vrot.slane %v4099_v12, 4  ;;  %6630 = vpow2.f32 %v4088_v39  ;;  %v4075_v45 = vmax.f32 %v4073_v1, %v4074_v11 }
0x10bc   : > { %v4095_v42 = vrot.slane %v4094_v14, 2  ;;  %v4101_v0 = vadd.f32 %v4100_v49, %v4099_v12  ;;  %v4076_v34 = vrot.slane %v4075_v45, 2 }
0x10be   : > { %v4102_v18 = vrot.slane %v4101_v0, 2  ;;  %v4077_v52 = vmax.f32 %v4075_v45, %v4076_v34  ;;  %v4096_v23 = vadd.f32 %v4095_v42, %v4094_v14 }
0x10c0   : > { %v6631_v15 = vpop.eup %6630  ;;  %v4078_v56 = vrot.slane %v4077_v52, 1  ;;  %v4097_v17 = vrot.slane %v4096_v23, 1  ;;  %v4103_v37 = vadd.f32 %v4102_v18, %v4101_v0 }
0x10c1   : > { %v4106_v24 = vsel %vm2023_vm5, %v6631_v15, 0.0 }
0x10c2   : > { %v4107_v16 = vrot.slane %v4106_v24, 4  ;;  %v4079_v54 = vmax.f32 %v4077_v52, %v4078_v56  ;;  %v4098_v48 = vadd.f32 %v4097_v17, %v4096_v23  ;;  %v4104_v41 = vrot.slane %v4103_v37, 1 }
0x10c4   : > { %v4108_v26 = vadd.f32 %v4107_v16, %v4106_v24  ;;  %v4083_v21 = vsub.f32 %v4049_v28, %v4079_v54  ;;  %6632 = vrcp.f32 %v4098_v48  ;;  %v4105_v1 = vadd.f32 %v4104_v41, %v4103_v37 }
0x10c6   : > { %v4109_v39 = vrot.slane %v4108_v26, 2  ;;  %v4090_v11 = vmul.f32 1.442695, %v4083_v21  ;;  %6634 = vrcp.f32 %v4105_v1 }
0x10c8   : > { %6636 = vpow2.f32 %v4090_v11  ;;  %v4110_v12 = vadd.f32 %v4109_v39, %v4108_v26 }
0x10ca   : > { %v6633_v14 = vpop.eup %6632  ;;  %v4111_v49 = vrot.slane %v4110_v12, 1 }
0x10cb   : > { %v4124_v45 = vmul.f32 %v6633_v14, %v6627_v8 }
0x10cc   : > { %v6635_v42 = vpop.eup %6634  ;;  %v4112_v0 = vadd.f32 %v4111_v49, %v4110_v12 }
0x10cd   : > { %v4128_v34 = vadd.f32 1e-08, %v4124_v45  ;;  %v4125_v18 = vmul.f32 %v6635_v42, %v6629_v61 }
0x10ce   : > { %v6637_v44 = vpop.eup %6636  ;;  %6638 = vrcp.f32 %v4112_v0 }
0x10cf   : > { %v4113_v52 = vsel %vm2023_vm5, %v6637_v44, 0.0  ;;  %v4132_v54 = vsel %vm2023_vm5, %v4128_v34, 0.0  ;;  %v4129_v48 = vadd.f32 1e-08, %v4125_v18  ;;  %v6834_v18 = vld [vmem:[%s10474_s10 + $0x10] sm:$0xff] }
0x10d0   : > { %v4114_v41 = vrot.slane %v4113_v52, 4  ;;  %4133 = vadd.xlane.f32.xlu1 %v4132_v54  ;;  %v6837_v54 = vld [vmem:[%s10472_s8 + $0x10] sm:$0xff] }
0x10d1   : > { %v4135_v28 = vsel %vm2023_vm5, %v4129_v48, 0.0 }
0x10d2   : > { %v4115_v23 = vadd.f32 %v4114_v41, %v4113_v52  ;;  %4136 = vadd.xlane.f32.xlu2 %v4135_v28  ;;  %v6836_v52 = vld [vmem:[%s10474_s10 + $0x8] sm:$0xff]  ;;  %v6838_v41 = vld [vmem:[%s10474_s10] sm:$0xff] }
0x10d3   : > { %v6839_v28 = vld [vmem:[%s10472_s8 + $0x8] sm:$0xff] }
0x10d4   : > { %v6639_v56 = vpop.eup %6638  ;;  %v4116_v17 = vrot.slane %v4115_v23, 2 }
0x10d5   : > { %v4126_v8 = vmul.f32 %v6639_v56, %v6631_v15  ;;  %v6840_v56 = vld [vmem:[%s10472_s8] sm:$0xff] }
0x10d6   : > { %v4117_v37 = vadd.f32 %v4116_v17, %v4115_v23  ;;  %v6841_v17 = vld [vmem:[%s10475_s11 + $0x18] sm:$0xff] }
0x10d7   : > { %v4130_v24 = vadd.f32 1e-08, %v4126_v8  ;;  %v6842_v8 = vld [vmem:[%s10475_s11 + $0x10] sm:$0xff] }
0x10d8   : > { %v4118_v16 = vrot.slane %v4117_v37, 1 }
0x10d9   : > { %v4138_v61 = vsel %vm2023_vm5, %v4130_v24, 0.0 }
0x10da   : > { %4139 = vadd.xlane.f32.xlu0 %v4138_v61  ;;  %v4119_v26 = vadd.f32 %v4118_v16, %v4117_v37  ;;  %v6844_v16 = vld [vmem:[%s10475_s11] sm:$0xff] }
0x10dc   : > { %6640 = vrcp.f32 %v4119_v26 }
0x10e2   : > { %v6641_v21 = vpop.eup %6640 }
0x10e3   : > { %v4127_v1 = vmul.f32 %v6641_v21, %v6637_v44  ;;  %v6833_v44 = vld [vmem:[%s10474_s10 + $0x18] sm:$0xff] }
0x10e4   : > { %v6845_v21 = vld [vmem:[%s10477_s13 + $0x38] sm:$0xff] }
0x10e5   : > { %v4131_v39 = vadd.f32 1e-08, %v4127_v1  ;;  %v6846_v1 = vld [vmem:[%s10477_s13 + $0x30] sm:$0xff] }
0x10e7   : > { %v4141_v11 = vsel %vm2023_vm5, %v4131_v39, 0.0 }
0x10e8   : > { %4142 = vadd.xlane.f32.xlu1 %v4141_v11  ;;  %v6852_v11 = vld [vmem:[%s10477_s13] sm:$0xff] }
0x1143   : > { %v4134_v12 = vpop.xlane.xlu1 %4133 }
0x1144   : > { %6642 = vrcp.f32 %v4134_v12 }
0x1145   : > { %v4137_v14 = vpop.xlane.xlu2 %4136 }
0x1146   : > { %6644 = vrcp.f32 %v4137_v14  ;;  %v10792_v14 = vld [vmem:[#allocation24_spill] sm:$0xff] }
0x114a   : > { %v6643_v49 = vpop.eup %6642 }
0x114b   : > { %v4148_v15 = vmul.f32 %v6643_v49, %v4128_v34  ;;  %v6835_v34 = vld [vmem:[%s10472_s8 + $0x18] sm:$0xff]  ;;  %v10793_v49 = vld [vmem:[#allocation23_spill] sm:$0xff] }
0x114c   : > { %v6645_v45 = vpop.eup %6644 }
0x114d   : > { %v4149_v42 = vmul.f32 %v6645_v45, %v4129_v48  ;;  %6213 = vmatmul.msk.f32.vlgmr.msrb.gmra.mxu2 %vm2023_vm5, %v4148_v15  ;;  %v4140_v0 = vpop.xlane.xlu0 %4139  ;;  %v10794_v45 = vld [vmem:[#allocation22_spill] sm:$0xff] }
0x114e   : > { %6646 = vrcp.f32 %v4140_v0  ;;  %4451 = vmatpush.msrb.mxu2 %v6833_v44  ;;  %v10796_v0 = vld [vmem:[#allocation65_spill] sm:$0xff]  ;;  %v10797_v44 = vld [vmem:[#allocation63_spill] sm:$0xff] }
0x114f   : > { %6214 = vmatmul.msk.f32.vlgmr.msra.gmra.mxu0 %vm2023_vm5, %v4149_v42  ;;  %v10795_v42 = vld [vmem:[#allocation20_spill] sm:$0xff] }
0x1150   : > { %4452 = vmatpush.msrb.mxu2 %v6834_v18  ;;  %4564 = vmatpush.msra.mxu0 %v6835_v34  ;;  %v10798_v18 = vld [vmem:[#allocation60_spill] sm:$0xff]  ;;  %v10799_v34 = vld [vmem:[#allocation58_spill] sm:$0xff] }
0x1152   : > { %4453 = vmatpush.msrb.mxu2 %v6836_v52  ;;  %4565 = vmatpush.msra.mxu0 %v6837_v54  ;;  %v10800_v52 = vld [vmem:[#allocation56_spill] sm:$0xff]  ;;  %v10801_v54 = vld [vmem:[#allocation54_spill] sm:$0xff] }
0x1154   : > { %v6647_v48 = vpop.eup %6646  ;;  %4454 = vmatpush.msrb.mxu2 %v6838_v41  ;;  %4566 = vmatpush.msra.mxu0 %v6839_v28  ;;  %v10803_v41 = vld [vmem:[#allocation50_spill] sm:$0xff] }
0x1155   : > { %v4150_v23 = vmul.f32 %v6647_v48, %v4130_v24  ;;  %v6843_v24 = vld [vmem:[%s10475_s11 + $0x8] sm:$0xff]  ;;  %v10802_v48 = vld [vmem:[#allocation52_spill] sm:$0xff] }
0x1156   : > { %4567 = vmatpush.msra.mxu0 %v6840_v56 }
0x1157   : > { %6215 = vmatmul.msk.f32.vlgmr.msra.gmra.mxu1 %vm2023_vm5, %v4150_v23 }
0x1158   : > { %4593 = vmatpush.msra.mxu1 %v6841_v17 }
0x115a   : > { %4594 = vmatpush.msra.mxu1 %v6842_v8 }
0x115b   : > { %v4143_v37 = vpop.xlane.xlu1 %4142 }
0x115c   : > { %6648 = vrcp.f32 %v4143_v37  ;;  %4595 = vmatpush.msra.mxu1 %v6843_v24  ;;  %v10804_v24 = vld [vmem:[#allocation17_spill] sm:$0xff] }
0x115e   : > { %4596 = vmatpush.msra.mxu1 %v6844_v16 }
0x115f   : > { %6221 = vmatmul.msk.f32.vlgmr.msrb.gmra.mxu1 %vm576_vm0, %v9433_v31 }
0x1160   : > { %6261 = vmatpush.xpose.msk.msrb.mxu1 %vm576_vm0, %v10722_v40  ;;  %v6847_v40 = vld [vmem:[%s10477_s13 + $0x28] sm:$0xff] }
0x1162   : > { %v6649_v61 = vpop.eup %6648 }
0x1163   : > { %v4151_v26 = vmul.f32 %v6649_v61, %v4131_v39  ;;  %v6850_v39 = vld [vmem:[%s10477_s13 + $0x10] sm:$0xff] }
0x1164   : > { %6262 = vmatpush.xpose.msk.msrb.mxu1 %vm576_vm0, %v10723_v19  ;;  %v6848_v19 = vld [vmem:[%s10477_s13 + $0x20] sm:$0xff] }
0x1165   : > { %6216 = vmatmul.msk.f32.vlgmr.msra.gmra.mxu2 %vm2023_vm5, %v4151_v26 }
0x1166   : > { %4799 = vmatpush.msra.mxu2 %v6845_v21 }
0x1167   : > { %6222 = vmatmul.msk.f32.gmra.mxu1 %vm576_vm0, %v9439_v63 }
0x1168   : > { %4800 = vmatpush.msra.mxu2 %v6846_v1  ;;  %6263 = vmatpush.xpose.msk.msrb.mxu1 %vm576_vm0, %v10724_v59  ;;  %v6849_v59 = vld [vmem:[%s10477_s13 + $0x18] sm:$0xff]  ;;  %v10805_v1 = vld [vmem:[#allocation66_spill] sm:$0xff] }
0x116a   : > { %4801 = vmatpush.msra.mxu2 %v6847_v40 }
0x116c   : > { %4802 = vmatpush.msra.mxu2 %v6848_v19  ;;  %6264 = vmatpush.xpose.msk.msrb.mxu1 %vm576_vm0, %v10725_v46  ;;  %v6851_v46 = vld [vmem:[%s10477_s13 + $0x8] sm:$0xff] }
0x116d   : > { %6233 = vmatmul.msk.f32.vlgmr.msrb.gmra.mxu2 %vm576_vm0, %v9433_v31 }
0x116e   : > { %4803 = vmatpush.msra.mxu2 %v6849_v59 }
0x116f   : > { %6223 = vmatmul.msk.f32.gmra.mxu1 %vm576_vm0, %v9445_v30 }
0x1170   : > { %4804 = vmatpush.msra.mxu2 %v6850_v39  ;;  %6265 = vmatpush.xpose.msk.msrb.mxu1 %vm576_vm0, %v10726_v3  ;;  %v10786_v3 = vld [vmem:[#allocation18_spill] sm:$0xff]  ;;  %v10806_v39 = vld [vmem:[#allocation67_spill] sm:$0xff] }
0x1172   : > { %4805 = vmatpush.msra.mxu2 %v6851_v46 }
0x1174   : > { %4806 = vmatpush.msra.mxu2 %v6852_v11  ;;  %6266 = vmatpush.xpose.msk.msrb.mxu1 %vm576_vm0, %v10727_v36  ;;  %v10788_v36 = vld [vmem:[#allocation29_spill] sm:$0xff] }
0x1175   : > { %6234 = vmatmul.msk.f32.gmra.mxu2 %vm576_vm0, %v9439_v63 }
0x1176   : > { %6279 = vmatpush.xpose.msk.msrb.mxu2 %vm576_vm0, %v10728_v2  ;;  %v6853_v2 = vld [vmem:[%s10469_s5 + $0x18] sm:$0xff] }
0x1177   : > { %6224 = vmatmul.msk.f32.gmra.mxu1 %vm576_vm0, %v9451_v9 }
0x1178   : > { %6267 = vmatpush.xpose.msk.msrb.mxu1 %vm576_vm0, %v10729_v58  ;;  %v6854_v58 = vld [vmem:[%s10469_s5 + $0x10] sm:$0xff] }
0x117a   : > { %6280 = vmatpush.xpose.msk.msrb.mxu2 %vm576_vm0, %v10730_v25  ;;  %v10789_v25 = vld [vmem:[#allocation27_spill] sm:$0xff] }
0x117c   : > { %6268 = vmatpush.xpose.msk.msrb.mxu1 %vm576_vm0, %v10731_v55  ;;  %v6855_v55 = vld [vmem:[%s10469_s5 + $0x8] sm:$0xff] }
0x117d   : > { %6235 = vmatmul.msk.f32.gmra.mxu2 %vm576_vm0, %v9445_v30 }
0x117e   : > { %6281 = vmatpush.xpose.msk.msrb.mxu2 %vm576_vm0, %v10732_v47 }
0x117f   : > { %6245 = vmatmul.msk.f32.vlgmr.msra.gmra.mxu1 %vm576_vm0, %v9433_v31 }
0x1180   : > { %5172 = vmatpush.msra.mxu1 %v7955_v60  ;;  %v10783_v60 = vld [vmem:[#allocation21_spill] sm:$0xff] }
0x1182   : > { %6282 = vmatpush.xpose.msk.msrb.mxu2 %vm576_vm0, %v10733_v38  ;;  %5173 = vmatpush.msra.mxu1 %v7933_v43  ;;  %v10784_v43 = vld [vmem:[#allocation19_spill] sm:$0xff]  ;;  %v6856_v38 = vld [vmem:[%s10469_s5] sm:$0xff] }
0x1184   : > { %5174 = vmatpush.msra.mxu1 %v7916_v51  ;;  %v10785_v51 = vld [vmem:[#allocation34_spill] sm:$0xff] }
0x1185   : > { %6236 = vmatmul.msk.f32.gmra.mxu2 %vm576_vm0, %v9451_v9 }
0x1186   : > { %6283 = vmatpush.xpose.msk.msrb.mxu2 %vm576_vm0, %v10734_v32  ;;  %5175 = vmatpush.msra.mxu1 %v7906_v57  ;;  %v10787_v57 = vld [vmem:[#allocation32_spill] sm:$0xff]  ;;  %v10790_v32 = vld [vmem:[#allocation26_spill] sm:$0xff] }
0x1187   : > { %6246 = vmatmul.msk.f32.gmra.mxu1 %vm576_vm0, %v9439_v63 }
0x1188   : > { %5176 = vmatpush.msra.mxu1 %v7902_v6 }
0x118a   : > { %6284 = vmatpush.xpose.msk.msrb.mxu2 %vm576_vm0, %v10735_v5  ;;  %5177 = vmatpush.msra.mxu1 %v10783_v60  ;;  %v10791_v5 = vld [vmem:[#allocation25_spill] sm:$0xff] }
0x118c   : > { %5178 = vmatpush.msra.mxu1 %v10784_v43 }
0x118e   : > { %6285 = vmatpush.xpose.msk.msrb.mxu2 %vm576_vm0, %v10785_v51  ;;  %5179 = vmatpush.msra.mxu1 %v10786_v3  ;;  %v10807_v51 = vld [vmem:[#allocation68_spill] sm:$0xff] }
0x118f   : > { %6247 = vmatmul.msk.f32.gmra.mxu1 %vm576_vm0, %v9445_v30 }
0x1192   : > { %6286 = vmatpush.xpose.msk.msrb.mxu2 %vm576_vm0, %v10787_v57 }
0x1197   : > { %6248 = vmatmul.msk.f32.gmra.mxu1 %vm576_vm0, %v9451_v9 }
0x11cc   : > { %v4195_v47 = vpop.f32.mrf.mxu0 }
0x11d0   : > { %v4172_v6 = vpop.f32.mrf.mxu2 }
0x11d1   : > { %6217 = vmatmul.msk.f32.vlgmr.msrb.gmra.mxu0 %vm576_vm0, %v4172_v6  ;;  %6229 = vmatmul.msk.f32.vlgmr.msra.gmra.mxu3 %vm576_vm0, %v4172_v6 }
0x11d2   : > { %6270 = vmatpush.xpose.msk.msra.mxu3 %vm576_vm0, %v10788_v36  ;;  %4948 = vmatpush.msrb.mxu0 %v6853_v2 }
0x11d4   : > { %4949 = vmatpush.msrb.mxu0 %v6854_v58  ;;  %v4218_v12 = vpop.f32.mrf.mxu1 }
0x11d6   : > { %6271 = vmatpush.xpose.msk.msra.mxu3 %vm576_vm0, %v10789_v25  ;;  %4950 = vmatpush.msrb.mxu0 %v6855_v55 }
0x11d8   : > { %4951 = vmatpush.msrb.mxu0 %v6856_v38 }
0x11d9   : > { %6218 = vmatmul.msk.f32.gmra.mxu0 %vm576_vm0, %v4195_v47  ;;  %6230 = vmatmul.msk.f32.gmra.mxu3 %vm576_vm0, %v4195_v47 }
0x11da   : > { %6272 = vmatpush.xpose.msk.msra.mxu3 %vm576_vm0, %v10790_v32 }
0x11dc   : > { %v4314_v28 = vpop.f32.mrf.mxu1 }
0x11de   : > { %6273 = vmatpush.xpose.msk.msra.mxu3 %vm576_vm0, %v10791_v5 }
0x11e1   : > { %6219 = vmatmul.msk.f32.gmra.mxu0 %vm576_vm0, %v4218_v12  ;;  %6231 = vmatmul.msk.f32.gmra.mxu3 %vm576_vm0, %v4218_v12 }
0x11e2   : > { %6274 = vmatpush.xpose.msk.msra.mxu3 %vm576_vm0, %v10792_v14 }
0x11e4   : > { %v4317_v23 = vpop.f32.mrf.mxu1 }
0x11e6   : > { %6275 = vmatpush.xpose.msk.msra.mxu3 %vm576_vm0, %v10793_v49 }
0x11e8   : > { %v4241_v15 = vpop.f32.mrf.mxu2 }
0x11e9   : > { %6220 = vmatmul.msk.f32.gmra.mxu0 %vm576_vm0, %v4241_v15  ;;  %6232 = vmatmul.msk.f32.gmra.mxu3 %vm576_vm0, %v4241_v15 }
0x11ea   : > { %6276 = vmatpush.xpose.msk.msra.mxu3 %vm576_vm0, %v10794_v45 }
0x11ec   : > { %v4320_v56 = vpop.f32.mrf.mxu1 }
0x11ee   : > { %6277 = vmatpush.xpose.msk.msra.mxu3 %vm576_vm0, %v10795_v42 }
0x11f0   : > { %v4456_v61 = vpop.f32.mrf.mxu2 }
0x11f1   : > { %6241 = vmatmul.msk.f32.vlgmr.msra.gmra.mxu0 %vm576_vm0, %v4172_v6 }
0x11f2   : > { %6288 = vmatpush.xpose.msk.msra.mxu0 %vm576_vm0, %v10796_v0 }
0x11f4   : > { %v4323_v17 = vpop.f32.mrf.mxu1 }
0x11f6   : > { %6289 = vmatpush.xpose.msk.msra.mxu0 %vm576_vm0, %v10797_v44 }
0x11f8   : > { %v4459_v6 = vpop.f32.mrf.mxu2 }
0x11f9   : > { %6242 = vmatmul.msk.f32.gmra.mxu0 %vm576_vm0, %v4195_v47 }
0x11fa   : > { %6290 = vmatpush.xpose.msk.msra.mxu0 %vm576_vm0, %v10798_v18 }
0x11fc   : > { %v4598_v8 = vpop.f32.mrf.mxu1 }
0x11fe   : > { %6291 = vmatpush.xpose.msk.msra.mxu0 %vm576_vm0, %v10799_v34 }
0x1200   : > { %v4462_v44 = vpop.f32.mrf.mxu2 }
0x1201   : > { %6243 = vmatmul.msk.f32.gmra.mxu0 %vm576_vm0, %v4218_v12 }
0x1202   : > { %6292 = vmatpush.xpose.msk.msra.mxu0 %vm576_vm0, %v10800_v52 }
0x1204   : > { %v4601_v21 = vpop.f32.mrf.mxu1 }
0x1206   : > { %6293 = vmatpush.xpose.msk.msra.mxu0 %vm576_vm0, %v10801_v54 }
0x1209   : > { %6244 = vmatmul.msk.f32.gmra.mxu0 %vm576_vm0, %v4241_v15 }
0x120a   : > { %6294 = vmatpush.xpose.msk.msra.mxu0 %vm576_vm0, %v10802_v48 }
0x120c   : > { %v4604_v55 = vpop.f32.mrf.mxu1 }
0x120e   : > { %6295 = vmatpush.xpose.msk.msra.mxu0 %vm576_vm0, %v10803_v41 }
0x124e   : > { %v4273_v37 = vpop.f32.mrf.mxu0 }
0x124f   : > { %v4274_v16 = vadd.f32 %v4273_v37, %v10804_v24  ;;  %v4607_v37 = vpop.f32.mrf.mxu1 }
0x1251   : > { %v4326_v26 = vadd.f32 %v4314_v28, %v4274_v16 }
0x1253   : > { %v4330_v40 = vadd.f32 %v4326_v26, %v10805_v1 }
0x1254   : > { %v4427_v19 = vpop.f32.mrf.mxu3 }
0x1255   : > { %v6225_v59 = vmul.f32 -1.442695, %v4330_v40  ;;  %v4428_v46 = vadd.f32 %v4427_v19, %v10806_v39  ;;  %v4599_v40 = vadd.f32 %v4598_v8, %v10750_v4 }
0x1256   : > { %v4276_v11 = vpop.f32.mrf.mxu0 }
0x1257   : > { %6650 = vpow2.f32 %v6225_v59  ;;  %v4468_v60 = vadd.f32 %v4456_v61, %v4428_v46  ;;  %v4277_v43 = vadd.f32 %v4276_v11, %v10804_v24  ;;  %v9769_v59 = vadd.f32 %v4601_v21, %v10750_v4 }
0x1259   : > { %v4472_v3 = vadd.f32 %v4468_v60, %v10807_v51  ;;  %v4327_v57 = vadd.f32 %v4317_v23, %v4277_v43  ;;  %v9773_v43 = vadd.f32 %v4604_v55, %v10750_v4 }
0x125b   : > { %v6237_v36 = vmul.f32 -1.442695, %v4472_v3  ;;  %v4331_v2 = vadd.f32 %v4327_v57, %v10805_v1  ;;  %v9776_v3 = vadd.f32 %v4607_v37, %v10750_v4 }
0x125c   : > { %v4430_v58 = vpop.f32.mrf.mxu3 }
0x125d   : > { %v6651_v25 = vpop.eup %6650  ;;  %6652 = vpow2.f32 %v6237_v36  ;;  %v6226_v47 = vmul.f32 -1.442695, %v4331_v2  ;;  %v4431_v38 = vadd.f32 %v4430_v58, %v10806_v39 }
0x125e   : > { %v4346_v32 = vadd.f32 1.0, %v6651_v25  ;;  %v4279_v5 = vpop.f32.mrf.mxu0 }
0x125f   : > { %6654 = vpow2.f32 %v6226_v47  ;;  %v4469_v12 = vadd.f32 %v4459_v6, %v4431_v38  ;;  %v4280_v14 = vadd.f32 %v4279_v5, %v10804_v24 }
0x1260   : > { %6656 = vrcp.f32 %v4346_v32  ;;  %v4361_v19 = vand.u32 2147483648, %v4346_v32  ;;  %vm4355_vm6 = vweird.f32 %v4346_v32 }
0x1261   : > { %v4473_v49 = vadd.f32 %v4469_v12, %v10807_v51  ;;  %v4328_v15 = vadd.f32 %v4320_v56, %v4280_v14  ;;  %v4359_v56 = vand.u32 2147483647, %v4346_v32 }
0x1262   : > { %v4362_v25 = vor.u32 1.1754944e-38, %v4361_v19 }
0x1263   : > { %v6653_v45 = vpop.eup %6652  ;;  %v6238_v42 = vmul.f32 -1.442695, %v4473_v49  ;;  %v4332_v0 = vadd.f32 %v4328_v15, %v10805_v1  ;;  %vm9778_vm7 = vcmp.eq.f32.partialorder %v4359_v56, 8.507059e+37  ;;  %v4465_v15 = vpop.f32.mrf.mxu2 }
0x1264   : > { %v9759_v18 = vadd.f32 1.0, %v6653_v45  ;;  %v4433_v34 = vpop.f32.mrf.mxu3 }
0x1265   : > { %v6655_v52 = vpop.eup %6654  ;;  %6658 = vpow2.f32 %v6238_v42  ;;  %v6227_v54 = vmul.f32 -1.442695, %v4332_v0  ;;  %v4434_v48 = vadd.f32 %v4433_v34, %v10806_v39 }
0x1266   : > { %v6657_v41 = vpop.eup %6656  ;;  %6660 = vrcp.f32 %v9759_v18  ;;  %v9763_v28 = vadd.f32 1.0, %v6655_v52  ;;  %v4282_v23 = vpop.f32.mrf.mxu0  ;;  %v4501_v47 = vand.u32 2147483647, %v9759_v18  ;;  %vm4497_vm9 = vweird.f32 %v9759_v18 }
0x1267   : > { %6662 = vpow2.f32 %v6227_v54  ;;  %v4470_v16 = vadd.f32 %v4462_v44, %v4434_v48  ;;  %v4283_v61 = vadd.f32 %v4282_v23, %v10804_v24  ;;  %v4351_v26 = vmul.f32 %v6657_v41, %v4346_v32 }
0x1268   : > { %6664 = vrcp.f32 %v9763_v28  ;;  %vm4356_vm8 = vweird.f32 %v6657_v41  ;;  %v4374_v55 = vand.u32 2147483647, %v9763_v28  ;;  %v4376_v0 = vand.u32 2147483648, %v9763_v28 }
0x1269   : > { %v4474_v46 = vadd.f32 %v4470_v16, %v10807_v51  ;;  %v4329_v11 = vadd.f32 %v4323_v17, %v4283_v61  ;;  %v4352_v60 = vsub.f32 1.0, %v4351_v26  ;;  %vm4357_vm10 = vmor %vm4355_vm6, %vm4356_vm8  ;;  %vm4370_vm11 = vweird.f32 %v9763_v28 }
0x126a   : > { %vm9804_vm12 = vcmp.eq.f32.partialorder %v4374_v55, 8.507059e+37  ;;  %v4377_v61 = vor.u32 1.1754944e-38, %v4376_v0  ;;  %vm9811_vm13 = vcmp.eq.f32.partialorder %v4501_v47, 8.507059e+37 }
0x126b   : > { %v6659_v8 = vpop.eup %6658  ;;  %v6239_v6 = vmul.f32 -1.442695, %v4474_v46  ;;  %v4333_v21 = vadd.f32 %v4329_v11, %v10805_v1  ;;  %v4353_v36 = vmul.f32 %v6657_v41, %v4352_v60 }
0x126c   : > { %v9783_v2 = vpop.eup %6660  ;;  %v9785_v17 = vadd.f32 1.0, %v6659_v8  ;;  %v4436_v58 = vpop.f32.mrf.mxu3 }
0x126d   : > { %v6663_v38 = vpop.eup %6662  ;;  %6666 = vpow2.f32 %v6239_v6  ;;  %v6228_v5 = vmul.f32 -1.442695, %v4333_v21  ;;  %v4437_v12 = vadd.f32 %v4436_v58, %v10806_v39  ;;  %v4354_v14 = vadd.f32 %v6657_v41, %v4353_v36 }
0x126e   : > { %v6665_v49 = vpop.eup %6664  ;;  %6668 = vrcp.f32 %v9785_v17  ;;  %v9792_v45 = vadd.f32 1.0, %v6663_v38  ;;  %v4569_v42 = vpop.f32.mrf.mxu0  ;;  %v4493_v44 = vmul.f32 %v9783_v2, %v9759_v18  ;;  %vm4498_vm15 = vweird.f32 %v9783_v2 }
0x126f   : > { %6670 = vpow2.f32 %v6228_v5  ;;  %v4471_v34 = vadd.f32 %v4465_v15, %v4437_v12  ;;  %v4358_v52 = vsel %vm4357_vm10, %v6657_v41, %v4354_v14  ;;  %v4366_v48 = vmul.f32 %v6665_v49, %v9763_v28  ;;  %vm4499_vm1 = vmor %vm4497_vm9, %vm4498_vm15 }
0x1270   : > { %6672 = vrcp.f32 %v9792_v45  ;;  %v4363_v54 = vsel %vm9778_vm7, %v4362_v25, %v4358_v52  ;;  %v4570_v56 = vadd.f32 %v4569_v42, %v10751_v7  ;;  %v4503_v41 = vand.u32 2147483648, %v9759_v18 }
0x1271   : > { %v4475_v23 = vadd.f32 %v4471_v34, %v10807_v51  ;;  %v4610_v37 = vmul.f32 %v4599_v40, %v4363_v54  ;;  %v4367_v16 = vsub.f32 1.0, %v4366_v48  ;;  %v4494_v26 = vsub.f32 1.0, %v4493_v44 }
0x1272   : > { %vm4371_vm14 = vweird.f32 %v6665_v49  ;;  %v4389_v6 = vand.u32 2147483647, %v9792_v45  ;;  %v4391_v58 = vand.u32 2147483648, %v9792_v45  ;;  %v4504_v25 = vor.u32 1.1754944e-38, %v4503_v41 }
0x1273   : > { %v6667_v46 = vpop.eup %6666  ;;  %v6240_v11 = vmul.f32 -1.442695, %v4475_v23  ;;  %v4614_v60 = vadd.f32 %v4610_v37, %v4570_v56  ;;  %v4368_v40 = vmul.f32 %v6665_v49, %v4367_v16  ;;  %v4495_v21 = vmul.f32 %v9783_v2, %v4494_v26  ;;  %vm4372_vm2 = vmor %vm4370_vm11, %vm4371_vm14 }
0x1274   : > { %v9816_v57 = vpop.eup %6668  ;;  %v9818_v8 = vadd.f32 1.0, %v6667_v46  ;;  %v4516_v55 = vand.u32 2147483647, %v9785_v17  ;;  %vm4385_vm3 = vweird.f32 %v9792_v45  ;;  %vm9840_vm4 = vcmp.eq.f32.partialorder %v4389_v6, 8.507059e+37 }
0x1275   : > { %v6671_v36 = vpop.eup %6670  ;;  %6674 = vpow2.f32 %v6240_v11  ;;  %v4369_v5 = vadd.f32 %v6665_v49, %v4368_v40  ;;  %v4496_v14 = vadd.f32 %v9783_v2, %v4495_v21  ;;  %v4508_v42 = vmul.f32 %v9816_v57, %v9785_v17 }
0x1276   : > { %v6673_v47 = vpop.eup %6672  ;;  %6676 = vrcp.f32 %v9818_v8  ;;  %v9825_v38 = vadd.f32 1.0, %v6671_v36  ;;  %v4572_v12 = vpop.f32.mrf.mxu0  ;;  %vm4512_vm6 = vweird.f32 %v9785_v17  ;;  %v4392_v52 = vor.u32 1.1754944e-38, %v4391_v58 }
0x1277   : > { %6678 = vtanh.f32 %v4614_v60  ;;  %v4381_v15 = vmul.f32 %v6673_v47, %v9792_v45  ;;  %v4373_v0 = vsel %vm4372_vm2, %v6665_v49, %v4369_v5  ;;  %v4500_v18 = vsel %vm4499_vm1, %v9783_v2, %v4496_v14 }
0x1278   : > { %6680 = vrcp.f32 %v9825_v38  ;;  %v4378_v28 = vsel %vm9804_vm12, %v4377_v61, %v4373_v0  ;;  %v4505_v54 = vsel %vm9811_vm13, %v4504_v25, %v4500_v18  ;;  %v4573_v48 = vadd.f32 %v4572_v12, %v10751_v7 }
0x1279   : > { %v4382_v34 = vsub.f32 1.0, %v4381_v15  ;;  %v4611_v49 = vmul.f32 %v9769_v59, %v4378_v28  ;;  %vm4513_vm7 = vweird.f32 %v9816_v57  ;;  %vm9853_vm8 = vcmp.eq.f32.partialorder %v4516_v55, 8.507059e+37 }
0x127a   : > { %vm4386_vm9 = vweird.f32 %v6673_v47  ;;  %v4509_v32 = vsub.f32 1.0, %v4508_v42  ;;  %v4518_v37 = vand.u32 2147483648, %v9785_v17  ;;  %v4622_v26 = vsub.f32 1.0, %v4505_v54  ;;  %vm4514_vm12 = vmor %vm4512_vm6, %vm4513_vm7 }
0x127b   : > { %v6675_v2 = vpop.eup %6674  ;;  %v4383_v56 = vmul.f32 %v6673_v47, %v4382_v34  ;;  %v4615_v61 = vadd.f32 %v4611_v49, %v4573_v48  ;;  %v4404_v59 = vand.u32 2147483647, %v9825_v38  ;;  %v4630_v11 = vmul.f32 %v4505_v54, %v9433_v31  ;;  %vm4387_vm10 = vmor %vm4385_vm3, %vm4386_vm9 }
0x127c   : > { %v9858_v41 = vpop.eup %6676  ;;  %v9860_v16 = vadd.f32 1.0, %v6675_v2  ;;  %v4510_v60 = vmul.f32 %v9816_v57, %v4509_v32  ;;  %v4406_v58 = vand.u32 2147483648, %v9825_v38  ;;  %v4519_v25 = vor.u32 1.1754944e-38, %v4518_v37 }
0x127d   : > { %v6679_v19 = vpop.eup %6678  ;;  %v4384_v46 = vadd.f32 %v6673_v47, %v4383_v56  ;;  %v4523_v40 = vmul.f32 %v9858_v41, %v9818_v8  ;;  %vm4528_vm11 = vweird.f32 %v9858_v41  ;;  %v4531_v45 = vand.u32 2147483647, %v9818_v8 }
0x127e   : > { %v6681_v6 = vpop.eup %6680  ;;  %6682 = vrcp.f32 %v9860_v16  ;;  %v4575_v21 = vpop.f32.mrf.mxu0  ;;  %v4626_v36 = vmul.f32 %v6679_v19, %v4622_v26  ;;  %v4511_v14 = vadd.f32 %v9816_v57, %v4510_v60  ;;  %v4533_v28 = vand.u32 2147483648, %v9818_v8 }
0x127f   : > { %6684 = vtanh.f32 %v4615_v61  ;;  %v4388_v55 = vsel %vm4387_vm10, %v6673_v47, %v4384_v46  ;;  %v4396_v31 = vmul.f32 %v6681_v6, %v9825_v38  ;;  %v4576_v15 = vadd.f32 %v4575_v21, %v10751_v7 }
0x1280   : > { %v4393_v5 = vsel %vm9840_vm4, %v4392_v52, %v4388_v55  ;;  %v9876_v12 = vadd.f32 %v4630_v11, %v4626_v36  ;;  %v4524_v47 = vsub.f32 1.0, %v4523_v40  ;;  %vm4401_vm13 = vweird.f32 %v6681_v6 }
0x1281   : > { %v4612_v42 = vmul.f32 %v9773_v43, %v4393_v5  ;;  %v4397_v0 = vsub.f32 1.0, %v4396_v31  ;;  %v4515_v18 = vsel %vm4514_vm12, %v9816_v57, %v4511_v14  ;;  %vm4400_vm14 = vweird.f32 %v9825_v38 }
0x1282   : > { %v4638_v44 = vsel %vm576_vm0, %v9876_v12, 0.0  ;;  %v4520_v43 = vsel %vm9853_vm8, %v4519_v25, %v4515_v18  ;;  %v4525_v54 = vmul.f32 %v9858_v41, %v4524_v47  ;;  %vm9894_vm15 = vcmp.eq.f32.partialorder %v4404_v59, 8.507059e+37  ;;  %vm4402_vm3 = vmor %vm4400_vm14, %vm4401_vm13 }
0x1283   : > { %v4616_v34 = vadd.f32 %v4612_v42, %v4576_v15  ;;  %4639 = vadd.xlane.f32.xlu2 %v4638_v44  ;;  %v4398_v52 = vmul.f32 %v6681_v6, %v4397_v0  ;;  %v4623_v49 = vsub.f32 1.0, %v4520_v43  ;;  %vm4527_vm1 = vweird.f32 %v9818_v8 }
0x1284   : > { %v6683_v48 = vpop.eup %6682  ;;  %v4526_v56 = vadd.f32 %v9858_v41, %v4525_v54  ;;  %vm4529_vm2 = vmor %vm4527_vm1, %vm4528_vm11  ;;  %v4407_v38 = vor.u32 1.1754944e-38, %v4406_v58  ;;  %v4631_v61 = vmul.f32 %v4520_v43, %v9439_v63  ;;  %v4534_v26 = vor.u32 1.1754944e-38, %v4533_v28 }
0x1285   : > { %v6685_v57 = vpop.eup %6684  ;;  %6686 = vtanh.f32 %v4616_v34  ;;  %v4399_v2 = vadd.f32 %v6681_v6, %v4398_v52  ;;  %v4538_v23 = vmul.f32 %v6683_v48, %v9860_v16  ;;  %vm4532_vm4 = vcmp.eq.f32.partialorder %v4531_v45, 8.507059e+37 }
0x1286   : > { %v4578_v32 = vpop.f32.mrf.mxu0  ;;  %v4627_v37 = vmul.f32 %v6685_v57, %v4623_v49  ;;  %v4530_v8 = vsel %vm4529_vm2, %v9858_v41, %v4526_v56  ;;  %vm4543_vm6 = vweird.f32 %v6683_v48  ;;  %v4548_v63 = vand.u32 2147483648, %v9860_v16 }
0x1287   : > { %v4403_v59 = vsel %vm4402_vm3, %v6681_v6, %v4399_v2  ;;  %v4539_v19 = vsub.f32 1.0, %v4538_v23  ;;  %v4535_v60 = vsel %vm4532_vm4, %v4534_v26, %v4530_v8  ;;  %v4579_v40 = vadd.f32 %v4578_v32, %v10751_v7 }
0x1288   : > { %v4408_v46 = vsel %vm9894_vm15, %v4407_v38, %v4403_v59  ;;  %v9908_v11 = vadd.f32 %v4631_v61, %v4627_v37  ;;  %v4624_v41 = vsub.f32 1.0, %v4535_v60  ;;  %v4546_v58 = vand.u32 2147483647, %v9860_v16 }
0x1289   : > { %v4613_v21 = vmul.f32 %v9776_v3, %v4408_v46  ;;  %v4540_v36 = vmul.f32 %v6683_v48, %v4539_v19  ;;  %vm4542_vm7 = vweird.f32 %v9860_v16  ;;  %v4632_v14 = vmul.f32 %v4535_v60, %v9445_v30 }
0x128a   : > { %v4641_v6 = vsel %vm576_vm0, %v9908_v11, 0.0  ;;  %vm4544_vm8 = vmor %vm4542_vm7, %vm4543_vm6  ;;  %v4549_v45 = vor.u32 1.1754944e-38, %v4548_v63  ;;  %vm4547_vm9 = vcmp.eq.f32.partialorder %v4546_v58, 8.507059e+37 }
0x128b   : > { %v6687_v25 = vpop.eup %6686  ;;  %v4617_v55 = vadd.f32 %v4613_v21, %v4579_v40  ;;  %4642 = vadd.xlane.f32.xlu0 %v4641_v6  ;;  %v4541_v31 = vadd.f32 %v6683_v48, %v4540_v36 }
0x128c   : > { %v4628_v5 = vmul.f32 %v6687_v25, %v4624_v41 }
0x128d   : > { %6688 = vtanh.f32 %v4617_v55  ;;  %v4545_v3 = vsel %vm4544_vm8, %v6683_v48, %v4541_v31 }
0x128e   : > { %v9919_v15 = vadd.f32 %v4632_v14, %v4628_v5  ;;  %v4550_v42 = vsel %vm4547_vm9, %v4549_v45, %v4545_v3 }
0x128f   : > { %v4625_v47 = vsub.f32 1.0, %v4550_v42  ;;  %v4633_v16 = vmul.f32 %v4550_v42, %v9451_v9 }
0x1290   : > { %v4644_v0 = vsel %vm576_vm0, %v9919_v15, 0.0 }
0x1291   : > { %4645 = vadd.xlane.f32.xlu1 %v4644_v0 }
0x1293   : > { %v6689_v44 = vpop.eup %6688 }
0x1294   : > { %v4629_v18 = vmul.f32 %v6689_v44, %v4625_v47 }
0x1296   : > { %v9924_v28 = vadd.f32 %v4633_v16, %v4629_v18 }
0x1298   : > { %v4647_v30 = vsel %vm576_vm0, %v9924_v28, 0.0 }
0x1299   : > { %4648 = vadd.xlane.f32.xlu2 %v4647_v30 }
0x12f6   : > { %v4640_v34 = vpop.xlane.xlu2 %4639 }
0x12f7   : > { %v4650_v52 = vmul.f32 %v4640_v34, %v7109_v20 }
0x12f9   : > { %v4654_v43 = vsub.f32 %v9876_v12, %v4650_v52 }
0x12fb   : > { %v4658_v54 = vmul.f32 %v4654_v43, %v4654_v43 }
0x12fd   : > { %v4662_v48 = vsel %vm576_vm0, %v4658_v54, 0.0 }
0x12fe   : > { %v4643_v17 = vpop.xlane.xlu0 %4642  ;;  %4663 = vadd.xlane.f32.xlu0 %v4662_v48 }
0x12ff   : > { %v4651_v49 = vmul.f32 %v4643_v17, %v7109_v20 }
0x1301   : > { %v4655_v9 = vsub.f32 %v9908_v11, %v4651_v49 }
0x1303   : > { %v4659_v57 = vmul.f32 %v4655_v9, %v4655_v9 }
0x1304   : > { %v4646_v2 = vpop.xlane.xlu1 %4645 }
0x1305   : > { %v4652_v56 = vmul.f32 %v4646_v2, %v7109_v20  ;;  %v4665_v23 = vsel %vm576_vm0, %v4659_v57, 0.0 }
0x1306   : > { %4666 = vadd.xlane.f32.xlu1 %v4665_v23 }
0x1307   : > { %v9936_v38 = vsub.f32 %v9919_v15, %v4652_v56 }
0x1309   : > { %v4660_v32 = vmul.f32 %v9936_v38, %v9936_v38 }
0x130b   : > { %v4668_v37 = vsel %vm576_vm0, %v4660_v32, 0.0 }
0x130c   : > { %4669 = vadd.xlane.f32.xlu2 %v4668_v37  ;;  %v4649_v61 = vpop.xlane.xlu2 %4648 }
0x130d   : > { %v4653_v26 = vmul.f32 %v4649_v61, %v7109_v20 }
0x130f   : > { %v9943_v59 = vsub.f32 %v9924_v28, %v4653_v26 }
0x1311   : > { %v4661_v8 = vmul.f32 %v9943_v59, %v9943_v59 }
0x1313   : > { %v4671_v19 = vsel %vm576_vm0, %v4661_v8, 0.0 }
0x1314   : > { %4672 = vadd.xlane.f32.xlu0 %v4671_v19 }
0x1371   : > { %v4664_v46 = vpop.xlane.xlu0 %4663 }
0x1372   : > { %v4674_v60 = vmul.f32 %v4664_v46, %v7109_v20 }
0x1374   : > { %v4678_v40 = vadd.f32 1e-05, %v4674_v60 }
0x1376   : > { %6690 = vrsqrt.f32 %v4678_v40  ;;  %vm4688_vm11 = vweird.f32 %v4678_v40 }
0x1379   : > { %v4667_v21 = vpop.xlane.xlu1 %4666 }
0x137a   : > { %v4675_v36 = vmul.f32 %v4667_v21, %v7109_v20 }
0x137c   : > { %v6691_v63 = vpop.eup %6690  ;;  %v4679_v6 = vadd.f32 1e-05, %v4675_v36 }
0x137d   : > { %v4683_v41 = vmul.f32 %v6691_v63, %v4678_v40  ;;  %vm4689_vm10 = vweird.f32 %v6691_v63 }
0x137e   : > { %6692 = vrsqrt.f32 %v4679_v6  ;;  %vm4690_vm12 = vmor %vm4688_vm11, %vm4689_vm10  ;;  %vm4698_vm14 = vweird.f32 %v4679_v6 }
0x137f   : > { %v4684_v58 = vmul.f32 %v6691_v63, %v4683_v41  ;;  %v4670_v25 = vpop.xlane.xlu2 %4669 }
0x1380   : > { %v4676_v55 = vmul.f32 %v4670_v25, %v7109_v20  ;;  %v10823_v25 = vld [vmem:[#allocation43_spill] sm:$0xff] }
0x1381   : > { %v4685_v31 = vmul.f32 0.5, %v4684_v58  ;;  %v10822_v58 = vld [vmem:[#allocation45_spill] sm:$0xff] }
0x1382   : > { %v4680_v5 = vadd.f32 1e-05, %v4676_v55 }
0x1383   : > { %v4686_v14 = vsub.f32 1.5, %v4685_v31  ;;  %v10824_v31 = vld [vmem:[#allocation41_spill] sm:$0xff] }
0x1384   : > { %v6693_v3 = vpop.eup %6692  ;;  %6694 = vrsqrt.f32 %v4680_v5  ;;  %vm4708_vm2 = vweird.f32 %v4680_v5 }
0x1385   : > { %v4687_v45 = vmul.f32 %v6691_v63, %v4686_v14  ;;  %v4693_v42 = vmul.f32 %v6693_v3, %v4679_v6  ;;  %vm4699_vm13 = vweird.f32 %v6693_v3  ;;  %v10826_v14 = vld [vmem:[#allocation37_spill] sm:$0xff] }
0x1386   : > { %vm4700_vm15 = vmor %vm4698_vm14, %vm4699_vm13 }
0x1387   : > { %v4691_v0 = vsel %vm4690_vm12, %v6691_v63, %v4687_v45  ;;  %v4694_v47 = vmul.f32 %v6693_v3, %v4693_v42  ;;  %v4673_v44 = vpop.xlane.xlu0 %4672  ;;  %v10820_v63 = vld [vmem:[#allocation71_spill] sm:$0xff] }
0x1388   : > { %v4722_v18 = vmul.f32 %v4691_v0, %v4654_v43  ;;  %v4677_v16 = vmul.f32 %v4673_v44, %v7109_v20  ;;  %v10827_v42 = vld [vmem:[#allocation35_spill] sm:$0xff] }
0x1389   : > { %v4695_v30 = vmul.f32 0.5, %v4694_v47  ;;  %v10828_v47 = vld [vmem:[#allocation33_spill] sm:$0xff] }
0x138a   : > { %v6695_v34 = vpop.eup %6694  ;;  %v4726_v52 = vmul.f32 %v4722_v18, %v8848_v33  ;;  %v4681_v54 = vadd.f32 1e-05, %v4677_v16 }
0x138b   : > { %v4696_v48 = vsub.f32 1.5, %v4695_v30  ;;  %v4703_v17 = vmul.f32 %v6695_v34, %v4680_v5  ;;  %vm4709_vm1 = vweird.f32 %v6695_v34  ;;  %v10825_v5 = vld [vmem:[#allocation39_spill] sm:$0xff] }
0x138c   : > { %v4730_v49 = vadd.f32 %v4726_v52, %v8852_v22  ;;  %6696 = vrsqrt.f32 %v4681_v54  ;;  %vm4710_vm3 = vmor %vm4708_vm2, %vm4709_vm1  ;;  %vm4718_vm6 = vweird.f32 %v4681_v54  ;;  %v10829_v52 = vld [vmem:[#allocation72_spill] sm:$0xff] }
0x138d   : > { %v4697_v57 = vmul.f32 %v6693_v3, %v4696_v48  ;;  %v4704_v2 = vmul.f32 %v6695_v34, %v4703_v17 }
0x138e   : > { %6249 = vmatmul.msk.f32.vlgmr.msrb.gmra.mxu3 %vm576_vm0, %v4730_v49 }
0x138f   : > { %v4701_v43 = vsel %vm4700_vm15, %v6693_v3, %v4697_v57  ;;  %v4705_v56 = vmul.f32 0.5, %v4704_v2  ;;  %5195 = vmatpush.msrb.mxu3 %v8144_v53 }
0x1390   : > { %v4723_v23 = vmul.f32 %v4701_v43, %v4655_v9 }
0x1391   : > { %v4706_v32 = vsub.f32 1.5, %v4705_v56  ;;  %5196 = vmatpush.msrb.mxu3 %v8142_v29 }
0x1392   : > { %v6697_v37 = vpop.eup %6696  ;;  %v4727_v61 = vmul.f32 %v4723_v23, %v8848_v33 }
0x1393   : > { %v4707_v26 = vmul.f32 %v6695_v34, %v4706_v32  ;;  %v4713_v8 = vmul.f32 %v6697_v37, %v4681_v54  ;;  %5197 = vmatpush.msrb.mxu3 %v8138_v62  ;;  %vm4719_vm4 = vweird.f32 %v6697_v37 }
0x1394   : > { %v4731_v19 = vadd.f32 %v4727_v61, %v8852_v22  ;;  %vm4720_vm7 = vmor %vm4718_vm6, %vm4719_vm4 }
0x1395   : > { %v4711_v46 = vsel %vm4710_vm3, %v6695_v34, %v4707_v26  ;;  %v4714_v60 = vmul.f32 %v6697_v37, %v4713_v8  ;;  %5198 = vmatpush.msrb.mxu3 %v8130_v27 }
0x1396   : > { %v4724_v53 = vmul.f32 %v4711_v46, %v9936_v38  ;;  %6250 = vmatmul.msk.f32.gmra.mxu3 %vm576_vm0, %v4731_v19 }
0x1397   : > { %v4715_v29 = vmul.f32 0.5, %v4714_v60  ;;  %5199 = vmatpush.msrb.mxu3 %v8115_v13 }
0x1398   : > { %v4728_v9 = vmul.f32 %v4724_v53, %v8848_v33 }
0x1399   : > { %v4716_v40 = vsub.f32 1.5, %v4715_v29  ;;  %5200 = vmatpush.msrb.mxu3 %v10760_v10 }
0x139a   : > { %v4732_v62 = vadd.f32 %v4728_v9, %v8852_v22 }
0x139b   : > { %v4717_v21 = vmul.f32 %v6697_v37, %v4716_v40  ;;  %5201 = vmatpush.msrb.mxu3 %v10761_v35  ;;  %v10821_v35 = vld [vmem:[#allocation48_spill] sm:$0xff] }
0x139d   : > { %v4721_v27 = vsel %vm4720_vm7, %v6697_v37, %v4717_v21  ;;  %5202 = vmatpush.msrb.mxu3 %v10762_v50 }
0x139e   : > { %v4725_v38 = vmul.f32 %v4721_v27, %v9943_v59  ;;  %6251 = vmatmul.msk.f32.gmra.mxu3 %vm576_vm0, %v4732_v62 }
0x13a0   : > { %v4729_v13 = vmul.f32 %v4725_v38, %v8848_v33 }
0x13a2   : > { %v4733_v36 = vadd.f32 %v4729_v13, %v8852_v22 }
0x13a6   : > { %6252 = vmatmul.msk.f32.gmra.mxu3 %vm576_vm0, %v4733_v36 }
0x1411   : > { %v4763_v10 = vpop.f32.mrf.mxu3 }
0x1412   : > { %v4764_v6 = vadd.f32 %v4763_v10, %v10820_v63 }
0x1414   : > { %v4775_v41 = vmax.f32 %v4764_v6, 0.0 }
0x1416   : > { %6253 = vmatmul.msk.f32.vlgmr.msra.gmra.mxu2 %vm2023_vm5, %v4775_v41 }
0x1417   : > { %5218 = vmatpush.msra.mxu2 %v10821_v35 }
0x1419   : > { %5219 = vmatpush.msra.mxu2 %v10822_v58  ;;  %v4766_v50 = vpop.f32.mrf.mxu3 }
0x141a   : > { %v4767_v59 = vadd.f32 %v4766_v50, %v10820_v63 }
0x141b   : > { %5220 = vmatpush.msra.mxu2 %v10823_v25 }
0x141c   : > { %v4776_v55 = vmax.f32 %v4767_v59, 0.0 }
0x141d   : > { %5221 = vmatpush.msra.mxu2 %v10824_v31 }
0x141e   : > { %6254 = vmatmul.msk.f32.gmra.mxu2 %vm2023_vm5, %v4776_v55 }
0x141f   : > { %5222 = vmatpush.msra.mxu2 %v10825_v5 }
0x1421   : > { %5223 = vmatpush.msra.mxu2 %v10826_v14  ;;  %v4769_v3 = vpop.f32.mrf.mxu3 }
0x1422   : > { %v4770_v45 = vadd.f32 %v4769_v3, %v10820_v63 }
0x1423   : > { %5224 = vmatpush.msra.mxu2 %v10827_v42 }
0x1424   : > { %v4777_v0 = vmax.f32 %v4770_v45, 0.0 }
0x1425   : > { %5225 = vmatpush.msra.mxu2 %v10828_v47 }
0x1426   : > { %6255 = vmatmul.msk.f32.gmra.mxu2 %vm2023_vm5, %v4777_v0 }
0x1429   : > { %v4772_v44 = vpop.f32.mrf.mxu3 }
0x142a   : > { %v4773_v18 = vadd.f32 %v4772_v44, %v10820_v63 }
0x142c   : > { %v4778_v16 = vmax.f32 %v4773_v18, 0.0 }
0x142e   : > { %6256 = vmatmul.msk.f32.gmra.mxu2 %vm2023_vm5, %v4778_v16 }
0x1499   : > { %v4808_v30 = vpop.f32.mrf.mxu2 }
0x149a   : > { %v4820_v34 = vadd.f32 %v4808_v30, %v9876_v12 }
0x149c   : > { %v9992_v54 = vadd.f32 %v4820_v34, %v10829_v52 }
0x149e   : > { %v4828_v48 = vsel %vm576_vm0, %v9992_v54, 0.0 }
0x149f   : > { %4829 = vadd.xlane.f32.xlu1 %v4828_v48 }
0x14a1   : > { %v4811_v17 = vpop.f32.mrf.mxu2 }
0x14a2   : > { %v4821_v49 = vadd.f32 %v4811_v17, %v9908_v11 }
0x14a4   : > { %v9998_v57 = vadd.f32 %v4821_v49, %v10829_v52 }
0x14a6   : > { %v4831_v2 = vsel %vm576_vm0, %v9998_v57, 0.0 }
0x14a7   : > { %4832 = vadd.xlane.f32.xlu2 %v4831_v2  ;;  %v10830_v2 = vld [vmem:[#allocation46_spill] sm:$0xff] }
0x14a9   : > { %v4814_v43 = vpop.f32.mrf.mxu2 }
0x14aa   : > { %v4822_v12 = vadd.f32 %v4814_v43, %v9919_v15 }
0x14ac   : > { %v10004_v56 = vadd.f32 %v4822_v12, %v10829_v52 }
0x14ae   : > { %v4834_v23 = vsel %vm576_vm0, %v10004_v56, 0.0 }
0x14af   : > { %4835 = vadd.xlane.f32.xlu0 %v4834_v23 }
0x14b1   : > { %v4817_v32 = vpop.f32.mrf.mxu2 }
0x14b2   : > { %v4823_v11 = vadd.f32 %v4817_v32, %v9924_v28 }
0x14b4   : > { %v10010_v37 = vadd.f32 %v4823_v11, %v10829_v52  ;;  %v10831_v11 = vld [vmem:[#allocation49_spill] sm:$0xff] }
0x14b6   : > { %v4837_v61 = vsel %vm576_vm0, %v10010_v37, 0.0 }
0x14b7   : > { %4838 = vadd.xlane.f32.xlu1 %v4837_v61 }
0x1512   : > { %v4830_v26 = vpop.xlane.xlu1 %4829 }
0x1513   : > { %v4840_v15 = vmul.f32 %v4830_v26, %v7109_v20 }
0x1515   : > { %v4844_v8 = vsub.f32 %v9992_v54, %v4840_v15 }
0x1517   : > { %v4848_v19 = vmul.f32 %v4844_v8, %v4844_v8 }
0x1519   : > { %v4852_v46 = vsel %vm576_vm0, %v4848_v19, 0.0 }
0x151a   : > { %4853 = vadd.xlane.f32.xlu2 %v4852_v46  ;;  %v4833_v60 = vpop.xlane.xlu2 %4832 }
0x151b   : > { %v4841_v53 = vmul.f32 %v4833_v60, %v7109_v20  ;;  %v6857_v60 = vld [vmem:[%s10471_s7 + $0x18] sm:$0xff] }
0x151d   : > { %v4845_v28 = vsub.f32 %v9998_v57, %v4841_v53 }
0x151f   : > { %v4849_v29 = vmul.f32 %v4845_v28, %v4845_v28 }
0x1521   : > { %v4855_v9 = vsel %vm576_vm0, %v4849_v29, 0.0 }
0x1522   : > { %v4836_v40 = vpop.xlane.xlu0 %4835  ;;  %4856 = vadd.xlane.f32.xlu0 %v4855_v9  ;;  %v6858_v9 = vld [vmem:[%s10471_s7 + $0x10] sm:$0xff] }
0x1523   : > { %v4842_v62 = vmul.f32 %v4836_v40, %v7109_v20 }
0x1525   : > { %v10022_v21 = vsub.f32 %v10004_v56, %v4842_v62 }
0x1527   : > { %v4850_v27 = vmul.f32 %v10022_v21, %v10022_v21 }
0x1529   : > { %v4858_v38 = vsel %vm576_vm0, %v4850_v27, 0.0  ;;  %v6859_v27 = vld [vmem:[%s10471_s7 + $0x8] sm:$0xff] }
0x152a   : > { %4859 = vadd.xlane.f32.xlu1 %v4858_v38  ;;  %v4839_v13 = vpop.xlane.xlu1 %4838 }
0x152b   : > { %v4843_v36 = vmul.f32 %v4839_v13, %v7109_v20 }
0x152d   : > { %v10029_v10 = vsub.f32 %v10010_v37, %v4843_v36 }
0x152f   : > { %v4851_v6 = vmul.f32 %v10029_v10, %v10029_v10 }
0x1531   : > { %v4861_v41 = vsel %vm576_vm0, %v4851_v6, 0.0  ;;  %v6860_v6 = vld [vmem:[%s10471_s7] sm:$0xff] }
0x1532   : > { %4862 = vadd.xlane.f32.xlu2 %v4861_v41 }
0x158d   : > { %v4854_v35 = vpop.xlane.xlu2 %4853 }
0x158e   : > { %v4864_v58 = vmul.f32 %v4854_v35, %v7109_v20 }
0x1590   : > { %v4868_v50 = vadd.f32 1e-05, %v4864_v58 }
0x1592   : > { %6698 = vrsqrt.f32 %v4868_v50  ;;  %vm4878_vm9 = vweird.f32 %v4868_v50 }
0x1595   : > { %v4857_v59 = vpop.xlane.xlu0 %4856 }
0x1596   : > { %v4865_v25 = vmul.f32 %v4857_v59, %v7109_v20 }
0x1598   : > { %v6699_v55 = vpop.eup %6698  ;;  %v4869_v31 = vadd.f32 1e-05, %v4865_v25 }
0x1599   : > { %v4873_v5 = vmul.f32 %v6699_v55, %v4868_v50  ;;  %vm4879_vm8 = vweird.f32 %v6699_v55 }
0x159a   : > { %6700 = vrsqrt.f32 %v4869_v31  ;;  %vm4880_vm10 = vmor %vm4878_vm9, %vm4879_vm8  ;;  %vm4888_vm12 = vweird.f32 %v4869_v31 }
0x159b   : > { %v4874_v14 = vmul.f32 %v6699_v55, %v4873_v5 }
0x159d   : > { %v4875_v3 = vmul.f32 0.5, %v4874_v14  ;;  %v4860_v45 = vpop.xlane.xlu1 %4859 }
0x159e   : > { %v4866_v42 = vmul.f32 %v4860_v45, %v7109_v20 }
0x159f   : > { %v4876_v0 = vsub.f32 1.5, %v4875_v3 }
0x15a0   : > { %v6701_v47 = vpop.eup %6700  ;;  %v4870_v44 = vadd.f32 1e-05, %v4866_v42 }
0x15a1   : > { %v4877_v18 = vmul.f32 %v6699_v55, %v4876_v0  ;;  %v4883_v16 = vmul.f32 %v6701_v47, %v4869_v31  ;;  %vm4889_vm11 = vweird.f32 %v6701_v47  ;;  %v10832_v0 = vld [vmem:[#allocation64_spill] sm:$0xff] }
0x15a2   : > { %6702 = vrsqrt.f32 %v4870_v44  ;;  %vm4890_vm13 = vmor %vm4888_vm12, %vm4889_vm11  ;;  %vm4898_vm15 = vweird.f32 %v4870_v44 }
0x15a3   : > { %v4881_v30 = vsel %vm4880_vm10, %v6699_v55, %v4877_v18  ;;  %v4884_v34 = vmul.f32 %v6701_v47, %v4883_v16 }
0x15a4   : > { %v4912_v48 = vmul.f32 %v4881_v30, %v4844_v8  ;;  %v10835_v30 = vld [vmem:[#allocation59_spill] sm:$0xff] }
0x15a5   : > { %v4885_v17 = vmul.f32 0.5, %v4884_v34  ;;  %v4863_v49 = vpop.xlane.xlu2 %4862  ;;  %v6861_v34 = vld [vmem:[%s10470_s6 + $0x18] sm:$0xff] }
0x15a6   : > { %v4916_v43 = vmul.f32 %v4912_v48, %v10830_v2  ;;  %v4867_v12 = vmul.f32 %v4863_v49, %v7109_v20  ;;  %v10837_v48 = vld [vmem:[#allocation55_spill] sm:$0xff]  ;;  %v10838_v49 = vld [vmem:[#allocation53_spill] sm:$0xff] }
0x15a7   : > { %v4886_v23 = vsub.f32 1.5, %v4885_v17  ;;  %v6862_v17 = vld [vmem:[%s10470_s6 + $0x10] sm:$0xff] }
0x15a8   : > { %v6703_v32 = vpop.eup %6702  ;;  %v4920_v61 = vadd.f32 %v4916_v43, %v10831_v11  ;;  %v4871_v26 = vadd.f32 1e-05, %v4867_v12  ;;  %v6863_v43 = vld [vmem:[%s10470_s6 + $0x8] sm:$0xff] }
0x15a9   : > { %v4887_v15 = vmul.f32 %v6701_v47, %v4886_v23  ;;  %v4893_v19 = vmul.f32 %v6703_v32, %v4870_v44  ;;  %vm4899_vm14 = vweird.f32 %v6703_v32  ;;  %v10834_v44 = vld [vmem:[#allocation61_spill] sm:$0xff]  ;;  %v10839_v23 = vld [vmem:[#allocation51_spill] sm:$0xff] }
0x15aa   : > { %6704 = vrsqrt.f32 %v4871_v26  ;;  %6257 = vmatmul.msk.f32.vlgmr.msrb.gmra.mxu0 %vm576_vm0, %v4920_v61  ;;  %vm4900_vm1 = vmor %vm4898_vm15, %vm4899_vm14  ;;  %vm4908_vm3 = vweird.f32 %v4871_v26  ;;  %v6866_v61 = vld [vmem:[%s10473_s9 + $0x10] sm:$0xff] }
0x15ab   : > { %v4891_v8 = vsel %vm4890_vm13, %v6701_v47, %v4887_v15  ;;  %v4894_v46 = vmul.f32 %v6703_v32, %v4893_v19  ;;  %5431 = vmatpush.msrb.mxu0 %v6857_v60  ;;  %v10833_v47 = vld [vmem:[#allocation62_spill] sm:$0xff]  ;;  %v6870_v60 = vld [vmem:[%s10476_s12 + $0x10] sm:$0xff] }
0x15ac   : > { %v4913_v53 = vmul.f32 %v4891_v8, %v4845_v28  ;;  %v6867_v15 = vld [vmem:[%s10473_s9 + $0x8] sm:$0xff]  ;;  %v6868_v8 = vld [vmem:[%s10473_s9] sm:$0xff] }
0x15ad   : > { %v4895_v29 = vmul.f32 0.5, %v4894_v46  ;;  %5432 = vmatpush.msrb.mxu0 %v6858_v9  ;;  %v6869_v46 = vld [vmem:[%s10476_s12 + $0x18] sm:$0xff] }
0x15ae   : > { %v4917_v40 = vmul.f32 %v4913_v53, %v10830_v2  ;;  %v6871_v53 = vld [vmem:[%s10476_s12 + $0x8] sm:$0xff] }
0x15af   : > { %v4896_v62 = vsub.f32 1.5, %v4895_v29  ;;  %5433 = vmatpush.msrb.mxu0 %v6859_v27  ;;  %v6872_v29 = vld [vmem:[%s10476_s12] sm:$0xff] }
0x15b0   : > { %v6705_v38 = vpop.eup %6704  ;;  %v4921_v13 = vadd.f32 %v4917_v40, %v10831_v11 }
0x15b1   : > { %v4897_v36 = vmul.f32 %v6703_v32, %v4896_v62  ;;  %v4903_v28 = vmul.f32 %v6705_v38, %v4871_v26  ;;  %5434 = vmatpush.msrb.mxu0 %v6860_v6  ;;  %vm4909_vm2 = vweird.f32 %v6705_v38 }
0x15b2   : > { %6258 = vmatmul.msk.f32.gmra.mxu0 %vm576_vm0, %v4921_v13  ;;  %vm4910_vm4 = vmor %vm4908_vm3, %vm4909_vm2 }
0x15b3   : > { %v4901_v41 = vsel %vm4900_vm1, %v6703_v32, %v4897_v36  ;;  %v4904_v35 = vmul.f32 %v6705_v38, %v4903_v28  ;;  %v6864_v32 = vld [vmem:[%s10470_s6] sm:$0xff] }
0x15b4   : > { %v4914_v58 = vmul.f32 %v4901_v41, %v10022_v21 }
0x15b5   : > { %v4905_v50 = vmul.f32 0.5, %v4904_v35 }
0x15b6   : > { %v4918_v59 = vmul.f32 %v4914_v58, %v10830_v2 }
0x15b7   : > { %v4906_v25 = vsub.f32 1.5, %v4905_v50 }
0x15b8   : > { %v4922_v55 = vadd.f32 %v4918_v59, %v10831_v11 }
0x15b9   : > { %v4907_v31 = vmul.f32 %v6705_v38, %v4906_v25 }
0x15ba   : > { %6259 = vmatmul.msk.f32.gmra.mxu0 %vm576_vm0, %v4922_v55 }
0x15bb   : > { %v4911_v5 = vsel %vm4910_vm4, %v6705_v38, %v4907_v31 }
0x15bc   : > { %v4915_v14 = vmul.f32 %v4911_v5, %v10029_v10  ;;  %v10836_v10 = vld [vmem:[#allocation57_spill] sm:$0xff] }
0x15be   : > { %v4919_v3 = vmul.f32 %v4915_v14, %v10830_v2 }
0x15c0   : > { %v4923_v45 = vadd.f32 %v4919_v3, %v10831_v11  ;;  %v6865_v11 = vld [vmem:[%s10473_s9 + $0x18] sm:$0xff] }
0x15c2   : > { %6260 = vmatmul.msk.f32.gmra.mxu0 %vm576_vm0, %v4923_v45 }
0x1627   : > { %v4953_v21 = vpop.f32.mrf.mxu0 }
0x1628   : > { %v4965_v42 = vmul.f32 0.17677669, %v4953_v21 }
0x162a   : > { %6269 = vmatmul.msk.f32.vlgmr.msrb.gmra.mxu1 %vm576_vm0, %v4965_v42 }
0x162b   : > { %5241 = vmatpush.msrb.mxu1 %v10832_v0 }
0x162d   : > { %5242 = vmatpush.msrb.mxu1 %v10833_v47 }
0x162f   : > { %5243 = vmatpush.msrb.mxu1 %v10834_v44  ;;  %v4956_v18 = vpop.f32.mrf.mxu0 }
0x1630   : > { %v4966_v16 = vmul.f32 0.17677669, %v4956_v18 }
0x1631   : > { %5244 = vmatpush.msrb.mxu1 %v10835_v30 }
0x1632   : > { %6278 = vmatmul.msk.f32.vlgmr.msra.gmra.mxu3 %vm576_vm0, %v4966_v16 }
0x1633   : > { %5245 = vmatpush.msrb.mxu1 %v10836_v10  ;;  %5277 = vmatpush.msra.mxu3 %v6861_v34 }
0x1635   : > { %5246 = vmatpush.msrb.mxu1 %v10837_v48  ;;  %5278 = vmatpush.msra.mxu3 %v6862_v17 }
0x1637   : > { %5247 = vmatpush.msrb.mxu1 %v10838_v49  ;;  %v4959_v2 = vpop.f32.mrf.mxu0  ;;  %5279 = vmatpush.msra.mxu3 %v6863_v43 }
0x1638   : > { %v4967_v12 = vmul.f32 0.17677669, %v4959_v2 }
0x1639   : > { %5248 = vmatpush.msrb.mxu1 %v10839_v23  ;;  %5280 = vmatpush.msra.mxu3 %v6864_v32 }
0x163a   : > { %6287 = vmatmul.msk.f32.vlgmr.msrb.gmra.mxu2 %vm576_vm0, %v4967_v12 }
0x163b   : > { %5318 = vmatpush.msrb.mxu2 %v6865_v11 }
0x163d   : > { %5319 = vmatpush.msrb.mxu2 %v6866_v61 }
0x163f   : > { %v4962_v26 = vpop.f32.mrf.mxu0  ;;  %5320 = vmatpush.msrb.mxu2 %v6867_v15 }
0x1640   : > { %v4968_v19 = vmul.f32 0.17677669, %v4962_v26 }
0x1641   : > { %5321 = vmatpush.msrb.mxu2 %v6868_v8 }
0x1642   : > { %6296 = vmatmul.msk.f32.vlgmr.msra.gmra.mxu0 %vm576_vm0, %v4968_v19 }
0x1643   : > { %5767 = vmatpush.msra.mxu0 %v6869_v46 }
0x1645   : > { %5768 = vmatpush.msra.mxu0 %v6870_v60 }
0x1647   : > { %5769 = vmatpush.msra.mxu0 %v6871_v53 }
0x1649   : > { %5770 = vmatpush.msra.mxu0 %v6872_v29 }
0x16a7   : > { %v4989_v9 = vpop.f32.mrf.mxu1 }
0x16a8   : > { %v5061_v40 = vsel %vm2023_vm5, %v4989_v9, -inf }
0x16a9   : > { %v5062_v62 = vrot.slane %v5061_v40, 4 }
0x16ab   : > { %v5063_v27 = vmax.f32 %v5061_v40, %v5062_v62 }
0x16ad   : > { %v5064_v38 = vrot.slane %v5063_v27, 2 }
0x16af   : > { %v5065_v13 = vmax.f32 %v5063_v27, %v5064_v38 }
0x16b1   : > { %v5066_v36 = vrot.slane %v5065_v13, 1 }
0x16b3   : > { %v5067_v28 = vmax.f32 %v5065_v13, %v5066_v36 }
0x16b5   : > { %v5089_v6 = vsub.f32 %v4989_v9, %v5067_v28  ;;  %v5012_v41 = vpop.f32.mrf.mxu3 }
0x16b6   : > { %v5068_v35 = vsel %vm2023_vm5, %v5012_v41, -inf }
0x16b7   : > { %v5093_v58 = vmul.f32 1.442695, %v5089_v6  ;;  %v5069_v50 = vrot.slane %v5068_v35, 4 }
0x16b9   : > { %6706 = vpow2.f32 %v5093_v58  ;;  %v5070_v59 = vmax.f32 %v5068_v35, %v5069_v50 }
0x16bb   : > { %v5071_v25 = vrot.slane %v5070_v59, 2 }
0x16bd   : > { %v5072_v55 = vmax.f32 %v5070_v59, %v5071_v25  ;;  %v5035_v31 = vpop.f32.mrf.mxu2 }
0x16be   : > { %v5075_v5 = vsel %vm2023_vm5, %v5035_v31, -inf }
0x16bf   : > { %v6707_v14 = vpop.eup %6706  ;;  %v5073_v3 = vrot.slane %v5072_v55, 1  ;;  %v5076_v45 = vrot.slane %v5075_v5, 4  ;;  %v5058_v21 = vpop.f32.mrf.mxu0 }
0x16c0   : > { %v5101_v42 = vsel %vm2023_vm5, %v6707_v14, 0.0  ;;  %v5082_v0 = vsel %vm2023_vm5, %v5058_v21, -inf }
0x16c1   : > { %v5102_v47 = vrot.slane %v5101_v42, 4  ;;  %v5074_v44 = vmax.f32 %v5072_v55, %v5073_v3  ;;  %v5077_v18 = vmax.f32 %v5075_v5, %v5076_v45  ;;  %v5083_v16 = vrot.slane %v5082_v0, 4 }
0x16c3   : > { %v5103_v30 = vadd.f32 %v5102_v47, %v5101_v42  ;;  %v5090_v10 = vsub.f32 %v5012_v41, %v5074_v44  ;;  %v5078_v34 = vrot.slane %v5077_v18, 2  ;;  %v5084_v48 = vmax.f32 %v5082_v0, %v5083_v16 }
0x16c5   : > { %v5104_v17 = vrot.slane %v5103_v30, 2  ;;  %v5095_v49 = vmul.f32 1.442695, %v5090_v10  ;;  %v5079_v2 = vmax.f32 %v5077_v18, %v5078_v34  ;;  %v5085_v43 = vrot.slane %v5084_v48, 2 }
0x16c7   : > { %6708 = vpow2.f32 %v5095_v49  ;;  %v5080_v12 = vrot.slane %v5079_v2, 1  ;;  %v5086_v23 = vmax.f32 %v5084_v48, %v5085_v43  ;;  %v5105_v32 = vadd.f32 %v5104_v17, %v5103_v30 }
0x16c9   : > { %v5081_v11 = vmax.f32 %v5079_v2, %v5080_v12  ;;  %v5087_v61 = vrot.slane %v5086_v23, 1  ;;  %v5106_v26 = vrot.slane %v5105_v32, 1 }
0x16cb   : > { %v5091_v15 = vsub.f32 %v5035_v31, %v5081_v11  ;;  %v5088_v19 = vmax.f32 %v5086_v23, %v5087_v61  ;;  %v5107_v8 = vadd.f32 %v5106_v26, %v5105_v32 }
0x16cd   : > { %v6709_v46 = vpop.eup %6708  ;;  %v5097_v60 = vmul.f32 1.442695, %v5091_v15  ;;  %v5092_v53 = vsub.f32 %v5058_v21, %v5088_v19  ;;  %6710 = vrcp.f32 %v5107_v8  ;;  %v6873_v15 = vld [vmem:[%s10474_s10 + $0x18] sm:$0xff]  ;;  %v6874_v19 = vld [vmem:[%s10474_s10 + $0x10] sm:$0xff] }
0x16ce   : > { %v5108_v29 = vsel %vm2023_vm5, %v6709_v46, 0.0 }
0x16cf   : > { %v5109_v9 = vrot.slane %v5108_v29, 4  ;;  %6712 = vpow2.f32 %v5097_v60  ;;  %v5099_v40 = vmul.f32 1.442695, %v5092_v53  ;;  %v6876_v60 = vld [vmem:[%s10474_s10] sm:$0xff] }
0x16d1   : > { %v5110_v62 = vadd.f32 %v5109_v9, %v5108_v29  ;;  %6714 = vpow2.f32 %v5099_v40 }
0x16d3   : > { %v6711_v27 = vpop.eup %6710  ;;  %v5111_v38 = vrot.slane %v5110_v62, 2 }
0x16d4   : > { %v5133_v13 = vmul.f32 %v6711_v27, %v6707_v14  ;;  %v6878_v27 = vld [vmem:[%s10472_s8 + $0x10] sm:$0xff] }
0x16d5   : > { %v6713_v36 = vpop.eup %6712  ;;  %v5112_v28 = vadd.f32 %v5111_v38, %v5110_v62  ;;  %v6877_v62 = vld [vmem:[%s10472_s8 + $0x18] sm:$0xff] }
0x16d6   : > { %v5115_v6 = vsel %vm2023_vm5, %v6713_v36, 0.0  ;;  %v5137_v41 = vadd.f32 1e-08, %v5133_v13  ;;  %v6879_v13 = vld [vmem:[%s10472_s8 + $0x8] sm:$0xff] }
0x16d7   : > { %v6715_v35 = vpop.eup %6714  ;;  %v5116_v58 = vrot.slane %v5115_v6, 4  ;;  %v5113_v50 = vrot.slane %v5112_v28, 1 }
0x16d8   : > { %v5122_v59 = vsel %vm2023_vm5, %v6715_v35, 0.0  ;;  %v5141_v25 = vsel %vm2023_vm5, %v5137_v41, 0.0 }
0x16d9   : > { %v5117_v55 = vadd.f32 %v5116_v58, %v5115_v6  ;;  %v5123_v31 = vrot.slane %v5122_v59, 4  ;;  %5142 = vadd.xlane.f32.xlu0 %v5141_v25  ;;  %v5114_v5 = vadd.f32 %v5113_v50, %v5112_v28  ;;  %v6880_v6 = vld [vmem:[%s10472_s8] sm:$0xff]  ;;  %v6882_v58 = vld [vmem:[%s10475_s11 + $0x10] sm:$0xff]  ;;  %v6883_v50 = vld [vmem:[%s10477_s13 + $0x38] sm:$0xff] }
0x16da   : > { %v6885_v25 = vld [vmem:[%s10477_s13 + $0x30] sm:$0xff] }
0x16db   : > { %v5118_v3 = vrot.slane %v5117_v55, 2  ;;  %v5124_v45 = vadd.f32 %v5123_v31, %v5122_v59  ;;  %6716 = vrcp.f32 %v5114_v5  ;;  %v6884_v59 = vld [vmem:[%s10475_s11 + $0x8] sm:$0xff]  ;;  %v6888_v5 = vld [vmem:[%s10477_s13 + $0x20] sm:$0xff] }
0x16dc   : > { %v6887_v31 = vld [vmem:[%s10477_s13 + $0x28] sm:$0xff] }
0x16dd   : > { %v5125_v14 = vrot.slane %v5124_v45, 2  ;;  %v5119_v21 = vadd.f32 %v5118_v3, %v5117_v55  ;;  %v6886_v55 = vld [vmem:[%s10475_s11] sm:$0xff]  ;;  %v6889_v3 = vld [vmem:[%s10477_s13 + $0x18] sm:$0xff] }
0x16df   : > { %v5120_v42 = vrot.slane %v5119_v21, 1  ;;  %v5126_v0 = vadd.f32 %v5125_v14, %v5124_v45  ;;  %v6890_v45 = vld [vmem:[%s10477_s13 + $0x10] sm:$0xff]  ;;  %v6891_v14 = vld [vmem:[%s10477_s13 + $0x8] sm:$0xff] }
0x16e1   : > { %v6717_v47 = vpop.eup %6716  ;;  %v5121_v44 = vadd.f32 %v5120_v42, %v5119_v21  ;;  %v5127_v18 = vrot.slane %v5126_v0, 1  ;;  %v6892_v21 = vld [vmem:[%s10477_s13] sm:$0xff] }
0x16e2   : > { %v5134_v16 = vmul.f32 %v6717_v47, %v6709_v46  ;;  %v6875_v46 = vld [vmem:[%s10474_s10 + $0x8] sm:$0xff] }
0x16e3   : > { %6718 = vrcp.f32 %v5121_v44  ;;  %v5128_v30 = vadd.f32 %v5127_v18, %v5126_v0 }
0x16e4   : > { %v5138_v10 = vadd.f32 1e-08, %v5134_v16 }
0x16e5   : > { %6720 = vrcp.f32 %v5128_v30 }
0x16e6   : > { %v5144_v34 = vsel %vm2023_vm5, %v5138_v10, 0.0 }
0x16e7   : > { %5145 = vadd.xlane.f32.xlu1 %v5144_v34 }
0x16e9   : > { %v6719_v48 = vpop.eup %6718 }
0x16ea   : > { %v5135_v17 = vmul.f32 %v6719_v48, %v6713_v36 }
0x16eb   : > { %v6721_v49 = vpop.eup %6720 }
0x16ec   : > { %v5139_v2 = vadd.f32 1e-08, %v5135_v17  ;;  %v5136_v43 = vmul.f32 %v6721_v49, %v6715_v35  ;;  %v6881_v35 = vld [vmem:[%s10475_s11 + $0x18] sm:$0xff] }
0x16ee   : > { %v5147_v12 = vsel %vm2023_vm5, %v5139_v2, 0.0  ;;  %v5140_v23 = vadd.f32 1e-08, %v5136_v43 }
0x16ef   : > { %5148 = vadd.xlane.f32.xlu2 %v5147_v12 }
0x16f0   : > { %v5150_v32 = vsel %vm2023_vm5, %v5140_v23, 0.0 }
0x16f1   : > { %5151 = vadd.xlane.f32.xlu0 %v5150_v32 }
0x174c   : > { %v5143_v11 = vpop.xlane.xlu0 %5142 }
0x174d   : > { %6722 = vrcp.f32 %v5143_v11 }
0x1753   : > { %v6723_v61 = vpop.eup %6722 }
0x1754   : > { %v5157_v26 = vmul.f32 %v6723_v61, %v5137_v41 }
0x1756   : > { %6297 = vmatmul.msk.f32.vlgmr.msra.gmra.mxu1 %vm2023_vm5, %v5157_v26 }
0x1757   : > { %5460 = vmatpush.msra.mxu1 %v6873_v15 }
0x1759   : > { %5461 = vmatpush.msra.mxu1 %v6874_v19 }
0x175a   : > { %v5146_v8 = vpop.xlane.xlu1 %5145 }
0x175b   : > { %6724 = vrcp.f32 %v5146_v8  ;;  %5462 = vmatpush.msra.mxu1 %v6875_v46 }
0x175d   : > { %5463 = vmatpush.msra.mxu1 %v6876_v60 }
0x1761   : > { %v6725_v53 = vpop.eup %6724 }
0x1762   : > { %v5158_v29 = vmul.f32 %v6725_v53, %v5138_v10  ;;  %v5149_v9 = vpop.xlane.xlu2 %5148 }
0x1763   : > { %6726 = vrcp.f32 %v5149_v9 }
0x1764   : > { %6298 = vmatmul.msk.f32.vlgmr.msrb.gmra.mxu3 %vm2023_vm5, %v5158_v29  ;;  %v5152_v40 = vpop.xlane.xlu0 %5151 }
0x1765   : > { %6728 = vrcp.f32 %v5152_v40  ;;  %5573 = vmatpush.msrb.mxu3 %v6877_v62 }
0x1767   : > { %5574 = vmatpush.msrb.mxu3 %v6878_v27 }
0x1769   : > { %v6727_v38 = vpop.eup %6726  ;;  %5575 = vmatpush.msrb.mxu3 %v6879_v13 }
0x176a   : > { %v5159_v36 = vmul.f32 %v6727_v38, %v5139_v2 }
0x176b   : > { %v6729_v28 = vpop.eup %6728  ;;  %5576 = vmatpush.msrb.mxu3 %v6880_v6 }
0x176c   : > { %v5160_v41 = vmul.f32 %v6729_v28, %v5140_v23  ;;  %6299 = vmatmul.msk.f32.vlgmr.msra.gmra.mxu2 %vm2023_vm5, %v5159_v36 }
0x176d   : > { %5602 = vmatpush.msra.mxu2 %v6881_v35 }
0x176e   : > { %6300 = vmatmul.msk.f32.vlgmr.msrb.gmra.mxu1 %vm2023_vm5, %v5160_v41 }
0x176f   : > { %5603 = vmatpush.msra.mxu2 %v6882_v58  ;;  %5808 = vmatpush.msrb.mxu1 %v6883_v50 }
0x1771   : > { %5604 = vmatpush.msra.mxu2 %v6884_v59  ;;  %5809 = vmatpush.msrb.mxu1 %v6885_v25 }
0x1773   : > { %5605 = vmatpush.msra.mxu2 %v6886_v55  ;;  %5810 = vmatpush.msrb.mxu1 %v6887_v31 }
0x1774   : > { %6305 = vmatmul.msk.f32.vlgmr.msrb.gmra.mxu2 %vm576_vm0, %v9992_v54 }
0x1775   : > { %5811 = vmatpush.msrb.mxu1 %v6888_v5 }
0x1776   : > { %6317 = vmatmul.msk.f32.vlgmr.msra.gmra.mxu1 %vm576_vm0, %v9992_v54 }
0x1777   : > { %5812 = vmatpush.msrb.mxu1 %v6889_v3 }
0x1779   : > { %5813 = vmatpush.msrb.mxu1 %v6890_v45 }
0x177b   : > { %5814 = vmatpush.msrb.mxu1 %v6891_v14 }
0x177c   : > { %6306 = vmatmul.msk.f32.gmra.mxu2 %vm576_vm0, %v9998_v57 }
0x177d   : > { %5815 = vmatpush.msrb.mxu1 %v6892_v21 }
0x177e   : > { %6318 = vmatmul.msk.f32.gmra.mxu1 %vm576_vm0, %v9998_v57 }
0x1784   : > { %6307 = vmatmul.msk.f32.gmra.mxu2 %vm576_vm0, %v10004_v56 }
0x1786   : > { %6319 = vmatmul.msk.f32.gmra.mxu1 %vm576_vm0, %v10004_v56 }
0x178c   : > { %6308 = vmatmul.msk.f32.gmra.mxu2 %vm576_vm0, %v10010_v37 }
0x178e   : > { %6320 = vmatmul.msk.f32.gmra.mxu1 %vm576_vm0, %v10010_v37 }
0x1794   : > { %6329 = vmatmul.msk.f32.vlgmr.msra.gmra.mxu2 %vm576_vm0, %v9992_v54 }
0x179c   : > { %6330 = vmatmul.msk.f32.gmra.mxu2 %vm576_vm0, %v9998_v57 }
0x17a4   : > { %6331 = vmatmul.msk.f32.gmra.mxu2 %vm576_vm0, %v10004_v56 }
0x17ac   : > { %6332 = vmatmul.msk.f32.gmra.mxu2 %vm576_vm0, %v10010_v37 }
0x17d3   : > { %v5181_v42 = vpop.f32.mrf.mxu1 }
0x17d4   : > { %6301 = vmatmul.msk.f32.vlgmr.msra.gmra.mxu3 %vm576_vm0, %v5181_v42  ;;  %6313 = vmatmul.msk.f32.vlgmr.msrb.gmra.mxu0 %vm576_vm0, %v5181_v42 }
0x17e7   : > { %v5204_v0 = vpop.f32.mrf.mxu3 }
0x17e8   : > { %6302 = vmatmul.msk.f32.gmra.mxu3 %vm576_vm0, %v5204_v0  ;;  %6314 = vmatmul.msk.f32.gmra.mxu0 %vm576_vm0, %v5204_v0 }
0x17eb   : > { %v5250_v44 = vpop.f32.mrf.mxu1 }
0x17ef   : > { %v5227_v47 = vpop.f32.mrf.mxu2 }
0x17f0   : > { %6303 = vmatmul.msk.f32.gmra.mxu3 %vm576_vm0, %v5227_v47  ;;  %6315 = vmatmul.msk.f32.gmra.mxu0 %vm576_vm0, %v5227_v47 }
0x17f3   : > { %v5465_v30 = vpop.f32.mrf.mxu1 }
0x17f7   : > { %v5323_v10 = vpop.f32.mrf.mxu2 }
0x17f8   : > { %6304 = vmatmul.msk.f32.gmra.mxu3 %vm576_vm0, %v5250_v44  ;;  %6316 = vmatmul.msk.f32.gmra.mxu0 %vm576_vm0, %v5250_v44 }
0x17fb   : > { %v5468_v61 = vpop.f32.mrf.mxu1 }
0x17ff   : > { %v5326_v23 = vpop.f32.mrf.mxu2 }
0x1800   : > { %6325 = vmatmul.msk.f32.vlgmr.msrb.gmra.mxu3 %vm576_vm0, %v5181_v42 }
0x1803   : > { %v5471_v27 = vpop.f32.mrf.mxu1 }
0x1807   : > { %v5329_v46 = vpop.f32.mrf.mxu2 }
0x1808   : > { %6326 = vmatmul.msk.f32.gmra.mxu3 %vm576_vm0, %v5204_v0 }
0x180f   : > { %v5332_v50 = vpop.f32.mrf.mxu2 }
0x1810   : > { %6327 = vmatmul.msk.f32.gmra.mxu3 %vm576_vm0, %v5227_v47 }
0x1818   : > { %6328 = vmatmul.msk.f32.gmra.mxu3 %vm576_vm0, %v5250_v44 }
0x1851   : > { %v5436_v18 = vpop.f32.mrf.mxu0 }
0x1852   : > { %v5437_v16 = vadd.f32 %v5436_v18, %v10806_v39  ;;  %v5474_v18 = vpop.f32.mrf.mxu1 }
0x1854   : > { %v5477_v34 = vadd.f32 %v5465_v30, %v5437_v16 }
0x1856   : > { %v5481_v48 = vadd.f32 %v5477_v34, %v10807_v51 }
0x1857   : > { %v5282_v17 = vpop.f32.mrf.mxu3 }
0x1858   : > { %v5283_v49 = vadd.f32 %v5282_v17, %v10804_v24  ;;  %v6321_v2 = vmul.f32 -1.442695, %v5481_v48 }
0x185a   : > { %v5335_v43 = vadd.f32 %v5323_v10, %v5283_v49  ;;  %6730 = vpow2.f32 %v6321_v2  ;;  %v5607_v2 = vpop.f32.mrf.mxu2 }
0x185c   : > { %v5339_v12 = vadd.f32 %v5335_v43, %v10805_v1 }
0x185e   : > { %v6309_v32 = vmul.f32 -1.442695, %v5339_v12 }
0x1860   : > { %6732 = vpow2.f32 %v6309_v32  ;;  %v6731_v11 = vpop.eup %6730 }
0x1861   : > { %v10228_v19 = vadd.f32 1.0, %v6731_v11 }
0x1863   : > { %vm5506_vm11 = vweird.f32 %v10228_v19 }
0x1865   : > { %v5439_v26 = vpop.f32.mrf.mxu0 }
0x1866   : > { %v6733_v15 = vpop.eup %6732  ;;  %v5440_v8 = vadd.f32 %v5439_v26, %v10806_v39 }
0x1867   : > { %v10231_v60 = vadd.f32 1.0, %v6733_v15 }
0x1868   : > { %v5478_v53 = vadd.f32 %v5468_v61, %v5440_v8 }
0x1869   : > { %6734 = vrcp.f32 %v10231_v60  ;;  %vm5364_vm7 = vweird.f32 %v10231_v60  ;;  %v5368_v26 = vand.u32 2147483647, %v10231_v60 }
0x186a   : > { %6736 = vrcp.f32 %v10228_v19  ;;  %v5482_v29 = vadd.f32 %v5478_v53, %v10807_v51 }
0x186b   : > { %v5285_v9 = vpop.f32.mrf.mxu3  ;;  %vm5369_vm10 = vcmp.eq.f32.partialorder %v5368_v26, 8.507059e+37 }
0x186c   : > { %v6322_v40 = vmul.f32 -1.442695, %v5482_v29  ;;  %v5286_v62 = vadd.f32 %v5285_v9, %v10804_v24  ;;  %v5512_v9 = vand.u32 2147483648, %v10228_v19 }
0x186d   : > { %v5442_v38 = vpop.f32.mrf.mxu0 }
0x186e   : > { %6738 = vpow2.f32 %v6322_v40  ;;  %v5336_v13 = vadd.f32 %v5326_v23, %v5286_v62  ;;  %v5443_v36 = vadd.f32 %v5442_v38, %v10806_v39 }
0x186f   : > { %v6735_v28 = vpop.eup %6734 }
0x1870   : > { %v10238_v6 = vpop.eup %6736  ;;  %v5340_v41 = vadd.f32 %v5336_v13, %v10805_v1  ;;  %v5479_v35 = vadd.f32 %v5471_v27, %v5443_v36  ;;  %v5360_v58 = vmul.f32 %v6735_v28, %v10231_v60  ;;  %vm5365_vm6 = vweird.f32 %v6735_v28 }
0x1871   : > { %v5502_v5 = vmul.f32 %v10238_v6, %v10228_v19  ;;  %vm5366_vm8 = vmor %vm5364_vm7, %vm5365_vm6  ;;  %vm5507_vm9 = vweird.f32 %v10238_v6  ;;  %v5608_v27 = vadd.f32 %v5607_v2, %v10750_v4  ;;  %v5510_v36 = vand.u32 2147483647, %v10228_v19 }
0x1872   : > { %v6310_v59 = vmul.f32 -1.442695, %v5340_v41  ;;  %v5483_v25 = vadd.f32 %v5479_v35, %v10807_v51  ;;  %v5361_v55 = vsub.f32 1.0, %v5360_v58  ;;  %vm10273_vm12 = vmor %vm5506_vm11, %vm5507_vm9  ;;  %v5513_v19 = vor.u32 1.1754944e-38, %v5512_v9 }
0x1873   : > { %v5288_v31 = vpop.f32.mrf.mxu3  ;;  %v5503_v16 = vsub.f32 1.0, %v5502_v5  ;;  %vm5511_vm13 = vcmp.eq.f32.partialorder %v5510_v36, 8.507059e+37 }
0x1874   : > { %v6739_v3 = vpop.eup %6738  ;;  %6740 = vpow2.f32 %v6310_v59  ;;  %v6323_v45 = vmul.f32 -1.442695, %v5483_v25  ;;  %v5289_v14 = vadd.f32 %v5288_v31, %v10804_v24  ;;  %v5362_v44 = vmul.f32 %v6735_v28, %v5361_v55  ;;  %v5610_v55 = vpop.f32.mrf.mxu2 }
0x1875   : > { %v10246_v21 = vadd.f32 1.0, %v6739_v3  ;;  %v5445_v42 = vpop.f32.mrf.mxu0  ;;  %v5504_v23 = vmul.f32 %v10238_v6, %v5503_v16 }
0x1876   : > { %6742 = vpow2.f32 %v6323_v45  ;;  %v5337_v0 = vadd.f32 %v5329_v46, %v5289_v14  ;;  %v5446_v47 = vadd.f32 %v5445_v42, %v10806_v39  ;;  %v5363_v49 = vadd.f32 %v6735_v28, %v5362_v44 }
0x1877   : > { %6744 = vrcp.f32 %v10246_v21  ;;  %v5370_v39 = vand.u32 2147483648, %v10231_v60  ;;  %v5505_v29 = vadd.f32 %v10238_v6, %v5504_v23  ;;  %vm5521_vm4 = vweird.f32 %v10246_v21 }
0x1878   : > { %v5341_v30 = vadd.f32 %v5337_v0, %v10805_v1  ;;  %v5480_v10 = vadd.f32 %v5474_v18, %v5446_v47  ;;  %v5367_v46 = vsel %vm5366_vm8, %v6735_v28, %v5363_v49  ;;  %v5525_v9 = vand.u32 2147483647, %v10246_v21 }
0x1879   : > { %v5371_v53 = vor.u32 1.1754944e-38, %v5370_v39  ;;  %v5509_v35 = vsel %vm10273_vm12, %v10238_v6, %v5505_v29 }
0x187a   : > { %v6741_v34 = vpop.eup %6740  ;;  %v6311_v48 = vmul.f32 -1.442695, %v5341_v30  ;;  %v5484_v17 = vadd.f32 %v5480_v10, %v10807_v51  ;;  %v5514_v42 = vsel %vm5511_vm13, %v5513_v19, %v5509_v35  ;;  %v5611_v30 = vadd.f32 %v5610_v55, %v10750_v4 }
0x187b   : > { %v10252_v43 = vadd.f32 1.0, %v6741_v34  ;;  %v5291_v12 = vpop.f32.mrf.mxu3  ;;  %v5372_v60 = vsel %vm5369_vm10, %v5371_v53, %v5367_v46  ;;  %v5631_v2 = vsub.f32 1.0, %v5514_v42  ;;  %vm5526_vm10 = vcmp.eq.f32.partialorder %v5525_v9, 8.507059e+37 }
0x187c   : > { %v6743_v32 = vpop.eup %6742  ;;  %6746 = vpow2.f32 %v6311_v48  ;;  %v6324_v11 = vmul.f32 -1.442695, %v5484_v17  ;;  %v5292_v61 = vadd.f32 %v5291_v12, %v10804_v24  ;;  %v5619_v59 = vmul.f32 %v5608_v27, %v5372_v60  ;;  %v5613_v29 = vpop.f32.mrf.mxu2 }
0x187d   : > { %6748 = vrcp.f32 %v10252_v43  ;;  %v10260_v51 = vadd.f32 1.0, %v6743_v32  ;;  %v10262_v15 = vpop.eup %6744  ;;  %v5385_v6 = vand.u32 2147483648, %v10252_v43  ;;  %v5383_v47 = vand.u32 2147483647, %v10252_v43 }
0x187e   : > { %6750 = vpow2.f32 %v6324_v11  ;;  %v5338_v8 = vadd.f32 %v5332_v50, %v5292_v61  ;;  %v5517_v40 = vmul.f32 %v10262_v15, %v10246_v21  ;;  %vm5379_vm15 = vweird.f32 %v10252_v43 }
0x187f   : > { %6752 = vrcp.f32 %v10260_v51  ;;  %v5386_v17 = vor.u32 1.1754944e-38, %v5385_v6  ;;  %v5639_v12 = vmul.f32 %v5514_v42, %v9992_v54  ;;  %vm5384_vm2 = vcmp.eq.f32.partialorder %v5383_v47, 8.507059e+37 }
0x1880   : > { %v5342_v24 = vadd.f32 %v5338_v8, %v10805_v1  ;;  %v5518_v5 = vsub.f32 1.0, %v5517_v40  ;;  %vm5522_vm3 = vweird.f32 %v10262_v15  ;;  %v5527_v54 = vand.u32 2147483648, %v10246_v21 }
0x1881   : > { %vm10315_vm7 = vmor %vm5521_vm4, %vm5522_vm3  ;;  %v5542_v47 = vand.u32 2147483648, %v10260_v51  ;;  %vm5536_vm13 = vweird.f32 %v10260_v51 }
0x1882   : > { %v6747_v62 = vpop.eup %6746  ;;  %v6312_v38 = vmul.f32 -1.442695, %v5342_v24  ;;  %v5519_v44 = vmul.f32 %v10262_v15, %v5518_v5  ;;  %v5528_v35 = vor.u32 1.1754944e-38, %v5527_v54 }
0x1883   : > { %v6749_v1 = vpop.eup %6748  ;;  %v10278_v28 = vadd.f32 1.0, %v6747_v62  ;;  %v5578_v41 = vpop.f32.mrf.mxu3 }
0x1884   : > { %v6751_v58 = vpop.eup %6750  ;;  %6754 = vpow2.f32 %v6312_v38  ;;  %v5579_v50 = vadd.f32 %v5578_v41, %v10751_v7  ;;  %v5375_v25 = vmul.f32 %v6749_v1, %v10252_v43  ;;  %vm5380_vm14 = vweird.f32 %v6749_v1 }
0x1885   : > { %6756 = vrcp.f32 %v10278_v28  ;;  %v10286_v31 = vadd.f32 1.0, %v6751_v58  ;;  %v10288_v3 = vpop.eup %6752  ;;  %vm5381_vm1 = vmor %vm5379_vm15, %vm5380_vm14  ;;  %v5520_v11 = vadd.f32 %v10262_v15, %v5519_v44  ;;  %v5400_v24 = vand.u32 2147483648, %v10278_v28 }
0x1886   : > { %v5623_v45 = vadd.f32 %v5619_v59, %v5579_v50  ;;  %v5376_v14 = vsub.f32 1.0, %v5375_v25  ;;  %v5532_v18 = vmul.f32 %v10288_v3, %v10260_v51  ;;  %v5398_v27 = vand.u32 2147483647, %v10278_v28 }
0x1887   : > { %6758 = vrcp.f32 %v10286_v31  ;;  %v5524_v36 = vsel %vm10315_vm7, %v10262_v15, %v5520_v11  ;;  %vm5394_vm8 = vweird.f32 %v10278_v28  ;;  %v5614_v50 = vadd.f32 %v5613_v29, %v10750_v4 }
0x1888   : > { %6760 = vtanh.f32 %v5623_v45  ;;  %v5377_v0 = vmul.f32 %v6749_v1, %v5376_v14  ;;  %v5533_v61 = vsub.f32 1.0, %v5532_v18  ;;  %v5401_v59 = vor.u32 1.1754944e-38, %v5400_v24 }
0x1889   : > { %vm5399_vm11 = vcmp.eq.f32.partialorder %v5398_v27, 8.507059e+37  ;;  %v5529_v5 = vsel %vm5526_vm10, %v5528_v35, %v5524_v36  ;;  %vm5537_vm12 = vweird.f32 %v10288_v3  ;;  %v5543_v11 = vor.u32 1.1754944e-38, %v5542_v47 }
0x188a   : > { %v6755_v16 = vpop.eup %6754  ;;  %v5378_v10 = vadd.f32 %v6749_v1, %v5377_v0  ;;  %v5632_v18 = vsub.f32 1.0, %v5529_v5  ;;  %vm10342_vm15 = vmor %vm5536_vm13, %vm5537_vm12  ;;  %vm5551_vm7 = vweird.f32 %v10286_v31 }
0x188b   : > { %v6757_v34 = vpop.eup %6756  ;;  %v10298_v48 = vadd.f32 1.0, %v6755_v16  ;;  %v5581_v49 = vpop.f32.mrf.mxu3  ;;  %v5540_v16 = vand.u32 2147483647, %v10260_v51 }
0x188c   : > { %v5382_v39 = vsel %vm5381_vm1, %v6749_v1, %v5378_v10  ;;  %v5390_v23 = vmul.f32 %v6757_v34, %v10278_v28  ;;  %v5582_v8 = vadd.f32 %v5581_v49, %v10751_v7  ;;  %vm5395_vm6 = vweird.f32 %v6757_v34 }
0x188d   : > { %v10303_v32 = vpop.eup %6758  ;;  %6762 = vrcp.f32 %v10298_v48  ;;  %v5387_v43 = vsel %vm5384_vm2, %v5386_v17, %v5382_v39  ;;  %v5534_v1 = vmul.f32 %v10288_v3, %v5533_v61  ;;  %vm5396_vm9 = vmor %vm5394_vm8, %vm5395_vm6  ;;  %v5415_v44 = vand.u32 2147483648, %v10298_v48 }
0x188e   : > { %v6761_v26 = vpop.eup %6760  ;;  %v5620_v46 = vmul.f32 %v5611_v30, %v5387_v43  ;;  %v5391_v53 = vsub.f32 1.0, %v5390_v23  ;;  %v5547_v21 = vmul.f32 %v10303_v32, %v10286_v31  ;;  %v5413_v17 = vand.u32 2147483647, %v10298_v48 }
0x188f   : > { %v5635_v60 = vmul.f32 %v6761_v26, %v5631_v2  ;;  %v5535_v28 = vadd.f32 %v10288_v3, %v5534_v1  ;;  %v5616_v2 = vpop.f32.mrf.mxu2  ;;  %v5640_v39 = vmul.f32 %v5529_v5, %v9998_v57  ;;  %vm5409_vm1 = vweird.f32 %v10298_v48 }
0x1890   : > { %v5624_v40 = vadd.f32 %v5620_v46, %v5582_v8  ;;  %v5392_v62 = vmul.f32 %v6757_v34, %v5391_v53  ;;  %v5548_v14 = vsub.f32 1.0, %v5547_v21  ;;  %v5416_v61 = vor.u32 1.1754944e-38, %v5415_v44 }
0x1891   : > { %v10319_v13 = vadd.f32 %v5639_v12, %v5635_v60  ;;  %v5539_v51 = vsel %vm10342_vm15, %v10288_v3, %v5535_v28  ;;  %vm5541_vm3 = vcmp.eq.f32.partialorder %v5540_v16, 8.507059e+37  ;;  %v5617_v46 = vadd.f32 %v5616_v2, %v10750_v4 }
0x1892   : > { %6764 = vtanh.f32 %v5624_v40  ;;  %v5393_v41 = vadd.f32 %v6757_v34, %v5392_v62  ;;  %v5549_v23 = vmul.f32 %v10303_v32, %v5548_v14  ;;  %vm5414_vm4 = vcmp.eq.f32.partialorder %v5413_v17, 8.507059e+37 }
0x1893   : > { %v6763_v58 = vpop.eup %6762  ;;  %v5584_v25 = vpop.f32.mrf.mxu3  ;;  %v5647_v55 = vsel %vm576_vm0, %v10319_v13, 0.0  ;;  %v5544_v53 = vsel %vm5541_vm3, %v5543_v11, %v5539_v51  ;;  %vm5552_vm6 = vweird.f32 %v10303_v32  ;;  %v5557_v60 = vand.u32 2147483648, %v10286_v31 }
0x1894   : > { %v5397_v15 = vsel %vm5396_vm9, %v6757_v34, %v5393_v41  ;;  %5648 = vadd.xlane.f32.xlu1 %v5647_v55  ;;  %v5405_v19 = vmul.f32 %v6763_v58, %v10298_v48  ;;  %v5585_v6 = vadd.f32 %v5584_v25, %v10751_v7  ;;  %vm5410_vm14 = vweird.f32 %v6763_v58  ;;  %vm5553_vm8 = vmor %vm5551_vm7, %vm5552_vm6 }
0x1895   : > { %v5402_v45 = vsel %vm5399_vm11, %v5401_v59, %v5397_v15  ;;  %vm5411_vm2 = vmor %vm5409_vm1, %vm5410_vm14  ;;  %v5550_v29 = vadd.f32 %v10303_v32, %v5549_v23  ;;  %v5633_v9 = vsub.f32 1.0, %v5544_v53  ;;  %v5555_v4 = vand.u32 2147483647, %v10286_v31 }
0x1896   : > { %v5621_v42 = vmul.f32 %v5614_v50, %v5402_v45  ;;  %v5406_v0 = vsub.f32 1.0, %v5405_v19  ;;  %v5641_v38 = vmul.f32 %v5544_v53, %v10004_v56  ;;  %v5558_v1 = vor.u32 1.1754944e-38, %v5557_v60 }
0x1897   : > { %v5554_v36 = vsel %vm5553_vm8, %v10303_v32, %v5550_v29  ;;  %vm5556_vm9 = vcmp.eq.f32.partialorder %v5555_v4, 8.507059e+37 }
0x1898   : > { %v6765_v30 = vpop.eup %6764  ;;  %v5625_v10 = vadd.f32 %v5621_v42, %v5585_v6  ;;  %v5407_v34 = vmul.f32 %v6763_v58, %v5406_v0  ;;  %v5559_v21 = vsel %vm5556_vm9, %v5558_v1, %v5554_v36 }
0x1899   : > { %v5636_v12 = vmul.f32 %v6765_v30, %v5632_v18  ;;  %v5634_v35 = vsub.f32 1.0, %v5559_v21  ;;  %v5642_v50 = vmul.f32 %v5559_v21, %v10010_v37 }
0x189a   : > { %6766 = vtanh.f32 %v5625_v10  ;;  %v5408_v43 = vadd.f32 %v6763_v58, %v5407_v34 }
0x189b   : > { %v5587_v26 = vpop.f32.mrf.mxu3  ;;  %v10352_v8 = vadd.f32 %v5640_v39, %v5636_v12 }
0x189c   : > { %v5412_v57 = vsel %vm5411_vm2, %v6763_v58, %v5408_v43  ;;  %v5588_v48 = vadd.f32 %v5587_v26, %v10751_v7 }
0x189d   : > { %v5417_v54 = vsel %vm5414_vm4, %v5416_v61, %v5412_v57  ;;  %v5650_v3 = vsel %vm576_vm0, %v10352_v8, 0.0 }
0x189e   : > { %v5622_v24 = vmul.f32 %v5617_v46, %v5417_v54  ;;  %5651 = vadd.xlane.f32.xlu2 %v5650_v3 }
0x18a0   : > { %v6767_v40 = vpop.eup %6766  ;;  %v5626_v62 = vadd.f32 %v5622_v24, %v5588_v48 }
0x18a1   : > { %v5637_v27 = vmul.f32 %v6767_v40, %v5633_v9 }
0x18a2   : > { %6768 = vtanh.f32 %v5626_v62 }
0x18a3   : > { %v10365_v7 = vadd.f32 %v5641_v38, %v5637_v27 }
0x18a5   : > { %v5653_v41 = vsel %vm576_vm0, %v10365_v7, 0.0 }
0x18a6   : > { %5654 = vadd.xlane.f32.xlu0 %v5653_v41 }
0x18a8   : > { %v6769_v31 = vpop.eup %6768 }
0x18a9   : > { %v5638_v58 = vmul.f32 %v6769_v31, %v5634_v35 }
0x18ab   : > { %v10370_v59 = vadd.f32 %v5642_v50, %v5638_v58 }
0x18ad   : > { %v5656_v56 = vsel %vm576_vm0, %v10370_v59, 0.0 }
0x18ae   : > { %5657 = vadd.xlane.f32.xlu1 %v5656_v56 }
0x1907   : > { %v5649_v32 = vpop.xlane.xlu1 %5648 }
0x1908   : > { %v5659_v25 = vmul.f32 %v5649_v32, %v7109_v20 }
0x190a   : > { %v5663_v55 = vsub.f32 %v10319_v13, %v5659_v25 }
0x190c   : > { %v5667_v15 = vmul.f32 %v5663_v55, %v5663_v55 }
0x190e   : > { %v5671_v19 = vsel %vm576_vm0, %v5667_v15, 0.0 }
0x190f   : > { %5672 = vadd.xlane.f32.xlu2 %v5671_v19 }
0x1911   : > { %v5652_v5 = vpop.xlane.xlu2 %5651 }
0x1912   : > { %v5660_v45 = vmul.f32 %v5652_v5, %v7109_v20 }
0x1914   : > { %v5664_v37 = vsub.f32 %v10352_v8, %v5660_v45 }
0x1916   : > { %v5668_v28 = vmul.f32 %v5664_v37, %v5664_v37 }
0x1918   : > { %v5674_v14 = vsel %vm576_vm0, %v5668_v28, 0.0 }
0x1919   : > { %5675 = vadd.xlane.f32.xlu0 %v5674_v14  ;;  %v5655_v6 = vpop.xlane.xlu0 %5654 }
0x191a   : > { %v5661_v42 = vmul.f32 %v5655_v6, %v7109_v20 }
0x191c   : > { %v10382_v0 = vsub.f32 %v10365_v7, %v5661_v42 }
0x191e   : > { %v5669_v47 = vmul.f32 %v10382_v0, %v10382_v0 }
0x1920   : > { %v5677_v44 = vsel %vm576_vm0, %v5669_v47, 0.0 }
0x1921   : > { %v5658_v18 = vpop.xlane.xlu1 %5657  ;;  %5678 = vadd.xlane.f32.xlu1 %v5677_v44 }
0x1922   : > { %v5662_v16 = vmul.f32 %v5658_v18, %v7109_v20 }
0x1924   : > { %v10389_v30 = vsub.f32 %v10370_v59, %v5662_v16 }
0x1926   : > { %v5670_v10 = vmul.f32 %v10389_v30, %v10389_v30 }
0x1928   : > { %v5680_v34 = vsel %vm576_vm0, %v5670_v10, 0.0 }
0x1929   : > { %5681 = vadd.xlane.f32.xlu2 %v5680_v34 }
0x1982   : > { %v5673_v17 = vpop.xlane.xlu2 %5672 }
0x1983   : > { %v5683_v49 = vmul.f32 %v5673_v17, %v7109_v20 }
0x1985   : > { %v5687_v2 = vadd.f32 1e-05, %v5683_v49 }
0x1987   : > { %6770 = vrsqrt.f32 %v5687_v2  ;;  %vm5697_vm11 = vweird.f32 %v5687_v2 }
0x198c   : > { %v5676_v12 = vpop.xlane.xlu0 %5675 }
0x198d   : > { %v6771_v39 = vpop.eup %6770  ;;  %v5684_v51 = vmul.f32 %v5676_v12, %v7109_v20 }
0x198e   : > { %v5692_v23 = vmul.f32 %v6771_v39, %v5687_v2  ;;  %vm5698_vm10 = vweird.f32 %v6771_v39 }
0x198f   : > { %v5688_v43 = vadd.f32 1e-05, %v5684_v51  ;;  %vm5699_vm12 = vmor %vm5697_vm11, %vm5698_vm10 }
0x1990   : > { %v5693_v11 = vmul.f32 %v6771_v39, %v5692_v23 }
0x1991   : > { %6772 = vrsqrt.f32 %v5688_v43  ;;  %vm5707_vm14 = vweird.f32 %v5688_v43 }
0x1992   : > { %v5694_v61 = vmul.f32 0.5, %v5693_v11 }
0x1994   : > { %v5695_v26 = vsub.f32 1.5, %v5694_v61  ;;  %v5679_v46 = vpop.xlane.xlu1 %5678 }
0x1995   : > { %v5685_v57 = vmul.f32 %v5679_v46, %v7109_v20 }
0x1996   : > { %v5696_v53 = vmul.f32 %v6771_v39, %v5695_v26 }
0x1997   : > { %v6773_v54 = vpop.eup %6772  ;;  %v5689_v3 = vadd.f32 1e-05, %v5685_v57 }
0x1998   : > { %v5700_v29 = vsel %vm5699_vm12, %v6771_v39, %v5696_v53  ;;  %v5702_v48 = vmul.f32 %v6773_v54, %v5688_v43  ;;  %vm5708_vm13 = vweird.f32 %v6773_v54 }
0x1999   : > { %v5731_v24 = vmul.f32 %v5700_v29, %v5663_v55  ;;  %6774 = vrsqrt.f32 %v5689_v3  ;;  %vm5709_vm15 = vmor %vm5707_vm14, %vm5708_vm13  ;;  %vm5717_vm2 = vweird.f32 %v5689_v3 }
0x199a   : > { %v5703_v60 = vmul.f32 %v6773_v54, %v5702_v48 }
0x199b   : > { %v5735_v9 = vmul.f32 %v5731_v24, %v8848_v33 }
0x199c   : > { %v5704_v4 = vmul.f32 0.5, %v5703_v60  ;;  %v5682_v40 = vpop.xlane.xlu2 %5681 }
0x199d   : > { %v5739_v62 = vadd.f32 %v5735_v9, %v8852_v22  ;;  %v5686_v27 = vmul.f32 %v5682_v40, %v7109_v20 }
0x199e   : > { %v5705_v38 = vsub.f32 1.5, %v5704_v4 }
0x199f   : > { %v6775_v36 = vpop.eup %6774  ;;  %v5690_v1 = vadd.f32 1e-05, %v5686_v27  ;;  %6333 = vmatmul.msk.f32.vlgmr.msra.gmra.mxu0 %vm576_vm0, %v5739_v62 }
0x19a0   : > { %v5706_v21 = vmul.f32 %v6773_v54, %v5705_v38  ;;  %v5712_v41 = vmul.f32 %v6775_v36, %v5689_v3  ;;  %vm5718_vm1 = vweird.f32 %v6775_v36 }
0x19a1   : > { %6776 = vrsqrt.f32 %v5690_v1  ;;  %vm5719_vm3 = vmor %vm5717_vm2, %vm5718_vm1  ;;  %vm5727_vm6 = vweird.f32 %v5690_v1 }
0x19a2   : > { %v5710_v35 = vsel %vm5709_vm15, %v6773_v54, %v5706_v21  ;;  %v5713_v31 = vmul.f32 %v6775_v36, %v5712_v41 }
0x19a3   : > { %v5732_v58 = vmul.f32 %v5710_v35, %v5664_v37 }
0x19a4   : > { %v5714_v50 = vmul.f32 0.5, %v5713_v31 }
0x19a5   : > { %v5736_v56 = vmul.f32 %v5732_v58, %v8848_v33 }
0x19a6   : > { %v5715_v32 = vsub.f32 1.5, %v5714_v50 }
0x19a7   : > { %v6777_v20 = vpop.eup %6776  ;;  %v5740_v25 = vadd.f32 %v5736_v56, %v8852_v22 }
0x19a8   : > { %v5716_v55 = vmul.f32 %v6775_v36, %v5715_v32  ;;  %v5722_v15 = vmul.f32 %v6777_v20, %v5690_v1  ;;  %vm5728_vm4 = vweird.f32 %v6777_v20 }
0x19a9   : > { %6334 = vmatmul.msk.f32.gmra.mxu0 %vm576_vm0, %v5740_v25  ;;  %vm5729_vm7 = vmor %vm5727_vm6, %vm5728_vm4 }
0x19aa   : > { %v5720_v19 = vsel %vm5719_vm3, %v6775_v36, %v5716_v55  ;;  %v5723_v5 = vmul.f32 %v6777_v20, %v5722_v15 }
0x19ab   : > { %v5733_v45 = vmul.f32 %v5720_v19, %v10382_v0 }
0x19ac   : > { %v5724_v28 = vmul.f32 0.5, %v5723_v5 }
0x19ad   : > { %v5737_v37 = vmul.f32 %v5733_v45, %v8848_v33 }
0x19ae   : > { %v5725_v14 = vsub.f32 1.5, %v5724_v28 }
0x19af   : > { %v5741_v6 = vadd.f32 %v5737_v37, %v8852_v22 }
0x19b0   : > { %v5726_v42 = vmul.f32 %v6777_v20, %v5725_v14 }
0x19b1   : > { %6335 = vmatmul.msk.f32.gmra.mxu0 %vm576_vm0, %v5741_v6 }
0x19b2   : > { %v5730_v47 = vsel %vm5729_vm7, %v6777_v20, %v5726_v42 }
0x19b3   : > { %v5734_v44 = vmul.f32 %v5730_v47, %v10389_v30 }
0x19b5   : > { %v5738_v18 = vmul.f32 %v5734_v44, %v8848_v33 }
0x19b7   : > { %v5742_v16 = vadd.f32 %v5738_v18, %v8852_v22 }
0x19b9   : > { %6336 = vmatmul.msk.f32.gmra.mxu0 %vm576_vm0, %v5742_v16 }
0x1a1c   : > { %v5772_v0 = vpop.f32.mrf.mxu0 }
0x1a1d   : > { %v5773_v10 = vadd.f32 %v5772_v0, %v10820_v63 }
0x1a1f   : > { %v5784_v34 = vmax.f32 %v5773_v10, 0.0 }
0x1a21   : > { %6337 = vmatmul.msk.f32.vlgmr.msrb.gmra.mxu1 %vm2023_vm5, %v5784_v34 }
0x1a26   : > { %v5775_v17 = vpop.f32.mrf.mxu0 }
0x1a27   : > { %v5776_v49 = vadd.f32 %v5775_v17, %v10820_v63 }
0x1a29   : > { %v5785_v2 = vmax.f32 %v5776_v49, 0.0 }
0x1a2b   : > { %6338 = vmatmul.msk.f32.gmra.mxu1 %vm2023_vm5, %v5785_v2 }
0x1a2e   : > { %v5778_v30 = vpop.f32.mrf.mxu0 }
0x1a2f   : > { %v5779_v33 = vadd.f32 %v5778_v30, %v10820_v63 }
0x1a31   : > { %v5786_v12 = vmax.f32 %v5779_v33, 0.0 }
0x1a33   : > { %6339 = vmatmul.msk.f32.gmra.mxu1 %vm2023_vm5, %v5786_v12 }
0x1a36   : > { %v5781_v22 = vpop.f32.mrf.mxu0 }
0x1a37   : > { %v5782_v39 = vadd.f32 %v5781_v22, %v10820_v63 }
0x1a39   : > { %v5787_v51 = vmax.f32 %v5782_v39, 0.0 }
0x1a3b   : > { %6340 = vmatmul.msk.f32.gmra.mxu1 %vm2023_vm5, %v5787_v51 }
0x1a9e   : > { %v5817_v23 = vpop.f32.mrf.mxu1 }
0x1a9f   : > { %v5829_v43 = vadd.f32 %v5817_v23, %v10319_v13 }
0x1aa1   : > { %v5833_v11 = vadd.f32 %v5829_v43, %v10829_v52 }
0x1aa3   : > { %5837 = vst.msk [vmem:[%s479_s18] sm:$0xff] %vm576_vm0, %v5833_v11 }
0x1aa8   : > { %v5820_v61 = vpop.f32.mrf.mxu1 }
0x1aa9   : > { %v5830_v26 = vadd.f32 %v5820_v61, %v10352_v8 }
0x1aab   : > { %v5834_v46 = vadd.f32 %v5830_v26, %v10829_v52 }
0x1aad   : > { %5838 = vst.msk [vmem:[%s479_s18 + $0x8] sm:$0xff] %vm576_vm0, %v5834_v46 }
0x1ab0   : > { %v5823_v63 = vpop.f32.mrf.mxu1 }
0x1ab1   : > { %v5831_v57 = vadd.f32 %v5823_v63, %v10365_v7 }
0x1ab3   : > { %v5835_v53 = vadd.f32 %v5831_v57, %v10829_v52 }
0x1ab5   : > { %5839 = vst.msk [vmem:[%s479_s18 + $0x10] sm:$0xff] %vm576_vm0, %v5835_v53 }
0x1ab8   : > { %v5826_v13 = vpop.f32.mrf.mxu1 }
0x1ab9   : > { %v5832_v8 = vadd.f32 %v5826_v13, %v10370_v59 }
0x1abb   : > { %v5836_v54 = vadd.f32 %v5832_v8, %v10829_v52 }
0x1abd   : > { %5840 = vst.msk [vmem:[%s479_s18 + $0x18] sm:$0xff] %vm576_vm0, %v5836_v54 }
0x1abe   : > { %6920 = shalt.err (!%p6917_p3)
}
0x1abf   : > { %s6958_s21 = smov 128   ;;  %s6959_s18 = smov 8  }
0x1ac0   : > { %6348 = dma.vmem_to_hbm [thread:$0]  (%p7073_p5), %s5855_s19, 512, %s5857_s22, %s5842_s17, %s6958_s21, %s6958_s21, %s6959_s18  }
0x1ac1 PF: > { %p6354_p4 = scmp.ge.s32.totalorder %s6955_s16, 2  ;;  %s5871_s25 = sand.u32 1, %s6943_s29  }
0x1ac2   : > { %s5872_s26 = scalar_lea.sflag [#allocation3], %s5871_s25 }
0x1ac3   : > { %p6351_p7 = pnand %p6354_p4, %p7077_p6 }
0x1ac5   : > { %p6352_p8 = pneg %p6351_p7 }
0x1ac7   : > { %6938 = dma.done.wait (%p6352_p8), %s5872_s26, 512  }
0x1ac8   : > { %6940 = vsyncadd (%p6352_p8), %s5872_s26, 4294966784  ;;  %s10847_s16 = sld [smem:[#allocation6_spill]]  ;;  %s10850_s29 = smov %s6947_s30 }
0x1ac9   : > { %s10848_s24 = sld [smem:[#allocation5_spill]] }
0x1aca   : > { %s10849_s15 = sld [smem:[#allocation7_spill]] }
0x1ace   : > { %p24_p9 = scmp.ge.s32.totalorder %s10847_s16, 4  }
0x1acf   : > { %s10851_s30 = smov %s10848_s24 }
0x1ad0   :  { %26 = sbr.rel (!%p24_p9) target bundleno = 5 (0x5), region = 114 }
0x1ad5   :  { %5878 = vsyncpa [#allocation3], 1 }
0x1ad6   :  { %5880 = vsyncpa [#allocation3 + $0x1], 1 }

</bundles_post_ra>
